<compile_context>
chip_gen: v6e
topology: v6e:2x2x1
jax: 0.10.0
libtpu: 0.0.40
codegen_flags: <defaults>
</compile_context>

<pallas_src>
import jax
import jax.numpy as jnp
from jax import lax
from jax.experimental import pallas as pl
from jax.experimental.pallas import tpu as pltpu

HIDDEN = 128
LN_EPS = 1e-5

_VMEM = pl.BlockSpec(memory_space=pltpu.MemorySpace.VMEM)
_SMEM = pl.BlockSpec(memory_space=pltpu.MemorySpace.SMEM)
_ANY = pl.BlockSpec(memory_space=pl.ANY)


def _lstm_gates(gates, H):
    # PyTorch gate order: i, f, g, o
    i = jax.nn.sigmoid(gates[:, 0 * H:1 * H])
    f = jax.nn.sigmoid(gates[:, 1 * H:2 * H])
    g = jnp.tanh(gates[:, 2 * H:3 * H])
    o = jax.nn.sigmoid(gates[:, 3 * H:4 * H])
    return i, f, g, o


# ----------------------------------------------------------------------------
# Single fused kernel: 2x BiLSTM + last-timestep head
# ----------------------------------------------------------------------------
def fused_kernel(x_ref,                                  # (T, B) f32, SMEM
                 w_ih1f_ref, b1f_ref, w_hh1f_ref,        # (1,4H) f32, (1,4H) f32, (H,4H) bf16
                 w_ih1b_ref, b1b_ref, w_hh1b_ref,
                 w2pack_hbm,                             # (5H,4H) bf16, HBM (ANY)
                 b2f_ref, b2b_ref,                       # (1,4H) f32
                 gamma_ref, beta_ref,                    # (1,2H) f32
                 w1_ref, bb1_ref, w2_ref, bb2_ref,       # head, f32
                 w3_ref, bb3_ref,                        # (1,64), (1,1) f32
                 out_ref,                                # (B,1) f32
                 h1hist_ref,                             # (T*B, 2H) f32 scratch
                 w2pack_vmem,                            # (5H,4H) bf16 scratch
                 dma_sem):
    T, B = x_ref.shape
    H = HIDDEN
    f32 = jnp.float32
    bf16 = jnp.bfloat16

    # ---- Kick off the DMA of the layer-2 matmul weights (w_ih2f | w_hh2f |
    # w_ih2b packed as rows) so it overlaps the layer-1 recurrence.
    cp = pltpu.make_async_copy(w2pack_hbm, w2pack_vmem, dma_sem)
    cp.start()

    # ---- Hoisted weight loads (layer 1).
    w1f_in = w_ih1f_ref[...]
    b1f = b1f_ref[...]
    w1b_in = w_ih1b_ref[...]
    b1b = b1b_ref[...]
    w_hh1f = w_hh1f_ref[...]
    w_hh1b = w_hh1b_ref[...]

    def gx1(t, w_row, b_row):
        # (B, 4H) layer-1 input projection at timestep t, built from SMEM
        # scalars (D_in == 1 -> pure scalar-broadcast VPU work, bias folded).
        return jnp.concatenate(
            [x_ref[t, b] * w_row + b_row for b in range(B)], axis=0)

    zeros = jnp.zeros((B, H), f32)
    h1f, c1f = zeros, zeros
    h1b, c1b = zeros, zeros
    h1b_first = zeros          # layer-1 backward output at time T-1 (first step)

    # ---- Layer 1: fwd (time t) and bwd (time T-1-t) recurrences interleaved
    # in one fully-unrolled loop; hidden states stashed to a dense scratch.
    for t in range(T):
        tr = T - 1 - t

        gates_f = gx1(t, w1f_in, b1f) + jnp.dot(
            h1f.astype(bf16), w_hh1f, preferred_element_type=f32)
        i, f, g, o = _lstm_gates(gates_f, H)
        c1f = f * c1f + i * g
        h1f = o * jnp.tanh(c1f)

        gates_b = gx1(tr, w1b_in, b1b) + jnp.dot(
            h1b.astype(bf16), w_hh1b, preferred_element_type=f32)
        i, f, g, o = _lstm_gates(gates_b, H)
        c1b = f * c1b + i * g
        h1b = o * jnp.tanh(c1b)
        if t == 0:
            h1b_first = h1b

        # stash layer-1 outputs (time-major rows) for the deferred projection
        h1hist_ref[t * B:(t + 1) * B, 0:H] = h1f
        h1hist_ref[tr * B:(tr + 1) * B, H:2 * H] = h1b

    # ---- Layer-2 weights must be resident from here on.
    cp.wait()
    w_ih2f = w2pack_vmem[0:2 * H, :]
    w_hh2f = w2pack_vmem[2 * H:3 * H, :]
    w_ih2b = w2pack_vmem[3 * H:5 * H, :]

    # ---- Layer-2 forward input projection for ALL timesteps as one
    # (T*B, 2H) @ (2H, 4H) bf16 matmul (K=256), plus bias.
    h1_all = h1hist_ref[...].astype(bf16)                         # (T*B, 2H)
    gx2f = jnp.dot(h1_all, w_ih2f, preferred_element_type=f32) + b2f_ref[...]

    # ---- Layer 2 forward recurrence: only the final hidden state is consumed.
    h2f, c2f = zeros, zeros
    for t in range(T):
        gates = gx2f[t * B:(t + 1) * B, :] + jnp.dot(
            h2f.astype(bf16), w_hh2f, preferred_element_type=f32)
        i, f, g, o = _lstm_gates(gates, H)
        c2f = f * c2f + i * g
        h2f = o * jnp.tanh(c2f)

    # ---- Layer 2 backward: the model only reads its output at t = T-1, which
    # is its FIRST step from a zero state -> h0 @ W_hh == 0 and f * c0 == 0.
    # Single fused K=256 dot on [h1_fwd[T-1] | h1_bwd[T-1]].
    h1_last = jnp.concatenate([h1f, h1b_first], axis=-1).astype(bf16)
    gates_b2 = (jnp.dot(h1_last, w_ih2b, preferred_element_type=f32)
                + b2b_ref[...])
    i2 = jax.nn.sigmoid(gates_b2[:, 0 * H:1 * H])
    g2 = jnp.tanh(gates_b2[:, 2 * H:3 * H])
    o2 = jax.nn.sigmoid(gates_b2[:, 3 * H:4 * H])
    h2b = o2 * jnp.tanh(i2 * g2)

    # ---- Head (f32): LayerNorm(256) -> fc1 + leaky_relu -> fc2 + relu -> out
    # (dropout layers are inference-mode identity)
    xl = jnp.concatenate([h2f, h2b], axis=-1)                     # (B, 256)
    mean = jnp.mean(xl, axis=-1, keepdims=True)
    var = jnp.mean((xl - mean) ** 2, axis=-1, keepdims=True)
    xn = (xl - mean) * lax.rsqrt(var + LN_EPS)
    xn = xn * gamma_ref[...] + beta_ref[...]

    h_1 = jnp.dot(xn, w1_ref[...], preferred_element_type=jnp.float32) + bb1_ref[...]
    h_1 = jnp.where(h_1 >= 0, h_1, 0.01 * h_1)                    # leaky_relu
    h_2 = jnp.dot(h_1, w2_ref[...], preferred_element_type=jnp.float32) + bb2_ref[...]
    h_2 = jnp.maximum(h_2, 0.0)                                   # relu
    # final Linear(64 -> 1) as a VPU multiply + lane reduce (avoids an N=1 matmul)
    out_ref[...] = (jnp.sum(h_2 * w3_ref[...], axis=-1, keepdims=True)
                    + bb3_ref[...])


def forward(x, params):
    """x: (B, T, 1) batch-first -> (B,) prediction."""
    B, T, _ = x.shape
    H = HIDDEN
    bf16 = jnp.bfloat16
    x_tb = jnp.transpose(x.reshape(B, T), (1, 0))                 # (T, B) for SMEM

    p1f, p1b = params["lstm1"]["fwd"], params["lstm1"]["bwd"]
    p2f, p2b = params["lstm2"]["fwd"], params["lstm2"]["bwd"]
    hd = params["head"]

    # bf16 pack of the big layer-2 matmul weights; stays in HBM (pl.ANY) and is
    # async-copied into VMEM inside the kernel, overlapping layer-1 compute.
    w2pack = jnp.concatenate(
        [p2f["w_ih"], p2f["w_hh"], p2b["w_ih"]], axis=0).astype(bf16)  # (5H, 4H)

    args = (x_tb,
            p1f["w_ih"], p1f["b"], p1f["w_hh"].astype(bf16),
            p1b["w_ih"], p1b["b"], p1b["w_hh"].astype(bf16),
            w2pack, p2f["b"], p2b["b"],
            hd["gamma"], hd["beta"],
            hd["w1"], hd["b1"], hd["w2"], hd["b2"],
            jnp.transpose(hd["w3"]), hd["b3"])
    in_specs = [_SMEM] + [_VMEM] * 6 + [_ANY] + [_VMEM] * 10

    y = pl.pallas_call(
        fused_kernel,
        out_shape=jax.ShapeDtypeStruct((B, 1), jnp.float32),
        in_specs=in_specs,
        out_specs=_VMEM,
        scratch_shapes=[pltpu.VMEM((T * B, 2 * H), jnp.float32),   # h1 history
                        pltpu.VMEM((5 * H, 4 * H), bf16),          # layer-2 weights
                        pltpu.SemaphoreType.DMA],
        compiler_params=pltpu.CompilerParams(
            vmem_limit_bytes=32 * 1024 * 1024),
    )(*args)
    return jnp.squeeze(y, axis=-1)


# ----------------------------------------------------------------------------
# Pure-JAX f32 reference (full bidirectional computation) for correctness check
# ----------------------------------------------------------------------------
def _lstm_dir_ref(x_tm, p):
    H = p["w_hh"].shape[0]
    B = x_tm.shape[1]

    def step(carry, x_t):
        h, c = carry
        gates = x_t @ p["w_ih"] + h @ p["w_hh"] + p["b"]
        i = jax.nn.sigmoid(gates[:, 0 * H:1 * H])
        f = jax.nn.sigmoid(gates[:, 1 * H:2 * H])
        g = jnp.tanh(gates[:, 2 * H:3 * H])
        o = jax.nn.sigmoid(gates[:, 3 * H:4 * H])
        c_new = f * c + i * g
        h_new = o * jnp.tanh(c_new)
        return (h_new, c_new), h_new

    init = (jnp.zeros((B, H), jnp.float32), jnp.zeros((B, H), jnp.float32))
    _, ys = lax.scan(step, init, x_tm)
    return ys


def _bilstm_ref(x, lp):
    x_tm = jnp.transpose(x, (1, 0, 2))
    fwd = _lstm_dir_ref(x_tm, lp["fwd"])
    bwd = _lstm_dir_ref(x_tm[::-1], lp["bwd"])[::-1]
    return jnp.transpose(jnp.concatenate([fwd, bwd], axis=-1), (1, 0, 2))


def forward_ref(x, params):
    h = _bilstm_ref(_bilstm_ref(x, params["lstm1"]), params["lstm2"])
    xl = h[:, -1, :]
    p = params["head"]
    mean = jnp.mean(xl, axis=-1, keepdims=True)
    var = jnp.mean((xl - mean) ** 2, axis=-1, keepdims=True)
    xn = (xl - mean) * lax.rsqrt(var + LN_EPS) * p["gamma"] + p["beta"]
    h1 = xn @ p["w1"] + p["b1"]
    h1 = jnp.where(h1 >= 0, h1, 0.01 * h1)
    h2 = jnp.maximum(h1 @ p["w2"] + p["b2"], 0.0)
    y = h2 @ p["w3"] + p["b3"]
    return jnp.squeeze(y)


# ----------------------------------------------------------------------------
# Deterministic synthetic parameters (shapes match the PyTorch module; weights
# stored pre-transposed as (D, 4H)/(H, 4H) with b_ih + b_hh folded)
# ----------------------------------------------------------------------------
def _init_lstm_dir(key, d_in, h):
    k1, k2, k3 = jax.random.split(key, 3)
    s = 1.0 / (h ** 0.5)
    return dict(
        w_ih=jax.random.uniform(k1, (d_in, 4 * h), jnp.float32, -s, s),
        w_hh=jax.random.uniform(k2, (h, 4 * h), jnp.float32, -s, s),
        b=jax.random.uniform(k3, (1, 4 * h), jnp.float32, -s, s),
    )


def init_params(key):
    keys = jax.random.split(key, 10)
    h = HIDDEN
    params = {
        "lstm1": {"fwd": _init_lstm_dir(keys[0], 1, h),
                  "bwd": _init_lstm_dir(keys[1], 1, h)},
        "lstm2": {"fwd": _init_lstm_dir(keys[2], 2 * h, h),
                  "bwd": _init_lstm_dir(keys[3], 2 * h, h)},
    }
    s1, s2, s3 = 1.0 / (256 ** 0.5), 1.0 / (128 ** 0.5), 1.0 / (64 ** 0.5)
    params["head"] = dict(
        gamma=jnp.ones((1, 256), jnp.float32),
        beta=jnp.zeros((1, 256), jnp.float32),
        w1=jax.random.uniform(keys[4], (256, 128), jnp.float32, -s1, s1),
        b1=jax.random.uniform(keys[5], (1, 128), jnp.float32, -s1, s1),
        w2=jax.random.uniform(keys[6], (128, 64), jnp.float32, -s2, s2),
        b2=jax.random.uniform(keys[7], (1, 64), jnp.float32, -s2, s2),
        w3=jax.random.uniform(keys[8], (64, 1), jnp.float32, -s3, s3),
        b3=jax.random.uniform(keys[9], (1, 1), jnp.float32, -s3, s3),
    )
    return params


if __name__ == "__main__":
    key = jax.random.PRNGKey(0)
    pkey, xkey = jax.random.split(key)
    params = init_params(pkey)

    B, T = 2, 8                      # batch=2, sequence length=8, feature=1
    x = jax.random.normal(xkey, (B, T, 1), jnp.float32)

    out = jax.jit(forward)(x, params)
    out = jax.block_until_ready(out)

    ref = forward_ref(x, params)
    assert out.shape == (B,), out.shape
    assert bool(jnp.all(jnp.isfinite(out)))
    # slightly looser tolerance: kernel uses bf16 matmul operands (f32 accum)
    assert bool(jnp.allclose(out, ref, atol=2e-2, rtol=2e-2)), (out, ref)

    print("KERNEL_OK")
</pallas_src>

<mosaic_0001>
module attributes {stable_mosaic.version = 11 : i64} {
  func.func @fused_kernel(%arg0: memref<8x2xf32, #tpu.memory_space<smem>>, %arg1: memref<1x512xf32, #tpu.memory_space<vmem>>, %arg2: memref<1x512xf32, #tpu.memory_space<vmem>>, %arg3: memref<128x512xbf16, #tpu.memory_space<vmem>>, %arg4: memref<1x512xf32, #tpu.memory_space<vmem>>, %arg5: memref<1x512xf32, #tpu.memory_space<vmem>>, %arg6: memref<128x512xbf16, #tpu.memory_space<vmem>>, %arg7: memref<640x512xbf16, #tpu.memory_space<any>>, %arg8: memref<1x512xf32, #tpu.memory_space<vmem>>, %arg9: memref<1x512xf32, #tpu.memory_space<vmem>>, %arg10: memref<1x256xf32, #tpu.memory_space<vmem>>, %arg11: memref<1x256xf32, #tpu.memory_space<vmem>>, %arg12: memref<256x128xf32, #tpu.memory_space<vmem>>, %arg13: memref<1x128xf32, #tpu.memory_space<vmem>>, %arg14: memref<128x64xf32, #tpu.memory_space<vmem>>, %arg15: memref<1x64xf32, #tpu.memory_space<vmem>>, %arg16: memref<1x64xf32, #tpu.memory_space<vmem>>, %arg17: memref<1x1xf32, #tpu.memory_space<vmem>>, %arg18: memref<2x1xf32, #tpu.memory_space<vmem>>, %arg19: memref<16x256xf32, #tpu.memory_space<vmem>>, %arg20: memref<640x512xbf16, #tpu.memory_space<vmem>>, %arg21: memref<!tpu.dma_semaphore, #tpu.memory_space<semaphore_mem>>) attributes {dimension_semantics = [], scalar_prefetch = 0 : i64, scratch_operands = 3 : i64, tpu.core_type = #tpu.core_type<tc>} {
    tpu.enqueue_dma source(%arg7 : memref<640x512xbf16, #tpu.memory_space<any>>) target(%arg20 : memref<640x512xbf16, #tpu.memory_space<vmem>>) target_semaphore(%arg21 : memref<!tpu.dma_semaphore, #tpu.memory_space<semaphore_mem>>)
    %c0 = arith.constant 0 : index
    %c0_0 = arith.constant 0 : index
    %0 = vector.load %arg1[%c0, %c0_0] : memref<1x512xf32, #tpu.memory_space<vmem>>, vector<1x512xf32>
    %c0_1 = arith.constant 0 : index
    %c0_2 = arith.constant 0 : index
    %1 = vector.load %arg2[%c0_1, %c0_2] : memref<1x512xf32, #tpu.memory_space<vmem>>, vector<1x512xf32>
    %c0_3 = arith.constant 0 : index
    %c0_4 = arith.constant 0 : index
    %2 = vector.load %arg4[%c0_3, %c0_4] : memref<1x512xf32, #tpu.memory_space<vmem>>, vector<1x512xf32>
    %c0_5 = arith.constant 0 : index
    %c0_6 = arith.constant 0 : index
    %3 = vector.load %arg5[%c0_5, %c0_6] : memref<1x512xf32, #tpu.memory_space<vmem>>, vector<1x512xf32>
    %c0_7 = arith.constant 0 : index
    %c0_8 = arith.constant 0 : index
    %4 = vector.load %arg3[%c0_7, %c0_8] : memref<128x512xbf16, #tpu.memory_space<vmem>>, vector<128x512xbf16>
    %c0_9 = arith.constant 0 : index
    %c0_10 = arith.constant 0 : index
    %5 = vector.load %arg6[%c0_9, %c0_10] : memref<128x512xbf16, #tpu.memory_space<vmem>>, vector<128x512xbf16>
    %cst = arith.constant 0.000000e+00 : f32
    %6 = vector.broadcast %cst : f32 to vector<2x128xf32>
    %c0_11 = arith.constant 0 : index
    %c0_12 = arith.constant 0 : index
    %7 = memref.load %arg0[%c0_11, %c0_12] : memref<8x2xf32, #tpu.memory_space<smem>>
    %8 = vector.broadcast %7 : f32 to vector<1x512xf32>
    %9 = arith.mulf %8, %0 : vector<1x512xf32>
    %10 = arith.addf %9, %1 : vector<1x512xf32>
    %c0_13 = arith.constant 0 : index
    %c1 = arith.constant 1 : index
    %11 = memref.load %arg0[%c0_13, %c1] : memref<8x2xf32, #tpu.memory_space<smem>>
    %12 = vector.broadcast %11 : f32 to vector<1x512xf32>
    %13 = arith.mulf %12, %0 : vector<1x512xf32>
    %14 = arith.addf %13, %1 : vector<1x512xf32>
    %15 = tpu.concatenate %10, %14 in 0 : vector<1x512xf32>, vector<1x512xf32> -> vector<2x512xf32>
    %16 = arith.truncf %6 : vector<2x128xf32> to vector<2x128xbf16>
    %cst_14 = arith.constant dense<0.000000e+00> : vector<2x512xf32>
    %17 = tpu.matmul %16, %4, %cst_14 {dimension_numbers = #tpu.dot_dimension_numbers<[1], [0], [0], [1], [0, 0, 1, 1], [], []>} : vector<2x128xbf16>, vector<128x512xbf16>, vector<2x512xf32> -> vector<2x512xf32>
    %18 = arith.addf %15, %17 : vector<2x512xf32>
    %19 = vector.extract_strided_slice %18 {offsets = [0, 0], sizes = [2, 128], strides = [1, 1]} : vector<2x512xf32> to vector<2x128xf32>
    %20 = arith.negf %19 : vector<2x128xf32>
    %21 = math.exp %20 : vector<2x128xf32>
    %cst_15 = arith.constant 1.000000e+00 : f32
    %22 = vector.broadcast %cst_15 : f32 to vector<2x128xf32>
    %23 = arith.addf %22, %21 : vector<2x128xf32>
    %24 = arith.divf %22, %23 : vector<2x128xf32>
    %25 = vector.extract_strided_slice %18 {offsets = [0, 128], sizes = [2, 128], strides = [1, 1]} : vector<2x512xf32> to vector<2x128xf32>
    %26 = arith.negf %25 : vector<2x128xf32>
    %27 = math.exp %26 : vector<2x128xf32>
    %cst_16 = arith.constant 1.000000e+00 : f32
    %28 = vector.broadcast %cst_16 : f32 to vector<2x128xf32>
    %29 = arith.addf %28, %27 : vector<2x128xf32>
    %30 = arith.divf %28, %29 : vector<2x128xf32>
    %31 = vector.extract_strided_slice %18 {offsets = [0, 256], sizes = [2, 128], strides = [1, 1]} : vector<2x512xf32> to vector<2x128xf32>
    %32 = math.tanh %31 : vector<2x128xf32>
    %33 = vector.extract_strided_slice %18 {offsets = [0, 384], sizes = [2, 128], strides = [1, 1]} : vector<2x512xf32> to vector<2x128xf32>
    %34 = arith.negf %33 : vector<2x128xf32>
    %35 = math.exp %34 : vector<2x128xf32>
    %cst_17 = arith.constant 1.000000e+00 : f32
    %36 = vector.broadcast %cst_17 : f32 to vector<2x128xf32>
    %37 = arith.addf %36, %35 : vector<2x128xf32>
    %38 = arith.divf %36, %37 : vector<2x128xf32>
    %39 = arith.mulf %30, %6 : vector<2x128xf32>
    %40 = arith.mulf %24, %32 : vector<2x128xf32>
    %41 = arith.addf %39, %40 : vector<2x128xf32>
    %42 = math.tanh %41 : vector<2x128xf32>
    %43 = arith.mulf %38, %42 : vector<2x128xf32>
    %c7 = arith.constant 7 : index
    %c0_18 = arith.constant 0 : index
    %44 = memref.load %arg0[%c7, %c0_18] : memref<8x2xf32, #tpu.memory_space<smem>>
    %45 = vector.broadcast %44 : f32 to vector<1x512xf32>
    %46 = arith.mulf %45, %2 : vector<1x512xf32>
    %47 = arith.addf %46, %3 : vector<1x512xf32>
    %c7_19 = arith.constant 7 : index
    %c1_20 = arith.constant 1 : index
    %48 = memref.load %arg0[%c7_19, %c1_20] : memref<8x2xf32, #tpu.memory_space<smem>>
    %49 = vector.broadcast %48 : f32 to vector<1x512xf32>
    %50 = arith.mulf %49, %2 : vector<1x512xf32>
    %51 = arith.addf %50, %3 : vector<1x512xf32>
    %52 = tpu.concatenate %47, %51 in 0 : vector<1x512xf32>, vector<1x512xf32> -> vector<2x512xf32>
    %53 = arith.truncf %6 : vector<2x128xf32> to vector<2x128xbf16>
    %cst_21 = arith.constant dense<0.000000e+00> : vector<2x512xf32>
    %54 = tpu.matmul %53, %5, %cst_21 {dimension_numbers = #tpu.dot_dimension_numbers<[1], [0], [0], [1], [0, 0, 1, 1], [], []>} : vector<2x128xbf16>, vector<128x512xbf16>, vector<2x512xf32> -> vector<2x512xf32>
    %55 = arith.addf %52, %54 : vector<2x512xf32>
    %56 = vector.extract_strided_slice %55 {offsets = [0, 0], sizes = [2, 128], strides = [1, 1]} : vector<2x512xf32> to vector<2x128xf32>
    %57 = arith.negf %56 : vector<2x128xf32>
    %58 = math.exp %57 : vector<2x128xf32>
    %cst_22 = arith.constant 1.000000e+00 : f32
    %59 = vector.broadcast %cst_22 : f32 to vector<2x128xf32>
    %60 = arith.addf %59, %58 : vector<2x128xf32>
    %61 = arith.divf %59, %60 : vector<2x128xf32>
    %62 = vector.extract_strided_slice %55 {offsets = [0, 128], sizes = [2, 128], strides = [1, 1]} : vector<2x512xf32> to vector<2x128xf32>
    %63 = arith.negf %62 : vector<2x128xf32>
    %64 = math.exp %63 : vector<2x128xf32>
    %cst_23 = arith.constant 1.000000e+00 : f32
    %65 = vector.broadcast %cst_23 : f32 to vector<2x128xf32>
    %66 = arith.addf %65, %64 : vector<2x128xf32>
    %67 = arith.divf %65, %66 : vector<2x128xf32>
    %68 = vector.extract_strided_slice %55 {offsets = [0, 256], sizes = [2, 128], strides = [1, 1]} : vector<2x512xf32> to vector<2x128xf32>
    %69 = math.tanh %68 : vector<2x128xf32>
    %70 = vector.extract_strided_slice %55 {offsets = [0, 384], sizes = [2, 128], strides = [1, 1]} : vector<2x512xf32> to vector<2x128xf32>
    %71 = arith.negf %70 : vector<2x128xf32>
    %72 = math.exp %71 : vector<2x128xf32>
    %cst_24 = arith.constant 1.000000e+00 : f32
    %73 = vector.broadcast %cst_24 : f32 to vector<2x128xf32>
    %74 = arith.addf %73, %72 : vector<2x128xf32>
    %75 = arith.divf %73, %74 : vector<2x128xf32>
    %76 = arith.mulf %67, %6 : vector<2x128xf32>
    %77 = arith.mulf %61, %69 : vector<2x128xf32>
    %78 = arith.addf %76, %77 : vector<2x128xf32>
    %79 = math.tanh %78 : vector<2x128xf32>
    %80 = arith.mulf %75, %79 : vector<2x128xf32>
    %c0_25 = arith.constant 0 : index
    %c0_26 = arith.constant 0 : index
    %81 = vector.load %arg19[%c0_25, %c0_26] : memref<16x256xf32, #tpu.memory_space<vmem>>, vector<2x128xf32>
    tpu.vector_store %arg19[%c0_25, %c0_26], %43 {strides = array<i32>} : memref<16x256xf32, #tpu.memory_space<vmem>>, vector<2x128xf32>,
    %c14 = arith.constant 14 : index
    %c128 = arith.constant 128 : index
    %82 = vector.load %arg19[%c14, %c128] : memref<16x256xf32, #tpu.memory_space<vmem>>, vector<2x128xf32>
    tpu.vector_store %arg19[%c14, %c128], %80 {strides = array<i32>} : memref<16x256xf32, #tpu.memory_space<vmem>>, vector<2x128xf32>,
    %c1_27 = arith.constant 1 : index
    %c0_28 = arith.constant 0 : index
    %83 = memref.load %arg0[%c1_27, %c0_28] : memref<8x2xf32, #tpu.memory_space<smem>>
    %84 = vector.broadcast %83 : f32 to vector<1x512xf32>
    %85 = arith.mulf %84, %0 : vector<1x512xf32>
    %86 = arith.addf %85, %1 : vector<1x512xf32>
    %c1_29 = arith.constant 1 : index
    %c1_30 = arith.constant 1 : index
    %87 = memref.load %arg0[%c1_29, %c1_30] : memref<8x2xf32, #tpu.memory_space<smem>>
    %88 = vector.broadcast %87 : f32 to vector<1x512xf32>
    %89 = arith.mulf %88, %0 : vector<1x512xf32>
    %90 = arith.addf %89, %1 : vector<1x512xf32>
    %91 = tpu.concatenate %86, %90 in 0 : vector<1x512xf32>, vector<1x512xf32> -> vector<2x512xf32>
    %92 = arith.truncf %43 : vector<2x128xf32> to vector<2x128xbf16>
    %cst_31 = arith.constant dense<0.000000e+00> : vector<2x512xf32>
    %93 = tpu.matmul %92, %4, %cst_31 {dimension_numbers = #tpu.dot_dimension_numbers<[1], [0], [0], [1], [0, 0, 1, 1], [], []>} : vector<2x128xbf16>, vector<128x512xbf16>, vector<2x512xf32> -> vector<2x512xf32>
    %94 = arith.addf %91, %93 : vector<2x512xf32>
    %95 = vector.extract_strided_slice %94 {offsets = [0, 0], sizes = [2, 128], strides = [1, 1]} : vector<2x512xf32> to vector<2x128xf32>
    %96 = arith.negf %95 : vector<2x128xf32>
    %97 = math.exp %96 : vector<2x128xf32>
    %cst_32 = arith.constant 1.000000e+00 : f32
    %98 = vector.broadcast %cst_32 : f32 to vector<2x128xf32>
    %99 = arith.addf %98, %97 : vector<2x128xf32>
    %100 = arith.divf %98, %99 : vector<2x128xf32>
    %101 = vector.extract_strided_slice %94 {offsets = [0, 128], sizes = [2, 128], strides = [1, 1]} : vector<2x512xf32> to vector<2x128xf32>
    %102 = arith.negf %101 : vector<2x128xf32>
    %103 = math.exp %102 : vector<2x128xf32>
    %cst_33 = arith.constant 1.000000e+00 : f32
    %104 = vector.broadcast %cst_33 : f32 to vector<2x128xf32>
    %105 = arith.addf %104, %103 : vector<2x128xf32>
    %106 = arith.divf %104, %105 : vector<2x128xf32>
    %107 = vector.extract_strided_slice %94 {offsets = [0, 256], sizes = [2, 128], strides = [1, 1]} : vector<2x512xf32> to vector<2x128xf32>
    %108 = math.tanh %107 : vector<2x128xf32>
    %109 = vector.extract_strided_slice %94 {offsets = [0, 384], sizes = [2, 128], strides = [1, 1]} : vector<2x512xf32> to vector<2x128xf32>
    %110 = arith.negf %109 : vector<2x128xf32>
    %111 = math.exp %110 : vector<2x128xf32>
    %cst_34 = arith.constant 1.000000e+00 : f32
    %112 = vector.broadcast %cst_34 : f32 to vector<2x128xf32>
    %113 = arith.addf %112, %111 : vector<2x128xf32>
    %114 = arith.divf %112, %113 : vector<2x128xf32>
    %115 = arith.mulf %106, %41 : vector<2x128xf32>
    %116 = arith.mulf %100, %108 : vector<2x128xf32>
    %117 = arith.addf %115, %116 : vector<2x128xf32>
    %118 = math.tanh %117 : vector<2x128xf32>
    %119 = arith.mulf %114, %118 : vector<2x128xf32>
    %c6 = arith.constant 6 : index
    %c0_35 = arith.constant 0 : index
    %120 = memref.load %arg0[%c6, %c0_35] : memref<8x2xf32, #tpu.memory_space<smem>>
    %121 = vector.broadcast %120 : f32 to vector<1x512xf32>
    %122 = arith.mulf %121, %2 : vector<1x512xf32>
    %123 = arith.addf %122, %3 : vector<1x512xf32>
    %c6_36 = arith.constant 6 : index
    %c1_37 = arith.constant 1 : index
    %124 = memref.load %arg0[%c6_36, %c1_37] : memref<8x2xf32, #tpu.memory_space<smem>>
    %125 = vector.broadcast %124 : f32 to vector<1x512xf32>
    %126 = arith.mulf %125, %2 : vector<1x512xf32>
    %127 = arith.addf %126, %3 : vector<1x512xf32>
    %128 = tpu.concatenate %123, %127 in 0 : vector<1x512xf32>, vector<1x512xf32> -> vector<2x512xf32>
    %129 = arith.truncf %80 : vector<2x128xf32> to vector<2x128xbf16>
    %cst_38 = arith.constant dense<0.000000e+00> : vector<2x512xf32>
    %130 = tpu.matmul %129, %5, %cst_38 {dimension_numbers = #tpu.dot_dimension_numbers<[1], [0], [0], [1], [0, 0, 1, 1], [], []>} : vector<2x128xbf16>, vector<128x512xbf16>, vector<2x512xf32> -> vector<2x512xf32>
    %131 = arith.addf %128, %130 : vector<2x512xf32>
    %132 = vector.extract_strided_slice %131 {offsets = [0, 0], sizes = [2, 128], strides = [1, 1]} : vector<2x512xf32> to vector<2x128xf32>
    %133 = arith.negf %132 : vector<2x128xf32>
    %134 = math.exp %133 : vector<2x128xf32>
    %cst_39 = arith.constant 1.000000e+00 : f32
    %135 = vector.broadcast %cst_39 : f32 to vector<2x128xf32>
    %136 = arith.addf %135, %134 : vector<2x128xf32>
    %137 = arith.divf %135, %136 : vector<2x128xf32>
    %138 = vector.extract_strided_slice %131 {offsets = [0, 128], sizes = [2, 128], strides = [1, 1]} : vector<2x512xf32> to vector<2x128xf32>
    %139 = arith.negf %138 : vector<2x128xf32>
    %140 = math.exp %139 : vector<2x128xf32>
    %cst_40 = arith.constant 1.000000e+00 : f32
    %141 = vector.broadcast %cst_40 : f32 to vector<2x128xf32>
    %142 = arith.addf %141, %140 : vector<2x128xf32>
    %143 = arith.divf %141, %142 : vector<2x128xf32>
    %144 = vector.extract_strided_slice %131 {offsets = [0, 256], sizes = [2, 128], strides = [1, 1]} : vector<2x512xf32> to vector<2x128xf32>
    %145 = math.tanh %144 : vector<2x128xf32>
    %146 = vector.extract_strided_slice %131 {offsets = [0, 384], sizes = [2, 128], strides = [1, 1]} : vector<2x512xf32> to vector<2x128xf32>
    %147 = arith.negf %146 : vector<2x128xf32>
    %148 = math.exp %147 : vector<2x128xf32>
    %cst_41 = arith.constant 1.000000e+00 : f32
    %149 = vector.broadcast %cst_41 : f32 to vector<2x128xf32>
    %150 = arith.addf %149, %148 : vector<2x128xf32>
    %151 = arith.divf %149, %150 : vector<2x128xf32>
    %152 = arith.mulf %143, %78 : vector<2x128xf32>
    %153 = arith.mulf %137, %145 : vector<2x128xf32>
    %154 = arith.addf %152, %153 : vector<2x128xf32>
    %155 = math.tanh %154 : vector<2x128xf32>
    %156 = arith.mulf %151, %155 : vector<2x128xf32>
    %c2 = arith.constant 2 : index
    %c0_42 = arith.constant 0 : index
    %157 = vector.load %arg19[%c2, %c0_42] : memref<16x256xf32, #tpu.memory_space<vmem>>, vector<2x128xf32>
    tpu.vector_store %arg19[%c2, %c0_42], %119 {strides = array<i32>} : memref<16x256xf32, #tpu.memory_space<vmem>>, vector<2x128xf32>,
    %c12 = arith.constant 12 : index
    %c128_43 = arith.constant 128 : index
    %158 = vector.load %arg19[%c12, %c128_43] : memref<16x256xf32, #tpu.memory_space<vmem>>, vector<2x128xf32>
    tpu.vector_store %arg19[%c12, %c128_43], %156 {strides = array<i32>} : memref<16x256xf32, #tpu.memory_space<vmem>>, vector<2x128xf32>,
    %c2_44 = arith.constant 2 : index
    %c0_45 = arith.constant 0 : index
    %159 = memref.load %arg0[%c2_44, %c0_45] : memref<8x2xf32, #tpu.memory_space<smem>>
    %160 = vector.broadcast %159 : f32 to vector<1x512xf32>
    %161 = arith.mulf %160, %0 : vector<1x512xf32>
    %162 = arith.addf %161, %1 : vector<1x512xf32>
    %c2_46 = arith.constant 2 : index
    %c1_47 = arith.constant 1 : index
    %163 = memref.load %arg0[%c2_46, %c1_47] : memref<8x2xf32, #tpu.memory_space<smem>>
    %164 = vector.broadcast %163 : f32 to vector<1x512xf32>
    %165 = arith.mulf %164, %0 : vector<1x512xf32>
    %166 = arith.addf %165, %1 : vector<1x512xf32>
    %167 = tpu.concatenate %162, %166 in 0 : vector<1x512xf32>, vector<1x512xf32> -> vector<2x512xf32>
    %168 = arith.truncf %119 : vector<2x128xf32> to vector<2x128xbf16>
    %cst_48 = arith.constant dense<0.000000e+00> : vector<2x512xf32>
    %169 = tpu.matmul %168, %4, %cst_48 {dimension_numbers = #tpu.dot_dimension_numbers<[1], [0], [0], [1], [0, 0, 1, 1], [], []>} : vector<2x128xbf16>, vector<128x512xbf16>, vector<2x512xf32> -> vector<2x512xf32>
    %170 = arith.addf %167, %169 : vector<2x512xf32>
    %171 = vector.extract_strided_slice %170 {offsets = [0, 0], sizes = [2, 128], strides = [1, 1]} : vector<2x512xf32> to vector<2x128xf32>
    %172 = arith.negf %171 : vector<2x128xf32>
    %173 = math.exp %172 : vector<2x128xf32>
    %cst_49 = arith.constant 1.000000e+00 : f32
    %174 = vector.broadcast %cst_49 : f32 to vector<2x128xf32>
    %175 = arith.addf %174, %173 : vector<2x128xf32>
    %176 = arith.divf %174, %175 : vector<2x128xf32>
    %177 = vector.extract_strided_slice %170 {offsets = [0, 128], sizes = [2, 128], strides = [1, 1]} : vector<2x512xf32> to vector<2x128xf32>
    %178 = arith.negf %177 : vector<2x128xf32>
    %179 = math.exp %178 : vector<2x128xf32>
    %cst_50 = arith.constant 1.000000e+00 : f32
    %180 = vector.broadcast %cst_50 : f32 to vector<2x128xf32>
    %181 = arith.addf %180, %179 : vector<2x128xf32>
    %182 = arith.divf %180, %181 : vector<2x128xf32>
    %183 = vector.extract_strided_slice %170 {offsets = [0, 256], sizes = [2, 128], strides = [1, 1]} : vector<2x512xf32> to vector<2x128xf32>
    %184 = math.tanh %183 : vector<2x128xf32>
    %185 = vector.extract_strided_slice %170 {offsets = [0, 384], sizes = [2, 128], strides = [1, 1]} : vector<2x512xf32> to vector<2x128xf32>
    %186 = arith.negf %185 : vector<2x128xf32>
    %187 = math.exp %186 : vector<2x128xf32>
    %cst_51 = arith.constant 1.000000e+00 : f32
    %188 = vector.broadcast %cst_51 : f32 to vector<2x128xf32>
    %189 = arith.addf %188, %187 : vector<2x128xf32>
    %190 = arith.divf %188, %189 : vector<2x128xf32>
    %191 = arith.mulf %182, %117 : vector<2x128xf32>
    %192 = arith.mulf %176, %184 : vector<2x128xf32>
    %193 = arith.addf %191, %192 : vector<2x128xf32>
    %194 = math.tanh %193 : vector<2x128xf32>
    %195 = arith.mulf %190, %194 : vector<2x128xf32>
    %c5 = arith.constant 5 : index
    %c0_52 = arith.constant 0 : index
    %196 = memref.load %arg0[%c5, %c0_52] : memref<8x2xf32, #tpu.memory_space<smem>>
    %197 = vector.broadcast %196 : f32 to vector<1x512xf32>
    %198 = arith.mulf %197, %2 : vector<1x512xf32>
    %199 = arith.addf %198, %3 : vector<1x512xf32>
    %c5_53 = arith.constant 5 : index
    %c1_54 = arith.constant 1 : index
    %200 = memref.load %arg0[%c5_53, %c1_54] : memref<8x2xf32, #tpu.memory_space<smem>>
    %201 = vector.broadcast %200 : f32 to vector<1x512xf32>
    %202 = arith.mulf %201, %2 : vector<1x512xf32>
    %203 = arith.addf %202, %3 : vector<1x512xf32>
    %204 = tpu.concatenate %199, %203 in 0 : vector<1x512xf32>, vector<1x512xf32> -> vector<2x512xf32>
    %205 = arith.truncf %156 : vector<2x128xf32> to vector<2x128xbf16>
    %cst_55 = arith.constant dense<0.000000e+00> : vector<2x512xf32>
    %206 = tpu.matmul %205, %5, %cst_55 {dimension_numbers = #tpu.dot_dimension_numbers<[1], [0], [0], [1], [0, 0, 1, 1], [], []>} : vector<2x128xbf16>, vector<128x512xbf16>, vector<2x512xf32> -> vector<2x512xf32>
    %207 = arith.addf %204, %206 : vector<2x512xf32>
    %208 = vector.extract_strided_slice %207 {offsets = [0, 0], sizes = [2, 128], strides = [1, 1]} : vector<2x512xf32> to vector<2x128xf32>
    %209 = arith.negf %208 : vector<2x128xf32>
    %210 = math.exp %209 : vector<2x128xf32>
    %cst_56 = arith.constant 1.000000e+00 : f32
    %211 = vector.broadcast %cst_56 : f32 to vector<2x128xf32>
    %212 = arith.addf %211, %210 : vector<2x128xf32>
    %213 = arith.divf %211, %212 : vector<2x128xf32>
    %214 = vector.extract_strided_slice %207 {offsets = [0, 128], sizes = [2, 128], strides = [1, 1]} : vector<2x512xf32> to vector<2x128xf32>
    %215 = arith.negf %214 : vector<2x128xf32>
    %216 = math.exp %215 : vector<2x128xf32>
    %cst_57 = arith.constant 1.000000e+00 : f32
    %217 = vector.broadcast %cst_57 : f32 to vector<2x128xf32>
    %218 = arith.addf %217, %216 : vector<2x128xf32>
    %219 = arith.divf %217, %218 : vector<2x128xf32>
    %220 = vector.extract_strided_slice %207 {offsets = [0, 256], sizes = [2, 128], strides = [1, 1]} : vector<2x512xf32> to vector<2x128xf32>
    %221 = math.tanh %220 : vector<2x128xf32>
    %222 = vector.extract_strided_slice %207 {offsets = [0, 384], sizes = [2, 128], strides = [1, 1]} : vector<2x512xf32> to vector<2x128xf32>
    %223 = arith.negf %222 : vector<2x128xf32>
    %224 = math.exp %223 : vector<2x128xf32>
    %cst_58 = arith.constant 1.000000e+00 : f32
    %225 = vector.broadcast %cst_58 : f32 to vector<2x128xf32>
    %226 = arith.addf %225, %224 : vector<2x128xf32>
    %227 = arith.divf %225, %226 : vector<2x128xf32>
    %228 = arith.mulf %219, %154 : vector<2x128xf32>
    %229 = arith.mulf %213, %221 : vector<2x128xf32>
    %230 = arith.addf %228, %229 : vector<2x128xf32>
    %231 = math.tanh %230 : vector<2x128xf32>
    %232 = arith.mulf %227, %231 : vector<2x128xf32>
    %c4 = arith.constant 4 : index
    %c0_59 = arith.constant 0 : index
    %233 = vector.load %arg19[%c4, %c0_59] : memref<16x256xf32, #tpu.memory_space<vmem>>, vector<2x128xf32>
    tpu.vector_store %arg19[%c4, %c0_59], %195 {strides = array<i32>} : memref<16x256xf32, #tpu.memory_space<vmem>>, vector<2x128xf32>,
    %c10 = arith.constant 10 : index
    %c128_60 = arith.constant 128 : index
    %234 = vector.load %arg19[%c10, %c128_60] : memref<16x256xf32, #tpu.memory_space<vmem>>, vector<2x128xf32>
    tpu.vector_store %arg19[%c10, %c128_60], %232 {strides = array<i32>} : memref<16x256xf32, #tpu.memory_space<vmem>>, vector<2x128xf32>,
    %c3 = arith.constant 3 : index
    %c0_61 = arith.constant 0 : index
    %235 = memref.load %arg0[%c3, %c0_61] : memref<8x2xf32, #tpu.memory_space<smem>>
    %236 = vector.broadcast %235 : f32 to vector<1x512xf32>
    %237 = arith.mulf %236, %0 : vector<1x512xf32>
    %238 = arith.addf %237, %1 : vector<1x512xf32>
    %c3_62 = arith.constant 3 : index
    %c1_63 = arith.constant 1 : index
    %239 = memref.load %arg0[%c3_62, %c1_63] : memref<8x2xf32, #tpu.memory_space<smem>>
    %240 = vector.broadcast %239 : f32 to vector<1x512xf32>
    %241 = arith.mulf %240, %0 : vector<1x512xf32>
    %242 = arith.addf %241, %1 : vector<1x512xf32>
    %243 = tpu.concatenate %238, %242 in 0 : vector<1x512xf32>, vector<1x512xf32> -> vector<2x512xf32>
    %244 = arith.truncf %195 : vector<2x128xf32> to vector<2x128xbf16>
    %cst_64 = arith.constant dense<0.000000e+00> : vector<2x512xf32>
    %245 = tpu.matmul %244, %4, %cst_64 {dimension_numbers = #tpu.dot_dimension_numbers<[1], [0], [0], [1], [0, 0, 1, 1], [], []>} : vector<2x128xbf16>, vector<128x512xbf16>, vector<2x512xf32> -> vector<2x512xf32>
    %246 = arith.addf %243, %245 : vector<2x512xf32>
    %247 = vector.extract_strided_slice %246 {offsets = [0, 0], sizes = [2, 128], strides = [1, 1]} : vector<2x512xf32> to vector<2x128xf32>
    %248 = arith.negf %247 : vector<2x128xf32>
    %249 = math.exp %248 : vector<2x128xf32>
    %cst_65 = arith.constant 1.000000e+00 : f32
    %250 = vector.broadcast %cst_65 : f32 to vector<2x128xf32>
    %251 = arith.addf %250, %249 : vector<2x128xf32>
    %252 = arith.divf %250, %251 : vector<2x128xf32>
    %253 = vector.extract_strided_slice %246 {offsets = [0, 128], sizes = [2, 128], strides = [1, 1]} : vector<2x512xf32> to vector<2x128xf32>
    %254 = arith.negf %253 : vector<2x128xf32>
    %255 = math.exp %254 : vector<2x128xf32>
    %cst_66 = arith.constant 1.000000e+00 : f32
    %256 = vector.broadcast %cst_66 : f32 to vector<2x128xf32>
    %257 = arith.addf %256, %255 : vector<2x128xf32>
    %258 = arith.divf %256, %257 : vector<2x128xf32>
    %259 = vector.extract_strided_slice %246 {offsets = [0, 256], sizes = [2, 128], strides = [1, 1]} : vector<2x512xf32> to vector<2x128xf32>
    %260 = math.tanh %259 : vector<2x128xf32>
    %261 = vector.extract_strided_slice %246 {offsets = [0, 384], sizes = [2, 128], strides = [1, 1]} : vector<2x512xf32> to vector<2x128xf32>
    %262 = arith.negf %261 : vector<2x128xf32>
    %263 = math.exp %262 : vector<2x128xf32>
    %cst_67 = arith.constant 1.000000e+00 : f32
    %264 = vector.broadcast %cst_67 : f32 to vector<2x128xf32>
    %265 = arith.addf %264, %263 : vector<2x128xf32>
    %266 = arith.divf %264, %265 : vector<2x128xf32>
    %267 = arith.mulf %258, %193 : vector<2x128xf32>
    %268 = arith.mulf %252, %260 : vector<2x128xf32>
    %269 = arith.addf %267, %268 : vector<2x128xf32>
    %270 = math.tanh %269 : vector<2x128xf32>
    %271 = arith.mulf %266, %270 : vector<2x128xf32>
    %c4_68 = arith.constant 4 : index
    %c0_69 = arith.constant 0 : index
    %272 = memref.load %arg0[%c4_68, %c0_69] : memref<8x2xf32, #tpu.memory_space<smem>>
    %273 = vector.broadcast %272 : f32 to vector<1x512xf32>
    %274 = arith.mulf %273, %2 : vector<1x512xf32>
    %275 = arith.addf %274, %3 : vector<1x512xf32>
    %c4_70 = arith.constant 4 : index
    %c1_71 = arith.constant 1 : index
    %276 = memref.load %arg0[%c4_70, %c1_71] : memref<8x2xf32, #tpu.memory_space<smem>>
    %277 = vector.broadcast %276 : f32 to vector<1x512xf32>
    %278 = arith.mulf %277, %2 : vector<1x512xf32>
    %279 = arith.addf %278, %3 : vector<1x512xf32>
    %280 = tpu.concatenate %275, %279 in 0 : vector<1x512xf32>, vector<1x512xf32> -> vector<2x512xf32>
    %281 = arith.truncf %232 : vector<2x128xf32> to vector<2x128xbf16>
    %cst_72 = arith.constant dense<0.000000e+00> : vector<2x512xf32>
    %282 = tpu.matmul %281, %5, %cst_72 {dimension_numbers = #tpu.dot_dimension_numbers<[1], [0], [0], [1], [0, 0, 1, 1], [], []>} : vector<2x128xbf16>, vector<128x512xbf16>, vector<2x512xf32> -> vector<2x512xf32>
    %283 = arith.addf %280, %282 : vector<2x512xf32>
    %284 = vector.extract_strided_slice %283 {offsets = [0, 0], sizes = [2, 128], strides = [1, 1]} : vector<2x512xf32> to vector<2x128xf32>
    %285 = arith.negf %284 : vector<2x128xf32>
    %286 = math.exp %285 : vector<2x128xf32>
    %cst_73 = arith.constant 1.000000e+00 : f32
    %287 = vector.broadcast %cst_73 : f32 to vector<2x128xf32>
    %288 = arith.addf %287, %286 : vector<2x128xf32>
    %289 = arith.divf %287, %288 : vector<2x128xf32>
    %290 = vector.extract_strided_slice %283 {offsets = [0, 128], sizes = [2, 128], strides = [1, 1]} : vector<2x512xf32> to vector<2x128xf32>
    %291 = arith.negf %290 : vector<2x128xf32>
    %292 = math.exp %291 : vector<2x128xf32>
    %cst_74 = arith.constant 1.000000e+00 : f32
    %293 = vector.broadcast %cst_74 : f32 to vector<2x128xf32>
    %294 = arith.addf %293, %292 : vector<2x128xf32>
    %295 = arith.divf %293, %294 : vector<2x128xf32>
    %296 = vector.extract_strided_slice %283 {offsets = [0, 256], sizes = [2, 128], strides = [1, 1]} : vector<2x512xf32> to vector<2x128xf32>
    %297 = math.tanh %296 : vector<2x128xf32>
    %298 = vector.extract_strided_slice %283 {offsets = [0, 384], sizes = [2, 128], strides = [1, 1]} : vector<2x512xf32> to vector<2x128xf32>
    %299 = arith.negf %298 : vector<2x128xf32>
    %300 = math.exp %299 : vector<2x128xf32>
    %cst_75 = arith.constant 1.000000e+00 : f32
    %301 = vector.broadcast %cst_75 : f32 to vector<2x128xf32>
    %302 = arith.addf %301, %300 : vector<2x128xf32>
    %303 = arith.divf %301, %302 : vector<2x128xf32>
    %304 = arith.mulf %295, %230 : vector<2x128xf32>
    %305 = arith.mulf %289, %297 : vector<2x128xf32>
    %306 = arith.addf %304, %305 : vector<2x128xf32>
    %307 = math.tanh %306 : vector<2x128xf32>
    %308 = arith.mulf %303, %307 : vector<2x128xf32>
    %c6_76 = arith.constant 6 : index
    %c0_77 = arith.constant 0 : index
    %309 = vector.load %arg19[%c6_76, %c0_77] : memref<16x256xf32, #tpu.memory_space<vmem>>, vector<2x128xf32>
    tpu.vector_store %arg19[%c6_76, %c0_77], %271 {strides = array<i32>} : memref<16x256xf32, #tpu.memory_space<vmem>>, vector<2x128xf32>,
    %c8 = arith.constant 8 : index
    %c128_78 = arith.constant 128 : index
    %310 = vector.load %arg19[%c8, %c128_78] : memref<16x256xf32, #tpu.memory_space<vmem>>, vector<2x128xf32>
    tpu.vector_store %arg19[%c8, %c128_78], %308 {strides = array<i32>} : memref<16x256xf32, #tpu.memory_space<vmem>>, vector<2x128xf32>,
    %c4_79 = arith.constant 4 : index
    %c0_80 = arith.constant 0 : index
    %311 = memref.load %arg0[%c4_79, %c0_80] : memref<8x2xf32, #tpu.memory_space<smem>>
    %312 = vector.broadcast %311 : f32 to vector<1x512xf32>
    %313 = arith.mulf %312, %0 : vector<1x512xf32>
    %314 = arith.addf %313, %1 : vector<1x512xf32>
    %c4_81 = arith.constant 4 : index
    %c1_82 = arith.constant 1 : index
    %315 = memref.load %arg0[%c4_81, %c1_82] : memref<8x2xf32, #tpu.memory_space<smem>>
    %316 = vector.broadcast %315 : f32 to vector<1x512xf32>
    %317 = arith.mulf %316, %0 : vector<1x512xf32>
    %318 = arith.addf %317, %1 : vector<1x512xf32>
    %319 = tpu.concatenate %314, %318 in 0 : vector<1x512xf32>, vector<1x512xf32> -> vector<2x512xf32>
    %320 = arith.truncf %271 : vector<2x128xf32> to vector<2x128xbf16>
    %cst_83 = arith.constant dense<0.000000e+00> : vector<2x512xf32>
    %321 = tpu.matmul %320, %4, %cst_83 {dimension_numbers = #tpu.dot_dimension_numbers<[1], [0], [0], [1], [0, 0, 1, 1], [], []>} : vector<2x128xbf16>, vector<128x512xbf16>, vector<2x512xf32> -> vector<2x512xf32>
    %322 = arith.addf %319, %321 : vector<2x512xf32>
    %323 = vector.extract_strided_slice %322 {offsets = [0, 0], sizes = [2, 128], strides = [1, 1]} : vector<2x512xf32> to vector<2x128xf32>
    %324 = arith.negf %323 : vector<2x128xf32>
    %325 = math.exp %324 : vector<2x128xf32>
    %cst_84 = arith.constant 1.000000e+00 : f32
    %326 = vector.broadcast %cst_84 : f32 to vector<2x128xf32>
    %327 = arith.addf %326, %325 : vector<2x128xf32>
    %328 = arith.divf %326, %327 : vector<2x128xf32>
    %329 = vector.extract_strided_slice %322 {offsets = [0, 128], sizes = [2, 128], strides = [1, 1]} : vector<2x512xf32> to vector<2x128xf32>
    %330 = arith.negf %329 : vector<2x128xf32>
    %331 = math.exp %330 : vector<2x128xf32>
    %cst_85 = arith.constant 1.000000e+00 : f32
    %332 = vector.broadcast %cst_85 : f32 to vector<2x128xf32>
    %333 = arith.addf %332, %331 : vector<2x128xf32>
    %334 = arith.divf %332, %333 : vector<2x128xf32>
    %335 = vector.extract_strided_slice %322 {offsets = [0, 256], sizes = [2, 128], strides = [1, 1]} : vector<2x512xf32> to vector<2x128xf32>
    %336 = math.tanh %335 : vector<2x128xf32>
    %337 = vector.extract_strided_slice %322 {offsets = [0, 384], sizes = [2, 128], strides = [1, 1]} : vector<2x512xf32> to vector<2x128xf32>
    %338 = arith.negf %337 : vector<2x128xf32>
    %339 = math.exp %338 : vector<2x128xf32>
    %cst_86 = arith.constant 1.000000e+00 : f32
    %340 = vector.broadcast %cst_86 : f32 to vector<2x128xf32>
    %341 = arith.addf %340, %339 : vector<2x128xf32>
    %342 = arith.divf %340, %341 : vector<2x128xf32>
    %343 = arith.mulf %334, %269 : vector<2x128xf32>
    %344 = arith.mulf %328, %336 : vector<2x128xf32>
    %345 = arith.addf %343, %344 : vector<2x128xf32>
    %346 = math.tanh %345 : vector<2x128xf32>
    %347 = arith.mulf %342, %346 : vector<2x128xf32>
    %c3_87 = arith.constant 3 : index
    %c0_88 = arith.constant 0 : index
    %348 = memref.load %arg0[%c3_87, %c0_88] : memref<8x2xf32, #tpu.memory_space<smem>>
    %349 = vector.broadcast %348 : f32 to vector<1x512xf32>
    %350 = arith.mulf %349, %2 : vector<1x512xf32>
    %351 = arith.addf %350, %3 : vector<1x512xf32>
    %c3_89 = arith.constant 3 : index
    %c1_90 = arith.constant 1 : index
    %352 = memref.load %arg0[%c3_89, %c1_90] : memref<8x2xf32, #tpu.memory_space<smem>>
    %353 = vector.broadcast %352 : f32 to vector<1x512xf32>
    %354 = arith.mulf %353, %2 : vector<1x512xf32>
    %355 = arith.addf %354, %3 : vector<1x512xf32>
    %356 = tpu.concatenate %351, %355 in 0 : vector<1x512xf32>, vector<1x512xf32> -> vector<2x512xf32>
    %357 = arith.truncf %308 : vector<2x128xf32> to vector<2x128xbf16>
    %cst_91 = arith.constant dense<0.000000e+00> : vector<2x512xf32>
    %358 = tpu.matmul %357, %5, %cst_91 {dimension_numbers = #tpu.dot_dimension_numbers<[1], [0], [0], [1], [0, 0, 1, 1], [], []>} : vector<2x128xbf16>, vector<128x512xbf16>, vector<2x512xf32> -> vector<2x512xf32>
    %359 = arith.addf %356, %358 : vector<2x512xf32>
    %360 = vector.extract_strided_slice %359 {offsets = [0, 0], sizes = [2, 128], strides = [1, 1]} : vector<2x512xf32> to vector<2x128xf32>
    %361 = arith.negf %360 : vector<2x128xf32>
    %362 = math.exp %361 : vector<2x128xf32>
    %cst_92 = arith.constant 1.000000e+00 : f32
    %363 = vector.broadcast %cst_92 : f32 to vector<2x128xf32>
    %364 = arith.addf %363, %362 : vector<2x128xf32>
    %365 = arith.divf %363, %364 : vector<2x128xf32>
    %366 = vector.extract_strided_slice %359 {offsets = [0, 128], sizes = [2, 128], strides = [1, 1]} : vector<2x512xf32> to vector<2x128xf32>
    %367 = arith.negf %366 : vector<2x128xf32>
    %368 = math.exp %367 : vector<2x128xf32>
    %cst_93 = arith.constant 1.000000e+00 : f32
    %369 = vector.broadcast %cst_93 : f32 to vector<2x128xf32>
    %370 = arith.addf %369, %368 : vector<2x128xf32>
    %371 = arith.divf %369, %370 : vector<2x128xf32>
    %372 = vector.extract_strided_slice %359 {offsets = [0, 256], sizes = [2, 128], strides = [1, 1]} : vector<2x512xf32> to vector<2x128xf32>
    %373 = math.tanh %372 : vector<2x128xf32>
    %374 = vector.extract_strided_slice %359 {offsets = [0, 384], sizes = [2, 128], strides = [1, 1]} : vector<2x512xf32> to vector<2x128xf32>
    %375 = arith.negf %374 : vector<2x128xf32>
    %376 = math.exp %375 : vector<2x128xf32>
    %cst_94 = arith.constant 1.000000e+00 : f32
    %377 = vector.broadcast %cst_94 : f32 to vector<2x128xf32>
    %378 = arith.addf %377, %376 : vector<2x128xf32>
    %379 = arith.divf %377, %378 : vector<2x128xf32>
    %380 = arith.mulf %371, %306 : vector<2x128xf32>
    %381 = arith.mulf %365, %373 : vector<2x128xf32>
    %382 = arith.addf %380, %381 : vector<2x128xf32>
    %383 = math.tanh %382 : vector<2x128xf32>
    %384 = arith.mulf %379, %383 : vector<2x128xf32>
    %c8_95 = arith.constant 8 : index
    %c0_96 = arith.constant 0 : index
    %385 = vector.load %arg19[%c8_95, %c0_96] : memref<16x256xf32, #tpu.memory_space<vmem>>, vector<2x128xf32>
    tpu.vector_store %arg19[%c8_95, %c0_96], %347 {strides = array<i32>} : memref<16x256xf32, #tpu.memory_space<vmem>>, vector<2x128xf32>,
    %c6_97 = arith.constant 6 : index
    %c128_98 = arith.constant 128 : index
    %386 = vector.load %arg19[%c6_97, %c128_98] : memref<16x256xf32, #tpu.memory_space<vmem>>, vector<2x128xf32>
    tpu.vector_store %arg19[%c6_97, %c128_98], %384 {strides = array<i32>} : memref<16x256xf32, #tpu.memory_space<vmem>>, vector<2x128xf32>,
    %c5_99 = arith.constant 5 : index
    %c0_100 = arith.constant 0 : index
    %387 = memref.load %arg0[%c5_99, %c0_100] : memref<8x2xf32, #tpu.memory_space<smem>>
    %388 = vector.broadcast %387 : f32 to vector<1x512xf32>
    %389 = arith.mulf %388, %0 : vector<1x512xf32>
    %390 = arith.addf %389, %1 : vector<1x512xf32>
    %c5_101 = arith.constant 5 : index
    %c1_102 = arith.constant 1 : index
    %391 = memref.load %arg0[%c5_101, %c1_102] : memref<8x2xf32, #tpu.memory_space<smem>>
    %392 = vector.broadcast %391 : f32 to vector<1x512xf32>
    %393 = arith.mulf %392, %0 : vector<1x512xf32>
    %394 = arith.addf %393, %1 : vector<1x512xf32>
    %395 = tpu.concatenate %390, %394 in 0 : vector<1x512xf32>, vector<1x512xf32> -> vector<2x512xf32>
    %396 = arith.truncf %347 : vector<2x128xf32> to vector<2x128xbf16>
    %cst_103 = arith.constant dense<0.000000e+00> : vector<2x512xf32>
    %397 = tpu.matmul %396, %4, %cst_103 {dimension_numbers = #tpu.dot_dimension_numbers<[1], [0], [0], [1], [0, 0, 1, 1], [], []>} : vector<2x128xbf16>, vector<128x512xbf16>, vector<2x512xf32> -> vector<2x512xf32>
    %398 = arith.addf %395, %397 : vector<2x512xf32>
    %399 = vector.extract_strided_slice %398 {offsets = [0, 0], sizes = [2, 128], strides = [1, 1]} : vector<2x512xf32> to vector<2x128xf32>
    %400 = arith.negf %399 : vector<2x128xf32>
    %401 = math.exp %400 : vector<2x128xf32>
    %cst_104 = arith.constant 1.000000e+00 : f32
    %402 = vector.broadcast %cst_104 : f32 to vector<2x128xf32>
    %403 = arith.addf %402, %401 : vector<2x128xf32>
    %404 = arith.divf %402, %403 : vector<2x128xf32>
    %405 = vector.extract_strided_slice %398 {offsets = [0, 128], sizes = [2, 128], strides = [1, 1]} : vector<2x512xf32> to vector<2x128xf32>
    %406 = arith.negf %405 : vector<2x128xf32>
    %407 = math.exp %406 : vector<2x128xf32>
    %cst_105 = arith.constant 1.000000e+00 : f32
    %408 = vector.broadcast %cst_105 : f32 to vector<2x128xf32>
    %409 = arith.addf %408, %407 : vector<2x128xf32>
    %410 = arith.divf %408, %409 : vector<2x128xf32>
    %411 = vector.extract_strided_slice %398 {offsets = [0, 256], sizes = [2, 128], strides = [1, 1]} : vector<2x512xf32> to vector<2x128xf32>
    %412 = math.tanh %411 : vector<2x128xf32>
    %413 = vector.extract_strided_slice %398 {offsets = [0, 384], sizes = [2, 128], strides = [1, 1]} : vector<2x512xf32> to vector<2x128xf32>
    %414 = arith.negf %413 : vector<2x128xf32>
    %415 = math.exp %414 : vector<2x128xf32>
    %cst_106 = arith.constant 1.000000e+00 : f32
    %416 = vector.broadcast %cst_106 : f32 to vector<2x128xf32>
    %417 = arith.addf %416, %415 : vector<2x128xf32>
    %418 = arith.divf %416, %417 : vector<2x128xf32>
    %419 = arith.mulf %410, %345 : vector<2x128xf32>
    %420 = arith.mulf %404, %412 : vector<2x128xf32>
    %421 = arith.addf %419, %420 : vector<2x128xf32>
    %422 = math.tanh %421 : vector<2x128xf32>
    %423 = arith.mulf %418, %422 : vector<2x128xf32>
    %c2_107 = arith.constant 2 : index
    %c0_108 = arith.constant 0 : index
    %424 = memref.load %arg0[%c2_107, %c0_108] : memref<8x2xf32, #tpu.memory_space<smem>>
    %425 = vector.broadcast %424 : f32 to vector<1x512xf32>
    %426 = arith.mulf %425, %2 : vector<1x512xf32>
    %427 = arith.addf %426, %3 : vector<1x512xf32>
    %c2_109 = arith.constant 2 : index
    %c1_110 = arith.constant 1 : index
    %428 = memref.load %arg0[%c2_109, %c1_110] : memref<8x2xf32, #tpu.memory_space<smem>>
    %429 = vector.broadcast %428 : f32 to vector<1x512xf32>
    %430 = arith.mulf %429, %2 : vector<1x512xf32>
    %431 = arith.addf %430, %3 : vector<1x512xf32>
    %432 = tpu.concatenate %427, %431 in 0 : vector<1x512xf32>, vector<1x512xf32> -> vector<2x512xf32>
    %433 = arith.truncf %384 : vector<2x128xf32> to vector<2x128xbf16>
    %cst_111 = arith.constant dense<0.000000e+00> : vector<2x512xf32>
    %434 = tpu.matmul %433, %5, %cst_111 {dimension_numbers = #tpu.dot_dimension_numbers<[1], [0], [0], [1], [0, 0, 1, 1], [], []>} : vector<2x128xbf16>, vector<128x512xbf16>, vector<2x512xf32> -> vector<2x512xf32>
    %435 = arith.addf %432, %434 : vector<2x512xf32>
    %436 = vector.extract_strided_slice %435 {offsets = [0, 0], sizes = [2, 128], strides = [1, 1]} : vector<2x512xf32> to vector<2x128xf32>
    %437 = arith.negf %436 : vector<2x128xf32>
    %438 = math.exp %437 : vector<2x128xf32>
    %cst_112 = arith.constant 1.000000e+00 : f32
    %439 = vector.broadcast %cst_112 : f32 to vector<2x128xf32>
    %440 = arith.addf %439, %438 : vector<2x128xf32>
    %441 = arith.divf %439, %440 : vector<2x128xf32>
    %442 = vector.extract_strided_slice %435 {offsets = [0, 128], sizes = [2, 128], strides = [1, 1]} : vector<2x512xf32> to vector<2x128xf32>
    %443 = arith.negf %442 : vector<2x128xf32>
    %444 = math.exp %443 : vector<2x128xf32>
    %cst_113 = arith.constant 1.000000e+00 : f32
    %445 = vector.broadcast %cst_113 : f32 to vector<2x128xf32>
    %446 = arith.addf %445, %444 : vector<2x128xf32>
    %447 = arith.divf %445, %446 : vector<2x128xf32>
    %448 = vector.extract_strided_slice %435 {offsets = [0, 256], sizes = [2, 128], strides = [1, 1]} : vector<2x512xf32> to vector<2x128xf32>
    %449 = math.tanh %448 : vector<2x128xf32>
    %450 = vector.extract_strided_slice %435 {offsets = [0, 384], sizes = [2, 128], strides = [1, 1]} : vector<2x512xf32> to vector<2x128xf32>
    %451 = arith.negf %450 : vector<2x128xf32>
    %452 = math.exp %451 : vector<2x128xf32>
    %cst_114 = arith.constant 1.000000e+00 : f32
    %453 = vector.broadcast %cst_114 : f32 to vector<2x128xf32>
    %454 = arith.addf %453, %452 : vector<2x128xf32>
    %455 = arith.divf %453, %454 : vector<2x128xf32>
    %456 = arith.mulf %447, %382 : vector<2x128xf32>
    %457 = arith.mulf %441, %449 : vector<2x128xf32>
    %458 = arith.addf %456, %457 : vector<2x128xf32>
    %459 = math.tanh %458 : vector<2x128xf32>
    %460 = arith.mulf %455, %459 : vector<2x128xf32>
    %c10_115 = arith.constant 10 : index
    %c0_116 = arith.constant 0 : index
    %461 = vector.load %arg19[%c10_115, %c0_116] : memref<16x256xf32, #tpu.memory_space<vmem>>, vector<2x128xf32>
    tpu.vector_store %arg19[%c10_115, %c0_116], %423 {strides = array<i32>} : memref<16x256xf32, #tpu.memory_space<vmem>>, vector<2x128xf32>,
    %c4_117 = arith.constant 4 : index
    %c128_118 = arith.constant 128 : index
    %462 = vector.load %arg19[%c4_117, %c128_118] : memref<16x256xf32, #tpu.memory_space<vmem>>, vector<2x128xf32>
    tpu.vector_store %arg19[%c4_117, %c128_118], %460 {strides = array<i32>} : memref<16x256xf32, #tpu.memory_space<vmem>>, vector<2x128xf32>,
    %c6_119 = arith.constant 6 : index
    %c0_120 = arith.constant 0 : index
    %463 = memref.load %arg0[%c6_119, %c0_120] : memref<8x2xf32, #tpu.memory_space<smem>>
    %464 = vector.broadcast %463 : f32 to vector<1x512xf32>
    %465 = arith.mulf %464, %0 : vector<1x512xf32>
    %466 = arith.addf %465, %1 : vector<1x512xf32>
    %c6_121 = arith.constant 6 : index
    %c1_122 = arith.constant 1 : index
    %467 = memref.load %arg0[%c6_121, %c1_122] : memref<8x2xf32, #tpu.memory_space<smem>>
    %468 = vector.broadcast %467 : f32 to vector<1x512xf32>
    %469 = arith.mulf %468, %0 : vector<1x512xf32>
    %470 = arith.addf %469, %1 : vector<1x512xf32>
    %471 = tpu.concatenate %466, %470 in 0 : vector<1x512xf32>, vector<1x512xf32> -> vector<2x512xf32>
    %472 = arith.truncf %423 : vector<2x128xf32> to vector<2x128xbf16>
    %cst_123 = arith.constant dense<0.000000e+00> : vector<2x512xf32>
    %473 = tpu.matmul %472, %4, %cst_123 {dimension_numbers = #tpu.dot_dimension_numbers<[1], [0], [0], [1], [0, 0, 1, 1], [], []>} : vector<2x128xbf16>, vector<128x512xbf16>, vector<2x512xf32> -> vector<2x512xf32>
    %474 = arith.addf %471, %473 : vector<2x512xf32>
    %475 = vector.extract_strided_slice %474 {offsets = [0, 0], sizes = [2, 128], strides = [1, 1]} : vector<2x512xf32> to vector<2x128xf32>
    %476 = arith.negf %475 : vector<2x128xf32>
    %477 = math.exp %476 : vector<2x128xf32>
    %cst_124 = arith.constant 1.000000e+00 : f32
    %478 = vector.broadcast %cst_124 : f32 to vector<2x128xf32>
    %479 = arith.addf %478, %477 : vector<2x128xf32>
    %480 = arith.divf %478, %479 : vector<2x128xf32>
    %481 = vector.extract_strided_slice %474 {offsets = [0, 128], sizes = [2, 128], strides = [1, 1]} : vector<2x512xf32> to vector<2x128xf32>
    %482 = arith.negf %481 : vector<2x128xf32>
    %483 = math.exp %482 : vector<2x128xf32>
    %cst_125 = arith.constant 1.000000e+00 : f32
    %484 = vector.broadcast %cst_125 : f32 to vector<2x128xf32>
    %485 = arith.addf %484, %483 : vector<2x128xf32>
    %486 = arith.divf %484, %485 : vector<2x128xf32>
    %487 = vector.extract_strided_slice %474 {offsets = [0, 256], sizes = [2, 128], strides = [1, 1]} : vector<2x512xf32> to vector<2x128xf32>
    %488 = math.tanh %487 : vector<2x128xf32>
    %489 = vector.extract_strided_slice %474 {offsets = [0, 384], sizes = [2, 128], strides = [1, 1]} : vector<2x512xf32> to vector<2x128xf32>
    %490 = arith.negf %489 : vector<2x128xf32>
    %491 = math.exp %490 : vector<2x128xf32>
    %cst_126 = arith.constant 1.000000e+00 : f32
    %492 = vector.broadcast %cst_126 : f32 to vector<2x128xf32>
    %493 = arith.addf %492, %491 : vector<2x128xf32>
    %494 = arith.divf %492, %493 : vector<2x128xf32>
    %495 = arith.mulf %486, %421 : vector<2x128xf32>
    %496 = arith.mulf %480, %488 : vector<2x128xf32>
    %497 = arith.addf %495, %496 : vector<2x128xf32>
    %498 = math.tanh %497 : vector<2x128xf32>
    %499 = arith.mulf %494, %498 : vector<2x128xf32>
    %c1_127 = arith.constant 1 : index
    %c0_128 = arith.constant 0 : index
    %500 = memref.load %arg0[%c1_127, %c0_128] : memref<8x2xf32, #tpu.memory_space<smem>>
    %501 = vector.broadcast %500 : f32 to vector<1x512xf32>
    %502 = arith.mulf %501, %2 : vector<1x512xf32>
    %503 = arith.addf %502, %3 : vector<1x512xf32>
    %c1_129 = arith.constant 1 : index
    %c1_130 = arith.constant 1 : index
    %504 = memref.load %arg0[%c1_129, %c1_130] : memref<8x2xf32, #tpu.memory_space<smem>>
    %505 = vector.broadcast %504 : f32 to vector<1x512xf32>
    %506 = arith.mulf %505, %2 : vector<1x512xf32>
    %507 = arith.addf %506, %3 : vector<1x512xf32>
    %508 = tpu.concatenate %503, %507 in 0 : vector<1x512xf32>, vector<1x512xf32> -> vector<2x512xf32>
    %509 = arith.truncf %460 : vector<2x128xf32> to vector<2x128xbf16>
    %cst_131 = arith.constant dense<0.000000e+00> : vector<2x512xf32>
    %510 = tpu.matmul %509, %5, %cst_131 {dimension_numbers = #tpu.dot_dimension_numbers<[1], [0], [0], [1], [0, 0, 1, 1], [], []>} : vector<2x128xbf16>, vector<128x512xbf16>, vector<2x512xf32> -> vector<2x512xf32>
    %511 = arith.addf %508, %510 : vector<2x512xf32>
    %512 = vector.extract_strided_slice %511 {offsets = [0, 0], sizes = [2, 128], strides = [1, 1]} : vector<2x512xf32> to vector<2x128xf32>
    %513 = arith.negf %512 : vector<2x128xf32>
    %514 = math.exp %513 : vector<2x128xf32>
    %cst_132 = arith.constant 1.000000e+00 : f32
    %515 = vector.broadcast %cst_132 : f32 to vector<2x128xf32>
    %516 = arith.addf %515, %514 : vector<2x128xf32>
    %517 = arith.divf %515, %516 : vector<2x128xf32>
    %518 = vector.extract_strided_slice %511 {offsets = [0, 128], sizes = [2, 128], strides = [1, 1]} : vector<2x512xf32> to vector<2x128xf32>
    %519 = arith.negf %518 : vector<2x128xf32>
    %520 = math.exp %519 : vector<2x128xf32>
    %cst_133 = arith.constant 1.000000e+00 : f32
    %521 = vector.broadcast %cst_133 : f32 to vector<2x128xf32>
    %522 = arith.addf %521, %520 : vector<2x128xf32>
    %523 = arith.divf %521, %522 : vector<2x128xf32>
    %524 = vector.extract_strided_slice %511 {offsets = [0, 256], sizes = [2, 128], strides = [1, 1]} : vector<2x512xf32> to vector<2x128xf32>
    %525 = math.tanh %524 : vector<2x128xf32>
    %526 = vector.extract_strided_slice %511 {offsets = [0, 384], sizes = [2, 128], strides = [1, 1]} : vector<2x512xf32> to vector<2x128xf32>
    %527 = arith.negf %526 : vector<2x128xf32>
    %528 = math.exp %527 : vector<2x128xf32>
    %cst_134 = arith.constant 1.000000e+00 : f32
    %529 = vector.broadcast %cst_134 : f32 to vector<2x128xf32>
    %530 = arith.addf %529, %528 : vector<2x128xf32>
    %531 = arith.divf %529, %530 : vector<2x128xf32>
    %532 = arith.mulf %523, %458 : vector<2x128xf32>
    %533 = arith.mulf %517, %525 : vector<2x128xf32>
    %534 = arith.addf %532, %533 : vector<2x128xf32>
    %535 = math.tanh %534 : vector<2x128xf32>
    %536 = arith.mulf %531, %535 : vector<2x128xf32>
    %c12_135 = arith.constant 12 : index
    %c0_136 = arith.constant 0 : index
    %537 = vector.load %arg19[%c12_135, %c0_136] : memref<16x256xf32, #tpu.memory_space<vmem>>, vector<2x128xf32>
    tpu.vector_store %arg19[%c12_135, %c0_136], %499 {strides = array<i32>} : memref<16x256xf32, #tpu.memory_space<vmem>>, vector<2x128xf32>,
    %c2_137 = arith.constant 2 : index
    %c128_138 = arith.constant 128 : index
    %538 = vector.load %arg19[%c2_137, %c128_138] : memref<16x256xf32, #tpu.memory_space<vmem>>, vector<2x128xf32>
    tpu.vector_store %arg19[%c2_137, %c128_138], %536 {strides = array<i32>} : memref<16x256xf32, #tpu.memory_space<vmem>>, vector<2x128xf32>,
    %c7_139 = arith.constant 7 : index
    %c0_140 = arith.constant 0 : index
    %539 = memref.load %arg0[%c7_139, %c0_140] : memref<8x2xf32, #tpu.memory_space<smem>>
    %540 = vector.broadcast %539 : f32 to vector<1x512xf32>
    %541 = arith.mulf %540, %0 : vector<1x512xf32>
    %542 = arith.addf %541, %1 : vector<1x512xf32>
    %c7_141 = arith.constant 7 : index
    %c1_142 = arith.constant 1 : index
    %543 = memref.load %arg0[%c7_141, %c1_142] : memref<8x2xf32, #tpu.memory_space<smem>>
    %544 = vector.broadcast %543 : f32 to vector<1x512xf32>
    %545 = arith.mulf %544, %0 : vector<1x512xf32>
    %546 = arith.addf %545, %1 : vector<1x512xf32>
    %547 = tpu.concatenate %542, %546 in 0 : vector<1x512xf32>, vector<1x512xf32> -> vector<2x512xf32>
    %548 = arith.truncf %499 : vector<2x128xf32> to vector<2x128xbf16>
    %cst_143 = arith.constant dense<0.000000e+00> : vector<2x512xf32>
    %549 = tpu.matmul %548, %4, %cst_143 {dimension_numbers = #tpu.dot_dimension_numbers<[1], [0], [0], [1], [0, 0, 1, 1], [], []>} : vector<2x128xbf16>, vector<128x512xbf16>, vector<2x512xf32> -> vector<2x512xf32>
    %550 = arith.addf %547, %549 : vector<2x512xf32>
    %551 = vector.extract_strided_slice %550 {offsets = [0, 0], sizes = [2, 128], strides = [1, 1]} : vector<2x512xf32> to vector<2x128xf32>
    %552 = arith.negf %551 : vector<2x128xf32>
    %553 = math.exp %552 : vector<2x128xf32>
    %cst_144 = arith.constant 1.000000e+00 : f32
    %554 = vector.broadcast %cst_144 : f32 to vector<2x128xf32>
    %555 = arith.addf %554, %553 : vector<2x128xf32>
    %556 = arith.divf %554, %555 : vector<2x128xf32>
    %557 = vector.extract_strided_slice %550 {offsets = [0, 128], sizes = [2, 128], strides = [1, 1]} : vector<2x512xf32> to vector<2x128xf32>
    %558 = arith.negf %557 : vector<2x128xf32>
    %559 = math.exp %558 : vector<2x128xf32>
    %cst_145 = arith.constant 1.000000e+00 : f32
    %560 = vector.broadcast %cst_145 : f32 to vector<2x128xf32>
    %561 = arith.addf %560, %559 : vector<2x128xf32>
    %562 = arith.divf %560, %561 : vector<2x128xf32>
    %563 = vector.extract_strided_slice %550 {offsets = [0, 256], sizes = [2, 128], strides = [1, 1]} : vector<2x512xf32> to vector<2x128xf32>
    %564 = math.tanh %563 : vector<2x128xf32>
    %565 = vector.extract_strided_slice %550 {offsets = [0, 384], sizes = [2, 128], strides = [1, 1]} : vector<2x512xf32> to vector<2x128xf32>
    %566 = arith.negf %565 : vector<2x128xf32>
    %567 = math.exp %566 : vector<2x128xf32>
    %cst_146 = arith.constant 1.000000e+00 : f32
    %568 = vector.broadcast %cst_146 : f32 to vector<2x128xf32>
    %569 = arith.addf %568, %567 : vector<2x128xf32>
    %570 = arith.divf %568, %569 : vector<2x128xf32>
    %571 = arith.mulf %562, %497 : vector<2x128xf32>
    %572 = arith.mulf %556, %564 : vector<2x128xf32>
    %573 = arith.addf %571, %572 : vector<2x128xf32>
    %574 = math.tanh %573 : vector<2x128xf32>
    %575 = arith.mulf %570, %574 : vector<2x128xf32>
    %c0_147 = arith.constant 0 : index
    %c0_148 = arith.constant 0 : index
    %576 = memref.load %arg0[%c0_147, %c0_148] : memref<8x2xf32, #tpu.memory_space<smem>>
    %577 = vector.broadcast %576 : f32 to vector<1x512xf32>
    %578 = arith.mulf %577, %2 : vector<1x512xf32>
    %579 = arith.addf %578, %3 : vector<1x512xf32>
    %c0_149 = arith.constant 0 : index
    %c1_150 = arith.constant 1 : index
    %580 = memref.load %arg0[%c0_149, %c1_150] : memref<8x2xf32, #tpu.memory_space<smem>>
    %581 = vector.broadcast %580 : f32 to vector<1x512xf32>
    %582 = arith.mulf %581, %2 : vector<1x512xf32>
    %583 = arith.addf %582, %3 : vector<1x512xf32>
    %584 = tpu.concatenate %579, %583 in 0 : vector<1x512xf32>, vector<1x512xf32> -> vector<2x512xf32>
    %585 = arith.truncf %536 : vector<2x128xf32> to vector<2x128xbf16>
    %cst_151 = arith.constant dense<0.000000e+00> : vector<2x512xf32>
    %586 = tpu.matmul %585, %5, %cst_151 {dimension_numbers = #tpu.dot_dimension_numbers<[1], [0], [0], [1], [0, 0, 1, 1], [], []>} : vector<2x128xbf16>, vector<128x512xbf16>, vector<2x512xf32> -> vector<2x512xf32>
    %587 = arith.addf %584, %586 : vector<2x512xf32>
    %588 = vector.extract_strided_slice %587 {offsets = [0, 0], sizes = [2, 128], strides = [1, 1]} : vector<2x512xf32> to vector<2x128xf32>
    %589 = arith.negf %588 : vector<2x128xf32>
    %590 = math.exp %589 : vector<2x128xf32>
    %cst_152 = arith.constant 1.000000e+00 : f32
    %591 = vector.broadcast %cst_152 : f32 to vector<2x128xf32>
    %592 = arith.addf %591, %590 : vector<2x128xf32>
    %593 = arith.divf %591, %592 : vector<2x128xf32>
    %594 = vector.extract_strided_slice %587 {offsets = [0, 128], sizes = [2, 128], strides = [1, 1]} : vector<2x512xf32> to vector<2x128xf32>
    %595 = arith.negf %594 : vector<2x128xf32>
    %596 = math.exp %595 : vector<2x128xf32>
    %cst_153 = arith.constant 1.000000e+00 : f32
    %597 = vector.broadcast %cst_153 : f32 to vector<2x128xf32>
    %598 = arith.addf %597, %596 : vector<2x128xf32>
    %599 = arith.divf %597, %598 : vector<2x128xf32>
    %600 = vector.extract_strided_slice %587 {offsets = [0, 256], sizes = [2, 128], strides = [1, 1]} : vector<2x512xf32> to vector<2x128xf32>
    %601 = math.tanh %600 : vector<2x128xf32>
    %602 = vector.extract_strided_slice %587 {offsets = [0, 384], sizes = [2, 128], strides = [1, 1]} : vector<2x512xf32> to vector<2x128xf32>
    %603 = arith.negf %602 : vector<2x128xf32>
    %604 = math.exp %603 : vector<2x128xf32>
    %cst_154 = arith.constant 1.000000e+00 : f32
    %605 = vector.broadcast %cst_154 : f32 to vector<2x128xf32>
    %606 = arith.addf %605, %604 : vector<2x128xf32>
    %607 = arith.divf %605, %606 : vector<2x128xf32>
    %608 = arith.mulf %599, %534 : vector<2x128xf32>
    %609 = arith.mulf %593, %601 : vector<2x128xf32>
    %610 = arith.addf %608, %609 : vector<2x128xf32>
    %611 = math.tanh %610 : vector<2x128xf32>
    %612 = arith.mulf %607, %611 : vector<2x128xf32>
    %c14_155 = arith.constant 14 : index
    %c0_156 = arith.constant 0 : index
    %613 = vector.load %arg19[%c14_155, %c0_156] : memref<16x256xf32, #tpu.memory_space<vmem>>, vector<2x128xf32>
    tpu.vector_store %arg19[%c14_155, %c0_156], %575 {strides = array<i32>} : memref<16x256xf32, #tpu.memory_space<vmem>>, vector<2x128xf32>,
    %c0_157 = arith.constant 0 : index
    %c128_158 = arith.constant 128 : index
    %614 = vector.load %arg19[%c0_157, %c128_158] : memref<16x256xf32, #tpu.memory_space<vmem>>, vector<2x128xf32>
    tpu.vector_store %arg19[%c0_157, %c128_158], %612 {strides = array<i32>} : memref<16x256xf32, #tpu.memory_space<vmem>>, vector<2x128xf32>,
    tpu.wait_dma2 semaphore(%arg21 : memref<!tpu.dma_semaphore, #tpu.memory_space<semaphore_mem>>) src(%arg7 : memref<640x512xbf16, #tpu.memory_space<any>>) dst(%arg20 : memref<640x512xbf16, #tpu.memory_space<vmem>>)
    %c0_159 = arith.constant 0 : index
    %c0_160 = arith.constant 0 : index
    %615 = vector.load %arg20[%c0_159, %c0_160] : memref<640x512xbf16, #tpu.memory_space<vmem>>, vector<256x512xbf16>
    %c256 = arith.constant 256 : index
    %c0_161 = arith.constant 0 : index
    %616 = vector.load %arg20[%c256, %c0_161] : memref<640x512xbf16, #tpu.memory_space<vmem>>, vector<128x512xbf16>
    %c384 = arith.constant 384 : index
    %c0_162 = arith.constant 0 : index
    %617 = vector.load %arg20[%c384, %c0_162] : memref<640x512xbf16, #tpu.memory_space<vmem>>, vector<256x512xbf16>
    %c0_163 = arith.constant 0 : index
    %c0_164 = arith.constant 0 : index
    %618 = vector.load %arg19[%c0_163, %c0_164] : memref<16x256xf32, #tpu.memory_space<vmem>>, vector<16x256xf32>
    %619 = arith.truncf %618 : vector<16x256xf32> to vector<16x256xbf16>
    %cst_165 = arith.constant dense<0.000000e+00> : vector<16x512xf32>
    %620 = tpu.matmul %619, %615, %cst_165 {dimension_numbers = #tpu.dot_dimension_numbers<[1], [0], [0], [1], [0, 0, 1, 1], [], []>} : vector<16x256xbf16>, vector<256x512xbf16>, vector<16x512xf32> -> vector<16x512xf32>
    %c0_166 = arith.constant 0 : index
    %c0_167 = arith.constant 0 : index
    %621 = vector.load %arg8[%c0_166, %c0_167] : memref<1x512xf32, #tpu.memory_space<vmem>>, vector<1x512xf32>
    %622 = vector.broadcast %621 : vector<1x512xf32> to vector<16x512xf32>
    %623 = arith.addf %620, %622 : vector<16x512xf32>
    %624 = vector.extract_strided_slice %623 {offsets = [0, 0], sizes = [2, 512], strides = [1, 1]} : vector<16x512xf32> to vector<2x512xf32>
    %625 = arith.truncf %6 : vector<2x128xf32> to vector<2x128xbf16>
    %cst_168 = arith.constant dense<0.000000e+00> : vector<2x512xf32>
    %626 = tpu.matmul %625, %616, %cst_168 {dimension_numbers = #tpu.dot_dimension_numbers<[1], [0], [0], [1], [0, 0, 1, 1], [], []>} : vector<2x128xbf16>, vector<128x512xbf16>, vector<2x512xf32> -> vector<2x512xf32>
    %627 = arith.addf %624, %626 : vector<2x512xf32>
    %628 = vector.extract_strided_slice %627 {offsets = [0, 0], sizes = [2, 128], strides = [1, 1]} : vector<2x512xf32> to vector<2x128xf32>
    %629 = arith.negf %628 : vector<2x128xf32>
    %630 = math.exp %629 : vector<2x128xf32>
    %cst_169 = arith.constant 1.000000e+00 : f32
    %631 = vector.broadcast %cst_169 : f32 to vector<2x128xf32>
    %632 = arith.addf %631, %630 : vector<2x128xf32>
    %633 = arith.divf %631, %632 : vector<2x128xf32>
    %634 = vector.extract_strided_slice %627 {offsets = [0, 128], sizes = [2, 128], strides = [1, 1]} : vector<2x512xf32> to vector<2x128xf32>
    %635 = arith.negf %634 : vector<2x128xf32>
    %636 = math.exp %635 : vector<2x128xf32>
    %cst_170 = arith.constant 1.000000e+00 : f32
    %637 = vector.broadcast %cst_170 : f32 to vector<2x128xf32>
    %638 = arith.addf %637, %636 : vector<2x128xf32>
    %639 = arith.divf %637, %638 : vector<2x128xf32>
    %640 = vector.extract_strided_slice %627 {offsets = [0, 256], sizes = [2, 128], strides = [1, 1]} : vector<2x512xf32> to vector<2x128xf32>
    %641 = math.tanh %640 : vector<2x128xf32>
    %642 = vector.extract_strided_slice %627 {offsets = [0, 384], sizes = [2, 128], strides = [1, 1]} : vector<2x512xf32> to vector<2x128xf32>
    %643 = arith.negf %642 : vector<2x128xf32>
    %644 = math.exp %643 : vector<2x128xf32>
    %cst_171 = arith.constant 1.000000e+00 : f32
    %645 = vector.broadcast %cst_171 : f32 to vector<2x128xf32>
    %646 = arith.addf %645, %644 : vector<2x128xf32>
    %647 = arith.divf %645, %646 : vector<2x128xf32>
    %648 = arith.mulf %639, %6 : vector<2x128xf32>
    %649 = arith.mulf %633, %641 : vector<2x128xf32>
    %650 = arith.addf %648, %649 : vector<2x128xf32>
    %651 = math.tanh %650 : vector<2x128xf32>
    %652 = arith.mulf %647, %651 : vector<2x128xf32>
    %653 = vector.extract_strided_slice %623 {offsets = [2, 0], sizes = [2, 512], strides = [1, 1]} : vector<16x512xf32> to vector<2x512xf32>
    %654 = arith.truncf %652 : vector<2x128xf32> to vector<2x128xbf16>
    %cst_172 = arith.constant dense<0.000000e+00> : vector<2x512xf32>
    %655 = tpu.matmul %654, %616, %cst_172 {dimension_numbers = #tpu.dot_dimension_numbers<[1], [0], [0], [1], [0, 0, 1, 1], [], []>} : vector<2x128xbf16>, vector<128x512xbf16>, vector<2x512xf32> -> vector<2x512xf32>
    %656 = arith.addf %653, %655 : vector<2x512xf32>
    %657 = vector.extract_strided_slice %656 {offsets = [0, 0], sizes = [2, 128], strides = [1, 1]} : vector<2x512xf32> to vector<2x128xf32>
    %658 = arith.negf %657 : vector<2x128xf32>
    %659 = math.exp %658 : vector<2x128xf32>
    %cst_173 = arith.constant 1.000000e+00 : f32
    %660 = vector.broadcast %cst_173 : f32 to vector<2x128xf32>
    %661 = arith.addf %660, %659 : vector<2x128xf32>
    %662 = arith.divf %660, %661 : vector<2x128xf32>
    %663 = vector.extract_strided_slice %656 {offsets = [0, 128], sizes = [2, 128], strides = [1, 1]} : vector<2x512xf32> to vector<2x128xf32>
    %664 = arith.negf %663 : vector<2x128xf32>
    %665 = math.exp %664 : vector<2x128xf32>
    %cst_174 = arith.constant 1.000000e+00 : f32
    %666 = vector.broadcast %cst_174 : f32 to vector<2x128xf32>
    %667 = arith.addf %666, %665 : vector<2x128xf32>
    %668 = arith.divf %666, %667 : vector<2x128xf32>
    %669 = vector.extract_strided_slice %656 {offsets = [0, 256], sizes = [2, 128], strides = [1, 1]} : vector<2x512xf32> to vector<2x128xf32>
    %670 = math.tanh %669 : vector<2x128xf32>
    %671 = vector.extract_strided_slice %656 {offsets = [0, 384], sizes = [2, 128], strides = [1, 1]} : vector<2x512xf32> to vector<2x128xf32>
    %672 = arith.negf %671 : vector<2x128xf32>
    %673 = math.exp %672 : vector<2x128xf32>
    %cst_175 = arith.constant 1.000000e+00 : f32
    %674 = vector.broadcast %cst_175 : f32 to vector<2x128xf32>
    %675 = arith.addf %674, %673 : vector<2x128xf32>
    %676 = arith.divf %674, %675 : vector<2x128xf32>
    %677 = arith.mulf %668, %650 : vector<2x128xf32>
    %678 = arith.mulf %662, %670 : vector<2x128xf32>
    %679 = arith.addf %677, %678 : vector<2x128xf32>
    %680 = math.tanh %679 : vector<2x128xf32>
    %681 = arith.mulf %676, %680 : vector<2x128xf32>
    %682 = vector.extract_strided_slice %623 {offsets = [4, 0], sizes = [2, 512], strides = [1, 1]} : vector<16x512xf32> to vector<2x512xf32>
    %683 = arith.truncf %681 : vector<2x128xf32> to vector<2x128xbf16>
    %cst_176 = arith.constant dense<0.000000e+00> : vector<2x512xf32>
    %684 = tpu.matmul %683, %616, %cst_176 {dimension_numbers = #tpu.dot_dimension_numbers<[1], [0], [0], [1], [0, 0, 1, 1], [], []>} : vector<2x128xbf16>, vector<128x512xbf16>, vector<2x512xf32> -> vector<2x512xf32>
    %685 = arith.addf %682, %684 : vector<2x512xf32>
    %686 = vector.extract_strided_slice %685 {offsets = [0, 0], sizes = [2, 128], strides = [1, 1]} : vector<2x512xf32> to vector<2x128xf32>
    %687 = arith.negf %686 : vector<2x128xf32>
    %688 = math.exp %687 : vector<2x128xf32>
    %cst_177 = arith.constant 1.000000e+00 : f32
    %689 = vector.broadcast %cst_177 : f32 to vector<2x128xf32>
    %690 = arith.addf %689, %688 : vector<2x128xf32>
    %691 = arith.divf %689, %690 : vector<2x128xf32>
    %692 = vector.extract_strided_slice %685 {offsets = [0, 128], sizes = [2, 128], strides = [1, 1]} : vector<2x512xf32> to vector<2x128xf32>
    %693 = arith.negf %692 : vector<2x128xf32>
    %694 = math.exp %693 : vector<2x128xf32>
    %cst_178 = arith.constant 1.000000e+00 : f32
    %695 = vector.broadcast %cst_178 : f32 to vector<2x128xf32>
    %696 = arith.addf %695, %694 : vector<2x128xf32>
    %697 = arith.divf %695, %696 : vector<2x128xf32>
    %698 = vector.extract_strided_slice %685 {offsets = [0, 256], sizes = [2, 128], strides = [1, 1]} : vector<2x512xf32> to vector<2x128xf32>
    %699 = math.tanh %698 : vector<2x128xf32>
    %700 = vector.extract_strided_slice %685 {offsets = [0, 384], sizes = [2, 128], strides = [1, 1]} : vector<2x512xf32> to vector<2x128xf32>
    %701 = arith.negf %700 : vector<2x128xf32>
    %702 = math.exp %701 : vector<2x128xf32>
    %cst_179 = arith.constant 1.000000e+00 : f32
    %703 = vector.broadcast %cst_179 : f32 to vector<2x128xf32>
    %704 = arith.addf %703, %702 : vector<2x128xf32>
    %705 = arith.divf %703, %704 : vector<2x128xf32>
    %706 = arith.mulf %697, %679 : vector<2x128xf32>
    %707 = arith.mulf %691, %699 : vector<2x128xf32>
    %708 = arith.addf %706, %707 : vector<2x128xf32>
    %709 = math.tanh %708 : vector<2x128xf32>
    %710 = arith.mulf %705, %709 : vector<2x128xf32>
    %711 = vector.extract_strided_slice %623 {offsets = [6, 0], sizes = [2, 512], strides = [1, 1]} : vector<16x512xf32> to vector<2x512xf32>
    %712 = arith.truncf %710 : vector<2x128xf32> to vector<2x128xbf16>
    %cst_180 = arith.constant dense<0.000000e+00> : vector<2x512xf32>
    %713 = tpu.matmul %712, %616, %cst_180 {dimension_numbers = #tpu.dot_dimension_numbers<[1], [0], [0], [1], [0, 0, 1, 1], [], []>} : vector<2x128xbf16>, vector<128x512xbf16>, vector<2x512xf32> -> vector<2x512xf32>
    %714 = arith.addf %711, %713 : vector<2x512xf32>
    %715 = vector.extract_strided_slice %714 {offsets = [0, 0], sizes = [2, 128], strides = [1, 1]} : vector<2x512xf32> to vector<2x128xf32>
    %716 = arith.negf %715 : vector<2x128xf32>
    %717 = math.exp %716 : vector<2x128xf32>
    %cst_181 = arith.constant 1.000000e+00 : f32
    %718 = vector.broadcast %cst_181 : f32 to vector<2x128xf32>
    %719 = arith.addf %718, %717 : vector<2x128xf32>
    %720 = arith.divf %718, %719 : vector<2x128xf32>
    %721 = vector.extract_strided_slice %714 {offsets = [0, 128], sizes = [2, 128], strides = [1, 1]} : vector<2x512xf32> to vector<2x128xf32>
    %722 = arith.negf %721 : vector<2x128xf32>
    %723 = math.exp %722 : vector<2x128xf32>
    %cst_182 = arith.constant 1.000000e+00 : f32
    %724 = vector.broadcast %cst_182 : f32 to vector<2x128xf32>
    %725 = arith.addf %724, %723 : vector<2x128xf32>
    %726 = arith.divf %724, %725 : vector<2x128xf32>
    %727 = vector.extract_strided_slice %714 {offsets = [0, 256], sizes = [2, 128], strides = [1, 1]} : vector<2x512xf32> to vector<2x128xf32>
    %728 = math.tanh %727 : vector<2x128xf32>
    %729 = vector.extract_strided_slice %714 {offsets = [0, 384], sizes = [2, 128], strides = [1, 1]} : vector<2x512xf32> to vector<2x128xf32>
    %730 = arith.negf %729 : vector<2x128xf32>
    %731 = math.exp %730 : vector<2x128xf32>
    %cst_183 = arith.constant 1.000000e+00 : f32
    %732 = vector.broadcast %cst_183 : f32 to vector<2x128xf32>
    %733 = arith.addf %732, %731 : vector<2x128xf32>
    %734 = arith.divf %732, %733 : vector<2x128xf32>
    %735 = arith.mulf %726, %708 : vector<2x128xf32>
    %736 = arith.mulf %720, %728 : vector<2x128xf32>
    %737 = arith.addf %735, %736 : vector<2x128xf32>
    %738 = math.tanh %737 : vector<2x128xf32>
    %739 = arith.mulf %734, %738 : vector<2x128xf32>
    %740 = vector.extract_strided_slice %623 {offsets = [8, 0], sizes = [2, 512], strides = [1, 1]} : vector<16x512xf32> to vector<2x512xf32>
    %741 = arith.truncf %739 : vector<2x128xf32> to vector<2x128xbf16>
    %cst_184 = arith.constant dense<0.000000e+00> : vector<2x512xf32>
    %742 = tpu.matmul %741, %616, %cst_184 {dimension_numbers = #tpu.dot_dimension_numbers<[1], [0], [0], [1], [0, 0, 1, 1], [], []>} : vector<2x128xbf16>, vector<128x512xbf16>, vector<2x512xf32> -> vector<2x512xf32>
    %743 = arith.addf %740, %742 : vector<2x512xf32>
    %744 = vector.extract_strided_slice %743 {offsets = [0, 0], sizes = [2, 128], strides = [1, 1]} : vector<2x512xf32> to vector<2x128xf32>
    %745 = arith.negf %744 : vector<2x128xf32>
    %746 = math.exp %745 : vector<2x128xf32>
    %cst_185 = arith.constant 1.000000e+00 : f32
    %747 = vector.broadcast %cst_185 : f32 to vector<2x128xf32>
    %748 = arith.addf %747, %746 : vector<2x128xf32>
    %749 = arith.divf %747, %748 : vector<2x128xf32>
    %750 = vector.extract_strided_slice %743 {offsets = [0, 128], sizes = [2, 128], strides = [1, 1]} : vector<2x512xf32> to vector<2x128xf32>
    %751 = arith.negf %750 : vector<2x128xf32>
    %752 = math.exp %751 : vector<2x128xf32>
    %cst_186 = arith.constant 1.000000e+00 : f32
    %753 = vector.broadcast %cst_186 : f32 to vector<2x128xf32>
    %754 = arith.addf %753, %752 : vector<2x128xf32>
    %755 = arith.divf %753, %754 : vector<2x128xf32>
    %756 = vector.extract_strided_slice %743 {offsets = [0, 256], sizes = [2, 128], strides = [1, 1]} : vector<2x512xf32> to vector<2x128xf32>
    %757 = math.tanh %756 : vector<2x128xf32>
    %758 = vector.extract_strided_slice %743 {offsets = [0, 384], sizes = [2, 128], strides = [1, 1]} : vector<2x512xf32> to vector<2x128xf32>
    %759 = arith.negf %758 : vector<2x128xf32>
    %760 = math.exp %759 : vector<2x128xf32>
    %cst_187 = arith.constant 1.000000e+00 : f32
    %761 = vector.broadcast %cst_187 : f32 to vector<2x128xf32>
    %762 = arith.addf %761, %760 : vector<2x128xf32>
    %763 = arith.divf %761, %762 : vector<2x128xf32>
    %764 = arith.mulf %755, %737 : vector<2x128xf32>
    %765 = arith.mulf %749, %757 : vector<2x128xf32>
    %766 = arith.addf %764, %765 : vector<2x128xf32>
    %767 = math.tanh %766 : vector<2x128xf32>
    %768 = arith.mulf %763, %767 : vector<2x128xf32>
    %769 = vector.extract_strided_slice %623 {offsets = [10, 0], sizes = [2, 512], strides = [1, 1]} : vector<16x512xf32> to vector<2x512xf32>
    %770 = arith.truncf %768 : vector<2x128xf32> to vector<2x128xbf16>
    %cst_188 = arith.constant dense<0.000000e+00> : vector<2x512xf32>
    %771 = tpu.matmul %770, %616, %cst_188 {dimension_numbers = #tpu.dot_dimension_numbers<[1], [0], [0], [1], [0, 0, 1, 1], [], []>} : vector<2x128xbf16>, vector<128x512xbf16>, vector<2x512xf32> -> vector<2x512xf32>
    %772 = arith.addf %769, %771 : vector<2x512xf32>
    %773 = vector.extract_strided_slice %772 {offsets = [0, 0], sizes = [2, 128], strides = [1, 1]} : vector<2x512xf32> to vector<2x128xf32>
    %774 = arith.negf %773 : vector<2x128xf32>
    %775 = math.exp %774 : vector<2x128xf32>
    %cst_189 = arith.constant 1.000000e+00 : f32
    %776 = vector.broadcast %cst_189 : f32 to vector<2x128xf32>
    %777 = arith.addf %776, %775 : vector<2x128xf32>
    %778 = arith.divf %776, %777 : vector<2x128xf32>
    %779 = vector.extract_strided_slice %772 {offsets = [0, 128], sizes = [2, 128], strides = [1, 1]} : vector<2x512xf32> to vector<2x128xf32>
    %780 = arith.negf %779 : vector<2x128xf32>
    %781 = math.exp %780 : vector<2x128xf32>
    %cst_190 = arith.constant 1.000000e+00 : f32
    %782 = vector.broadcast %cst_190 : f32 to vector<2x128xf32>
    %783 = arith.addf %782, %781 : vector<2x128xf32>
    %784 = arith.divf %782, %783 : vector<2x128xf32>
    %785 = vector.extract_strided_slice %772 {offsets = [0, 256], sizes = [2, 128], strides = [1, 1]} : vector<2x512xf32> to vector<2x128xf32>
    %786 = math.tanh %785 : vector<2x128xf32>
    %787 = vector.extract_strided_slice %772 {offsets = [0, 384], sizes = [2, 128], strides = [1, 1]} : vector<2x512xf32> to vector<2x128xf32>
    %788 = arith.negf %787 : vector<2x128xf32>
    %789 = math.exp %788 : vector<2x128xf32>
    %cst_191 = arith.constant 1.000000e+00 : f32
    %790 = vector.broadcast %cst_191 : f32 to vector<2x128xf32>
    %791 = arith.addf %790, %789 : vector<2x128xf32>
    %792 = arith.divf %790, %791 : vector<2x128xf32>
    %793 = arith.mulf %784, %766 : vector<2x128xf32>
    %794 = arith.mulf %778, %786 : vector<2x128xf32>
    %795 = arith.addf %793, %794 : vector<2x128xf32>
    %796 = math.tanh %795 : vector<2x128xf32>
    %797 = arith.mulf %792, %796 : vector<2x128xf32>
    %798 = vector.extract_strided_slice %623 {offsets = [12, 0], sizes = [2, 512], strides = [1, 1]} : vector<16x512xf32> to vector<2x512xf32>
    %799 = arith.truncf %797 : vector<2x128xf32> to vector<2x128xbf16>
    %cst_192 = arith.constant dense<0.000000e+00> : vector<2x512xf32>
    %800 = tpu.matmul %799, %616, %cst_192 {dimension_numbers = #tpu.dot_dimension_numbers<[1], [0], [0], [1], [0, 0, 1, 1], [], []>} : vector<2x128xbf16>, vector<128x512xbf16>, vector<2x512xf32> -> vector<2x512xf32>
    %801 = arith.addf %798, %800 : vector<2x512xf32>
    %802 = vector.extract_strided_slice %801 {offsets = [0, 0], sizes = [2, 128], strides = [1, 1]} : vector<2x512xf32> to vector<2x128xf32>
    %803 = arith.negf %802 : vector<2x128xf32>
    %804 = math.exp %803 : vector<2x128xf32>
    %cst_193 = arith.constant 1.000000e+00 : f32
    %805 = vector.broadcast %cst_193 : f32 to vector<2x128xf32>
    %806 = arith.addf %805, %804 : vector<2x128xf32>
    %807 = arith.divf %805, %806 : vector<2x128xf32>
    %808 = vector.extract_strided_slice %801 {offsets = [0, 128], sizes = [2, 128], strides = [1, 1]} : vector<2x512xf32> to vector<2x128xf32>
    %809 = arith.negf %808 : vector<2x128xf32>
    %810 = math.exp %809 : vector<2x128xf32>
    %cst_194 = arith.constant 1.000000e+00 : f32
    %811 = vector.broadcast %cst_194 : f32 to vector<2x128xf32>
    %812 = arith.addf %811, %810 : vector<2x128xf32>
    %813 = arith.divf %811, %812 : vector<2x128xf32>
    %814 = vector.extract_strided_slice %801 {offsets = [0, 256], sizes = [2, 128], strides = [1, 1]} : vector<2x512xf32> to vector<2x128xf32>
    %815 = math.tanh %814 : vector<2x128xf32>
    %816 = vector.extract_strided_slice %801 {offsets = [0, 384], sizes = [2, 128], strides = [1, 1]} : vector<2x512xf32> to vector<2x128xf32>
    %817 = arith.negf %816 : vector<2x128xf32>
    %818 = math.exp %817 : vector<2x128xf32>
    %cst_195 = arith.constant 1.000000e+00 : f32
    %819 = vector.broadcast %cst_195 : f32 to vector<2x128xf32>
    %820 = arith.addf %819, %818 : vector<2x128xf32>
    %821 = arith.divf %819, %820 : vector<2x128xf32>
    %822 = arith.mulf %813, %795 : vector<2x128xf32>
    %823 = arith.mulf %807, %815 : vector<2x128xf32>
    %824 = arith.addf %822, %823 : vector<2x128xf32>
    %825 = math.tanh %824 : vector<2x128xf32>
    %826 = arith.mulf %821, %825 : vector<2x128xf32>
    %827 = vector.extract_strided_slice %623 {offsets = [14, 0], sizes = [2, 512], strides = [1, 1]} : vector<16x512xf32> to vector<2x512xf32>
    %828 = arith.truncf %826 : vector<2x128xf32> to vector<2x128xbf16>
    %cst_196 = arith.constant dense<0.000000e+00> : vector<2x512xf32>
    %829 = tpu.matmul %828, %616, %cst_196 {dimension_numbers = #tpu.dot_dimension_numbers<[1], [0], [0], [1], [0, 0, 1, 1], [], []>} : vector<2x128xbf16>, vector<128x512xbf16>, vector<2x512xf32> -> vector<2x512xf32>
    %830 = arith.addf %827, %829 : vector<2x512xf32>
    %831 = vector.extract_strided_slice %830 {offsets = [0, 0], sizes = [2, 128], strides = [1, 1]} : vector<2x512xf32> to vector<2x128xf32>
    %832 = arith.negf %831 : vector<2x128xf32>
    %833 = math.exp %832 : vector<2x128xf32>
    %cst_197 = arith.constant 1.000000e+00 : f32
    %834 = vector.broadcast %cst_197 : f32 to vector<2x128xf32>
    %835 = arith.addf %834, %833 : vector<2x128xf32>
    %836 = arith.divf %834, %835 : vector<2x128xf32>
    %837 = vector.extract_strided_slice %830 {offsets = [0, 128], sizes = [2, 128], strides = [1, 1]} : vector<2x512xf32> to vector<2x128xf32>
    %838 = arith.negf %837 : vector<2x128xf32>
    %839 = math.exp %838 : vector<2x128xf32>
    %cst_198 = arith.constant 1.000000e+00 : f32
    %840 = vector.broadcast %cst_198 : f32 to vector<2x128xf32>
    %841 = arith.addf %840, %839 : vector<2x128xf32>
    %842 = arith.divf %840, %841 : vector<2x128xf32>
    %843 = vector.extract_strided_slice %830 {offsets = [0, 256], sizes = [2, 128], strides = [1, 1]} : vector<2x512xf32> to vector<2x128xf32>
    %844 = math.tanh %843 : vector<2x128xf32>
    %845 = vector.extract_strided_slice %830 {offsets = [0, 384], sizes = [2, 128], strides = [1, 1]} : vector<2x512xf32> to vector<2x128xf32>
    %846 = arith.negf %845 : vector<2x128xf32>
    %847 = math.exp %846 : vector<2x128xf32>
    %cst_199 = arith.constant 1.000000e+00 : f32
    %848 = vector.broadcast %cst_199 : f32 to vector<2x128xf32>
    %849 = arith.addf %848, %847 : vector<2x128xf32>
    %850 = arith.divf %848, %849 : vector<2x128xf32>
    %851 = arith.mulf %842, %824 : vector<2x128xf32>
    %852 = arith.mulf %836, %844 : vector<2x128xf32>
    %853 = arith.addf %851, %852 : vector<2x128xf32>
    %854 = math.tanh %853 : vector<2x128xf32>
    %855 = arith.mulf %850, %854 : vector<2x128xf32>
    %856 = tpu.concatenate %575, %80 in 1 : vector<2x128xf32>, vector<2x128xf32> -> vector<2x256xf32>
    %857 = arith.truncf %856 : vector<2x256xf32> to vector<2x256xbf16>
    %cst_200 = arith.constant dense<0.000000e+00> : vector<2x512xf32>
    %858 = tpu.matmul %857, %617, %cst_200 {dimension_numbers = #tpu.dot_dimension_numbers<[1], [0], [0], [1], [0, 0, 1, 1], [], []>} : vector<2x256xbf16>, vector<256x512xbf16>, vector<2x512xf32> -> vector<2x512xf32>
    %c0_201 = arith.constant 0 : index
    %c0_202 = arith.constant 0 : index
    %859 = vector.load %arg9[%c0_201, %c0_202] : memref<1x512xf32, #tpu.memory_space<vmem>>, vector<1x512xf32>
    %860 = vector.broadcast %859 : vector<1x512xf32> to vector<2x512xf32>
    %861 = arith.addf %858, %860 : vector<2x512xf32>
    %862 = vector.extract_strided_slice %861 {offsets = [0, 0], sizes = [2, 128], strides = [1, 1]} : vector<2x512xf32> to vector<2x128xf32>
    %863 = arith.negf %862 : vector<2x128xf32>
    %864 = math.exp %863 : vector<2x128xf32>
    %cst_203 = arith.constant 1.000000e+00 : f32
    %865 = vector.broadcast %cst_203 : f32 to vector<2x128xf32>
    %866 = arith.addf %865, %864 : vector<2x128xf32>
    %867 = arith.divf %865, %866 : vector<2x128xf32>
    %868 = vector.extract_strided_slice %861 {offsets = [0, 256], sizes = [2, 128], strides = [1, 1]} : vector<2x512xf32> to vector<2x128xf32>
    %869 = math.tanh %868 : vector<2x128xf32>
    %870 = vector.extract_strided_slice %861 {offsets = [0, 384], sizes = [2, 128], strides = [1, 1]} : vector<2x512xf32> to vector<2x128xf32>
    %871 = arith.negf %870 : vector<2x128xf32>
    %872 = math.exp %871 : vector<2x128xf32>
    %cst_204 = arith.constant 1.000000e+00 : f32
    %873 = vector.broadcast %cst_204 : f32 to vector<2x128xf32>
    %874 = arith.addf %873, %872 : vector<2x128xf32>
    %875 = arith.divf %873, %874 : vector<2x128xf32>
    %876 = arith.mulf %867, %869 : vector<2x128xf32>
    %877 = math.tanh %876 : vector<2x128xf32>
    %878 = arith.mulf %875, %877 : vector<2x128xf32>
    %879 = tpu.concatenate %855, %878 in 1 : vector<2x128xf32>, vector<2x128xf32> -> vector<2x256xf32>
    %cst_205 = arith.constant dense<0.000000e+00> : vector<2xf32>
    %880 = vector.multi_reduction <add>, %879, %cst_205 [1] : vector<2x256xf32> to vector<2xf32>
    %881 = vector.shape_cast %880 : vector<2xf32> to vector<2x1xf32>
    %cst_206 = arith.constant 2.560000e+02 : f32
    %882 = vector.broadcast %cst_206 : f32 to vector<2x1xf32>
    %883 = arith.divf %881, %882 : vector<2x1xf32>
    %884 = vector.broadcast %883 : vector<2x1xf32> to vector<2x256xf32>
    %885 = arith.subf %879, %884 : vector<2x256xf32>
    %886 = arith.mulf %885, %885 : vector<2x256xf32>
    %cst_207 = arith.constant dense<0.000000e+00> : vector<2xf32>
    %887 = vector.multi_reduction <add>, %886, %cst_207 [1] : vector<2x256xf32> to vector<2xf32>
    %888 = vector.shape_cast %887 : vector<2xf32> to vector<2x1xf32>
    %cst_208 = arith.constant 2.560000e+02 : f32
    %889 = vector.broadcast %cst_208 : f32 to vector<2x1xf32>
    %890 = arith.divf %888, %889 : vector<2x1xf32>
    %891 = vector.broadcast %883 : vector<2x1xf32> to vector<2x256xf32>
    %892 = arith.subf %879, %891 : vector<2x256xf32>
    %cst_209 = arith.constant 9.99999974E-6 : f32
    %893 = vector.broadcast %cst_209 : f32 to vector<2x1xf32>
    %894 = arith.addf %890, %893 : vector<2x1xf32>
    %895 = math.rsqrt %894 : vector<2x1xf32>
    %896 = vector.broadcast %895 : vector<2x1xf32> to vector<2x256xf32>
    %897 = arith.mulf %892, %896 : vector<2x256xf32>
    %c0_210 = arith.constant 0 : index
    %c0_211 = arith.constant 0 : index
    %898 = vector.load %arg10[%c0_210, %c0_211] : memref<1x256xf32, #tpu.memory_space<vmem>>, vector<1x256xf32>
    %899 = vector.broadcast %898 : vector<1x256xf32> to vector<2x256xf32>
    %900 = arith.mulf %897, %899 : vector<2x256xf32>
    %c0_212 = arith.constant 0 : index
    %c0_213 = arith.constant 0 : index
    %901 = vector.load %arg11[%c0_212, %c0_213] : memref<1x256xf32, #tpu.memory_space<vmem>>, vector<1x256xf32>
    %902 = vector.broadcast %901 : vector<1x256xf32> to vector<2x256xf32>
    %903 = arith.addf %900, %902 : vector<2x256xf32>
    %c0_214 = arith.constant 0 : index
    %c0_215 = arith.constant 0 : index
    %904 = vector.load %arg12[%c0_214, %c0_215] : memref<256x128xf32, #tpu.memory_space<vmem>>, vector<256x128xf32>
    %cst_216 = arith.constant dense<0.000000e+00> : vector<2x128xf32>
    %905 = tpu.matmul %903, %904, %cst_216 {dimension_numbers = #tpu.dot_dimension_numbers<[1], [0], [0], [1], [0, 0, 1, 1], [], []>} : vector<2x256xf32>, vector<256x128xf32>, vector<2x128xf32> -> vector<2x128xf32>
    %c0_217 = arith.constant 0 : index
    %c0_218 = arith.constant 0 : index
    %906 = vector.load %arg13[%c0_217, %c0_218] : memref<1x128xf32, #tpu.memory_space<vmem>>, vector<1x128xf32>
    %907 = vector.broadcast %906 : vector<1x128xf32> to vector<2x128xf32>
    %908 = arith.addf %905, %907 : vector<2x128xf32>
    %cst_219 = arith.constant 0.000000e+00 : f32
    %909 = vector.broadcast %cst_219 : f32 to vector<2x128xf32>
    %910 = arith.cmpf oge, %908, %909 : vector<2x128xf32>
    %cst_220 = arith.constant 0.00999999977 : f32
    %911 = vector.broadcast %cst_220 : f32 to vector<2x128xf32>
    %912 = arith.mulf %911, %908 : vector<2x128xf32>
    %913 = arith.select %910, %908, %912 : vector<2x128xi1>, vector<2x128xf32>
    %c0_221 = arith.constant 0 : index
    %c0_222 = arith.constant 0 : index
    %914 = vector.load %arg14[%c0_221, %c0_222] : memref<128x64xf32, #tpu.memory_space<vmem>>, vector<128x64xf32>
    %cst_223 = arith.constant dense<0.000000e+00> : vector<2x64xf32>
    %915 = tpu.matmul %913, %914, %cst_223 {dimension_numbers = #tpu.dot_dimension_numbers<[1], [0], [0], [1], [0, 0, 1, 1], [], []>} : vector<2x128xf32>, vector<128x64xf32>, vector<2x64xf32> -> vector<2x64xf32>
    %c0_224 = arith.constant 0 : index
    %c0_225 = arith.constant 0 : index
    %916 = vector.load %arg15[%c0_224, %c0_225] : memref<1x64xf32, #tpu.memory_space<vmem>>, vector<1x64xf32>
    %917 = vector.broadcast %916 : vector<1x64xf32> to vector<2x64xf32>
    %918 = arith.addf %915, %917 : vector<2x64xf32>
    %cst_226 = arith.constant 0.000000e+00 : f32
    %919 = vector.broadcast %cst_226 : f32 to vector<2x64xf32>
    %920 = arith.maximumf %918, %919 : vector<2x64xf32>
    %c0_227 = arith.constant 0 : index
    %c0_228 = arith.constant 0 : index
    %921 = vector.load %arg16[%c0_227, %c0_228] : memref<1x64xf32, #tpu.memory_space<vmem>>, vector<1x64xf32>
    %922 = vector.broadcast %921 : vector<1x64xf32> to vector<2x64xf32>
    %923 = arith.mulf %920, %922 : vector<2x64xf32>
    %cst_229 = arith.constant dense<0.000000e+00> : vector<2xf32>
    %924 = vector.multi_reduction <add>, %923, %cst_229 [1] : vector<2x64xf32> to vector<2xf32>
    %925 = vector.shape_cast %924 : vector<2xf32> to vector<2x1xf32>
    %c0_230 = arith.constant 0 : index
    %c0_231 = arith.constant 0 : index
    %926 = vector.load %arg17[%c0_230, %c0_231] : memref<1x1xf32, #tpu.memory_space<vmem>>, vector<1x1xf32>
    %927 = vector.broadcast %926 : vector<1x1xf32> to vector<2x1xf32>
    %928 = arith.addf %925, %927 : vector<2x1xf32>
    %c0_232 = arith.constant 0 : index
    %c0_233 = arith.constant 0 : index
    %929 = vector.load %arg18[%c0_232, %c0_233] : memref<2x1xf32, #tpu.memory_space<vmem>>, vector<2x1xf32>
    tpu.vector_store %arg18[%c0_232, %c0_233], %928 {strides = array<i32>} : memref<2x1xf32, #tpu.memory_space<vmem>>, vector<2x1xf32>,
    return
  }
}

</mosaic_0001>

<bundles_post_ra>
// kernel: forward.1
= control target key start
LH: loop header
LB: loop body
LE: loop exit
PB: predicated region body
PF: predicated region fallthrough
CT: control target
= control target key end

     0   :  { %s10874_s0 = inlined_call_operand.vmem [shape: f32[8,2], index: 0, kind: input, shape index: {}]   ;;  %s10875_s1 = inlined_call_operand.vmem [shape: f32[1,512], index: 1, kind: input, shape index: {}]   ;;  %s10876_s2 = inlined_call_operand.vmem [shape: f32[1,512], index: 2, kind: input, shape index: {}]   ;;  %s10877_s3 = inlined_call_operand.vmem [shape: bf16[128,512], index: 3, kind: input, shape index: {}]   ;;  %s10878_s4 = inlined_call_operand.vmem [shape: f32[1,512], index: 4, kind: input, shape index: {}]   ;;  %s10879_s5 = inlined_call_operand.vmem [shape: f32[1,512], index: 5, kind: input, shape index: {}]   ;;  %s10880_s6 = inlined_call_operand.vmem [shape: bf16[128,512], index: 6, kind: input, shape index: {}]   ;;  %s10881_s7 = inlined_call_operand.vmem [shape: bf16[640,512], index: 7, kind: input, shape index: {}]   ;;  %s10882_s8 = inlined_call_operand.vmem [shape: f32[1,512], index: 8, kind: input, shape index: {}]   ;;  %s10883_s9 = inlined_call_operand.vmem [shape: f32[1,512], index: 9, kind: input, shape index: {}]   ;;  %s10884_s10 = inlined_call_operand.vmem [shape: f32[1,256], index: 10, kind: input, shape index: {}]   ;;  %s10885_s11 = inlined_call_operand.vmem [shape: f32[1,256], index: 11, kind: input, shape index: {}]   ;;  %s10886_s12 = inlined_call_operand.vmem [shape: f32[256,128], index: 12, kind: input, shape index: {}]   ;;  %s10887_s13 = inlined_call_operand.vmem [shape: f32[1,128], index: 13, kind: input, shape index: {}]   ;;  %s10888_s14 = inlined_call_operand.vmem [shape: f32[128,64], index: 14, kind: input, shape index: {}]   ;;  %s10889_s15 = inlined_call_operand.vmem [shape: f32[1,64], index: 15, kind: input, shape index: {}]   ;;  %s10890_s16 = inlined_call_operand.vmem [shape: f32[1,64], index: 16, kind: input, shape index: {}]   ;;  %s10891_s17 = inlined_call_operand.<no memory space> [shape: f32[1,1], index: 17, kind: input, shape index: {}]   ;;  %s10892_s18 = inlined_call_operand.vmem [shape: f32[2,1], index: 18, kind: output, shape index: {}]  }
   0x1   :  { %11172 = sst [smem:[#allocation212_spill]] %s10874_s0  ;;  %v23_v0 = vstv %s10891_s17 }
   0x2   :  { %11173 = sst [smem:[#allocation213_spill]] %s10875_s1  ;;  %24 = vst [vmem:[#allocation5] sm:$0x1] %v23_v0 }
   0x3   :  { %11174 = sst [smem:[#allocation214_spill]] %s10876_s2 }
   0x4   :  { %25 = vsyncpa [#allocation7], 0  ;;  %s11175_s0 = sld [smem:[#allocation212_spill]] }
   0xa   :  { %s32_s19 = sshll.u32 %s11175_s0, 4  ;;  %s33_s19 = int_to_ptr.vmem [resolvable:$true] %s32_s19 }
   0xb   :  { %s7061_s1 = scalar_lea.vmem %s33_s19, 128  ;;  %p7066_p1 = scmp.lt.s32.totalorder %s33_s19, %s33_s19 }
   0xc   :  { %p7062_p0 = scmp.ne.s32.totalorder %s33_s19, %s7061_s1  ;;  %p7067_p2 = scmp.lt.s32.totalorder %s7061_s1, %s7061_s1 }
   0xe   :  { %p7068_p3 = por %p7067_p2, %p7066_p1 }
  0x10   :  { %p7069_p4 = pnand %p7068_p3, %p7062_p0 }
  0x12   :  { %7072 = shalt.err (!%p7069_p4)
}
  0x13   :  { %s7077_s20 = smov [#allocation6]  }
  0x14   :  { %35 = dma.vmem_to_smem %s33_s19, 128, %s7077_s20, [#allocation7]  }
  0x15   :  { %7073 = dma.done.wait [#allocation7], 128  }
  0x16   :  { %7074 = vsyncadd [#allocation7], 4294967168 }
  0x17   :  { %71 = sfence }
  0x18   :  { %v7185_v1 = vld [vmem:[%s10881_s7] sm:$0xff]  ;;  %v7190_v2 = vld [vmem:[%s10881_s7 + $0x8] sm:$0xff]  ;;  %v7195_v3 = vld [vmem:[%s10881_s7 + $0x10] sm:$0xff] }
  0x19   :  { %11176 = vst [vmem:[#allocation11_spill] sm:$0xff] %v7185_v1  ;;  %11177 = vst [vmem:[#allocation12_spill] sm:$0xff] %v7190_v2  ;;  %v7200_v4 = vld [vmem:[%s10881_s7 + $0x18] sm:$0xff]  ;;  %v7205_v5 = vld [vmem:[%s10881_s7 + $0x20] sm:$0xff] }
  0x1a   :  { %11178 = vst [vmem:[#allocation13_spill] sm:$0xff] %v7195_v3  ;;  %11179 = vst [vmem:[#allocation14_spill] sm:$0xff] %v7200_v4  ;;  %v7210_v6 = vld [vmem:[%s10881_s7 + $0x28] sm:$0xff]  ;;  %v7215_v7 = vld [vmem:[%s10881_s7 + $0x30] sm:$0xff] }
  0x1b   :  { %11180 = vst [vmem:[#allocation15_spill] sm:$0xff] %v7205_v5  ;;  %11181 = vst [vmem:[#allocation16_spill] sm:$0xff] %v7210_v6  ;;  %v7220_v8 = vld [vmem:[%s10881_s7 + $0x38] sm:$0xff]  ;;  %v7225_v9 = vld [vmem:[%s10881_s7 + $0x40] sm:$0xff] }
  0x1c   :  { %11182 = vst [vmem:[#allocation17_spill] sm:$0xff] %v7215_v7  ;;  %11183 = vst [vmem:[#allocation18_spill] sm:$0xff] %v7220_v8  ;;  %v7230_v10 = vld [vmem:[%s10881_s7 + $0x48] sm:$0xff]  ;;  %v7235_v11 = vld [vmem:[%s10881_s7 + $0x50] sm:$0xff] }
  0x1d   :  { %11184 = vst [vmem:[#allocation19_spill] sm:$0xff] %v7225_v9  ;;  %11185 = vst [vmem:[#allocation20_spill] sm:$0xff] %v7230_v10  ;;  %v7240_v12 = vld [vmem:[%s10881_s7 + $0x58] sm:$0xff]  ;;  %v7245_v13 = vld [vmem:[%s10881_s7 + $0x60] sm:$0xff] }
  0x1e   :  { %11186 = vst [vmem:[#allocation21_spill] sm:$0xff] %v7235_v11  ;;  %11187 = vst [vmem:[#allocation22_spill] sm:$0xff] %v7240_v12  ;;  %v7250_v14 = vld [vmem:[%s10881_s7 + $0x68] sm:$0xff]  ;;  %v7255_v15 = vld [vmem:[%s10881_s7 + $0x70] sm:$0xff] }
  0x1f   :  { %11188 = vst [vmem:[#allocation23_spill] sm:$0xff] %v7245_v13  ;;  %11189 = vst [vmem:[#allocation24_spill] sm:$0xff] %v7250_v14  ;;  %v7260_v16 = vld [vmem:[%s10881_s7 + $0x78] sm:$0xff]  ;;  %v7265_v17 = vld [vmem:[%s10881_s7 + $0x80] sm:$0xff] }
  0x20   :  { %11190 = vst [vmem:[#allocation25_spill] sm:$0xff] %v7255_v15  ;;  %11191 = vst [vmem:[#allocation26_spill] sm:$0xff] %v7260_v16  ;;  %v7270_v18 = vld [vmem:[%s10881_s7 + $0x88] sm:$0xff]  ;;  %v7275_v19 = vld [vmem:[%s10881_s7 + $0x90] sm:$0xff] }
  0x21   :  { %11192 = vst [vmem:[#allocation27_spill] sm:$0xff] %v7265_v17  ;;  %11193 = vst [vmem:[#allocation28_spill] sm:$0xff] %v7270_v18  ;;  %v7280_v20 = vld [vmem:[%s10881_s7 + $0x98] sm:$0xff]  ;;  %v7285_v21 = vld [vmem:[%s10881_s7 + $0xa0] sm:$0xff] }
  0x22   :  { %11194 = vst [vmem:[#allocation29_spill] sm:$0xff] %v7275_v19  ;;  %11195 = vst [vmem:[#allocation30_spill] sm:$0xff] %v7280_v20  ;;  %v7290_v22 = vld [vmem:[%s10881_s7 + $0xa8] sm:$0xff]  ;;  %v7295_v23 = vld [vmem:[%s10881_s7 + $0xb0] sm:$0xff] }
  0x23   :  { %11196 = vst [vmem:[#allocation31_spill] sm:$0xff] %v7285_v21  ;;  %11197 = vst [vmem:[#allocation32_spill] sm:$0xff] %v7290_v22  ;;  %v7300_v24 = vld [vmem:[%s10881_s7 + $0xb8] sm:$0xff]  ;;  %v7305_v25 = vld [vmem:[%s10881_s7 + $0xc0] sm:$0xff] }
  0x24   :  { %11198 = vst [vmem:[#allocation33_spill] sm:$0xff] %v7295_v23  ;;  %11199 = vst [vmem:[#allocation34_spill] sm:$0xff] %v7300_v24  ;;  %v7310_v26 = vld [vmem:[%s10881_s7 + $0xc8] sm:$0xff]  ;;  %v7315_v27 = vld [vmem:[%s10881_s7 + $0xd0] sm:$0xff] }
  0x25   :  { %11200 = vst [vmem:[#allocation35_spill] sm:$0xff] %v7305_v25  ;;  %11201 = vst [vmem:[#allocation36_spill] sm:$0xff] %v7310_v26  ;;  %v7320_v28 = vld [vmem:[%s10881_s7 + $0xd8] sm:$0xff]  ;;  %v7325_v29 = vld [vmem:[%s10881_s7 + $0xe0] sm:$0xff] }
  0x26   :  { %11202 = vst [vmem:[#allocation37_spill] sm:$0xff] %v7315_v27  ;;  %11203 = vst [vmem:[#allocation38_spill] sm:$0xff] %v7320_v28  ;;  %v7330_v30 = vld [vmem:[%s10881_s7 + $0xe8] sm:$0xff]  ;;  %v7335_v31 = vld [vmem:[%s10881_s7 + $0xf0] sm:$0xff] }
  0x27   :  { %11204 = vst [vmem:[#allocation39_spill] sm:$0xff] %v7325_v29  ;;  %11205 = vst [vmem:[#allocation40_spill] sm:$0xff] %v7330_v30  ;;  %v7340_v32 = vld [vmem:[%s10881_s7 + $0xf8] sm:$0xff]  ;;  %v7345_v33 = vld [vmem:[%s10881_s7 + $0x100] sm:$0xff] }
  0x28   :  { %11206 = vst [vmem:[#allocation41_spill] sm:$0xff] %v7335_v31  ;;  %11207 = vst [vmem:[#allocation42_spill] sm:$0xff] %v7340_v32  ;;  %v7350_v34 = vld [vmem:[%s10881_s7 + $0x108] sm:$0xff]  ;;  %v7355_v35 = vld [vmem:[%s10881_s7 + $0x110] sm:$0xff] }
  0x29   :  { %11208 = vst [vmem:[#allocation43_spill] sm:$0xff] %v7345_v33  ;;  %11209 = vst [vmem:[#allocation44_spill] sm:$0xff] %v7350_v34  ;;  %v7360_v36 = vld [vmem:[%s10881_s7 + $0x118] sm:$0xff]  ;;  %v7365_v37 = vld [vmem:[%s10881_s7 + $0x120] sm:$0xff] }
  0x2a   :  { %11210 = vst [vmem:[#allocation45_spill] sm:$0xff] %v7355_v35  ;;  %11211 = vst [vmem:[#allocation46_spill] sm:$0xff] %v7360_v36  ;;  %v7370_v38 = vld [vmem:[%s10881_s7 + $0x128] sm:$0xff]  ;;  %v7375_v39 = vld [vmem:[%s10881_s7 + $0x130] sm:$0xff] }
  0x2b   :  { %11212 = vst [vmem:[#allocation47_spill] sm:$0xff] %v7365_v37  ;;  %11213 = vst [vmem:[#allocation48_spill] sm:$0xff] %v7370_v38  ;;  %v7380_v40 = vld [vmem:[%s10881_s7 + $0x138] sm:$0xff]  ;;  %v7385_v41 = vld [vmem:[%s10881_s7 + $0x140] sm:$0xff] }
  0x2c   :  { %11214 = vst [vmem:[#allocation49_spill] sm:$0xff] %v7375_v39  ;;  %11215 = vst [vmem:[#allocation50_spill] sm:$0xff] %v7380_v40  ;;  %v7390_v42 = vld [vmem:[%s10881_s7 + $0x148] sm:$0xff]  ;;  %v7395_v43 = vld [vmem:[%s10881_s7 + $0x150] sm:$0xff] }
  0x2d   :  { %11216 = vst [vmem:[#allocation51_spill] sm:$0xff] %v7385_v41  ;;  %11217 = vst [vmem:[#allocation52_spill] sm:$0xff] %v7390_v42  ;;  %v7400_v44 = vld [vmem:[%s10881_s7 + $0x158] sm:$0xff]  ;;  %v7405_v45 = vld [vmem:[%s10881_s7 + $0x160] sm:$0xff] }
  0x2e   :  { %11218 = vst [vmem:[#allocation53_spill] sm:$0xff] %v7395_v43  ;;  %11219 = vst [vmem:[#allocation54_spill] sm:$0xff] %v7400_v44  ;;  %v7410_v46 = vld [vmem:[%s10881_s7 + $0x168] sm:$0xff]  ;;  %v7415_v47 = vld [vmem:[%s10881_s7 + $0x170] sm:$0xff] }
  0x2f   :  { %11220 = vst [vmem:[#allocation55_spill] sm:$0xff] %v7405_v45  ;;  %11221 = vst [vmem:[#allocation56_spill] sm:$0xff] %v7410_v46  ;;  %v7420_v48 = vld [vmem:[%s10881_s7 + $0x178] sm:$0xff]  ;;  %v7425_v49 = vld [vmem:[%s10881_s7 + $0x180] sm:$0xff] }
  0x30   :  { %11222 = vst [vmem:[#allocation57_spill] sm:$0xff] %v7415_v47  ;;  %11223 = vst [vmem:[#allocation58_spill] sm:$0xff] %v7420_v48  ;;  %v7430_v50 = vld [vmem:[%s10881_s7 + $0x188] sm:$0xff]  ;;  %v7435_v51 = vld [vmem:[%s10881_s7 + $0x190] sm:$0xff] }
  0x31   :  { %11224 = vst [vmem:[#allocation59_spill] sm:$0xff] %v7425_v49  ;;  %11225 = vst [vmem:[#allocation60_spill] sm:$0xff] %v7430_v50  ;;  %v7440_v52 = vld [vmem:[%s10881_s7 + $0x198] sm:$0xff]  ;;  %v7445_v53 = vld [vmem:[%s10881_s7 + $0x1a0] sm:$0xff] }
  0x32   :  { %11226 = vst [vmem:[#allocation61_spill] sm:$0xff] %v7435_v51  ;;  %11227 = vst [vmem:[#allocation62_spill] sm:$0xff] %v7440_v52  ;;  %v7450_v54 = vld [vmem:[%s10881_s7 + $0x1a8] sm:$0xff]  ;;  %v7455_v55 = vld [vmem:[%s10881_s7 + $0x1b0] sm:$0xff] }
  0x33   :  { %11228 = vst [vmem:[#allocation63_spill] sm:$0xff] %v7445_v53  ;;  %11229 = vst [vmem:[#allocation64_spill] sm:$0xff] %v7450_v54  ;;  %v7460_v56 = vld [vmem:[%s10881_s7 + $0x1b8] sm:$0xff]  ;;  %v7465_v57 = vld [vmem:[%s10881_s7 + $0x1c0] sm:$0xff] }
  0x34   :  { %11230 = vst [vmem:[#allocation65_spill] sm:$0xff] %v7455_v55  ;;  %11231 = vst [vmem:[#allocation66_spill] sm:$0xff] %v7460_v56  ;;  %v7470_v58 = vld [vmem:[%s10881_s7 + $0x1c8] sm:$0xff]  ;;  %v7475_v59 = vld [vmem:[%s10881_s7 + $0x1d0] sm:$0xff] }
  0x35   :  { %11232 = vst [vmem:[#allocation67_spill] sm:$0xff] %v7465_v57  ;;  %11233 = vst [vmem:[#allocation68_spill] sm:$0xff] %v7470_v58  ;;  %v7480_v60 = vld [vmem:[%s10881_s7 + $0x1d8] sm:$0xff]  ;;  %v7485_v61 = vld [vmem:[%s10881_s7 + $0x1e0] sm:$0xff] }
  0x36   :  { %11234 = vst [vmem:[#allocation69_spill] sm:$0xff] %v7475_v59  ;;  %11235 = vst [vmem:[#allocation70_spill] sm:$0xff] %v7480_v60  ;;  %v7490_v62 = vld [vmem:[%s10881_s7 + $0x1e8] sm:$0xff]  ;;  %v7495_v63 = vld [vmem:[%s10881_s7 + $0x1f0] sm:$0xff] }
  0x37   :  { %11236 = vst [vmem:[#allocation71_spill] sm:$0xff] %v7485_v61  ;;  %11237 = vst [vmem:[#allocation72_spill] sm:$0xff] %v7490_v62  ;;  %v7500_v0 = vld [vmem:[%s10881_s7 + $0x1f8] sm:$0xff]  ;;  %v7505_v34 = vld [vmem:[%s10881_s7 + $0x200] sm:$0xff] }
  0x38   :  { %11238 = vst [vmem:[#allocation73_spill] sm:$0xff] %v7495_v63  ;;  %11239 = vst [vmem:[#allocation74_spill] sm:$0xff] %v7500_v0  ;;  %v7510_v36 = vld [vmem:[%s10881_s7 + $0x208] sm:$0xff]  ;;  %v7515_v33 = vld [vmem:[%s10881_s7 + $0x210] sm:$0xff] }
  0x39   :  { %11240 = vst [vmem:[#allocation75_spill] sm:$0xff] %v7505_v34  ;;  %11241 = vst [vmem:[#allocation76_spill] sm:$0xff] %v7510_v36  ;;  %v7520_v35 = vld [vmem:[%s10881_s7 + $0x218] sm:$0xff]  ;;  %v7525_v38 = vld [vmem:[%s10881_s7 + $0x220] sm:$0xff] }
  0x3a   :  { %11242 = vst [vmem:[#allocation77_spill] sm:$0xff] %v7515_v33  ;;  %11243 = vst [vmem:[#allocation78_spill] sm:$0xff] %v7520_v35  ;;  %v7530_v34 = vld [vmem:[%s10881_s7 + $0x228] sm:$0xff]  ;;  %v7535_v36 = vld [vmem:[%s10881_s7 + $0x230] sm:$0xff] }
  0x3b   :  { %11244 = vst [vmem:[#allocation79_spill] sm:$0xff] %v7525_v38  ;;  %11245 = vst [vmem:[#allocation80_spill] sm:$0xff] %v7530_v34  ;;  %v7540_v33 = vld [vmem:[%s10881_s7 + $0x238] sm:$0xff]  ;;  %v7545_v35 = vld [vmem:[%s10881_s7 + $0x240] sm:$0xff] }
  0x3c   :  { %11246 = vst [vmem:[#allocation81_spill] sm:$0xff] %v7535_v36  ;;  %11247 = vst [vmem:[#allocation82_spill] sm:$0xff] %v7540_v33  ;;  %v7550_v38 = vld [vmem:[%s10881_s7 + $0x248] sm:$0xff]  ;;  %v7555_v34 = vld [vmem:[%s10881_s7 + $0x250] sm:$0xff] }
  0x3d   :  { %11248 = vst [vmem:[#allocation83_spill] sm:$0xff] %v7545_v35  ;;  %11249 = vst [vmem:[#allocation84_spill] sm:$0xff] %v7550_v38  ;;  %v7560_v36 = vld [vmem:[%s10881_s7 + $0x258] sm:$0xff]  ;;  %v7565_v33 = vld [vmem:[%s10881_s7 + $0x260] sm:$0xff] }
  0x3e   :  { %11250 = vst [vmem:[#allocation85_spill] sm:$0xff] %v7555_v34  ;;  %11251 = vst [vmem:[#allocation86_spill] sm:$0xff] %v7560_v36  ;;  %v7570_v35 = vld [vmem:[%s10881_s7 + $0x268] sm:$0xff]  ;;  %v7575_v38 = vld [vmem:[%s10881_s7 + $0x270] sm:$0xff] }
  0x3f   :  { %11252 = vst [vmem:[#allocation87_spill] sm:$0xff] %v7565_v33  ;;  %11253 = vst [vmem:[#allocation88_spill] sm:$0xff] %v7570_v35  ;;  %v7580_v34 = vld [vmem:[%s10881_s7 + $0x278] sm:$0xff]  ;;  %v7585_v36 = vld [vmem:[%s10881_s7 + $0x280] sm:$0xff] }
  0x40   :  { %11254 = vst [vmem:[#allocation89_spill] sm:$0xff] %v7575_v38  ;;  %11255 = vst [vmem:[#allocation90_spill] sm:$0xff] %v7580_v34  ;;  %v7590_v33 = vld [vmem:[%s10881_s7 + $0x288] sm:$0xff]  ;;  %v7595_v35 = vld [vmem:[%s10881_s7 + $0x290] sm:$0xff] }
  0x41   :  { %11256 = vst [vmem:[#allocation91_spill] sm:$0xff] %v7585_v36  ;;  %11257 = vst [vmem:[#allocation92_spill] sm:$0xff] %v7590_v33  ;;  %v7600_v38 = vld [vmem:[%s10881_s7 + $0x298] sm:$0xff]  ;;  %v7605_v34 = vld [vmem:[%s10881_s7 + $0x2a0] sm:$0xff] }
  0x42   :  { %11258 = vst [vmem:[#allocation93_spill] sm:$0xff] %v7595_v35  ;;  %11259 = vst [vmem:[#allocation94_spill] sm:$0xff] %v7600_v38  ;;  %v7610_v36 = vld [vmem:[%s10881_s7 + $0x2a8] sm:$0xff]  ;;  %v7615_v33 = vld [vmem:[%s10881_s7 + $0x2b0] sm:$0xff] }
  0x43   :  { %11260 = vst [vmem:[#allocation95_spill] sm:$0xff] %v7605_v34  ;;  %11261 = vst [vmem:[#allocation96_spill] sm:$0xff] %v7610_v36  ;;  %v7620_v35 = vld [vmem:[%s10881_s7 + $0x2b8] sm:$0xff]  ;;  %v7625_v38 = vld [vmem:[%s10881_s7 + $0x2c0] sm:$0xff] }
  0x44   :  { %11262 = vst [vmem:[#allocation97_spill] sm:$0xff] %v7615_v33  ;;  %11263 = vst [vmem:[#allocation98_spill] sm:$0xff] %v7620_v35  ;;  %v7630_v34 = vld [vmem:[%s10881_s7 + $0x2c8] sm:$0xff]  ;;  %v7635_v36 = vld [vmem:[%s10881_s7 + $0x2d0] sm:$0xff] }
  0x45   :  { %11264 = vst [vmem:[#allocation99_spill] sm:$0xff] %v7625_v38  ;;  %11265 = vst [vmem:[#allocation100_spill] sm:$0xff] %v7630_v34  ;;  %v7640_v33 = vld [vmem:[%s10881_s7 + $0x2d8] sm:$0xff]  ;;  %v7645_v35 = vld [vmem:[%s10881_s7 + $0x2e0] sm:$0xff] }
  0x46   :  { %11266 = vst [vmem:[#allocation101_spill] sm:$0xff] %v7635_v36  ;;  %11267 = vst [vmem:[#allocation102_spill] sm:$0xff] %v7640_v33  ;;  %v7650_v38 = vld [vmem:[%s10881_s7 + $0x2e8] sm:$0xff]  ;;  %v7655_v34 = vld [vmem:[%s10881_s7 + $0x2f0] sm:$0xff] }
  0x47   :  { %11268 = vst [vmem:[#allocation103_spill] sm:$0xff] %v7645_v35  ;;  %11269 = vst [vmem:[#allocation104_spill] sm:$0xff] %v7650_v38  ;;  %v7660_v36 = vld [vmem:[%s10881_s7 + $0x2f8] sm:$0xff]  ;;  %v7665_v33 = vld [vmem:[%s10881_s7 + $0x300] sm:$0xff] }
  0x48   :  { %11270 = vst [vmem:[#allocation105_spill] sm:$0xff] %v7655_v34  ;;  %11271 = vst [vmem:[#allocation106_spill] sm:$0xff] %v7660_v36  ;;  %v7670_v35 = vld [vmem:[%s10881_s7 + $0x308] sm:$0xff]  ;;  %v7675_v38 = vld [vmem:[%s10881_s7 + $0x310] sm:$0xff] }
  0x49   :  { %11272 = vst [vmem:[#allocation107_spill] sm:$0xff] %v7665_v33  ;;  %11273 = vst [vmem:[#allocation108_spill] sm:$0xff] %v7670_v35  ;;  %v7680_v34 = vld [vmem:[%s10881_s7 + $0x318] sm:$0xff]  ;;  %v7685_v36 = vld [vmem:[%s10881_s7 + $0x320] sm:$0xff] }
  0x4a   :  { %11274 = vst [vmem:[#allocation109_spill] sm:$0xff] %v7675_v38  ;;  %11275 = vst [vmem:[#allocation110_spill] sm:$0xff] %v7680_v34  ;;  %v7690_v33 = vld [vmem:[%s10881_s7 + $0x328] sm:$0xff]  ;;  %v7695_v35 = vld [vmem:[%s10881_s7 + $0x330] sm:$0xff] }
  0x4b   :  { %11276 = vst [vmem:[#allocation111_spill] sm:$0xff] %v7685_v36  ;;  %11277 = vst [vmem:[#allocation112_spill] sm:$0xff] %v7690_v33  ;;  %v7700_v38 = vld [vmem:[%s10881_s7 + $0x338] sm:$0xff]  ;;  %v7705_v34 = vld [vmem:[%s10881_s7 + $0x340] sm:$0xff] }
  0x4c   :  { %11278 = vst [vmem:[#allocation113_spill] sm:$0xff] %v7695_v35  ;;  %11279 = vst [vmem:[#allocation114_spill] sm:$0xff] %v7700_v38  ;;  %v7710_v36 = vld [vmem:[%s10881_s7 + $0x348] sm:$0xff]  ;;  %v7715_v33 = vld [vmem:[%s10881_s7 + $0x350] sm:$0xff] }
  0x4d   :  { %11280 = vst [vmem:[#allocation115_spill] sm:$0xff] %v7705_v34  ;;  %11281 = vst [vmem:[#allocation116_spill] sm:$0xff] %v7710_v36  ;;  %v7720_v35 = vld [vmem:[%s10881_s7 + $0x358] sm:$0xff]  ;;  %v7725_v38 = vld [vmem:[%s10881_s7 + $0x360] sm:$0xff] }
  0x4e   :  { %11282 = vst [vmem:[#allocation117_spill] sm:$0xff] %v7715_v33  ;;  %11283 = vst [vmem:[#allocation118_spill] sm:$0xff] %v7720_v35  ;;  %v7730_v34 = vld [vmem:[%s10881_s7 + $0x368] sm:$0xff]  ;;  %v7735_v36 = vld [vmem:[%s10881_s7 + $0x370] sm:$0xff] }
  0x4f   :  { %11284 = vst [vmem:[#allocation119_spill] sm:$0xff] %v7725_v38  ;;  %11285 = vst [vmem:[#allocation120_spill] sm:$0xff] %v7730_v34  ;;  %v7740_v33 = vld [vmem:[%s10881_s7 + $0x378] sm:$0xff]  ;;  %v7745_v35 = vld [vmem:[%s10881_s7 + $0x380] sm:$0xff] }
  0x50   :  { %11286 = vst [vmem:[#allocation121_spill] sm:$0xff] %v7735_v36  ;;  %11287 = vst [vmem:[#allocation122_spill] sm:$0xff] %v7740_v33  ;;  %v7750_v38 = vld [vmem:[%s10881_s7 + $0x388] sm:$0xff]  ;;  %v7755_v34 = vld [vmem:[%s10881_s7 + $0x390] sm:$0xff] }
  0x51   :  { %11288 = vst [vmem:[#allocation123_spill] sm:$0xff] %v7745_v35  ;;  %11289 = vst [vmem:[#allocation124_spill] sm:$0xff] %v7750_v38  ;;  %v7760_v36 = vld [vmem:[%s10881_s7 + $0x398] sm:$0xff]  ;;  %v7765_v33 = vld [vmem:[%s10881_s7 + $0x3a0] sm:$0xff] }
  0x52   :  { %11290 = vst [vmem:[#allocation125_spill] sm:$0xff] %v7755_v34  ;;  %11291 = vst [vmem:[#allocation126_spill] sm:$0xff] %v7760_v36  ;;  %v7770_v35 = vld [vmem:[%s10881_s7 + $0x3a8] sm:$0xff]  ;;  %v7775_v38 = vld [vmem:[%s10881_s7 + $0x3b0] sm:$0xff] }
  0x53   :  { %11292 = vst [vmem:[#allocation127_spill] sm:$0xff] %v7765_v33  ;;  %11293 = vst [vmem:[#allocation128_spill] sm:$0xff] %v7770_v35  ;;  %v7780_v34 = vld [vmem:[%s10881_s7 + $0x3b8] sm:$0xff]  ;;  %v7785_v36 = vld [vmem:[%s10881_s7 + $0x3c0] sm:$0xff] }
  0x54   :  { %11294 = vst [vmem:[#allocation129_spill] sm:$0xff] %v7775_v38  ;;  %11295 = vst [vmem:[#allocation130_spill] sm:$0xff] %v7780_v34  ;;  %v7790_v33 = vld [vmem:[%s10881_s7 + $0x3c8] sm:$0xff]  ;;  %v7795_v35 = vld [vmem:[%s10881_s7 + $0x3d0] sm:$0xff] }
  0x55   :  { %11296 = vst [vmem:[#allocation131_spill] sm:$0xff] %v7785_v36  ;;  %11297 = vst [vmem:[#allocation132_spill] sm:$0xff] %v7790_v33  ;;  %v7800_v38 = vld [vmem:[%s10881_s7 + $0x3d8] sm:$0xff]  ;;  %v7805_v34 = vld [vmem:[%s10881_s7 + $0x3e0] sm:$0xff] }
  0x56   :  { %11298 = vst [vmem:[#allocation133_spill] sm:$0xff] %v7795_v35  ;;  %11299 = vst [vmem:[#allocation134_spill] sm:$0xff] %v7800_v38  ;;  %v7810_v36 = vld [vmem:[%s10881_s7 + $0x3e8] sm:$0xff]  ;;  %v7815_v33 = vld [vmem:[%s10881_s7 + $0x3f0] sm:$0xff] }
  0x57   :  { %11300 = vst [vmem:[#allocation135_spill] sm:$0xff] %v7805_v34  ;;  %11301 = vst [vmem:[#allocation136_spill] sm:$0xff] %v7810_v36  ;;  %v7820_v35 = vld [vmem:[%s10881_s7 + $0x3f8] sm:$0xff]  ;;  %v7825_v38 = vld [vmem:[%s10881_s7 + $0x400] sm:$0xff] }
  0x58   :  { %11302 = vst [vmem:[#allocation137_spill] sm:$0xff] %v7815_v33  ;;  %11303 = vst [vmem:[#allocation138_spill] sm:$0xff] %v7820_v35  ;;  %v7830_v34 = vld [vmem:[%s10881_s7 + $0x408] sm:$0xff]  ;;  %v7835_v36 = vld [vmem:[%s10881_s7 + $0x410] sm:$0xff] }
  0x59   :  { %11304 = vst [vmem:[#allocation139_spill] sm:$0xff] %v7825_v38  ;;  %11305 = vst [vmem:[#allocation140_spill] sm:$0xff] %v7830_v34  ;;  %v7840_v33 = vld [vmem:[%s10881_s7 + $0x418] sm:$0xff]  ;;  %v7845_v35 = vld [vmem:[%s10881_s7 + $0x420] sm:$0xff] }
  0x5a   :  { %11306 = vst [vmem:[#allocation141_spill] sm:$0xff] %v7835_v36  ;;  %11307 = vst [vmem:[#allocation142_spill] sm:$0xff] %v7840_v33  ;;  %v7850_v38 = vld [vmem:[%s10881_s7 + $0x428] sm:$0xff]  ;;  %v7855_v34 = vld [vmem:[%s10881_s7 + $0x430] sm:$0xff] }
  0x5b   :  { %11308 = vst [vmem:[#allocation143_spill] sm:$0xff] %v7845_v35  ;;  %11309 = vst [vmem:[#allocation144_spill] sm:$0xff] %v7850_v38  ;;  %v7860_v36 = vld [vmem:[%s10881_s7 + $0x438] sm:$0xff]  ;;  %v7865_v33 = vld [vmem:[%s10881_s7 + $0x440] sm:$0xff] }
  0x5c   :  { %11310 = vst [vmem:[#allocation145_spill] sm:$0xff] %v7855_v34  ;;  %11311 = vst [vmem:[#allocation146_spill] sm:$0xff] %v7860_v36  ;;  %v7870_v35 = vld [vmem:[%s10881_s7 + $0x448] sm:$0xff]  ;;  %v7875_v38 = vld [vmem:[%s10881_s7 + $0x450] sm:$0xff] }
  0x5d   :  { %11312 = vst [vmem:[#allocation147_spill] sm:$0xff] %v7865_v33  ;;  %11313 = vst [vmem:[#allocation148_spill] sm:$0xff] %v7870_v35  ;;  %v7880_v34 = vld [vmem:[%s10881_s7 + $0x458] sm:$0xff]  ;;  %v7885_v36 = vld [vmem:[%s10881_s7 + $0x460] sm:$0xff] }
  0x5e   :  { %11314 = vst [vmem:[#allocation149_spill] sm:$0xff] %v7875_v38  ;;  %11315 = vst [vmem:[#allocation150_spill] sm:$0xff] %v7880_v34  ;;  %v7890_v33 = vld [vmem:[%s10881_s7 + $0x468] sm:$0xff]  ;;  %v7895_v35 = vld [vmem:[%s10881_s7 + $0x470] sm:$0xff] }
  0x5f   :  { %11316 = vst [vmem:[#allocation151_spill] sm:$0xff] %v7885_v36  ;;  %11317 = vst [vmem:[#allocation152_spill] sm:$0xff] %v7890_v33  ;;  %v7900_v38 = vld [vmem:[%s10881_s7 + $0x478] sm:$0xff]  ;;  %v7905_v34 = vld [vmem:[%s10881_s7 + $0x480] sm:$0xff] }
  0x60   :  { %11318 = vst [vmem:[#allocation153_spill] sm:$0xff] %v7895_v35  ;;  %11319 = vst [vmem:[#allocation154_spill] sm:$0xff] %v7900_v38  ;;  %v7910_v36 = vld [vmem:[%s10881_s7 + $0x488] sm:$0xff]  ;;  %v7915_v33 = vld [vmem:[%s10881_s7 + $0x490] sm:$0xff] }
  0x61   :  { %11320 = vst [vmem:[#allocation155_spill] sm:$0xff] %v7905_v34  ;;  %11321 = vst [vmem:[#allocation156_spill] sm:$0xff] %v7910_v36  ;;  %v7920_v35 = vld [vmem:[%s10881_s7 + $0x498] sm:$0xff]  ;;  %v7925_v38 = vld [vmem:[%s10881_s7 + $0x4a0] sm:$0xff] }
  0x62   :  { %11322 = vst [vmem:[#allocation157_spill] sm:$0xff] %v7915_v33  ;;  %11323 = vst [vmem:[#allocation158_spill] sm:$0xff] %v7920_v35  ;;  %v7930_v34 = vld [vmem:[%s10881_s7 + $0x4a8] sm:$0xff]  ;;  %v7935_v36 = vld [vmem:[%s10881_s7 + $0x4b0] sm:$0xff] }
  0x63   :  { %11324 = vst [vmem:[#allocation159_spill] sm:$0xff] %v7925_v38  ;;  %11325 = vst [vmem:[#allocation160_spill] sm:$0xff] %v7930_v34  ;;  %v7940_v33 = vld [vmem:[%s10881_s7 + $0x4b8] sm:$0xff]  ;;  %v7945_v35 = vld [vmem:[%s10881_s7 + $0x4c0] sm:$0xff] }
  0x64   :  { %11326 = vst [vmem:[#allocation161_spill] sm:$0xff] %v7935_v36  ;;  %11327 = vst [vmem:[#allocation162_spill] sm:$0xff] %v7940_v33  ;;  %v7950_v38 = vld [vmem:[%s10881_s7 + $0x4c8] sm:$0xff]  ;;  %v7955_v34 = vld [vmem:[%s10881_s7 + $0x4d0] sm:$0xff] }
  0x65   :  { %11328 = vst [vmem:[#allocation163_spill] sm:$0xff] %v7945_v35  ;;  %11329 = vst [vmem:[#allocation164_spill] sm:$0xff] %v7950_v38  ;;  %v7960_v36 = vld [vmem:[%s10881_s7 + $0x4d8] sm:$0xff]  ;;  %v7965_v33 = vld [vmem:[%s10881_s7 + $0x4e0] sm:$0xff] }
  0x66   :  { %11330 = vst [vmem:[#allocation165_spill] sm:$0xff] %v7955_v34  ;;  %11331 = vst [vmem:[#allocation166_spill] sm:$0xff] %v7960_v36  ;;  %v7970_v35 = vld [vmem:[%s10881_s7 + $0x4e8] sm:$0xff]  ;;  %v7975_v38 = vld [vmem:[%s10881_s7 + $0x4f0] sm:$0xff] }
  0x67   :  { %11332 = vst [vmem:[#allocation167_spill] sm:$0xff] %v7965_v33  ;;  %11333 = vst [vmem:[#allocation168_spill] sm:$0xff] %v7970_v35  ;;  %v7980_v34 = vld [vmem:[%s10881_s7 + $0x4f8] sm:$0xff] }
  0x68   :  { %11334 = vst [vmem:[#allocation169_spill] sm:$0xff] %v7975_v38  ;;  %11335 = vst [vmem:[#allocation170_spill] sm:$0xff] %v7980_v34 }
  0x69   :  { %433 = vsyncadd [#allocation4], 20480  ;;  %v7985_v36 = vld [vmem:[%s10877_s3 + $0xe4] ss:$16 sps:$4 sm:$0xff]   ;;  %v7990_v35 = vld [vmem:[%s10877_s3 + $0xe0] ss:$16 sps:$4 sm:$0xff]  }
  0x6a   :  { %v10996_v33 = vmov 0   ;;  %v7997_v34 = vld [vmem:[%s10877_s3 + $0xc4] ss:$16 sps:$4 sm:$0xff]   ;;  %717 = vmatprep.subr.bf16.mxu0 %v7985_v36  ;;  %v8004_v38 = vld [vmem:[%s10877_s3 + $0xc0] ss:$16 sps:$4 sm:$0xff]   ;;  %v11362_v6 = vmov 0  }
  0x6b   :  { %749 = vmatprep.mubr.bf16.mxu0 %v10996_v33  ;;  %790 = vmatprep.mubr.bf16.mxu1 %v10996_v33  ;;  %v8010_v33 = vld [vmem:[%s10877_s3 + $0xa4] ss:$16 sps:$4 sm:$0xff]   ;;  %v8015_v40 = vld [vmem:[%s10877_s3 + $0xec] ss:$16 sps:$4 sm:$0xff]   ;;  %v8020_v37 = vld [vmem:[%s10877_s3 + $0xe8] ss:$16 sps:$4 sm:$0xff]  }
  0x6c   :  { %718 = vmatpush1.bf16.msra.mxu0 %v7990_v35  ;;  %11336 = vst [vmem:[#allocation171_spill] sm:$0xff] %v8010_v33  ;;  %v8025_v39 = vld [vmem:[%s10877_s3 + $0xa0] ss:$16 sps:$4 sm:$0xff]   ;;  %758 = vmatprep.subr.bf16.mxu1 %v8015_v40  ;;  %v8032_v42 = vld [vmem:[%s10877_s3 + $0xcc] ss:$16 sps:$4 sm:$0xff]   ;;  %s502_s27 = sld [smem:[#allocation6]] }
  0x6d   :  { %719 = vmatprep.subr.bf16.mxu0 %v7997_v34  ;;  %11337 = vst [vmem:[#allocation172_spill] sm:$0xff] %v8025_v39  ;;  %v8038_v44 = vld [vmem:[%s10877_s3 + $0x84] ss:$16 sps:$4 sm:$0xff]   ;;  %759 = vmatpush1.bf16.msra.mxu1 %v8020_v37  ;;  %v8044_v41 = vld [vmem:[%s10877_s3 + $0xc8] ss:$16 sps:$4 sm:$0xff]   ;;  %s6007_s28 = sld [smem:[#allocation6 + $0x1]] }
  0x6e   :  { %11338 = vst [vmem:[#allocation173_spill] sm:$0xff] %v8038_v44  ;;  %760 = vmatprep.subr.bf16.mxu1 %v8032_v42  ;;  %v8050_v43 = vld [vmem:[%s10877_s3 + $0x80] ss:$16 sps:$4 sm:$0xff]   ;;  %v8055_v46 = vld [vmem:[%s10877_s3 + $0xac] ss:$16 sps:$4 sm:$0xff]   ;;  %s11364_s0 = sld [smem:[#allocation213_spill]] }
  0x6f   :  { %11339 = vst [vmem:[#allocation174_spill] sm:$0xff] %v8050_v43  ;;  %11340 = vst [vmem:[#allocation175_spill] sm:$0xff] %v8055_v46  ;;  %v8061_v48 = vld [vmem:[%s10877_s3 + $0x64] ss:$16 sps:$4 sm:$0xff]   ;;  %v8068_v45 = vld [vmem:[%s10877_s3 + $0xa8] ss:$16 sps:$4 sm:$0xff]  }
  0x70   :  { %720 = vmatpush1.bf16.msra.mxu0 %v8004_v38  ;;  %11341 = vst [vmem:[#allocation176_spill] sm:$0xff] %v8061_v48  ;;  %11342 = vst [vmem:[#allocation177_spill] sm:$0xff] %v8068_v45  ;;  %v8074_v47 = vld [vmem:[%s10877_s3 + $0x8c] ss:$16 sps:$4 sm:$0xff]   ;;  %v8080_v50 = vld [vmem:[%s10877_s3 + $0x60] ss:$16 sps:$4 sm:$0xff]  }
  0x71   :  { %721 = vmatprep.subr.bf16.mxu0 %v8010_v33  ;;  %761 = vmatpush1.bf16.msra.mxu1 %v8044_v41  ;;  %11343 = vst [vmem:[#allocation178_spill] sm:$0xff] %v8074_v47  ;;  %11344 = vst [vmem:[#allocation179_spill] sm:$0xff] %v8080_v50  ;;  %v8086_v52 = vld [vmem:[%s10877_s3 + $0x44] ss:$16 sps:$4 sm:$0xff]   ;;  %v8092_v49 = vld [vmem:[%s10877_s3 + $0x88] ss:$16 sps:$4 sm:$0xff]  }
  0x72   :  { %762 = vmatprep.subr.bf16.mxu1 %v8055_v46  ;;  %11345 = vst [vmem:[#allocation180_spill] sm:$0xff] %v8086_v52  ;;  %11346 = vst [vmem:[#allocation181_spill] sm:$0xff] %v8092_v49  ;;  %v8098_v51 = vld [vmem:[%s10877_s3 + $0x6c] ss:$16 sps:$4 sm:$0xff]   ;;  %v8103_v54 = vld [vmem:[%s10877_s3 + $0x40] ss:$16 sps:$4 sm:$0xff]  }
  0x73   :  { %11347 = vst [vmem:[#allocation182_spill] sm:$0xff] %v8098_v51  ;;  %11348 = vst [vmem:[#allocation183_spill] sm:$0xff] %v8103_v54  ;;  %v8109_v56 = vld [vmem:[%s10877_s3 + $0x24] ss:$16 sps:$4 sm:$0xff]   ;;  %v8116_v53 = vld [vmem:[%s10877_s3 + $0x68] ss:$16 sps:$4 sm:$0xff]  }
  0x74   :  { %722 = vmatpush1.bf16.msra.mxu0 %v8025_v39  ;;  %11349 = vst [vmem:[#allocation184_spill] sm:$0xff] %v8109_v56  ;;  %11350 = vst [vmem:[#allocation185_spill] sm:$0xff] %v8116_v53  ;;  %v8122_v55 = vld [vmem:[%s10877_s3 + $0x4c] ss:$16 sps:$4 sm:$0xff]   ;;  %v8128_v58 = vld [vmem:[%s10877_s3 + $0x20] ss:$16 sps:$4 sm:$0xff]  }
  0x75   :  { %723 = vmatprep.subr.bf16.mxu0 %v8038_v44  ;;  %763 = vmatpush1.bf16.msra.mxu1 %v8068_v45  ;;  %11351 = vst [vmem:[#allocation186_spill] sm:$0xff] %v8122_v55  ;;  %11352 = vst [vmem:[#allocation187_spill] sm:$0xff] %v8128_v58  ;;  %v8134_v60 = vld [vmem:[%s10877_s3 + $0x4] ss:$16 sps:$4 sm:$0xff]   ;;  %v8140_v57 = vld [vmem:[%s10877_s3 + $0x48] ss:$16 sps:$4 sm:$0xff]  }
  0x76   :  { %764 = vmatprep.subr.bf16.mxu1 %v8074_v47  ;;  %11353 = vst [vmem:[#allocation188_spill] sm:$0xff] %v8134_v60  ;;  %11354 = vst [vmem:[#allocation189_spill] sm:$0xff] %v8140_v57  ;;  %v8146_v59 = vld [vmem:[%s10877_s3 + $0x2c] ss:$16 sps:$4 sm:$0xff]   ;;  %v8151_v62 = vld [vmem:[%s10877_s3] ss:$16 sps:$4 sm:$0xff]  }
  0x77   :  { %11355 = vst [vmem:[#allocation190_spill] sm:$0xff] %v8146_v59  ;;  %11356 = vst [vmem:[#allocation191_spill] sm:$0xff] %v8151_v62  ;;  %v8157_v0 = vld [vmem:[%s10880_s6 + $0xe4] ss:$16 sps:$4 sm:$0xff]   ;;  %v8164_v61 = vld [vmem:[%s10877_s3 + $0x28] ss:$16 sps:$4 sm:$0xff]  }
  0x78   :  { %724 = vmatpush1.bf16.msra.mxu0 %v8050_v43  ;;  %11357 = vst [vmem:[#allocation192_spill] sm:$0xff] %v8157_v0  ;;  %11358 = vst [vmem:[#allocation193_spill] sm:$0xff] %v8164_v61  ;;  %v8170_v63 = vld [vmem:[%s10877_s3 + $0xc] ss:$16 sps:$4 sm:$0xff]   ;;  %v8176_v2 = vld [vmem:[%s10880_s6 + $0xe0] ss:$16 sps:$4 sm:$0xff]  }
  0x79   :  { %725 = vmatprep.subr.bf16.mxu0 %v8061_v48  ;;  %765 = vmatpush1.bf16.msra.mxu1 %v8092_v49  ;;  %11359 = vst [vmem:[#allocation194_spill] sm:$0xff] %v8170_v63  ;;  %v8182_v4 = vld [vmem:[%s10880_s6 + $0xc4] ss:$16 sps:$4 sm:$0xff]   ;;  %v8188_v1 = vld [vmem:[%s10877_s3 + $0x8] ss:$16 sps:$4 sm:$0xff]   ;;  %s11366_s20 = sld [smem:[#allocation214_spill]] }
  0x7a   :  { %766 = vmatprep.subr.bf16.mxu1 %v8098_v51  ;;  %11360 = vst [vmem:[#allocation195_spill] sm:$0xff] %v8188_v1  ;;  %v8194_v3 = vld [vmem:[%s10880_s6 + $0xec] ss:$16 sps:$4 sm:$0xff]   ;;  %v8200_v8 = vld [vmem:[%s10880_s6 + $0xc0] ss:$16 sps:$4 sm:$0xff]   ;;  %vm552_vm0 = vcmask 1040384  }
  0x7b   :  { %11361 = vst [vmem:[#allocation196_spill] sm:$0xff] %v8194_v3  ;;  %v8206_v5 = vld [vmem:[%s10880_s6 + $0xa4] ss:$16 sps:$4 sm:$0xff]   ;;  %v8214_v7 = vld [vmem:[%s10880_s6 + $0xe8] ss:$16 sps:$4 sm:$0xff]   ;;  %s6043_s17 = sld [smem:[#allocation6 + $0x380]] }
  0x7c   :  { %726 = vmatpush1.bf16.msra.mxu0 %v8080_v50  ;;  %v8220_v10 = vld [vmem:[%s10880_s6 + $0xcc] ss:$16 sps:$4 sm:$0xff]   ;;  %v8226_v12 = vld [vmem:[%s10880_s6 + $0xa0] ss:$16 sps:$4 sm:$0xff]   ;;  %v8233_v9 = vld [vmem:[%s10880_s6 + $0x84] ss:$16 sps:$4 sm:$0xff]  }
  0x7d   :  { %727 = vmatprep.subr.bf16.mxu0 %v8086_v52  ;;  %767 = vmatpush1.bf16.msra.mxu1 %v8116_v53  ;;  %v8239_v11 = vld [vmem:[%s10880_s6 + $0xc8] ss:$16 sps:$4 sm:$0xff]   ;;  %v8245_v14 = vld [vmem:[%s10880_s6 + $0xac] ss:$16 sps:$4 sm:$0xff]   ;;  %v8252_v16 = vld [vmem:[%s10880_s6 + $0x80] ss:$16 sps:$4 sm:$0xff]  }
  0x7e   :  { %768 = vmatprep.subr.bf16.mxu1 %v8122_v55  ;;  %v8258_v13 = vld [vmem:[%s10880_s6 + $0x64] ss:$16 sps:$4 sm:$0xff]   ;;  %v8264_v15 = vld [vmem:[%s10880_s6 + $0xa8] ss:$16 sps:$4 sm:$0xff]   ;;  %v8270_v18 = vld [vmem:[%s10880_s6 + $0x8c] ss:$16 sps:$4 sm:$0xff]  }
  0x7f   :  { %v8276_v20 = vld [vmem:[%s10880_s6 + $0x60] ss:$16 sps:$4 sm:$0xff]   ;;  %v8282_v17 = vld [vmem:[%s10880_s6 + $0x44] ss:$16 sps:$4 sm:$0xff]   ;;  %v8288_v19 = vld [vmem:[%s10880_s6 + $0x88] ss:$16 sps:$4 sm:$0xff]  }
  0x80   :  { %728 = vmatpush1.bf16.msra.mxu0 %v8103_v54  ;;  %v8294_v22 = vld [vmem:[%s10880_s6 + $0x6c] ss:$16 sps:$4 sm:$0xff]   ;;  %v8300_v24 = vld [vmem:[%s10880_s6 + $0x40] ss:$16 sps:$4 sm:$0xff]   ;;  %v8306_v21 = vld [vmem:[%s10880_s6 + $0x24] ss:$16 sps:$4 sm:$0xff]  }
  0x81   :  { %729 = vmatprep.subr.bf16.mxu0 %v8109_v56  ;;  %769 = vmatpush1.bf16.msra.mxu1 %v8140_v57  ;;  %v8312_v23 = vld [vmem:[%s10880_s6 + $0x68] ss:$16 sps:$4 sm:$0xff]   ;;  %v8318_v26 = vld [vmem:[%s10880_s6 + $0x4c] ss:$16 sps:$4 sm:$0xff]   ;;  %v8324_v28 = vld [vmem:[%s10880_s6 + $0x20] ss:$16 sps:$4 sm:$0xff]  }
  0x82   :  { %770 = vmatprep.subr.bf16.mxu1 %v8146_v59  ;;  %v8330_v25 = vld [vmem:[%s10880_s6 + $0x4] ss:$16 sps:$4 sm:$0xff]   ;;  %v8336_v27 = vld [vmem:[%s10880_s6 + $0x48] ss:$16 sps:$4 sm:$0xff]   ;;  %v8342_v30 = vld [vmem:[%s10880_s6 + $0x2c] ss:$16 sps:$4 sm:$0xff]  }
  0x83   :  { %11363 = vst [vmem:[#allocation197_spill] sm:$0xff] %v8330_v25  ;;  %v8348_v32 = vld [vmem:[%s10880_s6] ss:$16 sps:$4 sm:$0xff]   ;;  %v8355_v29 = vld [vmem:[%s10880_s6 + $0x28] ss:$16 sps:$4 sm:$0xff]   ;;  %s6044_s21 = sld [smem:[#allocation6 + $0x381]] }
  0x84   :  { %730 = vmatpush1.bf16.msra.mxu0 %v8128_v58  ;;  %v8361_v31 = vld [vmem:[%s10880_s6 + $0xc] ss:$16 sps:$4 sm:$0xff]   ;;  %s6080_s7 = sld [smem:[#allocation6 + $0x80]] }
  0x85   :  { %731 = vmatprep.subr.bf16.mxu0 %v8134_v60  ;;  %771 = vmatpush1.bf16.msra.mxu1 %v8164_v61  ;;  %s6081_s25 = sld [smem:[#allocation6 + $0x81]] }
  0x86   :  { %772 = vmatprep.subr.bf16.mxu1 %v8170_v63  ;;  %s6085_s26 = sld [smem:[#allocation6 + $0x300]] }
  0x87   :  { %s6090_s2 = sld [smem:[#allocation6 + $0x100]] }
  0x88   :  { %732 = vmatpush1.bf16.msra.mxu0 %v8151_v62  ;;  %s6091_s23 = sld [smem:[#allocation6 + $0x101]] }
  0x89   :  { %1041 = vmatprep.subr.bf16.mxu0 %v8157_v0  ;;  %773 = vmatpush1.bf16.msra.mxu1 %v8188_v1  ;;  %s8838_s24 = sld [smem:[#allocation6 + $0x280]] }
  0x8a   :  { %1082 = vmatprep.subr.bf16.mxu1 %v8194_v3 }
  0x8b   :  { %750 = vmatmul.mubr.bf16.vlgmr.msra.gmra.mxu0 %v11362_v6 }
  0x8c   :  { %1042 = vmatpush1.bf16.msra.mxu0 %v8176_v2  ;;  %1073 = vmatprep.mubr.bf16.mxu0 %v11362_v6 }
  0x8d   :  { %1043 = vmatprep.subr.bf16.mxu0 %v8182_v4  ;;  %791 = vmatmul.mubr.bf16.vlgmr.msra.gmra.mxu1 %v11362_v6 }
  0x8e   :  { %1083 = vmatpush1.bf16.msra.mxu1 %v8214_v7  ;;  %1114 = vmatprep.mubr.bf16.mxu1 %v11362_v6 }
  0x8f   :  { %1084 = vmatprep.subr.bf16.mxu1 %v8220_v10 }
  0x90   :  { %1044 = vmatpush1.bf16.msra.mxu0 %v8200_v8 }
  0x91   :  { %1045 = vmatprep.subr.bf16.mxu0 %v8206_v5 }
  0x92   :  { %1085 = vmatpush1.bf16.msra.mxu1 %v8239_v11 }
  0x93   :  { %1086 = vmatprep.subr.bf16.mxu1 %v8245_v14 }
  0x94   :  { %1046 = vmatpush1.bf16.msra.mxu0 %v8226_v12 }
  0x95   :  { %1047 = vmatprep.subr.bf16.mxu0 %v8233_v9 }
  0x96   :  { %1087 = vmatpush1.bf16.msra.mxu1 %v8264_v15 }
  0x97   :  { %1088 = vmatprep.subr.bf16.mxu1 %v8270_v18 }
  0x98   :  { %1048 = vmatpush1.bf16.msra.mxu0 %v8252_v16 }
  0x99   :  { %1049 = vmatprep.subr.bf16.mxu0 %v8258_v13 }
  0x9a   :  { %1089 = vmatpush1.bf16.msra.mxu1 %v8288_v19 }
  0x9b   :  { %1090 = vmatprep.subr.bf16.mxu1 %v8294_v22 }
  0x9c   :  { %1050 = vmatpush1.bf16.msra.mxu0 %v8276_v20 }
  0x9d   :  { %1051 = vmatprep.subr.bf16.mxu0 %v8282_v17 }
  0x9e   :  { %1091 = vmatpush1.bf16.msra.mxu1 %v8312_v23 }
  0x9f   :  { %1092 = vmatprep.subr.bf16.mxu1 %v8318_v26 }
  0xa0   :  { %1052 = vmatpush1.bf16.msra.mxu0 %v8300_v24 }
  0xa1   :  { %1053 = vmatprep.subr.bf16.mxu0 %v8306_v21 }
  0xa2   :  { %1093 = vmatpush1.bf16.msra.mxu1 %v8336_v27 }
  0xa3   :  { %1094 = vmatprep.subr.bf16.mxu1 %v8342_v30 }
  0xa4   :  { %1054 = vmatpush1.bf16.msra.mxu0 %v8324_v28 }
  0xa5   :  { %1055 = vmatprep.subr.bf16.mxu0 %v8330_v25  ;;  %v8368_v25 = vld [vmem:[%s10880_s6 + $0x8] ss:$16 sps:$4 sm:$0xff]  }
  0xa6   :  { %1095 = vmatpush1.bf16.msra.mxu1 %v8355_v29 }
  0xa7   :  { %1096 = vmatprep.subr.bf16.mxu1 %v8361_v31 }
  0xa8   :  { %1056 = vmatpush1.bf16.msra.mxu0 %v8348_v32 }
  0xa9   :  { %1211 = vmatprep.subr.bf16.mxu0 %v7985_v36 }
  0xaa   :  { %1097 = vmatpush1.bf16.msra.mxu1 %v8368_v25 }
  0xab   :  { %1074 = vmatmul.mubr.bf16.vlgmr.msra.gmra.mxu0 %v11362_v6  ;;  %1252 = vmatprep.subr.bf16.mxu1 %v8015_v40 }
  0xac   :  { %1212 = vmatpush1.bf16.msra.mxu0 %v7990_v35  ;;  %1243 = vmatprep.mubr.bf16.mxu0 %v11362_v6 }
  0xad   :  { %1213 = vmatprep.subr.bf16.mxu0 %v7997_v34  ;;  %1115 = vmatmul.mubr.bf16.vlgmr.msra.gmra.mxu1 %v11362_v6 }
  0xae   :  { %1253 = vmatpush1.bf16.msra.mxu1 %v8020_v37  ;;  %1284 = vmatprep.mubr.bf16.mxu1 %v11362_v6 }
  0xaf   :  { %1254 = vmatprep.subr.bf16.mxu1 %v8032_v42 }
  0xb0   :  { %1214 = vmatpush1.bf16.msra.mxu0 %v8004_v38 }
  0xb1   :  { %1215 = vmatprep.subr.bf16.mxu0 %v8010_v33 }
  0xb2   :  { %1255 = vmatpush1.bf16.msra.mxu1 %v8044_v41 }
  0xb3   :  { %1256 = vmatprep.subr.bf16.mxu1 %v8055_v46 }
  0xb4   :  { %1216 = vmatpush1.bf16.msra.mxu0 %v8025_v39 }
  0xb5   :  { %1217 = vmatprep.subr.bf16.mxu0 %v8038_v44 }
  0xb6   :  { %1257 = vmatpush1.bf16.msra.mxu1 %v8068_v45 }
  0xb7   :  { %1258 = vmatprep.subr.bf16.mxu1 %v8074_v47 }
  0xb8   :  { %1218 = vmatpush1.bf16.msra.mxu0 %v8050_v43 }
  0xb9   :  { %1219 = vmatprep.subr.bf16.mxu0 %v8061_v48 }
  0xba   :  { %1259 = vmatpush1.bf16.msra.mxu1 %v8092_v49 }
  0xbb   :  { %1260 = vmatprep.subr.bf16.mxu1 %v8098_v51 }
  0xbc   :  { %1220 = vmatpush1.bf16.msra.mxu0 %v8080_v50 }
  0xbd   :  { %1221 = vmatprep.subr.bf16.mxu0 %v8086_v52 }
  0xbe   :  { %1261 = vmatpush1.bf16.msra.mxu1 %v8116_v53 }
  0xbf   :  { %1262 = vmatprep.subr.bf16.mxu1 %v8122_v55 }
  0xc0   :  { %1222 = vmatpush1.bf16.msra.mxu0 %v8103_v54 }
  0xc1   :  { %1223 = vmatprep.subr.bf16.mxu0 %v8109_v56 }
  0xc2   :  { %1263 = vmatpush1.bf16.msra.mxu1 %v8140_v57 }
  0xc3   :  { %1264 = vmatprep.subr.bf16.mxu1 %v8146_v59  ;;  %v503_v59 = vstv %s502_s27  ;;  %s6086_s27 = sld [smem:[#allocation6 + $0x301]] }
  0xc4   :  { %1224 = vmatpush1.bf16.msra.mxu0 %v8128_v58  ;;  %v511_v58 = vlaneseq }
  0xc5   :  { %1225 = vmatprep.subr.bf16.mxu0 %v8134_v60  ;;  %v8413_v60 = vld [vmem:[%s11364_s0] sm:$0xf] }
  0xc6   :  { %1265 = vmatpush1.bf16.msra.mxu1 %v8164_v61  ;;  %11365 = vst [vmem:[#allocation198_spill] sm:$0xff] %v8413_v60  ;;  %v504_v61 = vmul.f32 %v503_v59, %v8413_v60  ;;  %v512_v56 = vshrl.u32 %v511_v58, 7 }
  0xc7   :  { %1266 = vmatprep.subr.bf16.mxu1 %v8170_v63 }
  0xc8   :  { %1226 = vmatpush1.bf16.msra.mxu0 %v8151_v62  ;;  %v507_v62 = vstv %s6007_s28  ;;  %v8424_v57 = vsub.s32 0, %v512_v56  ;;  %v8426_v54 = vsub.s32 1, %v512_v56  ;;  %v8433_v52 = vsub.s32 3, %v512_v56 }
  0xc9   :  { %1376 = vmatprep.subr.bf16.mxu0 %v8157_v0  ;;  %v508_v0 = vmul.f32 %v507_v62, %v8413_v60  ;;  %v8438_v47 = vsub.s32 2, %v512_v56 }
  0xca   :  { %1267 = vmatpush1.bf16.msra.mxu1 %v8188_v1  ;;  %v8420_v1 = vld [vmem:[%s11366_s20] sm:$0xf]  ;;  %11368 = vst [vmem:[#allocation200_spill] sm:$0xff] %v8424_v57  ;;  %11369 = vst [vmem:[#allocation201_spill] sm:$0xff] %v8426_v54 }
  0xcb   :  { %1417 = vmatprep.subr.bf16.mxu1 %v8194_v3  ;;  %11367 = vst [vmem:[#allocation199_spill] sm:$0xff] %v8420_v1  ;;  %v505_v3 = vadd.f32 %v504_v61, %v8420_v1  ;;  %v509_v63 = vadd.f32 %v508_v0, %v8420_v1  ;;  %11370 = vst [vmem:[#allocation202_spill] sm:$0xff] %v8438_v47 }
  0xcd   :  { %v514_v55 = vrot.slane %v505_v3, %v8424_v57  ;;  %v535_v59 = vrot.slane %v509_v63, %v8424_v57  ;;  %v518_v58 = vrot.slane %v505_v3, %v8426_v54  ;;  %v539_v62 = vrot.slane %v509_v63, %v8426_v54 }
  0xce   :  { %v526_v48 = vrot.slane %v505_v3, %v8433_v52  ;;  %v547_v49 = vrot.slane %v509_v63, %v8433_v52 }
  0xcf   :  { %v553_v60 = vsel %vm552_vm0, %v514_v55, %v535_v59  ;;  %v554_v0 = vsel %vm552_vm0, %v518_v58, %v539_v62 }
  0xd0   :  { %v556_v59 = vsel %vm552_vm0, %v526_v48, %v547_v49  ;;  %v832_v48 = vstv %s6044_s21  ;;  %s9096_s21 = sld [smem:[#allocation6 + $0x201]] }
 0x14b   :  { %v751_v61 = vpop.f32.mrf.mxu0 }
 0x14c   :  { %v799_v1 = vadd.f32 %v751_v61, %v553_v60 }
 0x14d   :  { %v753_v53 = vpop.f32.mrf.mxu0  ;;  %v792_v45 = vpop.f32.mrf.mxu1 }
 0x14e   :  { %v6040_v50 = vmul.f32 -1.442695, %v799_v1  ;;  %v800_v51 = vadd.f32 %v753_v53, %v554_v0  ;;  %v522_v1 = vrot.slane %v505_v3, %v8438_v47  ;;  %v543_v53 = vrot.slane %v509_v63, %v8438_v47 }
 0x14f   :  { %v755_v43 = vpop.f32.mrf.mxu0  ;;  %v794_v58 = vpop.f32.mrf.mxu1 }
 0x150   :  { %6527 = vpow2.f32 %v6040_v50  ;;  %v6041_v44 = vmul.f32 -1.442695, %v800_v51  ;;  %v802_v62 = vadd.f32 %v794_v58, %v556_v59  ;;  %v555_v43 = vsel %vm552_vm0, %v522_v1, %v543_v53  ;;  %v8447_v51 = vld [vmem:[%s10878_s4] sm:$0xf] }
 0x151   :  { %v756_v55 = vpop.f32.mrf.mxu0  ;;  %v796_v60 = vpop.f32.mrf.mxu1  ;;  %v801_v50 = vadd.f32 %v792_v45, %v555_v43  ;;  %11371 = vst [vmem:[#allocation203_spill] sm:$0xff] %v8447_v51  ;;  %v833_v63 = vmul.f32 %v832_v48, %v8447_v51 }
 0x152   :  { %6529 = vpow2.f32 %v6041_v44  ;;  %v6042_v56 = vmul.f32 -1.442695, %v802_v62  ;;  %v828_v44 = vstv %s6043_s17  ;;  %v8454_v55 = vld [vmem:[%s10879_s5] sm:$0xf]  ;;  %s9094_s17 = sld [smem:[#allocation6 + $0x200]] }
 0x153   :  { %v797_v61 = vpop.f32.mrf.mxu1  ;;  %v829_v3 = vmul.f32 %v828_v44, %v8447_v51  ;;  %11372 = vst [vmem:[#allocation204_spill] sm:$0xff] %v8454_v55  ;;  %v834_v1 = vadd.f32 %v833_v63, %v8454_v55 }
 0x154   :  { %6531 = vpow2.f32 %v6042_v56 }
 0x155   :  { %6533 = vtanh.f32 %v801_v50  ;;  %v830_v58 = vadd.f32 %v829_v3, %v8454_v55  ;;  %v860_v60 = vrot.slane %v834_v1, %v8424_v57  ;;  %v864_v61 = vrot.slane %v834_v1, %v8426_v54 }
 0x157   :  { %v839_v53 = vrot.slane %v830_v58, %v8424_v57  ;;  %v843_v62 = vrot.slane %v830_v58, %v8426_v54  ;;  %v851_v39 = vrot.slane %v830_v58, %v8433_v52 }
 0x159   :  { %v877_v43 = vsel %vm552_vm0, %v839_v53, %v860_v60  ;;  %v878_v48 = vsel %vm552_vm0, %v843_v62, %v864_v61  ;;  %v872_v60 = vrot.slane %v834_v1, %v8433_v52 }
 0x15d   :  { %v6528_v49 = vpop.eup %6527 }
 0x15e   :  { %v806_v0 = vadd.f32 1.0, %v6528_v49 }
 0x15f   :  { %v6530_v45 = vpop.eup %6529 }
 0x160   :  { %6535 = vrcp.f32 %v806_v0  ;;  %v812_v59 = vadd.f32 1.0, %v6530_v45 }
 0x161   :  { %v6532_v56 = vpop.eup %6531 }
 0x162   :  { %6537 = vrcp.f32 %v812_v59  ;;  %v6534_v50 = vpop.eup %6533  ;;  %v819_v0 = vadd.f32 1.0, %v6532_v56  ;;  %v868_v56 = vrot.slane %v834_v1, %v8438_v47 }
 0x16b   :  { %v1075_v44 = vpop.f32.mrf.mxu0 }
 0x16c   :  { %v1123_v49 = vadd.f32 %v1075_v44, %v877_v43  ;;  %v847_v43 = vrot.slane %v830_v58, %v8438_v47 }
 0x16d   :  { %v6536_v3 = vpop.eup %6535  ;;  %v1077_v63 = vpop.f32.mrf.mxu0 }
 0x16e   :  { %v823_v45 = vmul.f32 %v6536_v3, %v6534_v50  ;;  %v6077_v59 = vmul.f32 -1.442695, %v1123_v49  ;;  %v1124_v55 = vadd.f32 %v1077_v63, %v878_v48  ;;  %v1116_v53 = vpop.f32.mrf.mxu1 }
 0x16f   :  { %v6538_v51 = vpop.eup %6537  ;;  %v1079_v57 = vpop.f32.mrf.mxu0 }
 0x170   :  { %v822_v46 = vmul.f32 0.0, %v6538_v51  ;;  %6539 = vpow2.f32 %v6077_v59  ;;  %v6078_v54 = vmul.f32 -1.442695, %v1124_v55  ;;  %v1118_v61 = vpop.f32.mrf.mxu1  ;;  %v880_v57 = vsel %vm552_vm0, %v851_v39, %v872_v60 }
 0x171   :  { %6541 = vrcp.f32 %v819_v0  ;;  %v1080_v33 = vpop.f32.mrf.mxu0  ;;  %v879_v55 = vsel %vm552_vm0, %v847_v43, %v868_v56  ;;  %v1126_v44 = vadd.f32 %v1118_v61, %v880_v57 }
 0x172   :  { %v8466_v62 = vadd.f32 %v823_v45, %v822_v46  ;;  %6543 = vpow2.f32 %v6078_v54  ;;  %v1120_v51 = vpop.f32.mrf.mxu1  ;;  %v1125_v48 = vadd.f32 %v1116_v53, %v879_v55 }
 0x173   :  { %v6079_v49 = vmul.f32 -1.442695, %v1126_v44  ;;  %v11373_v51 = vld [vmem:[#allocation197_spill] sm:$0xff] }
 0x174   :  { %6545 = vtanh.f32 %v8466_v62  ;;  %v1121_v50 = vpop.f32.mrf.mxu1 }
 0x175   :  { %6547 = vtanh.f32 %v1125_v48 }
 0x176   :  { %6549 = vpow2.f32 %v6079_v49  ;;  %v11377_v49 = vld [vmem:[#allocation172_spill] sm:$0xff] }
 0x17d   :  { %v6540_v33 = vpop.eup %6539 }
 0x17e   :  { %v6542_v46 = vpop.eup %6541  ;;  %v1130_v3 = vadd.f32 1.0, %v6540_v33  ;;  %v11382_v33 = vld [vmem:[#allocation181_spill] sm:$0xff] }
 0x17f   :  { %v6544_v54 = vpop.eup %6543 }
 0x180   :  { %6551 = vrcp.f32 %v1130_v3  ;;  %v1136_v58 = vadd.f32 1.0, %v6544_v54  ;;  %v11386_v3 = vld [vmem:[#allocation185_spill] sm:$0xff]  ;;  %v11387_v54 = vld [vmem:[#allocation180_spill] sm:$0xff] }
 0x181   :  { %v6546_v1 = vpop.eup %6545 }
 0x182   :  { %6553 = vrcp.f32 %v1136_v58  ;;  %v826_v0 = vmul.f32 %v6546_v1, %v6542_v46  ;;  %v6548_v63 = vpop.eup %6547  ;;  %v11383_v46 = vld [vmem:[#allocation176_spill] sm:$0xff]  ;;  %v11388_v58 = vld [vmem:[#allocation186_spill] sm:$0xff]  ;;  %v11389_v1 = vld [vmem:[#allocation183_spill] sm:$0xff] }
 0x183   :  { %v6550_v45 = vpop.eup %6549 }
 0x184   :  { %1151 = vst [vmem:[#allocation2 + $0x10] sm:$0x3] %v826_v0  ;;  %v1210_v39 = vpack.c.bf16 %v826_v0, %v826_v0  ;;  %v1143_v60 = vadd.f32 1.0, %v6550_v45  ;;  %v11390_v0 = vld [vmem:[#allocation189_spill] sm:$0xff]  ;;  %v11393_v45 = vld [vmem:[#allocation187_spill] sm:$0xff] }
 0x186   :  { %1244 = vmatmul.mubr.bf16.vlgmr.msra.gmra.mxu0 %v1210_v39  ;;  %1285 = vmatmul.mubr.bf16.vlgmr.msra.gmra.mxu1 %v1210_v39  ;;  %6555 = vrcp.f32 %v1143_v60  ;;  %v11391_v39 = vld [vmem:[#allocation184_spill] sm:$0xff]  ;;  %v11396_v60 = vld [vmem:[#allocation194_spill] sm:$0xff] }
 0x187   :  { %1377 = vmatpush1.bf16.msra.mxu0 %v8176_v2  ;;  %1418 = vmatpush1.bf16.msra.mxu1 %v8214_v7 }
 0x188   :  { %1378 = vmatprep.subr.bf16.mxu0 %v8182_v4  ;;  %1419 = vmatprep.subr.bf16.mxu1 %v8220_v10 }
 0x189   :  { %1408 = vmatprep.mubr.bf16.mxu0 %v11362_v6  ;;  %1449 = vmatprep.mubr.bf16.mxu1 %v11362_v6 }
 0x18b   :  { %1379 = vmatpush1.bf16.msra.mxu0 %v8200_v8  ;;  %1420 = vmatpush1.bf16.msra.mxu1 %v8239_v11 }
 0x18c   :  { %1380 = vmatprep.subr.bf16.mxu0 %v8206_v5  ;;  %1421 = vmatprep.subr.bf16.mxu1 %v8245_v14 }
 0x18d   :  { %v6552_v59 = vpop.eup %6551 }
 0x18e   :  { %v1147_v43 = vmul.f32 %v6552_v59, %v6548_v63  ;;  %v11392_v63 = vld [vmem:[#allocation190_spill] sm:$0xff]  ;;  %v11394_v59 = vld [vmem:[#allocation193_spill] sm:$0xff] }
 0x18f   :  { %v6554_v53 = vpop.eup %6553  ;;  %1381 = vmatpush1.bf16.msra.mxu0 %v8226_v12  ;;  %1422 = vmatpush1.bf16.msra.mxu1 %v8264_v15 }
 0x190   :  { %v1146_v61 = vmul.f32 0.0, %v6554_v53  ;;  %1382 = vmatprep.subr.bf16.mxu0 %v8233_v9  ;;  %1423 = vmatprep.subr.bf16.mxu1 %v8270_v18  ;;  %v11395_v53 = vld [vmem:[#allocation188_spill] sm:$0xff] }
 0x192   :  { %v8487_v56 = vadd.f32 %v1147_v43, %v1146_v61  ;;  %v11397_v61 = vld [vmem:[#allocation191_spill] sm:$0xff] }
 0x193   :  { %1383 = vmatpush1.bf16.msra.mxu0 %v8252_v16  ;;  %1424 = vmatpush1.bf16.msra.mxu1 %v8288_v19  ;;  %v6556_v57 = vpop.eup %6555  ;;  %v11398_v43 = vld [vmem:[#allocation195_spill] sm:$0xff] }
 0x194   :  { %6557 = vtanh.f32 %v8487_v56  ;;  %1384 = vmatprep.subr.bf16.mxu0 %v8258_v13  ;;  %1425 = vmatprep.subr.bf16.mxu1 %v8294_v22 }
 0x197   :  { %1385 = vmatpush1.bf16.msra.mxu0 %v8276_v20  ;;  %1426 = vmatpush1.bf16.msra.mxu1 %v8312_v23 }
 0x198   :  { %1386 = vmatprep.subr.bf16.mxu0 %v8282_v17  ;;  %1427 = vmatprep.subr.bf16.mxu1 %v8318_v26 }
 0x19b   :  { %1387 = vmatpush1.bf16.msra.mxu0 %v8300_v24  ;;  %1428 = vmatpush1.bf16.msra.mxu1 %v8336_v27 }
 0x19c   :  { %1388 = vmatprep.subr.bf16.mxu0 %v8306_v21  ;;  %1429 = vmatprep.subr.bf16.mxu1 %v8342_v30 }
 0x19f   :  { %1389 = vmatpush1.bf16.msra.mxu0 %v8324_v28  ;;  %1430 = vmatpush1.bf16.msra.mxu1 %v8355_v29 }
 0x1a0   :  { %1390 = vmatprep.subr.bf16.mxu0 %v11373_v51  ;;  %1431 = vmatprep.subr.bf16.mxu1 %v8361_v31 }
 0x1a1   :  { %v6558_v50 = vpop.eup %6557 }
 0x1a2   :  { %v1150_v55 = vmul.f32 %v6558_v50, %v6556_v57  ;;  %v11399_v57 = vld [vmem:[#allocation192_spill] sm:$0xff] }
 0x1a3   :  { %1391 = vmatpush1.bf16.msra.mxu0 %v8348_v32  ;;  %1432 = vmatpush1.bf16.msra.mxu1 %v8368_v25  ;;  %v11400_v50 = vld [vmem:[#allocation196_spill] sm:$0xff] }
 0x1a4   :  { %v1153_v44 = vrot.slane %v1150_v55, 2  ;;  %v8508_v48 = vpack.c.bf16 %v1150_v55, %v1150_v55  ;;  %1549 = vmatprep.subr.bf16.mxu0 %v7985_v36  ;;  %1590 = vmatprep.subr.bf16.mxu1 %v8015_v40  ;;  %v11375_v36 = vld [vmem:[#allocation171_spill] sm:$0xff]  ;;  %v1157_v55 = vstv %s6080_s7  ;;  %s8840_s7 = sld [smem:[#allocation6 + $0x281]] }
 0x1a5   :  { %v11376_v40 = vld [vmem:[#allocation175_spill] sm:$0xff] }
 0x1a6   :  { %11374 = vst [vmem:[#allocation197_spill] sm:$0xff] %v8508_v48  ;;  %1155 = vst [vmem:[#allocation2] sm:$0xc0] %v1153_v44  ;;  %1409 = vmatmul.mubr.bf16.vlgmr.msra.gmra.mxu0 %v8508_v48  ;;  %1450 = vmatmul.mubr.bf16.vlgmr.msra.gmra.mxu1 %v8508_v48  ;;  %v1161_v44 = vstv %s6081_s25 }
 0x1a7   :  { %1550 = vmatpush1.bf16.msra.mxu0 %v7990_v35  ;;  %1591 = vmatpush1.bf16.msra.mxu1 %v8020_v37  ;;  %v11378_v35 = vld [vmem:[#allocation177_spill] sm:$0xff] }
 0x1a8   :  { %1551 = vmatprep.subr.bf16.mxu0 %v7997_v34  ;;  %1592 = vmatprep.subr.bf16.mxu1 %v8032_v42  ;;  %v11379_v37 = vld [vmem:[#allocation173_spill] sm:$0xff]  ;;  %v11380_v34 = vld [vmem:[#allocation178_spill] sm:$0xff] }
 0x1a9   :  { %1581 = vmatprep.mubr.bf16.mxu0 %v11362_v6  ;;  %1622 = vmatprep.mubr.bf16.mxu1 %v11362_v6  ;;  %v11381_v42 = vld [vmem:[#allocation174_spill] sm:$0xff] }
 0x1ab   :  { %1552 = vmatpush1.bf16.msra.mxu0 %v8004_v38  ;;  %1593 = vmatpush1.bf16.msra.mxu1 %v8044_v41  ;;  %v11384_v38 = vld [vmem:[#allocation182_spill] sm:$0xff]  ;;  %v11385_v41 = vld [vmem:[#allocation179_spill] sm:$0xff] }
 0x1ac   :  { %1553 = vmatprep.subr.bf16.mxu0 %v11375_v36  ;;  %1594 = vmatprep.subr.bf16.mxu1 %v11376_v40  ;;  %v11401_v36 = vld [vmem:[#allocation198_spill] sm:$0xff] }
 0x1ad   :  { %v1158_v40 = vmul.f32 %v1157_v55, %v11401_v36 }
 0x1af   :  { %1554 = vmatpush1.bf16.msra.mxu0 %v11377_v49  ;;  %1595 = vmatpush1.bf16.msra.mxu1 %v11378_v35  ;;  %v1162_v49 = vmul.f32 %v1161_v44, %v11401_v36  ;;  %v11402_v35 = vld [vmem:[#allocation199_spill] sm:$0xff] }
 0x1b0   :  { %1555 = vmatprep.subr.bf16.mxu0 %v11379_v37  ;;  %1596 = vmatprep.subr.bf16.mxu1 %v11380_v34  ;;  %v1159_v37 = vadd.f32 %v1158_v40, %v11402_v35 }
 0x1b1   :  { %v1163_v34 = vadd.f32 %v1162_v49, %v11402_v35 }
 0x1b2   :  { %v1176_v49 = vrot.slane %v1159_v37, %v8438_v47 }
 0x1b3   :  { %1556 = vmatpush1.bf16.msra.mxu0 %v11381_v42  ;;  %1597 = vmatpush1.bf16.msra.mxu1 %v11382_v33  ;;  %v11403_v42 = vld [vmem:[#allocation200_spill] sm:$0xff] }
 0x1b4   :  { %1557 = vmatprep.subr.bf16.mxu0 %v11383_v46  ;;  %1598 = vmatprep.subr.bf16.mxu1 %v11384_v38  ;;  %v1168_v33 = vrot.slane %v1159_v37, %v11403_v42  ;;  %v1189_v46 = vrot.slane %v1163_v34, %v11403_v42  ;;  %v11404_v38 = vld [vmem:[#allocation201_spill] sm:$0xff] }
 0x1b7   :  { %1558 = vmatpush1.bf16.msra.mxu0 %v11385_v41  ;;  %1599 = vmatpush1.bf16.msra.mxu1 %v11386_v3  ;;  %v1172_v41 = vrot.slane %v1159_v37, %v11404_v38  ;;  %v1193_v3 = vrot.slane %v1163_v34, %v11404_v38 }
 0x1b8   :  { %1559 = vmatprep.subr.bf16.mxu0 %v11387_v54  ;;  %1600 = vmatprep.subr.bf16.mxu1 %v11388_v58  ;;  %v1206_v54 = vsel %vm552_vm0, %v1168_v33, %v1189_v46  ;;  %v1197_v33 = vrot.slane %v1163_v34, %v8438_v47 }
 0x1bb   :  { %1560 = vmatpush1.bf16.msra.mxu0 %v11389_v1  ;;  %1601 = vmatpush1.bf16.msra.mxu1 %v11390_v0  ;;  %v1207_v0 = vsel %vm552_vm0, %v1172_v41, %v1193_v3  ;;  %v1208_v41 = vsel %vm552_vm0, %v1176_v49, %v1197_v33  ;;  %v1322_v3 = vstv %s6085_s26  ;;  %s9125_s26 = sld [smem:[#allocation6 + $0x180]] }
 0x1bc   :  { %1561 = vmatprep.subr.bf16.mxu0 %v11391_v39  ;;  %1602 = vmatprep.subr.bf16.mxu1 %v11392_v63 }
 0x1bf   :  { %1562 = vmatpush1.bf16.msra.mxu0 %v11393_v45  ;;  %1603 = vmatpush1.bf16.msra.mxu1 %v11394_v59 }
 0x1c0   :  { %1563 = vmatprep.subr.bf16.mxu0 %v11395_v53  ;;  %1604 = vmatprep.subr.bf16.mxu1 %v11396_v60 }
 0x1c3   :  { %1564 = vmatpush1.bf16.msra.mxu0 %v11397_v61  ;;  %1605 = vmatpush1.bf16.msra.mxu1 %v11398_v43 }
 0x1c4   :  { %1714 = vmatprep.subr.bf16.mxu0 %v11399_v57  ;;  %1755 = vmatprep.subr.bf16.mxu1 %v11400_v50  ;;  %v1180_v57 = vrot.slane %v1159_v37, %v8433_v52  ;;  %v1201_v50 = vrot.slane %v1163_v34, %v8433_v52  ;;  %v11406_v37 = vld [vmem:[#allocation204_spill] sm:$0xff] }
 0x1c6   :  { %v1209_v40 = vsel %vm552_vm0, %v1180_v57, %v1201_v50 }
 0x246   :  { %v1245_v58 = vpop.f32.mrf.mxu0  ;;  %v1286_v1 = vpop.f32.mrf.mxu1 }
 0x247   :  { %v1293_v39 = vadd.f32 %v1245_v58, %v1206_v54  ;;  %v1326_v54 = vstv %s6086_s27  ;;  %s9127_s27 = sld [smem:[#allocation6 + $0x181]] }
 0x248   :  { %v1247_v63 = vpop.f32.mrf.mxu0  ;;  %v1288_v45 = vpop.f32.mrf.mxu1 }
 0x249   :  { %v6082_v59 = vmul.f32 -1.442695, %v1293_v39  ;;  %v1294_v53 = vadd.f32 %v1247_v63, %v1207_v0  ;;  %v1296_v46 = vadd.f32 %v1288_v45, %v1209_v40  ;;  %v1295_v39 = vadd.f32 %v1286_v1, %v1208_v41  ;;  %v11405_v63 = vld [vmem:[#allocation203_spill] sm:$0xff] }
 0x24a   :  { %v1249_v60 = vpop.f32.mrf.mxu0  ;;  %v1290_v61 = vpop.f32.mrf.mxu1 }
 0x24b   :  { %6559 = vpow2.f32 %v6082_v59  ;;  %v6083_v43 = vmul.f32 -1.442695, %v1294_v53  ;;  %v6084_v58 = vmul.f32 -1.442695, %v1296_v46  ;;  %v1323_v59 = vmul.f32 %v1322_v3, %v11405_v63 }
 0x24c   :  { %v1250_v55 = vpop.f32.mrf.mxu0  ;;  %v1291_v44 = vpop.f32.mrf.mxu1  ;;  %v1327_v53 = vmul.f32 %v1326_v54, %v11405_v63 }
 0x24d   :  { %6561 = vpow2.f32 %v6083_v43  ;;  %v1324_v34 = vadd.f32 %v1323_v59, %v11406_v37 }
 0x24e   :  { %6563 = vpow2.f32 %v6084_v58  ;;  %v1328_v45 = vadd.f32 %v1327_v53, %v11406_v37 }
 0x24f   :  { %v1333_v57 = vrot.slane %v1324_v34, %v11403_v42  ;;  %v1337_v1 = vrot.slane %v1324_v34, %v11404_v38 }
 0x250   :  { %v1354_v50 = vrot.slane %v1328_v45, %v11403_v42  ;;  %v1358_v55 = vrot.slane %v1328_v45, %v11404_v38 }
 0x252   :  { %v1371_v44 = vsel %vm552_vm0, %v1333_v57, %v1354_v50  ;;  %v1372_v33 = vsel %vm552_vm0, %v1337_v1, %v1358_v55 }
 0x258   :  { %v6560_v0 = vpop.eup %6559 }
 0x259   :  { %v1300_v60 = vadd.f32 1.0, %v6560_v0 }
 0x25a   :  { %v6562_v61 = vpop.eup %6561 }
 0x25b   :  { %6565 = vrcp.f32 %v1300_v60  ;;  %v1306_v43 = vadd.f32 1.0, %v6562_v61  ;;  %v6564_v46 = vpop.eup %6563  ;;  %v1345_v61 = vrot.slane %v1324_v34, %v8433_v52 }
 0x25c   :  { %6567 = vtanh.f32 %v1295_v39  ;;  %v1313_v60 = vadd.f32 1.0, %v6564_v46  ;;  %v1341_v46 = vrot.slane %v1324_v34, %v8438_v47 }
 0x25d   :  { %6569 = vrcp.f32 %v1306_v43  ;;  %v1366_v43 = vrot.slane %v1328_v45, %v8433_v52 }
 0x266   :  { %v1410_v40 = vpop.f32.mrf.mxu0  ;;  %v1451_v49 = vpop.f32.mrf.mxu1 }
 0x267   :  { %v1458_v41 = vadd.f32 %v1410_v40, %v1371_v44 }
 0x268   :  { %v6566_v3 = vpop.eup %6565  ;;  %v1412_v54 = vpop.f32.mrf.mxu0 }
 0x269   :  { %v1453_v58 = vpop.f32.mrf.mxu1  ;;  %v6568_v0 = vpop.eup %6567  ;;  %v6087_v39 = vmul.f32 -1.442695, %v1458_v41  ;;  %v1459_v59 = vadd.f32 %v1412_v54, %v1372_v33  ;;  %v1374_v33 = vsel %vm552_vm0, %v1345_v61, %v1366_v43 }
 0x26a   :  { %v6570_v53 = vpop.eup %6569  ;;  %v1414_v48 = vpop.f32.mrf.mxu0  ;;  %v1317_v50 = vmul.f32 %v6568_v0, %v6566_v3  ;;  %v1461_v41 = vadd.f32 %v1453_v58, %v1374_v33  ;;  %v8781_v33 = vld [vmem:[%s10877_s3 + $0x20] ss:$16 sps:$4 sm:$0xff]  }
 0x26b   :  { %v1455_v57 = vpop.f32.mrf.mxu1  ;;  %v1316_v37 = vmul.f32 %v6570_v53, %v8466_v62  ;;  %6571 = vpow2.f32 %v6087_v39  ;;  %v6088_v1 = vmul.f32 -1.442695, %v1459_v59  ;;  %v1362_v48 = vrot.slane %v1328_v45, %v8438_v47  ;;  %11419 = vst [vmem:[#allocation180_spill] sm:$0xff] %v8781_v33 }
 0x26c   :  { %v1415_v55 = vpop.f32.mrf.mxu0  ;;  %v6089_v62 = vmul.f32 -1.442695, %v1461_v41  ;;  %v8751_v57 = vld [vmem:[%s10877_s3 + $0x4c] ss:$16 sps:$4 sm:$0xff]  }
 0x26d   :  { %v1456_v44 = vpop.f32.mrf.mxu1  ;;  %v8577_v40 = vadd.f32 %v1317_v50, %v1316_v37  ;;  %6573 = vpow2.f32 %v6088_v1  ;;  %v1373_v3 = vsel %vm552_vm0, %v1341_v46, %v1362_v48  ;;  %11414 = vst [vmem:[#allocation181_spill] sm:$0xff] %v8751_v57  ;;  %v8757_v50 = vld [vmem:[%s10877_s3 + $0x40] ss:$16 sps:$4 sm:$0xff]   ;;  %v8763_v1 = vld [vmem:[%s10877_s3 + $0x48] ss:$16 sps:$4 sm:$0xff]  }
 0x26e   :  { %6575 = vrcp.f32 %v1313_v60  ;;  %v1460_v0 = vadd.f32 %v1451_v49, %v1373_v3  ;;  %11415 = vst [vmem:[#allocation176_spill] sm:$0xff] %v8757_v50  ;;  %11416 = vst [vmem:[#allocation182_spill] sm:$0xff] %v8763_v1  ;;  %v8769_v55 = vld [vmem:[%s10877_s3 + $0x24] ss:$16 sps:$4 sm:$0xff]   ;;  %v8775_v44 = vld [vmem:[%s10877_s3 + $0x2c] ss:$16 sps:$4 sm:$0xff]  }
 0x26f   :  { %6577 = vtanh.f32 %v8577_v40  ;;  %11417 = vst [vmem:[#allocation179_spill] sm:$0xff] %v8769_v55  ;;  %11418 = vst [vmem:[#allocation185_spill] sm:$0xff] %v8775_v44  ;;  %v8787_v46 = vld [vmem:[%s10877_s3 + $0x28] ss:$16 sps:$4 sm:$0xff]   ;;  %v8793_v48 = vld [vmem:[%s10877_s3 + $0x4] ss:$16 sps:$4 sm:$0xff]  }
 0x270   :  { %6579 = vpow2.f32 %v6089_v62  ;;  %11420 = vst [vmem:[#allocation186_spill] sm:$0xff] %v8787_v46  ;;  %11421 = vst [vmem:[#allocation183_spill] sm:$0xff] %v8793_v48  ;;  %v8799_v41 = vld [vmem:[%s10877_s3 + $0xc] ss:$16 sps:$4 sm:$0xff]   ;;  %v8805_v3 = vld [vmem:[%s10877_s3] ss:$16 sps:$4 sm:$0xff]  }
 0x271   :  { %11422 = vst [vmem:[#allocation189_spill] sm:$0xff] %v8799_v41  ;;  %11423 = vst [vmem:[#allocation184_spill] sm:$0xff] %v8805_v3  ;;  %v8811_v62 = vld [vmem:[%s10877_s3 + $0x8] ss:$16 sps:$4 sm:$0xff]  }
 0x272   :  { %11424 = vst [vmem:[#allocation190_spill] sm:$0xff] %v8811_v62 }
 0x278   :  { %v6572_v54 = vpop.eup %6571 }
 0x279   :  { %v1465_v39 = vadd.f32 1.0, %v6572_v54  ;;  %v8817_v54 = vld [vmem:[%s10880_s6 + $0xe4] ss:$16 sps:$4 sm:$0xff]  }
 0x27a   :  { %v6574_v59 = vpop.eup %6573  ;;  %11425 = vst [vmem:[#allocation187_spill] sm:$0xff] %v8817_v54 }
 0x27b   :  { %v6576_v37 = vpop.eup %6575  ;;  %6581 = vrcp.f32 %v1465_v39  ;;  %v1471_v53 = vadd.f32 1.0, %v6574_v59  ;;  %v1495_v39 = vstv %s6090_s2  ;;  %v1499_v59 = vstv %s6091_s23 }
 0x27c   :  { %v6578_v60 = vpop.eup %6577  ;;  %6583 = vtanh.f32 %v1460_v0  ;;  %v8823_v0 = vld [vmem:[%s10880_s6 + $0xec] ss:$16 sps:$4 sm:$0xff]  }
 0x27d   :  { %6585 = vrcp.f32 %v1471_v53  ;;  %v1320_v61 = vmul.f32 %v6578_v60, %v6576_v37  ;;  %v6580_v45 = vpop.eup %6579  ;;  %11426 = vst [vmem:[#allocation193_spill] sm:$0xff] %v8823_v0  ;;  %v1496_v37 = vmul.f32 %v1495_v39, %v11401_v36  ;;  %v1500_v53 = vmul.f32 %v1499_v59, %v11401_v36 }
 0x27e   :  { %v1478_v58 = vadd.f32 1.0, %v6580_v45 }
 0x27f   :  { %v1487_v43 = vrot.slane %v1320_v61, 6  ;;  %v1548_v34 = vpack.c.bf16 %v1320_v61, %v1320_v61  ;;  %v1497_v60 = vadd.f32 %v1496_v37, %v11402_v35  ;;  %v1501_v61 = vadd.f32 %v1500_v53, %v11402_v35 }
 0x280   :  { %6587 = vrcp.f32 %v1478_v58 }
 0x281   :  { %1489 = vst [vmem:[#allocation2 + $0x10] sm:$0xc] %v1487_v43  ;;  %1582 = vmatmul.mubr.bf16.vlgmr.msra.gmra.mxu0 %v1548_v34  ;;  %1623 = vmatmul.mubr.bf16.vlgmr.msra.gmra.mxu1 %v1548_v34  ;;  %v1506_v43 = vrot.slane %v1497_v60, %v11403_v42  ;;  %v1527_v34 = vrot.slane %v1501_v61, %v11403_v42 }
 0x282   :  { %1715 = vmatpush1.bf16.msra.mxu0 %v8176_v2  ;;  %1756 = vmatpush1.bf16.msra.mxu1 %v8214_v7  ;;  %v1510_v45 = vrot.slane %v1497_v60, %v11404_v38  ;;  %v1518_v39 = vrot.slane %v1497_v60, %v8433_v52  ;;  %v1539_v59 = vrot.slane %v1501_v61, %v8433_v52 }
 0x283   :  { %1716 = vmatprep.subr.bf16.mxu0 %v8182_v4  ;;  %1757 = vmatprep.subr.bf16.mxu1 %v8220_v10 }
 0x284   :  { %1746 = vmatprep.mubr.bf16.mxu0 %v11362_v6  ;;  %1787 = vmatprep.mubr.bf16.mxu1 %v11362_v6 }
 0x286   :  { %1717 = vmatpush1.bf16.msra.mxu0 %v8200_v8  ;;  %1758 = vmatpush1.bf16.msra.mxu1 %v8239_v11 }
 0x287   :  { %1718 = vmatprep.subr.bf16.mxu0 %v8206_v5  ;;  %1759 = vmatprep.subr.bf16.mxu1 %v8245_v14  ;;  %v8623_v14 = vld [vmem:[%s10877_s3 + $0xe4] ss:$16 sps:$4 sm:$0xff]  }
 0x288   :  { %v6582_v2 = vpop.eup %6581 }
 0x289   :  { %v6584_v49 = vpop.eup %6583 }
 0x28a   :  { %v6586_v7 = vpop.eup %6585  ;;  %1719 = vmatpush1.bf16.msra.mxu0 %v8226_v12  ;;  %1760 = vmatpush1.bf16.msra.mxu1 %v8264_v15  ;;  %v1482_v4 = vmul.f32 %v6584_v49, %v6582_v2  ;;  %v8629_v15 = vld [vmem:[%s10877_s3 + $0xec] ss:$16 sps:$4 sm:$0xff]   ;;  %v1531_v2 = vrot.slane %v1501_v61, %v11404_v38  ;;  %v1544_v49 = vsel %vm552_vm0, %v1506_v43, %v1527_v34 }
 0x28b   :  { %v1481_v10 = vmul.f32 %v6586_v7, %v8487_v56  ;;  %1720 = vmatprep.subr.bf16.mxu0 %v8233_v9  ;;  %1761 = vmatprep.subr.bf16.mxu1 %v8270_v18  ;;  %v8647_v18 = vld [vmem:[%s10877_s3 + $0xc4] ss:$16 sps:$4 sm:$0xff]   ;;  %v8739_v56 = vld [vmem:[%s10877_s3 + $0x68] ss:$16 sps:$4 sm:$0xff]   ;;  %v1547_v43 = vsel %vm552_vm0, %v1518_v39, %v1539_v59  ;;  %v1514_v34 = vrot.slane %v1497_v60, %v8438_v47 }
 0x28c   :  { %11412 = vst [vmem:[#allocation178_spill] sm:$0xff] %v8739_v56 }
 0x28d   :  { %v8599_v8 = vadd.f32 %v1482_v4, %v1481_v10  ;;  %v6588_v5 = vpop.eup %6587  ;;  %v1545_v4 = vsel %vm552_vm0, %v1510_v45, %v1531_v2  ;;  %v1535_v45 = vrot.slane %v1501_v61, %v8438_v47  ;;  %v11427_v61 = vld [vmem:[#allocation204_spill] sm:$0xff] }
 0x28e   :  { %1721 = vmatpush1.bf16.msra.mxu0 %v8252_v16  ;;  %1762 = vmatpush1.bf16.msra.mxu1 %v8288_v19  ;;  %v8635_v16 = vld [vmem:[%s10877_s3 + $0xe0] ss:$16 sps:$4 sm:$0xff]   ;;  %v8653_v19 = vld [vmem:[%s10877_s3 + $0xcc] ss:$16 sps:$4 sm:$0xff]  }
 0x28f   :  { %1722 = vmatprep.subr.bf16.mxu0 %v8258_v13  ;;  %1763 = vmatprep.subr.bf16.mxu1 %v8294_v22  ;;  %6589 = vtanh.f32 %v8599_v8  ;;  %v8673_v22 = vld [vmem:[%s10877_s3 + $0xa4] ss:$16 sps:$4 sm:$0xff]  }
 0x292   :  { %1723 = vmatpush1.bf16.msra.mxu0 %v8276_v20  ;;  %1764 = vmatpush1.bf16.msra.mxu1 %v8312_v23  ;;  %v8661_v20 = vld [vmem:[%s10877_s3 + $0xc0] ss:$16 sps:$4 sm:$0xff]   ;;  %v8679_v23 = vld [vmem:[%s10877_s3 + $0xac] ss:$16 sps:$4 sm:$0xff]  }
 0x293   :  { %1724 = vmatprep.subr.bf16.mxu0 %v8282_v17  ;;  %1765 = vmatprep.subr.bf16.mxu1 %v8318_v26  ;;  %v8641_v17 = vld [vmem:[%s10877_s3 + $0xe8] ss:$16 sps:$4 sm:$0xff]   ;;  %v8697_v26 = vld [vmem:[%s10877_s3 + $0x84] ss:$16 sps:$4 sm:$0xff]  }
 0x296   :  { %1725 = vmatpush1.bf16.msra.mxu0 %v8300_v24  ;;  %1766 = vmatpush1.bf16.msra.mxu1 %v8336_v27  ;;  %v8685_v24 = vld [vmem:[%s10877_s3 + $0xa0] ss:$16 sps:$4 sm:$0xff]   ;;  %v8703_v27 = vld [vmem:[%s10877_s3 + $0x8c] ss:$16 sps:$4 sm:$0xff]  }
 0x297   :  { %1726 = vmatprep.subr.bf16.mxu0 %v8306_v21  ;;  %1767 = vmatprep.subr.bf16.mxu1 %v8342_v30  ;;  %v8667_v21 = vld [vmem:[%s10877_s3 + $0xc8] ss:$16 sps:$4 sm:$0xff]   ;;  %v8721_v30 = vld [vmem:[%s10877_s3 + $0x64] ss:$16 sps:$4 sm:$0xff]  }
 0x298   :  { %11409 = vst [vmem:[#allocation172_spill] sm:$0xff] %v8721_v30 }
 0x29a   :  { %1727 = vmatpush1.bf16.msra.mxu0 %v8324_v28  ;;  %1768 = vmatpush1.bf16.msra.mxu1 %v8355_v29  ;;  %v8709_v28 = vld [vmem:[%s10877_s3 + $0x80] ss:$16 sps:$4 sm:$0xff]   ;;  %v8715_v29 = vld [vmem:[%s10877_s3 + $0x88] ss:$16 sps:$4 sm:$0xff]  }
 0x29b   :  { %1728 = vmatprep.subr.bf16.mxu0 %v11373_v51  ;;  %1769 = vmatprep.subr.bf16.mxu1 %v8361_v31  ;;  %11407 = vst [vmem:[#allocation171_spill] sm:$0xff] %v8709_v28  ;;  %11408 = vst [vmem:[#allocation175_spill] sm:$0xff] %v8715_v29  ;;  %v8727_v31 = vld [vmem:[%s10877_s3 + $0x6c] ss:$16 sps:$4 sm:$0xff]   ;;  %v8745_v51 = vld [vmem:[%s10877_s3 + $0x44] ss:$16 sps:$4 sm:$0xff]  }
 0x29c   :  { %v6590_v9 = vpop.eup %6589  ;;  %11410 = vst [vmem:[#allocation177_spill] sm:$0xff] %v8727_v31  ;;  %11413 = vst [vmem:[#allocation174_spill] sm:$0xff] %v8745_v51 }
 0x29d   :  { %v1485_v11 = vmul.f32 %v6590_v9, %v6588_v5 }
 0x29e   :  { %1729 = vmatpush1.bf16.msra.mxu0 %v8348_v32  ;;  %1770 = vmatpush1.bf16.msra.mxu1 %v8368_v25  ;;  %v8691_v25 = vld [vmem:[%s10877_s3 + $0xa8] ss:$16 sps:$4 sm:$0xff]   ;;  %v8733_v32 = vld [vmem:[%s10877_s3 + $0x60] ss:$16 sps:$4 sm:$0xff]  }
 0x29f   :  { %v1491_v12 = vrot.slane %v1485_v11, 4  ;;  %v1713_v13 = vpack.c.bf16 %v1485_v11, %v1485_v11  ;;  %1887 = vmatprep.subr.bf16.mxu0 %v8623_v14  ;;  %1928 = vmatprep.subr.bf16.mxu1 %v8629_v15  ;;  %11411 = vst [vmem:[#allocation173_spill] sm:$0xff] %v8733_v32 }
 0x2a1   :  { %1493 = vst [vmem:[#allocation2] sm:$0x30] %v1491_v12  ;;  %1747 = vmatmul.mubr.bf16.vlgmr.msra.gmra.mxu0 %v1713_v13  ;;  %1788 = vmatmul.mubr.bf16.vlgmr.msra.gmra.mxu1 %v1713_v13 }
 0x2a2   :  { %1888 = vmatpush1.bf16.msra.mxu0 %v8635_v16  ;;  %1929 = vmatpush1.bf16.msra.mxu1 %v8641_v17 }
 0x2a3   :  { %1889 = vmatprep.subr.bf16.mxu0 %v8647_v18  ;;  %1930 = vmatprep.subr.bf16.mxu1 %v8653_v19 }
 0x2a4   :  { %1919 = vmatprep.mubr.bf16.mxu0 %v11362_v6  ;;  %1960 = vmatprep.mubr.bf16.mxu1 %v11362_v6 }
 0x2a6   :  { %1890 = vmatpush1.bf16.msra.mxu0 %v8661_v20  ;;  %1931 = vmatpush1.bf16.msra.mxu1 %v8667_v21 }
 0x2a7   :  { %1891 = vmatprep.subr.bf16.mxu0 %v8673_v22  ;;  %1932 = vmatprep.subr.bf16.mxu1 %v8679_v23 }
 0x2aa   :  { %1892 = vmatpush1.bf16.msra.mxu0 %v8685_v24  ;;  %1933 = vmatpush1.bf16.msra.mxu1 %v8691_v25 }
 0x2ab   :  { %1893 = vmatprep.subr.bf16.mxu0 %v8697_v26  ;;  %1934 = vmatprep.subr.bf16.mxu1 %v8703_v27 }
 0x2ae   :  { %1894 = vmatpush1.bf16.msra.mxu0 %v8709_v28  ;;  %1935 = vmatpush1.bf16.msra.mxu1 %v8715_v29 }
 0x2af   :  { %1895 = vmatprep.subr.bf16.mxu0 %v8721_v30  ;;  %1936 = vmatprep.subr.bf16.mxu1 %v8727_v31 }
 0x2b2   :  { %1896 = vmatpush1.bf16.msra.mxu0 %v8733_v32  ;;  %1937 = vmatpush1.bf16.msra.mxu1 %v8739_v56 }
 0x2b3   :  { %1897 = vmatprep.subr.bf16.mxu0 %v8745_v51  ;;  %1938 = vmatprep.subr.bf16.mxu1 %v8751_v57 }
 0x2b6   :  { %1898 = vmatpush1.bf16.msra.mxu0 %v8757_v50  ;;  %1939 = vmatpush1.bf16.msra.mxu1 %v8763_v1 }
 0x2b7   :  { %1899 = vmatprep.subr.bf16.mxu0 %v8769_v55  ;;  %1940 = vmatprep.subr.bf16.mxu1 %v8775_v44 }
 0x2ba   :  { %1900 = vmatpush1.bf16.msra.mxu0 %v8781_v33  ;;  %1941 = vmatpush1.bf16.msra.mxu1 %v8787_v46 }
 0x2bb   :  { %1901 = vmatprep.subr.bf16.mxu0 %v8793_v48  ;;  %1942 = vmatprep.subr.bf16.mxu1 %v8799_v41 }
 0x2be   :  { %1902 = vmatpush1.bf16.msra.mxu0 %v8805_v3  ;;  %1943 = vmatpush1.bf16.msra.mxu1 %v8811_v62 }
 0x2bf   :  { %2052 = vmatprep.subr.bf16.mxu0 %v8817_v54  ;;  %2093 = vmatprep.subr.bf16.mxu1 %v8823_v0 }
 0x341   :  { %v1583_v7 = vpop.f32.mrf.mxu0  ;;  %v1624_v58 = vpop.f32.mrf.mxu1 }
 0x342   :  { %v1631_v10 = vadd.f32 %v1583_v7, %v1544_v49  ;;  %v1546_v49 = vsel %vm552_vm0, %v1514_v34, %v1535_v45  ;;  %v11101_v7 = vstv %s8838_s24 }
 0x343   :  { %v1585_v36 = vpop.f32.mrf.mxu0  ;;  %v1626_v5 = vpop.f32.mrf.mxu1 }
 0x344   :  { %v6092_v9 = vmul.f32 -1.442695, %v1631_v10  ;;  %v1632_v11 = vadd.f32 %v1585_v36, %v1545_v4  ;;  %v1634_v2 = vadd.f32 %v1626_v5, %v1547_v43  ;;  %v11100_v4 = vstv %s8840_s7 }
 0x345   :  { %v1587_v35 = vpop.f32.mrf.mxu0  ;;  %v1628_v12 = vpop.f32.mrf.mxu1 }
 0x346   :  { %6591 = vpow2.f32 %v6092_v9  ;;  %v6093_v13 = vmul.f32 -1.442695, %v1632_v11  ;;  %v6094_v10 = vmul.f32 -1.442695, %v1634_v2  ;;  %v1633_v9 = vadd.f32 %v1624_v58, %v1546_v49 }
 0x347   :  { %v1588_v37 = vpop.f32.mrf.mxu0  ;;  %v1629_v53 = vpop.f32.mrf.mxu1  ;;  %v1661_v11 = vmul.f32 %v11101_v7, %v11405_v63  ;;  %v1665_v35 = vmul.f32 %v11100_v4, %v11405_v63 }
 0x348   :  { %6593 = vpow2.f32 %v6093_v13 }
 0x349   :  { %6595 = vpow2.f32 %v6094_v10  ;;  %v1662_v5 = vadd.f32 %v1661_v11, %v11427_v61  ;;  %v1666_v39 = vadd.f32 %v1665_v35, %v11427_v61 }
 0x34b   :  { %v1671_v59 = vrot.slane %v1662_v5, %v11403_v42  ;;  %v1692_v58 = vrot.slane %v1666_v39, %v11403_v42  ;;  %v1675_v37 = vrot.slane %v1662_v5, %v11404_v38  ;;  %v1696_v53 = vrot.slane %v1666_v39, %v11404_v38 }
 0x34c   :  { %v1683_v61 = vrot.slane %v1662_v5, %v8433_v52  ;;  %v1704_v4 = vrot.slane %v1666_v39, %v8433_v52 }
 0x34d   :  { %v1709_v63 = vsel %vm552_vm0, %v1671_v59, %v1692_v58  ;;  %v1710_v45 = vsel %vm552_vm0, %v1675_v37, %v1696_v53 }
 0x353   :  { %v6592_v36 = vpop.eup %6591 }
 0x354   :  { %v1638_v12 = vadd.f32 1.0, %v6592_v36 }
 0x355   :  { %v6594_v13 = vpop.eup %6593 }
 0x356   :  { %6597 = vrcp.f32 %v1638_v12  ;;  %v1644_v60 = vadd.f32 1.0, %v6594_v13  ;;  %v6596_v2 = vpop.eup %6595 }
 0x357   :  { %6599 = vtanh.f32 %v1633_v9 }
 0x358   :  { %6601 = vrcp.f32 %v1644_v60  ;;  %v1651_v60 = vadd.f32 1.0, %v6596_v2  ;;  %v1679_v2 = vrot.slane %v1662_v5, %v8438_v47 }
 0x361   :  { %v1748_v43 = vpop.f32.mrf.mxu0  ;;  %v1789_v34 = vpop.f32.mrf.mxu1 }
 0x362   :  { %v1796_v49 = vadd.f32 %v1748_v43, %v1709_v63 }
 0x363   :  { %v6598_v10 = vpop.eup %6597  ;;  %v1750_v36 = vpop.f32.mrf.mxu0 }
 0x364   :  { %v1791_v9 = vpop.f32.mrf.mxu1  ;;  %v6600_v11 = vpop.eup %6599  ;;  %v6097_v35 = vmul.f32 -1.442695, %v1796_v49  ;;  %v1797_v12 = vadd.f32 %v1750_v36, %v1710_v45  ;;  %v1712_v45 = vsel %vm552_vm0, %v1683_v61, %v1704_v4 }
 0x365   :  { %v6602_v13 = vpop.eup %6601  ;;  %v1752_v7 = vpop.f32.mrf.mxu0  ;;  %v1655_v58 = vmul.f32 %v6600_v11, %v6598_v10  ;;  %v1799_v49 = vadd.f32 %v1791_v9, %v1712_v45  ;;  %v8887_v9 = vld [vmem:[%s10880_s6 + $0xc4] ss:$16 sps:$4 sm:$0xff]   ;;  %v8919_v45 = vld [vmem:[%s10880_s6 + $0xac] ss:$16 sps:$4 sm:$0xff]  }
 0x366   :  { %v1793_v59 = vpop.f32.mrf.mxu1  ;;  %v1654_v38 = vmul.f32 %v6602_v13, %v8577_v40  ;;  %6603 = vpow2.f32 %v6097_v35  ;;  %v6098_v37 = vmul.f32 -1.442695, %v1797_v12  ;;  %v1700_v7 = vrot.slane %v1666_v39, %v8438_v47  ;;  %v8875_v39 = vld [vmem:[%s10880_s6 + $0xe0] ss:$16 sps:$4 sm:$0xff]  }
 0x367   :  { %v1753_v53 = vpop.f32.mrf.mxu0  ;;  %v6099_v40 = vmul.f32 -1.442695, %v1799_v49  ;;  %v8893_v59 = vld [vmem:[%s10880_s6 + $0xcc] ss:$16 sps:$4 sm:$0xff]  }
 0x368   :  { %v1794_v63 = vpop.f32.mrf.mxu1  ;;  %v8865_v43 = vadd.f32 %v1655_v58, %v1654_v38  ;;  %6605 = vpow2.f32 %v6098_v37  ;;  %v1711_v10 = vsel %vm552_vm0, %v1679_v2, %v1700_v7  ;;  %v8901_v58 = vld [vmem:[%s10880_s6 + $0xc0] ss:$16 sps:$4 sm:$0xff]   ;;  %v8907_v37 = vld [vmem:[%s10880_s6 + $0xc8] ss:$16 sps:$4 sm:$0xff]  }
 0x369   :  { %6607 = vrcp.f32 %v1651_v60  ;;  %v1798_v11 = vadd.f32 %v1789_v34, %v1711_v10  ;;  %v8881_v34 = vld [vmem:[%s10880_s6 + $0xe8] ss:$16 sps:$4 sm:$0xff]   ;;  %v8913_v63 = vld [vmem:[%s10880_s6 + $0xa4] ss:$16 sps:$4 sm:$0xff]  }
 0x36a   :  { %6609 = vtanh.f32 %v8865_v43 }
 0x36b   :  { %6611 = vpow2.f32 %v6099_v40  ;;  %v8925_v40 = vld [vmem:[%s10880_s6 + $0xa0] ss:$16 sps:$4 sm:$0xff]  }
 0x373   :  { %v6604_v36 = vpop.eup %6603 }
 0x374   :  { %v1803_v35 = vadd.f32 1.0, %v6604_v36  ;;  %v8931_v36 = vld [vmem:[%s10880_s6 + $0xa8] ss:$16 sps:$4 sm:$0xff]  }
 0x375   :  { %v6606_v12 = vpop.eup %6605 }
 0x376   :  { %v6608_v38 = vpop.eup %6607  ;;  %6613 = vrcp.f32 %v1803_v35  ;;  %v1809_v13 = vadd.f32 1.0, %v6606_v12  ;;  %v8938_v12 = vld [vmem:[%s10880_s6 + $0x84] ss:$16 sps:$4 sm:$0xff]  }
 0x377   :  { %v6610_v60 = vpop.eup %6609  ;;  %6615 = vtanh.f32 %v1798_v11 }
 0x378   :  { %6617 = vrcp.f32 %v1809_v13  ;;  %v1658_v4 = vmul.f32 %v6610_v60, %v6608_v38  ;;  %v6612_v53 = vpop.eup %6611  ;;  %v8944_v38 = vld [vmem:[%s10880_s6 + $0x8c] ss:$16 sps:$4 sm:$0xff]   ;;  %v8958_v60 = vld [vmem:[%s10880_s6 + $0x88] ss:$16 sps:$4 sm:$0xff]  }
 0x379   :  { %v1816_v10 = vadd.f32 1.0, %v6612_v53  ;;  %v8983_v53 = vld [vmem:[%s10880_s6 + $0x68] ss:$16 sps:$4 sm:$0xff]  }
 0x37a   :  { %v1825_v61 = vrot.slane %v1658_v4, 4  ;;  %v1886_v5 = vpack.c.bf16 %v1658_v4, %v1658_v4  ;;  %v8964_v4 = vld [vmem:[%s10880_s6 + $0x64] ss:$16 sps:$4 sm:$0xff]   ;;  %11429 = vst [vmem:[#allocation194_spill] sm:$0xff] %v8983_v53 }
 0x37b   :  { %6619 = vrcp.f32 %v1816_v10  ;;  %v9007_v10 = vld [vmem:[%s10880_s6 + $0x48] ss:$16 sps:$4 sm:$0xff]  }
 0x37c   :  { %1827 = vst [vmem:[#allocation2 + $0x10] sm:$0x30] %v1825_v61  ;;  %1920 = vmatmul.mubr.bf16.vlgmr.msra.gmra.mxu0 %v1886_v5  ;;  %1961 = vmatmul.mubr.bf16.vlgmr.msra.gmra.mxu1 %v1886_v5  ;;  %v8970_v61 = vld [vmem:[%s10880_s6 + $0x6c] ss:$16 sps:$4 sm:$0xff]   ;;  %v8977_v5 = vld [vmem:[%s10880_s6 + $0x60] ss:$16 sps:$4 sm:$0xff]  }
 0x37d   :  { %2053 = vmatpush1.bf16.msra.mxu0 %v8875_v39  ;;  %2094 = vmatpush1.bf16.msra.mxu1 %v8881_v34  ;;  %11428 = vst [vmem:[#allocation188_spill] sm:$0xff] %v8977_v5  ;;  %11433 = vst [vmem:[#allocation196_spill] sm:$0xff] %v9007_v10 }
 0x37e   :  { %2054 = vmatprep.subr.bf16.mxu0 %v8887_v9  ;;  %2095 = vmatprep.subr.bf16.mxu1 %v8893_v59 }
 0x37f   :  { %2084 = vmatprep.mubr.bf16.mxu0 %v11362_v6  ;;  %2125 = vmatprep.mubr.bf16.mxu1 %v11362_v6 }
 0x381   :  { %2055 = vmatpush1.bf16.msra.mxu0 %v8901_v58  ;;  %2096 = vmatpush1.bf16.msra.mxu1 %v8907_v37 }
 0x382   :  { %2056 = vmatprep.subr.bf16.mxu0 %v8913_v63  ;;  %2097 = vmatprep.subr.bf16.mxu1 %v8919_v45 }
 0x383   :  { %v6614_v2 = vpop.eup %6613 }
 0x384   :  { %v6616_v7 = vpop.eup %6615 }
 0x385   :  { %v6618_v49 = vpop.eup %6617  ;;  %2057 = vmatpush1.bf16.msra.mxu0 %v8925_v40  ;;  %2098 = vmatpush1.bf16.msra.mxu1 %v8931_v36  ;;  %v1820_v11 = vmul.f32 %v6616_v7, %v6614_v2  ;;  %v8989_v2 = vld [vmem:[%s10880_s6 + $0x44] ss:$16 sps:$4 sm:$0xff]   ;;  %v8995_v7 = vld [vmem:[%s10880_s6 + $0x4c] ss:$16 sps:$4 sm:$0xff]  }
 0x386   :  { %v1819_v35 = vmul.f32 %v6618_v49, %v8599_v8  ;;  %2058 = vmatprep.subr.bf16.mxu0 %v8938_v12  ;;  %2099 = vmatprep.subr.bf16.mxu1 %v8944_v38  ;;  %v8952_v8 = vld [vmem:[%s10880_s6 + $0x80] ss:$16 sps:$4 sm:$0xff]   ;;  %11430 = vst [vmem:[#allocation191_spill] sm:$0xff] %v8989_v2  ;;  %11431 = vst [vmem:[#allocation195_spill] sm:$0xff] %v8995_v7 }
 0x387   :  { %v9001_v49 = vld [vmem:[%s10880_s6 + $0x40] ss:$16 sps:$4 sm:$0xff]  }
 0x388   :  { %v8947_v13 = vadd.f32 %v1820_v11, %v1819_v35  ;;  %11432 = vst [vmem:[#allocation192_spill] sm:$0xff] %v9001_v49  ;;  %v9013_v11 = vld [vmem:[%s10880_s6 + $0x24] ss:$16 sps:$4 sm:$0xff]   ;;  %v9019_v35 = vld [vmem:[%s10880_s6 + $0x2c] ss:$16 sps:$4 sm:$0xff]  }
 0x389   :  { %2059 = vmatpush1.bf16.msra.mxu0 %v8952_v8  ;;  %2100 = vmatpush1.bf16.msra.mxu1 %v8958_v60  ;;  %11434 = vst [vmem:[#allocation198_spill] sm:$0xff] %v9013_v11  ;;  %11435 = vst [vmem:[#allocation199_spill] sm:$0xff] %v9019_v35 }
 0x38a   :  { %2060 = vmatprep.subr.bf16.mxu0 %v8964_v4  ;;  %2101 = vmatprep.subr.bf16.mxu1 %v8970_v61  ;;  %6621 = vtanh.f32 %v8947_v13 }
 0x38d   :  { %2061 = vmatpush1.bf16.msra.mxu0 %v8977_v5  ;;  %2102 = vmatpush1.bf16.msra.mxu1 %v8983_v53 }
 0x38e   :  { %2062 = vmatprep.subr.bf16.mxu0 %v8989_v2  ;;  %2103 = vmatprep.subr.bf16.mxu1 %v8995_v7  ;;  %v9037_v7 = vld [vmem:[%s10880_s6 + $0x4] ss:$16 sps:$4 sm:$0xff]  }
 0x38f   :  { %11438 = vst [vmem:[#allocation205_spill] sm:$0xff] %v9037_v7 }
 0x391   :  { %2063 = vmatpush1.bf16.msra.mxu0 %v9001_v49  ;;  %2104 = vmatpush1.bf16.msra.mxu1 %v9007_v10  ;;  %v9025_v49 = vld [vmem:[%s10880_s6 + $0x20] ss:$16 sps:$4 sm:$0xff]   ;;  %v9031_v10 = vld [vmem:[%s10880_s6 + $0x28] ss:$16 sps:$4 sm:$0xff]  }
 0x392   :  { %2064 = vmatprep.subr.bf16.mxu0 %v9013_v11  ;;  %2105 = vmatprep.subr.bf16.mxu1 %v9019_v35  ;;  %11436 = vst [vmem:[#allocation203_spill] sm:$0xff] %v9025_v49  ;;  %11437 = vst [vmem:[#allocation204_spill] sm:$0xff] %v9031_v10  ;;  %v6620_v11 = vpop.eup %6619  ;;  %v9043_v35 = vld [vmem:[%s10880_s6 + $0xc] ss:$16 sps:$4 sm:$0xff]  }
 0x395   :  { %2065 = vmatpush1.bf16.msra.mxu0 %v9025_v49  ;;  %2106 = vmatpush1.bf16.msra.mxu1 %v9031_v10  ;;  %v9049_v10 = vld [vmem:[%s10880_s6] ss:$16 sps:$4 sm:$0xff]  }
 0x396   :  { %2066 = vmatprep.subr.bf16.mxu0 %v9037_v7  ;;  %2107 = vmatprep.subr.bf16.mxu1 %v9043_v35  ;;  %v9055_v7 = vld [vmem:[%s10880_s6 + $0x8] ss:$16 sps:$4 sm:$0xff]  }
 0x397   :  { %v6622_v49 = vpop.eup %6621 }
 0x398   :  { %v1823_v2 = vmul.f32 %v6622_v49, %v6620_v11 }
 0x399   :  { %2067 = vmatpush1.bf16.msra.mxu0 %v9049_v10  ;;  %2108 = vmatpush1.bf16.msra.mxu1 %v9055_v7 }
 0x39a   :  { %v1829_v53 = vrot.slane %v1823_v2, 6  ;;  %v2051_v5 = vpack.c.bf16 %v1823_v2, %v1823_v2  ;;  %2222 = vmatprep.subr.bf16.mxu0 %v8623_v14  ;;  %2263 = vmatprep.subr.bf16.mxu1 %v8629_v15  ;;  %v9103_v2 = vld [vmem:[%s11364_s0] sm:$0xf] }
 0x39b   :  { %11439 = vst [vmem:[#allocation206_spill] sm:$0xff] %v9103_v2 }
 0x39c   :  { %1831 = vst [vmem:[#allocation2] sm:$0xc] %v1829_v53  ;;  %2085 = vmatmul.mubr.bf16.vlgmr.msra.gmra.mxu0 %v2051_v5  ;;  %2126 = vmatmul.mubr.bf16.vlgmr.msra.gmra.mxu1 %v2051_v5  ;;  %v1998_v5 = vstv %s9094_s17  ;;  %v2002_v53 = vstv %s9096_s21  ;;  %s6131_s17 = sld [smem:[#allocation6 + $0x301]] }
 0x39d   :  { %2223 = vmatpush1.bf16.msra.mxu0 %v8635_v16  ;;  %2264 = vmatpush1.bf16.msra.mxu1 %v8641_v17  ;;  %v2169_v49 = vmul.f32 %v9103_v2, %v1998_v5  ;;  %v2173_v11 = vmul.f32 %v9103_v2, %v2002_v53 }
 0x39e   :  { %2224 = vmatprep.subr.bf16.mxu0 %v8647_v18  ;;  %2265 = vmatprep.subr.bf16.mxu1 %v8653_v19 }
 0x39f   :  { %2254 = vmatprep.mubr.bf16.mxu0 %v11362_v6  ;;  %2295 = vmatprep.mubr.bf16.mxu1 %v11362_v6 }
 0x3a1   :  { %2225 = vmatpush1.bf16.msra.mxu0 %v8661_v20  ;;  %2266 = vmatpush1.bf16.msra.mxu1 %v8667_v21 }
 0x3a2   :  { %2226 = vmatprep.subr.bf16.mxu0 %v8673_v22  ;;  %2267 = vmatprep.subr.bf16.mxu1 %v8679_v23 }
 0x3a5   :  { %2227 = vmatpush1.bf16.msra.mxu0 %v8685_v24  ;;  %2268 = vmatpush1.bf16.msra.mxu1 %v8691_v25 }
 0x3a6   :  { %2228 = vmatprep.subr.bf16.mxu0 %v8697_v26  ;;  %2269 = vmatprep.subr.bf16.mxu1 %v8703_v27 }
 0x3a9   :  { %2229 = vmatpush1.bf16.msra.mxu0 %v8709_v28  ;;  %2270 = vmatpush1.bf16.msra.mxu1 %v8715_v29 }
 0x3aa   :  { %2230 = vmatprep.subr.bf16.mxu0 %v8721_v30  ;;  %2271 = vmatprep.subr.bf16.mxu1 %v8727_v31 }
 0x3ad   :  { %2231 = vmatpush1.bf16.msra.mxu0 %v8733_v32  ;;  %2272 = vmatpush1.bf16.msra.mxu1 %v8739_v56 }
 0x3ae   :  { %2232 = vmatprep.subr.bf16.mxu0 %v8745_v51  ;;  %2273 = vmatprep.subr.bf16.mxu1 %v8751_v57 }
 0x3b1   :  { %2233 = vmatpush1.bf16.msra.mxu0 %v8757_v50  ;;  %2274 = vmatpush1.bf16.msra.mxu1 %v8763_v1 }
 0x3b2   :  { %2234 = vmatprep.subr.bf16.mxu0 %v8769_v55  ;;  %2275 = vmatprep.subr.bf16.mxu1 %v8775_v44 }
 0x3b5   :  { %2235 = vmatpush1.bf16.msra.mxu0 %v8781_v33  ;;  %2276 = vmatpush1.bf16.msra.mxu1 %v8787_v46  ;;  %v11444_v33 = vld [vmem:[#allocation201_spill] sm:$0xff] }
 0x3b6   :  { %2236 = vmatprep.subr.bf16.mxu0 %v8793_v48  ;;  %2277 = vmatprep.subr.bf16.mxu1 %v8799_v41 }
 0x3b9   :  { %2237 = vmatpush1.bf16.msra.mxu0 %v8805_v3  ;;  %2278 = vmatpush1.bf16.msra.mxu1 %v8811_v62 }
 0x3ba   :  { %2387 = vmatprep.subr.bf16.mxu0 %v8817_v54  ;;  %2428 = vmatprep.subr.bf16.mxu1 %v8823_v0  ;;  %v9110_v0 = vld [vmem:[%s11366_s20] sm:$0xf] }
 0x3bb   :  { %11440 = vst [vmem:[#allocation207_spill] sm:$0xff] %v9110_v0  ;;  %v9113_v54 = vadd.f32 %v9110_v0, %v2169_v49  ;;  %v9116_v62 = vadd.f32 %v9110_v0, %v2173_v11  ;;  %v11142_v49 = vstv %s9125_s26  ;;  %v11144_v11 = vstv %s9127_s27 }
 0x3bc   :  { %v1834_v46 = vmul.f32 %v9103_v2, %v11142_v49 }
 0x3bd   :  { %11441 = vst [vmem:[#allocation208_spill] sm:$0xff] %v9113_v54  ;;  %11442 = vst [vmem:[#allocation209_spill] sm:$0xff] %v9116_v62  ;;  %v2179_v3 = vrot.slane %v9113_v54, %v11403_v42  ;;  %v2200_v41 = vrot.slane %v9116_v62, %v11403_v42  ;;  %v1838_v54 = vmul.f32 %v9103_v2, %v11144_v11 }
 0x3be   :  { %v1835_v62 = vadd.f32 %v9110_v0, %v1834_v46 }
 0x3bf   :  { %v9123_v48 = vsel %vm552_vm0, %v2179_v3, %v2200_v41  ;;  %v1839_v41 = vadd.f32 %v9110_v0, %v1838_v54 }
 0x3c0   :  { %11443 = vst [vmem:[#allocation210_spill] sm:$0xff] %v9123_v48  ;;  %v1844_v3 = vrot.slane %v1835_v62, %v11403_v42  ;;  %v1848_v44 = vrot.slane %v1835_v62, %v11444_v33  ;;  %v1856_v31 = vrot.slane %v1835_v62, %v8433_v52 }
 0x3c1   :  { %v1865_v48 = vrot.slane %v1839_v41, %v11403_v42  ;;  %v1869_v55 = vrot.slane %v1839_v41, %v11444_v33  ;;  %v1877_v30 = vrot.slane %v1839_v41, %v8433_v52 }
 0x3c3   :  { %v1882_v1 = vsel %vm552_vm0, %v1844_v3, %v1865_v48  ;;  %v1883_v49 = vsel %vm552_vm0, %v1848_v44, %v1869_v55  ;;  %v1885_v48 = vsel %vm552_vm0, %v1856_v31, %v1877_v30  ;;  %v1852_v55 = vrot.slane %v1835_v62, %v8438_v47  ;;  %v9161_v62 = vld [vmem:[%s10879_s5] sm:$0xf] }
 0x3c4   :  { %11445 = vst [vmem:[#allocation211_spill] sm:$0xff] %v9161_v62 }
 0x43c   :  { %v1921_v50 = vpop.f32.mrf.mxu0  ;;  %v1962_v57 = vpop.f32.mrf.mxu1 }
 0x43d   :  { %v1969_v51 = vadd.f32 %v1921_v50, %v1882_v1  ;;  %v1873_v50 = vrot.slane %v1839_v41, %v8438_v47 }
 0x43e   :  { %v1923_v11 = vpop.f32.mrf.mxu0  ;;  %v1964_v2 = vpop.f32.mrf.mxu1 }
 0x43f   :  { %v6102_v46 = vmul.f32 -1.442695, %v1969_v51  ;;  %v1970_v56 = vadd.f32 %v1923_v11, %v1883_v49  ;;  %v1972_v1 = vadd.f32 %v1964_v2, %v1885_v48  ;;  %v1884_v51 = vsel %vm552_vm0, %v1852_v55, %v1873_v50 }
 0x440   :  { %v1925_v54 = vpop.f32.mrf.mxu0  ;;  %v1966_v0 = vpop.f32.mrf.mxu1  ;;  %v1971_v49 = vadd.f32 %v1962_v57, %v1884_v51 }
 0x441   :  { %6623 = vpow2.f32 %v6102_v46  ;;  %v6103_v32 = vmul.f32 -1.442695, %v1970_v56  ;;  %v6104_v44 = vmul.f32 -1.442695, %v1972_v1  ;;  %v9154_v56 = vld [vmem:[%s10878_s4] sm:$0xf] }
 0x442   :  { %v1926_v29 = vpop.f32.mrf.mxu0  ;;  %v1967_v28 = vpop.f32.mrf.mxu1 }
 0x443   :  { %6625 = vpow2.f32 %v6103_v32  ;;  %v1999_v28 = vmul.f32 %v9154_v56, %v1998_v5  ;;  %v2003_v29 = vmul.f32 %v9154_v56, %v2002_v53 }
 0x444   :  { %6627 = vpow2.f32 %v6104_v44 }
 0x445   :  { %v2000_v57 = vadd.f32 %v9161_v62, %v1999_v28  ;;  %v2004_v2 = vadd.f32 %v9161_v62, %v2003_v29 }
 0x447   :  { %v2009_v5 = vrot.slane %v2000_v57, %v11403_v42  ;;  %v2030_v53 = vrot.slane %v2004_v2, %v11403_v42  ;;  %v2013_v11 = vrot.slane %v2000_v57, %v11444_v33  ;;  %v2034_v41 = vrot.slane %v2004_v2, %v11444_v33 }
 0x449   :  { %v2047_v3 = vsel %vm552_vm0, %v2009_v5, %v2030_v53  ;;  %v2048_v48 = vsel %vm552_vm0, %v2013_v11, %v2034_v41 }
 0x44e   :  { %v6624_v0 = vpop.eup %6623 }
 0x44f   :  { %v1976_v30 = vadd.f32 1.0, %v6624_v0 }
 0x450   :  { %v6626_v31 = vpop.eup %6625 }
 0x451   :  { %6629 = vrcp.f32 %v1976_v30  ;;  %v1982_v32 = vadd.f32 1.0, %v6626_v31  ;;  %v6628_v55 = vpop.eup %6627  ;;  %v2021_v31 = vrot.slane %v2000_v57, %v8433_v52 }
 0x452   :  { %6631 = vtanh.f32 %v1971_v49  ;;  %v1989_v30 = vadd.f32 1.0, %v6628_v55  ;;  %v2017_v55 = vrot.slane %v2000_v57, %v8438_v47 }
 0x453   :  { %6633 = vrcp.f32 %v1982_v32  ;;  %v2042_v32 = vrot.slane %v2004_v2, %v8433_v52 }
 0x45c   :  { %v2086_v46 = vpop.f32.mrf.mxu0  ;;  %v2127_v54 = vpop.f32.mrf.mxu1 }
 0x45d   :  { %v2134_v50 = vadd.f32 %v2086_v46, %v2047_v3 }
 0x45e   :  { %v6630_v1 = vpop.eup %6629  ;;  %v2088_v51 = vpop.f32.mrf.mxu0 }
 0x45f   :  { %v2129_v44 = vpop.f32.mrf.mxu1  ;;  %v6632_v0 = vpop.eup %6631  ;;  %v6107_v49 = vmul.f32 -1.442695, %v2134_v50  ;;  %v2135_v28 = vadd.f32 %v2088_v51, %v2048_v48  ;;  %v2050_v48 = vsel %vm552_vm0, %v2021_v31, %v2042_v32 }
 0x460   :  { %v6634_v29 = vpop.eup %6633  ;;  %v2090_v42 = vpop.f32.mrf.mxu0  ;;  %v1993_v53 = vmul.f32 %v6632_v0, %v6630_v1  ;;  %v2137_v50 = vadd.f32 %v2129_v44, %v2050_v48  ;;  %v11446_v48 = vld [vmem:[#allocation188_spill] sm:$0xff] }
 0x461   :  { %v2131_v5 = vpop.f32.mrf.mxu1  ;;  %v1992_v62 = vmul.f32 %v6634_v29, %v8865_v43  ;;  %6635 = vpow2.f32 %v6107_v49  ;;  %v6108_v11 = vmul.f32 -1.442695, %v2135_v28  ;;  %v2038_v42 = vrot.slane %v2004_v2, %v8438_v47 }
 0x462   :  { %v2091_v41 = vpop.f32.mrf.mxu0  ;;  %v6109_v43 = vmul.f32 -1.442695, %v2137_v50  ;;  %v11450_v50 = vld [vmem:[#allocation192_spill] sm:$0xff] }
 0x463   :  { %v2132_v3 = vpop.f32.mrf.mxu1  ;;  %v9174_v46 = vadd.f32 %v1993_v53, %v1992_v62  ;;  %6637 = vpow2.f32 %v6108_v11  ;;  %v2049_v1 = vsel %vm552_vm0, %v2017_v55, %v2038_v42  ;;  %v11448_v55 = vld [vmem:[#allocation191_spill] sm:$0xff] }
 0x464   :  { %6639 = vrcp.f32 %v1989_v30  ;;  %v2136_v0 = vadd.f32 %v2127_v54, %v2049_v1  ;;  %v11449_v42 = vld [vmem:[#allocation195_spill] sm:$0xff]  ;;  %v11451_v1 = vld [vmem:[#allocation196_spill] sm:$0xff] }
 0x465   :  { %6641 = vtanh.f32 %v9174_v46 }
 0x466   :  { %6643 = vpow2.f32 %v6109_v43  ;;  %v11452_v43 = vld [vmem:[#allocation198_spill] sm:$0xff] }
 0x46e   :  { %v6636_v51 = vpop.eup %6635 }
 0x46f   :  { %v2141_v49 = vadd.f32 1.0, %v6636_v51  ;;  %v11453_v51 = vld [vmem:[#allocation199_spill] sm:$0xff] }
 0x470   :  { %v6638_v28 = vpop.eup %6637 }
 0x471   :  { %v6640_v62 = vpop.eup %6639  ;;  %6645 = vrcp.f32 %v2141_v49  ;;  %v2147_v29 = vadd.f32 1.0, %v6638_v28  ;;  %v11455_v49 = vld [vmem:[#allocation204_spill] sm:$0xff] }
 0x472   :  { %v6642_v30 = vpop.eup %6641  ;;  %6647 = vtanh.f32 %v2136_v0  ;;  %v11454_v0 = vld [vmem:[#allocation203_spill] sm:$0xff] }
 0x473   :  { %6649 = vrcp.f32 %v2147_v29  ;;  %v1996_v31 = vmul.f32 %v6642_v30, %v6640_v62  ;;  %v6644_v2 = vpop.eup %6643  ;;  %v11456_v62 = vld [vmem:[#allocation205_spill] sm:$0xff] }
 0x474   :  { %v2154_v53 = vadd.f32 1.0, %v6644_v2  ;;  %v11473_v2 = vld [vmem:[#allocation184_spill] sm:$0xff] }
 0x475   :  { %v2163_v32 = vrot.slane %v1996_v31, 2  ;;  %v2221_v57 = vpack.c.bf16 %v1996_v31, %v1996_v31 }
 0x476   :  { %6651 = vrcp.f32 %v2154_v53  ;;  %v11477_v53 = vld [vmem:[#allocation208_spill] sm:$0xff] }
 0x477   :  { %2165 = vst [vmem:[#allocation2 + $0x10] sm:$0xc0] %v2163_v32  ;;  %2255 = vmatmul.mubr.bf16.vlgmr.msra.gmra.mxu0 %v2221_v57  ;;  %2296 = vmatmul.mubr.bf16.vlgmr.msra.gmra.mxu1 %v2221_v57  ;;  %v11471_v32 = vld [vmem:[#allocation183_spill] sm:$0xff]  ;;  %v11472_v57 = vld [vmem:[#allocation189_spill] sm:$0xff] }
 0x478   :  { %2388 = vmatpush1.bf16.msra.mxu0 %v8875_v39  ;;  %2429 = vmatpush1.bf16.msra.mxu1 %v8881_v34 }
 0x479   :  { %2389 = vmatprep.subr.bf16.mxu0 %v8887_v9  ;;  %2430 = vmatprep.subr.bf16.mxu1 %v8893_v59 }
 0x47a   :  { %2419 = vmatprep.mubr.bf16.mxu0 %v11362_v6  ;;  %2460 = vmatprep.mubr.bf16.mxu1 %v11362_v6 }
 0x47c   :  { %2390 = vmatpush1.bf16.msra.mxu0 %v8901_v58  ;;  %2431 = vmatpush1.bf16.msra.mxu1 %v8907_v37 }
 0x47d   :  { %2391 = vmatprep.subr.bf16.mxu0 %v8913_v63  ;;  %2432 = vmatprep.subr.bf16.mxu1 %v8919_v45 }
 0x47e   :  { %v6646_v54 = vpop.eup %6645 }
 0x47f   :  { %v6648_v44 = vpop.eup %6647 }
 0x480   :  { %v6650_v5 = vpop.eup %6649  ;;  %2392 = vmatpush1.bf16.msra.mxu0 %v8925_v40  ;;  %2433 = vmatpush1.bf16.msra.mxu1 %v8931_v36  ;;  %v2158_v11 = vmul.f32 %v6648_v44, %v6646_v54  ;;  %v11474_v54 = vld [vmem:[#allocation190_spill] sm:$0xff]  ;;  %v11475_v44 = vld [vmem:[#allocation187_spill] sm:$0xff] }
 0x481   :  { %v2157_v41 = vmul.f32 %v6650_v5, %v8947_v13  ;;  %2393 = vmatprep.subr.bf16.mxu0 %v8938_v12  ;;  %2434 = vmatprep.subr.bf16.mxu1 %v8944_v38  ;;  %v11447_v13 = vld [vmem:[#allocation194_spill] sm:$0xff]  ;;  %v11476_v5 = vld [vmem:[#allocation193_spill] sm:$0xff] }
 0x483   :  { %v9196_v3 = vadd.f32 %v2158_v11, %v2157_v41  ;;  %v6652_v28 = vpop.eup %6651  ;;  %v2187_v11 = vrot.slane %v11477_v53, %v8438_v47  ;;  %v11478_v41 = vld [vmem:[#allocation209_spill] sm:$0xff] }
 0x484   :  { %2394 = vmatpush1.bf16.msra.mxu0 %v8952_v8  ;;  %2435 = vmatpush1.bf16.msra.mxu1 %v8958_v60 }
 0x485   :  { %2395 = vmatprep.subr.bf16.mxu0 %v8964_v4  ;;  %2436 = vmatprep.subr.bf16.mxu1 %v8970_v61  ;;  %6653 = vtanh.f32 %v9196_v3 }
 0x488   :  { %2396 = vmatpush1.bf16.msra.mxu0 %v11446_v48  ;;  %2437 = vmatpush1.bf16.msra.mxu1 %v11447_v13 }
 0x489   :  { %2397 = vmatprep.subr.bf16.mxu0 %v11448_v55  ;;  %2438 = vmatprep.subr.bf16.mxu1 %v11449_v42 }
 0x48c   :  { %2398 = vmatpush1.bf16.msra.mxu0 %v11450_v50  ;;  %2439 = vmatpush1.bf16.msra.mxu1 %v11451_v1 }
 0x48d   :  { %2399 = vmatprep.subr.bf16.mxu0 %v11452_v43  ;;  %2440 = vmatprep.subr.bf16.mxu1 %v11453_v51 }
 0x490   :  { %2400 = vmatpush1.bf16.msra.mxu0 %v11454_v0  ;;  %2441 = vmatpush1.bf16.msra.mxu1 %v11455_v49 }
 0x491   :  { %2401 = vmatprep.subr.bf16.mxu0 %v11456_v62  ;;  %2442 = vmatprep.subr.bf16.mxu1 %v9043_v35 }
 0x492   :  { %v6654_v29 = vpop.eup %6653 }
 0x493   :  { %v2161_v30 = vmul.f32 %v6654_v29, %v6652_v28  ;;  %v2208_v28 = vrot.slane %v11478_v41, %v8438_v47 }
 0x494   :  { %2402 = vmatpush1.bf16.msra.mxu0 %v9049_v10  ;;  %2443 = vmatpush1.bf16.msra.mxu1 %v9055_v7 }
 0x495   :  { %2166 = vst [vmem:[#allocation2] sm:$0x3] %v2161_v30  ;;  %v2386_v31 = vpack.c.bf16 %v2161_v30, %v2161_v30  ;;  %2557 = vmatprep.subr.bf16.mxu0 %v8623_v14  ;;  %2598 = vmatprep.subr.bf16.mxu1 %v8629_v15  ;;  %v11457_v14 = vld [vmem:[#allocation171_spill] sm:$0xff]  ;;  %v2219_v29 = vsel %vm552_vm0, %v2187_v11, %v2208_v28  ;;  %v11480_v11 = vstv %s9125_s26  ;;  %v11481_v28 = vstv %s9127_s27  ;;  %s3343_s26 = sld [smem:[#allocation6]] }
 0x496   :  { %v11458_v15 = vld [vmem:[#allocation175_spill] sm:$0xff]  ;;  %v2183_v30 = vrot.slane %v11477_v53, %v11444_v33  ;;  %s6145_s27 = sld [smem:[#allocation6 + $0x1]] }
 0x497   :  { %2420 = vmatmul.mubr.bf16.vlgmr.msra.gmra.mxu0 %v2386_v31  ;;  %2461 = vmatmul.mubr.bf16.vlgmr.msra.gmra.mxu1 %v2386_v31  ;;  %v2204_v31 = vrot.slane %v11478_v41, %v11444_v33 }
 0x498   :  { %2558 = vmatpush1.bf16.msra.mxu0 %v8635_v16  ;;  %2599 = vmatpush1.bf16.msra.mxu1 %v8641_v17  ;;  %v11459_v16 = vld [vmem:[#allocation172_spill] sm:$0xff]  ;;  %v11460_v17 = vld [vmem:[#allocation177_spill] sm:$0xff] }
 0x499   :  { %2559 = vmatprep.subr.bf16.mxu0 %v8647_v18  ;;  %2600 = vmatprep.subr.bf16.mxu1 %v8653_v19  ;;  %v11461_v18 = vld [vmem:[#allocation173_spill] sm:$0xff]  ;;  %v11462_v19 = vld [vmem:[#allocation178_spill] sm:$0xff] }
 0x49a   :  { %2589 = vmatprep.mubr.bf16.mxu0 %v11362_v6  ;;  %2630 = vmatprep.mubr.bf16.mxu1 %v11362_v6 }
 0x49c   :  { %2560 = vmatpush1.bf16.msra.mxu0 %v8661_v20  ;;  %2601 = vmatpush1.bf16.msra.mxu1 %v8667_v21  ;;  %v11463_v20 = vld [vmem:[#allocation174_spill] sm:$0xff]  ;;  %v11464_v21 = vld [vmem:[#allocation181_spill] sm:$0xff] }
 0x49d   :  { %2561 = vmatprep.subr.bf16.mxu0 %v8673_v22  ;;  %2602 = vmatprep.subr.bf16.mxu1 %v8679_v23  ;;  %v11465_v22 = vld [vmem:[#allocation176_spill] sm:$0xff]  ;;  %v11466_v23 = vld [vmem:[#allocation182_spill] sm:$0xff] }
 0x4a0   :  { %2562 = vmatpush1.bf16.msra.mxu0 %v8685_v24  ;;  %2603 = vmatpush1.bf16.msra.mxu1 %v8691_v25  ;;  %v11467_v24 = vld [vmem:[#allocation179_spill] sm:$0xff]  ;;  %v11468_v25 = vld [vmem:[#allocation185_spill] sm:$0xff] }
 0x4a1   :  { %2563 = vmatprep.subr.bf16.mxu0 %v8697_v26  ;;  %2604 = vmatprep.subr.bf16.mxu1 %v8703_v27  ;;  %v11469_v26 = vld [vmem:[#allocation180_spill] sm:$0xff]  ;;  %v11470_v27 = vld [vmem:[#allocation186_spill] sm:$0xff] }
 0x4a4   :  { %2564 = vmatpush1.bf16.msra.mxu0 %v11457_v14  ;;  %2605 = vmatpush1.bf16.msra.mxu1 %v11458_v15  ;;  %v2191_v14 = vrot.slane %v11477_v53, %v8433_v52  ;;  %v2212_v15 = vrot.slane %v11478_v41, %v8433_v52  ;;  %v2334_v41 = vmul.f32 %v9154_v56, %v11480_v11 }
 0x4a5   :  { %2565 = vmatprep.subr.bf16.mxu0 %v11459_v16  ;;  %2606 = vmatprep.subr.bf16.mxu1 %v11460_v17  ;;  %v2218_v16 = vsel %vm552_vm0, %v2183_v30, %v2204_v31  ;;  %v2338_v30 = vmul.f32 %v9154_v56, %v11481_v28 }
 0x4a6   :  { %v2220_v17 = vsel %vm552_vm0, %v2191_v14, %v2212_v15 }
 0x4a8   :  { %2566 = vmatpush1.bf16.msra.mxu0 %v11461_v18  ;;  %2607 = vmatpush1.bf16.msra.mxu1 %v11462_v19 }
 0x4a9   :  { %2567 = vmatprep.subr.bf16.mxu0 %v11463_v20  ;;  %2608 = vmatprep.subr.bf16.mxu1 %v11464_v21  ;;  %v11479_v20 = vld [vmem:[#allocation210_spill] sm:$0xff] }
 0x4ac   :  { %2568 = vmatpush1.bf16.msra.mxu0 %v11465_v22  ;;  %2609 = vmatpush1.bf16.msra.mxu1 %v11466_v23 }
 0x4ad   :  { %2569 = vmatprep.subr.bf16.mxu0 %v11467_v24  ;;  %2610 = vmatprep.subr.bf16.mxu1 %v11468_v25 }
 0x4b0   :  { %2570 = vmatpush1.bf16.msra.mxu0 %v11469_v26  ;;  %2611 = vmatpush1.bf16.msra.mxu1 %v11470_v27 }
 0x4b1   :  { %2571 = vmatprep.subr.bf16.mxu0 %v11471_v32  ;;  %2612 = vmatprep.subr.bf16.mxu1 %v11472_v57 }
 0x4b4   :  { %2572 = vmatpush1.bf16.msra.mxu0 %v11473_v2  ;;  %2613 = vmatpush1.bf16.msra.mxu1 %v11474_v54 }
 0x4b5   :  { %2722 = vmatprep.subr.bf16.mxu0 %v11475_v44  ;;  %2763 = vmatprep.subr.bf16.mxu1 %v11476_v5 }
 0x537   :  { %v2256_v18 = vpop.f32.mrf.mxu0  ;;  %v2297_v19 = vpop.f32.mrf.mxu1 }
 0x538   :  { %v2304_v21 = vadd.f32 %v2256_v18, %v11479_v20  ;;  %v2306_v44 = vadd.f32 %v2297_v19, %v2219_v29  ;;  %v11483_v29 = vld [vmem:[#allocation200_spill] sm:$0xff] }
 0x539   :  { %v2258_v22 = vpop.f32.mrf.mxu0  ;;  %v2299_v23 = vpop.f32.mrf.mxu1 }
 0x53a   :  { %v6112_v24 = vmul.f32 -1.442695, %v2304_v21  ;;  %v2305_v25 = vadd.f32 %v2258_v22, %v2218_v16  ;;  %v2307_v54 = vadd.f32 %v2299_v23, %v2220_v17  ;;  %v11482_v16 = vld [vmem:[#allocation211_spill] sm:$0xff] }
 0x53b   :  { %v2260_v26 = vpop.f32.mrf.mxu0  ;;  %v2301_v27 = vpop.f32.mrf.mxu1  ;;  %v2335_v18 = vadd.f32 %v11482_v16, %v2334_v41  ;;  %v2339_v20 = vadd.f32 %v11482_v16, %v2338_v30 }
 0x53c   :  { %6655 = vpow2.f32 %v6112_v24  ;;  %v6113_v32 = vmul.f32 -1.442695, %v2305_v25  ;;  %v6114_v5 = vmul.f32 -1.442695, %v2307_v54 }
 0x53d   :  { %v2261_v57 = vpop.f32.mrf.mxu0  ;;  %v2302_v2 = vpop.f32.mrf.mxu1  ;;  %v2344_v17 = vrot.slane %v2335_v18, %v11483_v29  ;;  %v2365_v19 = vrot.slane %v2339_v20, %v11483_v29  ;;  %v2348_v21 = vrot.slane %v2335_v18, %v11444_v33  ;;  %v2369_v22 = vrot.slane %v2339_v20, %v11444_v33 }
 0x53e   :  { %6657 = vpow2.f32 %v6113_v32  ;;  %v2356_v30 = vrot.slane %v2335_v18, %v8433_v52 }
 0x53f   :  { %6659 = vtanh.f32 %v2306_v44  ;;  %v2382_v23 = vsel %vm552_vm0, %v2344_v17, %v2365_v19  ;;  %v2383_v27 = vsel %vm552_vm0, %v2348_v21, %v2369_v22  ;;  %v2377_v19 = vrot.slane %v2339_v20, %v8433_v52 }
 0x540   :  { %6661 = vpow2.f32 %v6114_v5 }
 0x549   :  { %v6656_v53 = vpop.eup %6655 }
 0x54a   :  { %v2311_v31 = vadd.f32 1.0, %v6656_v53 }
 0x54b   :  { %v6658_v14 = vpop.eup %6657 }
 0x54c   :  { %6663 = vrcp.f32 %v2311_v31  ;;  %v2317_v15 = vadd.f32 1.0, %v6658_v14  ;;  %v6660_v24 = vpop.eup %6659 }
 0x54d   :  { %v6662_v32 = vpop.eup %6661 }
 0x54e   :  { %6665 = vrcp.f32 %v2317_v15  ;;  %v2324_v28 = vadd.f32 1.0, %v6662_v32 }
 0x557   :  { %v2421_v25 = vpop.f32.mrf.mxu0  ;;  %v2462_v26 = vpop.f32.mrf.mxu1 }
 0x558   :  { %v2469_v57 = vadd.f32 %v2421_v25, %v2382_v23  ;;  %v2352_v25 = vrot.slane %v2335_v18, %v8438_v47 }
 0x559   :  { %v6664_v2 = vpop.eup %6663  ;;  %v2423_v54 = vpop.f32.mrf.mxu0 }
 0x55a   :  { %v2464_v44 = vpop.f32.mrf.mxu1  ;;  %v2328_v5 = vmul.f32 %v6664_v2, %v6660_v24  ;;  %v6117_v53 = vmul.f32 -1.442695, %v2469_v57  ;;  %v2470_v11 = vadd.f32 %v2423_v54, %v2383_v27  ;;  %v2385_v24 = vsel %vm552_vm0, %v2356_v30, %v2377_v19  ;;  %v9484_v19 = vld [vmem:[%s10877_s3 + $0x2c] ss:$16 sps:$4 sm:$0xff]  }
 0x55b   :  { %v6666_v41 = vpop.eup %6665  ;;  %v2425_v31 = vpop.f32.mrf.mxu0  ;;  %v2373_v27 = vrot.slane %v2339_v20, %v8438_v47  ;;  %v2472_v32 = vadd.f32 %v2464_v44, %v2385_v24  ;;  %v9502_v24 = vld [vmem:[%s10877_s3 + $0x4] ss:$16 sps:$4 sm:$0xff]  }
 0x55c   :  { %v2466_v14 = vpop.f32.mrf.mxu1  ;;  %v2327_v15 = vmul.f32 %v6666_v41, %v9174_v46  ;;  %6667 = vpow2.f32 %v6117_v53  ;;  %v6118_v17 = vmul.f32 -1.442695, %v2470_v11  ;;  %v9460_v31 = vld [vmem:[%s10877_s3 + $0x4c] ss:$16 sps:$4 sm:$0xff]  }
 0x55d   :  { %v2426_v21 = vpop.f32.mrf.mxu0  ;;  %v2384_v46 = vsel %vm552_vm0, %v2352_v25, %v2373_v27  ;;  %v6119_v57 = vmul.f32 -1.442695, %v2472_v32  ;;  %v9466_v14 = vld [vmem:[%s10877_s3 + $0x40] ss:$16 sps:$4 sm:$0xff]   ;;  %v9508_v25 = vld [vmem:[%s10877_s3 + $0xc] ss:$16 sps:$4 sm:$0xff]  }
 0x55e   :  { %v2467_v22 = vpop.f32.mrf.mxu1  ;;  %v9286_v23 = vadd.f32 %v2328_v5, %v2327_v15  ;;  %6669 = vpow2.f32 %v6118_v17  ;;  %v2471_v54 = vadd.f32 %v2462_v26, %v2384_v46  ;;  %v9472_v15 = vld [vmem:[%s10877_s3 + $0x48] ss:$16 sps:$4 sm:$0xff]   ;;  %v9478_v17 = vld [vmem:[%s10877_s3 + $0x24] ss:$16 sps:$4 sm:$0xff]   ;;  %v9490_v21 = vld [vmem:[%s10877_s3 + $0x20] ss:$16 sps:$4 sm:$0xff]  }
 0x55f   :  { %6671 = vrcp.f32 %v2324_v28  ;;  %v9496_v22 = vld [vmem:[%s10877_s3 + $0x28] ss:$16 sps:$4 sm:$0xff]   ;;  %v9514_v27 = vld [vmem:[%s10877_s3] ss:$16 sps:$4 sm:$0xff]   ;;  %v9526_v46 = vld [vmem:[%s10880_s6 + $0xe4] ss:$16 sps:$4 sm:$0xff]  }
 0x560   :  { %6673 = vtanh.f32 %v9286_v23  ;;  %v9520_v32 = vld [vmem:[%s10877_s3 + $0x8] ss:$16 sps:$4 sm:$0xff]  }
 0x561   :  { %6675 = vpow2.f32 %v6119_v57  ;;  %v9532_v57 = vld [vmem:[%s10880_s6 + $0xec] ss:$16 sps:$4 sm:$0xff]  }
 0x562   :  { %11484 = vst [vmem:[#allocation188_spill] sm:$0xff] %v9532_v57 }
 0x569   :  { %v6668_v2 = vpop.eup %6667 }
 0x56a   :  { %v2476_v53 = vadd.f32 1.0, %v6668_v2  ;;  %v11485_v2 = vstv %s8838_s24  ;;  %s6126_s24 = sld [smem:[#allocation6 + $0x101]] }
 0x56b   :  { %v6670_v11 = vpop.eup %6669 }
 0x56c   :  { %v6672_v5 = vpop.eup %6671  ;;  %6677 = vrcp.f32 %v2476_v53  ;;  %v2482_v41 = vadd.f32 1.0, %v6670_v11  ;;  %v11487_v11 = vstv %s8840_s7 }
 0x56d   :  { %v6674_v28 = vpop.eup %6673  ;;  %6679 = vtanh.f32 %v2471_v54  ;;  %v11486_v54 = vld [vmem:[#allocation206_spill] sm:$0xff] }
 0x56e   :  { %6681 = vrcp.f32 %v2482_v41  ;;  %v2331_v30 = vmul.f32 %v6674_v28, %v6672_v5  ;;  %v6676_v20 = vpop.eup %6675  ;;  %v2504_v53 = vmul.f32 %v11486_v54, %v11485_v2  ;;  %v2508_v5 = vmul.f32 %v11486_v54, %v11487_v11  ;;  %v11488_v41 = vld [vmem:[#allocation207_spill] sm:$0xff] }
 0x56f   :  { %v2489_v44 = vadd.f32 1.0, %v6676_v20 }
 0x570   :  { %2497 = vst [vmem:[#allocation2 + $0x8] sm:$0x3] %v2331_v30  ;;  %v2556_v18 = vpack.c.bf16 %v2331_v30, %v2331_v30  ;;  %v2505_v28 = vadd.f32 %v11488_v41, %v2504_v53  ;;  %v2509_v30 = vadd.f32 %v11488_v41, %v2508_v5 }
 0x571   :  { %6683 = vrcp.f32 %v2489_v44 }
 0x572   :  { %2590 = vmatmul.mubr.bf16.vlgmr.msra.gmra.mxu0 %v2556_v18  ;;  %2631 = vmatmul.mubr.bf16.vlgmr.msra.gmra.mxu1 %v2556_v18  ;;  %v2514_v18 = vrot.slane %v2505_v28, %v11483_v29  ;;  %v2535_v20 = vrot.slane %v2509_v30, %v11483_v29  ;;  %v2526_v11 = vrot.slane %v2505_v28, %v8433_v52 }
 0x573   :  { %2723 = vmatpush1.bf16.msra.mxu0 %v8875_v39  ;;  %2764 = vmatpush1.bf16.msra.mxu1 %v8881_v34  ;;  %v2547_v5 = vrot.slane %v2509_v30, %v8433_v52 }
 0x574   :  { %2724 = vmatprep.subr.bf16.mxu0 %v8887_v9  ;;  %2765 = vmatprep.subr.bf16.mxu1 %v8893_v59 }
 0x575   :  { %2754 = vmatprep.mubr.bf16.mxu0 %v11362_v6  ;;  %2795 = vmatprep.mubr.bf16.mxu1 %v11362_v6 }
 0x577   :  { %2725 = vmatpush1.bf16.msra.mxu0 %v8901_v58  ;;  %2766 = vmatpush1.bf16.msra.mxu1 %v8907_v37 }
 0x578   :  { %2726 = vmatprep.subr.bf16.mxu0 %v8913_v63  ;;  %2767 = vmatprep.subr.bf16.mxu1 %v8919_v45 }
 0x579   :  { %v6678_v39 = vpop.eup %6677 }
 0x57a   :  { %v6680_v26 = vpop.eup %6679 }
 0x57b   :  { %v6682_v34 = vpop.eup %6681  ;;  %2727 = vmatpush1.bf16.msra.mxu0 %v8925_v40  ;;  %2768 = vmatpush1.bf16.msra.mxu1 %v8931_v36  ;;  %v2493_v9 = vmul.f32 %v6680_v26, %v6678_v39  ;;  %v2518_v39 = vrot.slane %v2505_v28, %v11444_v33  ;;  %v2539_v26 = vrot.slane %v2509_v30, %v11444_v33 }
 0x57c   :  { %v2492_v59 = vmul.f32 %v6682_v34, %v9196_v3  ;;  %2728 = vmatprep.subr.bf16.mxu0 %v8938_v12  ;;  %2769 = vmatprep.subr.bf16.mxu1 %v8944_v38  ;;  %v9332_v12 = vld [vmem:[%s10877_s3 + $0xe4] ss:$16 sps:$4 sm:$0xff]   ;;  %v9338_v38 = vld [vmem:[%s10877_s3 + $0xec] ss:$16 sps:$4 sm:$0xff]   ;;  %v2552_v34 = vsel %vm552_vm0, %v2514_v18, %v2535_v20  ;;  %v2555_v18 = vsel %vm552_vm0, %v2526_v11, %v2547_v5 }
 0x57d   :  { %v9388_v3 = vld [vmem:[%s10877_s3 + $0xac] ss:$16 sps:$4 sm:$0xff]   ;;  %v2522_v20 = vrot.slane %v2505_v28, %v8438_v47 }
 0x57e   :  { %v9308_v58 = vadd.f32 %v2493_v9, %v2492_v59  ;;  %v6684_v37 = vpop.eup %6683  ;;  %v2553_v59 = vsel %vm552_vm0, %v2518_v39, %v2539_v26  ;;  %v2543_v39 = vrot.slane %v2509_v30, %v8438_v47 }
 0x57f   :  { %2729 = vmatpush1.bf16.msra.mxu0 %v8952_v8  ;;  %2770 = vmatpush1.bf16.msra.mxu1 %v8958_v60  ;;  %v9344_v8 = vld [vmem:[%s10877_s3 + $0xe0] ss:$16 sps:$4 sm:$0xff]   ;;  %v9350_v60 = vld [vmem:[%s10877_s3 + $0xe8] ss:$16 sps:$4 sm:$0xff]  }
 0x580   :  { %2730 = vmatprep.subr.bf16.mxu0 %v8964_v4  ;;  %2771 = vmatprep.subr.bf16.mxu1 %v8970_v61  ;;  %6685 = vtanh.f32 %v9308_v58  ;;  %v9356_v4 = vld [vmem:[%s10877_s3 + $0xc4] ss:$16 sps:$4 sm:$0xff]   ;;  %v9362_v61 = vld [vmem:[%s10877_s3 + $0xcc] ss:$16 sps:$4 sm:$0xff]  }
 0x583   :  { %2731 = vmatpush1.bf16.msra.mxu0 %v11446_v48  ;;  %2772 = vmatpush1.bf16.msra.mxu1 %v11447_v13  ;;  %v9394_v48 = vld [vmem:[%s10877_s3 + $0xa0] ss:$16 sps:$4 sm:$0xff]   ;;  %v9400_v13 = vld [vmem:[%s10877_s3 + $0xa8] ss:$16 sps:$4 sm:$0xff]  }
 0x584   :  { %2732 = vmatprep.subr.bf16.mxu0 %v11448_v55  ;;  %2773 = vmatprep.subr.bf16.mxu1 %v11449_v42  ;;  %v9406_v55 = vld [vmem:[%s10877_s3 + $0x84] ss:$16 sps:$4 sm:$0xff]   ;;  %v9412_v42 = vld [vmem:[%s10877_s3 + $0x8c] ss:$16 sps:$4 sm:$0xff]  }
 0x587   :  { %2733 = vmatpush1.bf16.msra.mxu0 %v11450_v50  ;;  %2774 = vmatpush1.bf16.msra.mxu1 %v11451_v1  ;;  %v9418_v50 = vld [vmem:[%s10877_s3 + $0x80] ss:$16 sps:$4 sm:$0xff]   ;;  %v9424_v1 = vld [vmem:[%s10877_s3 + $0x88] ss:$16 sps:$4 sm:$0xff]  }
 0x588   :  { %2734 = vmatprep.subr.bf16.mxu0 %v11452_v43  ;;  %2775 = vmatprep.subr.bf16.mxu1 %v11453_v51  ;;  %v9430_v43 = vld [vmem:[%s10877_s3 + $0x64] ss:$16 sps:$4 sm:$0xff]   ;;  %v9436_v51 = vld [vmem:[%s10877_s3 + $0x6c] ss:$16 sps:$4 sm:$0xff]  }
 0x58b   :  { %2735 = vmatpush1.bf16.msra.mxu0 %v11454_v0  ;;  %2776 = vmatpush1.bf16.msra.mxu1 %v11455_v49  ;;  %v9442_v0 = vld [vmem:[%s10877_s3 + $0x60] ss:$16 sps:$4 sm:$0xff]   ;;  %v9448_v49 = vld [vmem:[%s10877_s3 + $0x68] ss:$16 sps:$4 sm:$0xff]  }
 0x58c   :  { %2736 = vmatprep.subr.bf16.mxu0 %v11456_v62  ;;  %2777 = vmatprep.subr.bf16.mxu1 %v9043_v35  ;;  %v9382_v35 = vld [vmem:[%s10877_s3 + $0xa4] ss:$16 sps:$4 sm:$0xff]  }
 0x58d   :  { %v6686_v63 = vpop.eup %6685  ;;  %v9454_v62 = vld [vmem:[%s10877_s3 + $0x44] ss:$16 sps:$4 sm:$0xff]  }
 0x58e   :  { %v2496_v45 = vmul.f32 %v6686_v63, %v6684_v37 }
 0x58f   :  { %2737 = vmatpush1.bf16.msra.mxu0 %v9049_v10  ;;  %2778 = vmatpush1.bf16.msra.mxu1 %v9055_v7  ;;  %v9370_v7 = vld [vmem:[%s10877_s3 + $0xc0] ss:$16 sps:$4 sm:$0xff]   ;;  %v9376_v10 = vld [vmem:[%s10877_s3 + $0xc8] ss:$16 sps:$4 sm:$0xff]   ;;  %s6125_s3 = sld [smem:[#allocation6 + $0x100]] }
 0x590   :  { %v2499_v40 = vrot.slane %v2496_v45, 2  ;;  %v2721_v36 = vpack.c.bf16 %v2496_v45, %v2496_v45  ;;  %2895 = vmatprep.subr.bf16.mxu0 %v9332_v12  ;;  %2936 = vmatprep.subr.bf16.mxu1 %v9338_v38 }
 0x592   :  { %2501 = vst [vmem:[#allocation2 + $0x18] sm:$0xc0] %v2499_v40  ;;  %2755 = vmatmul.mubr.bf16.vlgmr.msra.gmra.mxu0 %v2721_v36  ;;  %2796 = vmatmul.mubr.bf16.vlgmr.msra.gmra.mxu1 %v2721_v36 }
 0x593   :  { %2896 = vmatpush1.bf16.msra.mxu0 %v9344_v8  ;;  %2937 = vmatpush1.bf16.msra.mxu1 %v9350_v60 }
 0x594   :  { %2897 = vmatprep.subr.bf16.mxu0 %v9356_v4  ;;  %2938 = vmatprep.subr.bf16.mxu1 %v9362_v61 }
 0x595   :  { %2927 = vmatprep.mubr.bf16.mxu0 %v11362_v6  ;;  %2968 = vmatprep.mubr.bf16.mxu1 %v11362_v6 }
 0x597   :  { %2898 = vmatpush1.bf16.msra.mxu0 %v9370_v7  ;;  %2939 = vmatpush1.bf16.msra.mxu1 %v9376_v10 }
 0x598   :  { %2899 = vmatprep.subr.bf16.mxu0 %v9382_v35  ;;  %2940 = vmatprep.subr.bf16.mxu1 %v9388_v3 }
 0x59b   :  { %2900 = vmatpush1.bf16.msra.mxu0 %v9394_v48  ;;  %2941 = vmatpush1.bf16.msra.mxu1 %v9400_v13 }
 0x59c   :  { %2901 = vmatprep.subr.bf16.mxu0 %v9406_v55  ;;  %2942 = vmatprep.subr.bf16.mxu1 %v9412_v42 }
 0x59f   :  { %2902 = vmatpush1.bf16.msra.mxu0 %v9418_v50  ;;  %2943 = vmatpush1.bf16.msra.mxu1 %v9424_v1 }
 0x5a0   :  { %2903 = vmatprep.subr.bf16.mxu0 %v9430_v43  ;;  %2944 = vmatprep.subr.bf16.mxu1 %v9436_v51 }
 0x5a3   :  { %2904 = vmatpush1.bf16.msra.mxu0 %v9442_v0  ;;  %2945 = vmatpush1.bf16.msra.mxu1 %v9448_v49 }
 0x5a4   :  { %2905 = vmatprep.subr.bf16.mxu0 %v9454_v62  ;;  %2946 = vmatprep.subr.bf16.mxu1 %v9460_v31 }
 0x5a7   :  { %2906 = vmatpush1.bf16.msra.mxu0 %v9466_v14  ;;  %2947 = vmatpush1.bf16.msra.mxu1 %v9472_v15 }
 0x5a8   :  { %2907 = vmatprep.subr.bf16.mxu0 %v9478_v17  ;;  %2948 = vmatprep.subr.bf16.mxu1 %v9484_v19 }
 0x5ab   :  { %2908 = vmatpush1.bf16.msra.mxu0 %v9490_v21  ;;  %2949 = vmatpush1.bf16.msra.mxu1 %v9496_v22 }
 0x5ac   :  { %2909 = vmatprep.subr.bf16.mxu0 %v9502_v24  ;;  %2950 = vmatprep.subr.bf16.mxu1 %v9508_v25 }
 0x5af   :  { %2910 = vmatpush1.bf16.msra.mxu0 %v9514_v27  ;;  %2951 = vmatpush1.bf16.msra.mxu1 %v9520_v32 }
 0x5b0   :  { %3060 = vmatprep.subr.bf16.mxu0 %v9526_v46  ;;  %3101 = vmatprep.subr.bf16.mxu1 %v9532_v57 }
 0x632   :  { %v2591_v44 = vpop.f32.mrf.mxu0  ;;  %v2632_v9 = vpop.f32.mrf.mxu1 }
 0x633   :  { %v2639_v37 = vadd.f32 %v2591_v44, %v2552_v34  ;;  %v2554_v34 = vsel %vm552_vm0, %v2522_v20, %v2543_v39  ;;  %v2668_v44 = vstv %s6125_s3 }
 0x634   :  { %v2593_v63 = vpop.f32.mrf.mxu0  ;;  %v2634_v45 = vpop.f32.mrf.mxu1 }
 0x635   :  { %v6122_v40 = vmul.f32 -1.442695, %v2639_v37  ;;  %v2640_v36 = vadd.f32 %v2593_v63, %v2553_v59  ;;  %v2642_v26 = vadd.f32 %v2634_v45, %v2555_v18  ;;  %v2672_v59 = vstv %s6126_s24 }
 0x636   :  { %v2595_v2 = vpop.f32.mrf.mxu0  ;;  %v2636_v54 = vpop.f32.mrf.mxu1 }
 0x637   :  { %6687 = vpow2.f32 %v6122_v40  ;;  %v6123_v53 = vmul.f32 -1.442695, %v2640_v36  ;;  %v6124_v37 = vmul.f32 -1.442695, %v2642_v26  ;;  %v2641_v40 = vadd.f32 %v2632_v9, %v2554_v34 }
 0x638   :  { %v2596_v41 = vpop.f32.mrf.mxu0  ;;  %v2637_v57 = vpop.f32.mrf.mxu1  ;;  %v2669_v36 = vmul.f32 %v9154_v56, %v2668_v44 }
 0x639   :  { %6689 = vpow2.f32 %v6123_v53  ;;  %v2673_v57 = vmul.f32 %v9154_v56, %v2672_v59 }
 0x63a   :  { %6691 = vpow2.f32 %v6124_v37  ;;  %v2670_v28 = vadd.f32 %v11482_v16, %v2669_v36 }
 0x63b   :  { %v2674_v30 = vadd.f32 %v11482_v16, %v2673_v57 }
 0x63c   :  { %v2679_v45 = vrot.slane %v2670_v28, %v11483_v29  ;;  %v2683_v9 = vrot.slane %v2670_v28, %v11444_v33  ;;  %v2691_v57 = vrot.slane %v2670_v28, %v8433_v52 }
 0x63d   :  { %v2700_v11 = vrot.slane %v2674_v30, %v11483_v29  ;;  %v2704_v5 = vrot.slane %v2674_v30, %v11444_v33 }
 0x63f   :  { %v2717_v56 = vsel %vm552_vm0, %v2679_v45, %v2700_v11  ;;  %v2718_v20 = vsel %vm552_vm0, %v2683_v9, %v2704_v5 }
 0x644   :  { %v6688_v63 = vpop.eup %6687 }
 0x645   :  { %v2646_v2 = vadd.f32 1.0, %v6688_v63 }
 0x646   :  { %v6690_v54 = vpop.eup %6689 }
 0x647   :  { %6693 = vrcp.f32 %v2646_v2  ;;  %v2652_v53 = vadd.f32 1.0, %v6690_v54  ;;  %v6692_v39 = vpop.eup %6691  ;;  %v2712_v2 = vrot.slane %v2674_v30, %v8433_v52 }
 0x648   :  { %6695 = vtanh.f32 %v2641_v40  ;;  %v2659_v36 = vadd.f32 1.0, %v6692_v39  ;;  %v2687_v39 = vrot.slane %v2670_v28, %v8438_v47 }
 0x649   :  { %6697 = vrcp.f32 %v2652_v53 }
 0x652   :  { %v2756_v41 = vpop.f32.mrf.mxu0  ;;  %v2797_v18 = vpop.f32.mrf.mxu1 }
 0x653   :  { %v2804_v26 = vadd.f32 %v2756_v41, %v2717_v56 }
 0x654   :  { %v6694_v34 = vpop.eup %6693  ;;  %v2758_v44 = vpop.f32.mrf.mxu0 }
 0x655   :  { %v2799_v16 = vpop.f32.mrf.mxu1  ;;  %v6696_v59 = vpop.eup %6695  ;;  %v6127_v37 = vmul.f32 -1.442695, %v2804_v26  ;;  %v2805_v63 = vadd.f32 %v2758_v44, %v2718_v20  ;;  %v2720_v20 = vsel %vm552_vm0, %v2691_v57, %v2712_v2  ;;  %v2708_v26 = vrot.slane %v2674_v30, %v8438_v47  ;;  %v9578_v30 = vld [vmem:[%s10880_s6 + $0xe0] ss:$16 sps:$4 sm:$0xff]  }
 0x656   :  { %v6698_v40 = vpop.eup %6697  ;;  %v2760_v54 = vpop.f32.mrf.mxu0  ;;  %v2663_v45 = vmul.f32 %v6696_v59, %v6694_v34  ;;  %v2807_v44 = vadd.f32 %v2799_v16, %v2720_v20  ;;  %v9590_v16 = vld [vmem:[%s10880_s6 + $0xc4] ss:$16 sps:$4 sm:$0xff]   ;;  %v9622_v20 = vld [vmem:[%s10880_s6 + $0xac] ss:$16 sps:$4 sm:$0xff]  }
 0x657   :  { %v2801_v53 = vpop.f32.mrf.mxu1  ;;  %v2662_v11 = vmul.f32 %v6698_v40, %v9286_v23  ;;  %6699 = vpow2.f32 %v6127_v37  ;;  %v6128_v9 = vmul.f32 -1.442695, %v2805_v63  ;;  %v2719_v34 = vsel %vm552_vm0, %v2687_v39, %v2708_v26 }
 0x658   :  { %v2761_v5 = vpop.f32.mrf.mxu0  ;;  %v6129_v23 = vmul.f32 -1.442695, %v2807_v44  ;;  %v2806_v37 = vadd.f32 %v2797_v18, %v2719_v34  ;;  %v9584_v18 = vld [vmem:[%s10880_s6 + $0xe8] ss:$16 sps:$4 sm:$0xff]  }
 0x659   :  { %v2802_v56 = vpop.f32.mrf.mxu1  ;;  %v9568_v41 = vadd.f32 %v2663_v45, %v2662_v11  ;;  %6701 = vpow2.f32 %v6128_v9  ;;  %v9596_v45 = vld [vmem:[%s10880_s6 + $0xcc] ss:$16 sps:$4 sm:$0xff]   ;;  %v9604_v11 = vld [vmem:[%s10880_s6 + $0xc0] ss:$16 sps:$4 sm:$0xff]   ;;  %v9610_v9 = vld [vmem:[%s10880_s6 + $0xc8] ss:$16 sps:$4 sm:$0xff]  }
 0x65a   :  { %6703 = vrcp.f32 %v2659_v36  ;;  %v9616_v56 = vld [vmem:[%s10880_s6 + $0xa4] ss:$16 sps:$4 sm:$0xff]  }
 0x65b   :  { %6705 = vtanh.f32 %v9568_v41 }
 0x65c   :  { %6707 = vpow2.f32 %v6129_v23  ;;  %v9628_v23 = vld [vmem:[%s10880_s6 + $0xa0] ss:$16 sps:$4 sm:$0xff]  }
 0x664   :  { %v6700_v59 = vpop.eup %6699 }
 0x665   :  { %v2811_v63 = vadd.f32 1.0, %v6700_v59  ;;  %v9634_v59 = vld [vmem:[%s10880_s6 + $0xa8] ss:$16 sps:$4 sm:$0xff]  }
 0x666   :  { %v6702_v40 = vpop.eup %6701 }
 0x667   :  { %v6704_v54 = vpop.eup %6703  ;;  %6709 = vrcp.f32 %v2811_v63  ;;  %v2817_v36 = vadd.f32 1.0, %v6702_v40  ;;  %v9641_v40 = vld [vmem:[%s10880_s6 + $0x84] ss:$16 sps:$4 sm:$0xff]  }
 0x668   :  { %v6706_v53 = vpop.eup %6705  ;;  %6711 = vtanh.f32 %v2806_v37 }
 0x669   :  { %6713 = vrcp.f32 %v2817_v36  ;;  %v2666_v57 = vmul.f32 %v6706_v53, %v6704_v54  ;;  %v6708_v5 = vpop.eup %6707  ;;  %v9647_v54 = vld [vmem:[%s10880_s6 + $0x8c] ss:$16 sps:$4 sm:$0xff]   ;;  %v9661_v53 = vld [vmem:[%s10880_s6 + $0x88] ss:$16 sps:$4 sm:$0xff]  }
 0x66a   :  { %v2824_v34 = vadd.f32 1.0, %v6708_v5  ;;  %v9686_v5 = vld [vmem:[%s10880_s6 + $0x68] ss:$16 sps:$4 sm:$0xff]  }
 0x66b   :  { %v2833_v2 = vrot.slane %v2666_v57, 6  ;;  %v2894_v28 = vpack.c.bf16 %v2666_v57, %v2666_v57  ;;  %v9667_v57 = vld [vmem:[%s10880_s6 + $0x64] ss:$16 sps:$4 sm:$0xff]   ;;  %11490 = vst [vmem:[#allocation191_spill] sm:$0xff] %v9686_v5 }
 0x66c   :  { %6715 = vrcp.f32 %v2824_v34  ;;  %v9710_v34 = vld [vmem:[%s10880_s6 + $0x48] ss:$16 sps:$4 sm:$0xff]  }
 0x66d   :  { %2835 = vst [vmem:[#allocation2 + $0x8] sm:$0xc] %v2833_v2  ;;  %2928 = vmatmul.mubr.bf16.vlgmr.msra.gmra.mxu0 %v2894_v28  ;;  %2969 = vmatmul.mubr.bf16.vlgmr.msra.gmra.mxu1 %v2894_v28  ;;  %v9673_v2 = vld [vmem:[%s10880_s6 + $0x6c] ss:$16 sps:$4 sm:$0xff]   ;;  %v9680_v28 = vld [vmem:[%s10880_s6 + $0x60] ss:$16 sps:$4 sm:$0xff]  }
 0x66e   :  { %3061 = vmatpush1.bf16.msra.mxu0 %v9578_v30  ;;  %3102 = vmatpush1.bf16.msra.mxu1 %v9584_v18  ;;  %11489 = vst [vmem:[#allocation194_spill] sm:$0xff] %v9680_v28  ;;  %11494 = vst [vmem:[#allocation198_spill] sm:$0xff] %v9710_v34 }
 0x66f   :  { %3062 = vmatprep.subr.bf16.mxu0 %v9590_v16  ;;  %3103 = vmatprep.subr.bf16.mxu1 %v9596_v45 }
 0x670   :  { %3092 = vmatprep.mubr.bf16.mxu0 %v11362_v6  ;;  %3133 = vmatprep.mubr.bf16.mxu1 %v11362_v6 }
 0x672   :  { %3063 = vmatpush1.bf16.msra.mxu0 %v9604_v11  ;;  %3104 = vmatpush1.bf16.msra.mxu1 %v9610_v9 }
 0x673   :  { %3064 = vmatprep.subr.bf16.mxu0 %v9616_v56  ;;  %3105 = vmatprep.subr.bf16.mxu1 %v9622_v20 }
 0x674   :  { %v6710_v39 = vpop.eup %6709 }
 0x675   :  { %v6712_v26 = vpop.eup %6711 }
 0x676   :  { %v6714_v44 = vpop.eup %6713  ;;  %3065 = vmatpush1.bf16.msra.mxu0 %v9628_v23  ;;  %3106 = vmatpush1.bf16.msra.mxu1 %v9634_v59  ;;  %v2828_v37 = vmul.f32 %v6712_v26, %v6710_v39  ;;  %v9692_v39 = vld [vmem:[%s10880_s6 + $0x44] ss:$16 sps:$4 sm:$0xff]   ;;  %v9698_v26 = vld [vmem:[%s10880_s6 + $0x4c] ss:$16 sps:$4 sm:$0xff]  }
 0x677   :  { %v2827_v63 = vmul.f32 %v6714_v44, %v9308_v58  ;;  %3066 = vmatprep.subr.bf16.mxu0 %v9641_v40  ;;  %3107 = vmatprep.subr.bf16.mxu1 %v9647_v54  ;;  %v9655_v58 = vld [vmem:[%s10880_s6 + $0x80] ss:$16 sps:$4 sm:$0xff]   ;;  %11491 = vst [vmem:[#allocation195_spill] sm:$0xff] %v9692_v39  ;;  %11492 = vst [vmem:[#allocation192_spill] sm:$0xff] %v9698_v26 }
 0x678   :  { %v9704_v44 = vld [vmem:[%s10880_s6 + $0x40] ss:$16 sps:$4 sm:$0xff]  }
 0x679   :  { %v9650_v36 = vadd.f32 %v2828_v37, %v2827_v63  ;;  %11493 = vst [vmem:[#allocation196_spill] sm:$0xff] %v9704_v44  ;;  %v9716_v37 = vld [vmem:[%s10880_s6 + $0x24] ss:$16 sps:$4 sm:$0xff]   ;;  %v9722_v63 = vld [vmem:[%s10880_s6 + $0x2c] ss:$16 sps:$4 sm:$0xff]  }
 0x67a   :  { %3067 = vmatpush1.bf16.msra.mxu0 %v9655_v58  ;;  %3108 = vmatpush1.bf16.msra.mxu1 %v9661_v53  ;;  %11495 = vst [vmem:[#allocation199_spill] sm:$0xff] %v9716_v37  ;;  %11496 = vst [vmem:[#allocation203_spill] sm:$0xff] %v9722_v63 }
 0x67b   :  { %3068 = vmatprep.subr.bf16.mxu0 %v9667_v57  ;;  %3109 = vmatprep.subr.bf16.mxu1 %v9673_v2  ;;  %6717 = vtanh.f32 %v9650_v36 }
 0x67e   :  { %3069 = vmatpush1.bf16.msra.mxu0 %v9680_v28  ;;  %3110 = vmatpush1.bf16.msra.mxu1 %v9686_v5 }
 0x67f   :  { %3070 = vmatprep.subr.bf16.mxu0 %v9692_v39  ;;  %3111 = vmatprep.subr.bf16.mxu1 %v9698_v26  ;;  %v9740_v26 = vld [vmem:[%s10880_s6 + $0x4] ss:$16 sps:$4 sm:$0xff]  }
 0x680   :  { %11499 = vst [vmem:[#allocation171_spill] sm:$0xff] %v9740_v26 }
 0x682   :  { %3071 = vmatpush1.bf16.msra.mxu0 %v9704_v44  ;;  %3112 = vmatpush1.bf16.msra.mxu1 %v9710_v34  ;;  %v9728_v44 = vld [vmem:[%s10880_s6 + $0x20] ss:$16 sps:$4 sm:$0xff]   ;;  %v9734_v34 = vld [vmem:[%s10880_s6 + $0x28] ss:$16 sps:$4 sm:$0xff]  }
 0x683   :  { %3072 = vmatprep.subr.bf16.mxu0 %v9716_v37  ;;  %3113 = vmatprep.subr.bf16.mxu1 %v9722_v63  ;;  %11497 = vst [vmem:[#allocation204_spill] sm:$0xff] %v9728_v44  ;;  %11498 = vst [vmem:[#allocation205_spill] sm:$0xff] %v9734_v34  ;;  %v6716_v37 = vpop.eup %6715  ;;  %v9746_v63 = vld [vmem:[%s10880_s6 + $0xc] ss:$16 sps:$4 sm:$0xff]  }
 0x686   :  { %3073 = vmatpush1.bf16.msra.mxu0 %v9728_v44  ;;  %3114 = vmatpush1.bf16.msra.mxu1 %v9734_v34  ;;  %v9752_v34 = vld [vmem:[%s10880_s6] ss:$16 sps:$4 sm:$0xff]  }
 0x687   :  { %3074 = vmatprep.subr.bf16.mxu0 %v9740_v26  ;;  %3115 = vmatprep.subr.bf16.mxu1 %v9746_v63  ;;  %v9758_v26 = vld [vmem:[%s10880_s6 + $0x8] ss:$16 sps:$4 sm:$0xff]   ;;  %s6130_s6 = sld [smem:[#allocation6 + $0x300]] }
 0x688   :  { %v6718_v44 = vpop.eup %6717 }
 0x689   :  { %v2831_v39 = vmul.f32 %v6718_v44, %v6716_v37 }
 0x68a   :  { %3075 = vmatpush1.bf16.msra.mxu0 %v9752_v34  ;;  %3116 = vmatpush1.bf16.msra.mxu1 %v9758_v26 }
 0x68b   :  { %v2837_v5 = vrot.slane %v2831_v39, 4  ;;  %v3059_v28 = vpack.c.bf16 %v2831_v39, %v2831_v39  ;;  %3233 = vmatprep.subr.bf16.mxu0 %v9332_v12  ;;  %3274 = vmatprep.subr.bf16.mxu1 %v9338_v38  ;;  %v11500_v12 = vld [vmem:[#allocation188_spill] sm:$0xff] }
 0x68d   :  { %2839 = vst [vmem:[#allocation2 + $0x18] sm:$0x30] %v2837_v5  ;;  %3093 = vmatmul.mubr.bf16.vlgmr.msra.gmra.mxu0 %v3059_v28  ;;  %3134 = vmatmul.mubr.bf16.vlgmr.msra.gmra.mxu1 %v3059_v28  ;;  %v2841_v38 = vstv %s6130_s6 }
 0x68e   :  { %3234 = vmatpush1.bf16.msra.mxu0 %v9344_v8  ;;  %3275 = vmatpush1.bf16.msra.mxu1 %v9350_v60  ;;  %v2845_v8 = vstv %s6131_s17  ;;  %v9800_v60 = vld [vmem:[%s11364_s0] sm:$0xf]  ;;  %s6135_s0 = sld [smem:[#allocation6 + $0x80]] }
 0x68f   :  { %3235 = vmatprep.subr.bf16.mxu0 %v9356_v4  ;;  %3276 = vmatprep.subr.bf16.mxu1 %v9362_v61  ;;  %v2842_v4 = vmul.f32 %v9800_v60, %v2841_v38  ;;  %v2846_v61 = vmul.f32 %v9800_v60, %v2845_v8  ;;  %v9826_v38 = vld [vmem:[%s10878_s4] sm:$0xf]  ;;  %s6140_s4 = sld [smem:[#allocation6 + $0x380]] }
 0x690   :  { %3265 = vmatprep.mubr.bf16.mxu0 %v11362_v6  ;;  %3306 = vmatprep.mubr.bf16.mxu1 %v11362_v6 }
 0x692   :  { %3236 = vmatpush1.bf16.msra.mxu0 %v9370_v7  ;;  %3277 = vmatpush1.bf16.msra.mxu1 %v9376_v10  ;;  %v9807_v7 = vld [vmem:[%s11366_s20] sm:$0xf]  ;;  %s6136_s20 = sld [smem:[#allocation6 + $0x81]] }
 0x693   :  { %3237 = vmatprep.subr.bf16.mxu0 %v9382_v35  ;;  %3278 = vmatprep.subr.bf16.mxu1 %v9388_v3  ;;  %v2843_v10 = vadd.f32 %v9807_v7, %v2842_v4  ;;  %v2847_v35 = vadd.f32 %v9807_v7, %v2846_v61 }
 0x694   :  { %v3006_v5 = vstv %s6135_s0 }
 0x695   :  { %v2852_v3 = vrot.slane %v2843_v10, %v11483_v29  ;;  %v3007_v8 = vmul.f32 %v9826_v38, %v3006_v5 }
 0x696   :  { %3238 = vmatpush1.bf16.msra.mxu0 %v9394_v48  ;;  %3279 = vmatpush1.bf16.msra.mxu1 %v9400_v13  ;;  %v2873_v48 = vrot.slane %v2847_v35, %v11483_v29  ;;  %v2856_v13 = vrot.slane %v2843_v10, %v11444_v33 }
 0x697   :  { %3239 = vmatprep.subr.bf16.mxu0 %v9406_v55  ;;  %3280 = vmatprep.subr.bf16.mxu1 %v9412_v42  ;;  %v2877_v55 = vrot.slane %v2847_v35, %v11444_v33 }
 0x698   :  { %v2890_v42 = vsel %vm552_vm0, %v2852_v3, %v2873_v48  ;;  %v3010_v39 = vstv %s6136_s20  ;;  %v9833_v3 = vld [vmem:[%s10879_s5] sm:$0xf]  ;;  %s6141_s5 = sld [smem:[#allocation6 + $0x381]] }
 0x699   :  { %v3011_v4 = vmul.f32 %v9826_v38, %v3010_v39  ;;  %v3008_v48 = vadd.f32 %v9833_v3, %v3007_v8 }
 0x69a   :  { %3240 = vmatpush1.bf16.msra.mxu0 %v9418_v50  ;;  %3281 = vmatpush1.bf16.msra.mxu1 %v9424_v1 }
 0x69b   :  { %3241 = vmatprep.subr.bf16.mxu0 %v9430_v43  ;;  %3282 = vmatprep.subr.bf16.mxu1 %v9436_v51  ;;  %v2891_v43 = vsel %vm552_vm0, %v2856_v13, %v2877_v55  ;;  %v3012_v13 = vadd.f32 %v9833_v3, %v3011_v4  ;;  %v3017_v55 = vrot.slane %v3008_v48, %v11483_v29 }
 0x69e   :  { %3242 = vmatpush1.bf16.msra.mxu0 %v9442_v0  ;;  %3283 = vmatpush1.bf16.msra.mxu1 %v9448_v49 }
 0x69f   :  { %3243 = vmatprep.subr.bf16.mxu0 %v9454_v62  ;;  %3284 = vmatprep.subr.bf16.mxu1 %v9460_v31 }
 0x6a2   :  { %3244 = vmatpush1.bf16.msra.mxu0 %v9466_v14  ;;  %3285 = vmatpush1.bf16.msra.mxu1 %v9472_v15 }
 0x6a3   :  { %3245 = vmatprep.subr.bf16.mxu0 %v9478_v17  ;;  %3286 = vmatprep.subr.bf16.mxu1 %v9484_v19  ;;  %v2864_v19 = vrot.slane %v2843_v10, %v8433_v52 }
 0x6a6   :  { %3246 = vmatpush1.bf16.msra.mxu0 %v9490_v21  ;;  %3287 = vmatpush1.bf16.msra.mxu1 %v9496_v22  ;;  %v2885_v21 = vrot.slane %v2847_v35, %v8433_v52 }
 0x6a7   :  { %3247 = vmatprep.subr.bf16.mxu0 %v9502_v24  ;;  %3288 = vmatprep.subr.bf16.mxu1 %v9508_v25 }
 0x6a8   :  { %v2893_v25 = vsel %vm552_vm0, %v2864_v19, %v2885_v21 }
 0x6aa   :  { %3248 = vmatpush1.bf16.msra.mxu0 %v9514_v27  ;;  %3289 = vmatpush1.bf16.msra.mxu1 %v9520_v32  ;;  %v2860_v27 = vrot.slane %v2843_v10, %v8438_v47  ;;  %v2881_v32 = vrot.slane %v2847_v35, %v8438_v47 }
 0x6ab   :  { %3398 = vmatprep.subr.bf16.mxu0 %v9526_v46  ;;  %3439 = vmatprep.subr.bf16.mxu1 %v11500_v12 }
 0x6ac   :  { %v2892_v28 = vsel %vm552_vm0, %v2860_v27, %v2881_v32  ;;  %v3029_v27 = vrot.slane %v3008_v48, %v8433_v52  ;;  %v3050_v32 = vrot.slane %v3012_v13, %v8433_v52 }
 0x6ae   :  { %v3058_v4 = vsel %vm552_vm0, %v3029_v27, %v3050_v32 }
 0x72d   :  { %v2929_v50 = vpop.f32.mrf.mxu0  ;;  %v2970_v1 = vpop.f32.mrf.mxu1 }
 0x72e   :  { %v2977_v51 = vadd.f32 %v2929_v50, %v2890_v42  ;;  %v2979_v12 = vadd.f32 %v2970_v1, %v2892_v28  ;;  %v3038_v42 = vrot.slane %v3012_v13, %v11483_v29  ;;  %v3021_v50 = vrot.slane %v3008_v48, %v11444_v33 }
 0x72f   :  { %v2931_v0 = vpop.f32.mrf.mxu0  ;;  %v2972_v49 = vpop.f32.mrf.mxu1  ;;  %v3042_v1 = vrot.slane %v3012_v13, %v11444_v33 }
 0x730   :  { %v6132_v62 = vmul.f32 -1.442695, %v2977_v51  ;;  %v2978_v31 = vadd.f32 %v2931_v0, %v2891_v43  ;;  %v2980_v46 = vadd.f32 %v2972_v49, %v2893_v25  ;;  %v3055_v43 = vsel %vm552_vm0, %v3017_v55, %v3038_v42 }
 0x731   :  { %v2933_v14 = vpop.f32.mrf.mxu0  ;;  %v2974_v15 = vpop.f32.mrf.mxu1  ;;  %v3056_v49 = vsel %vm552_vm0, %v3021_v50, %v3042_v1 }
 0x732   :  { %6719 = vpow2.f32 %v6132_v62  ;;  %v6133_v17 = vmul.f32 -1.442695, %v2978_v31  ;;  %v6134_v44 = vmul.f32 -1.442695, %v2980_v46 }
 0x733   :  { %v2934_v22 = vpop.f32.mrf.mxu0  ;;  %v2975_v24 = vpop.f32.mrf.mxu1 }
 0x734   :  { %6721 = vpow2.f32 %v6133_v17 }
 0x735   :  { %6723 = vpow2.f32 %v6134_v44 }
 0x73f   :  { %v6720_v37 = vpop.eup %6719 }
 0x740   :  { %v2984_v61 = vadd.f32 1.0, %v6720_v37 }
 0x741   :  { %v6722_v10 = vpop.eup %6721 }
 0x742   :  { %6725 = vrcp.f32 %v2984_v61  ;;  %v2990_v35 = vadd.f32 1.0, %v6722_v10  ;;  %v6724_v62 = vpop.eup %6723  ;;  %v3025_v61 = vrot.slane %v3008_v48, %v8438_v47  ;;  %v3046_v10 = vrot.slane %v3012_v13, %v8438_v47 }
 0x743   :  { %6727 = vtanh.f32 %v2979_v12  ;;  %v2997_v25 = vadd.f32 1.0, %v6724_v62 }
 0x744   :  { %6729 = vrcp.f32 %v2990_v35  ;;  %v3057_v55 = vsel %vm552_vm0, %v3025_v61, %v3046_v10 }
 0x74d   :  { %v3094_v51 = vpop.f32.mrf.mxu0  ;;  %v3135_v0 = vpop.f32.mrf.mxu1 }
 0x74e   :  { %v3142_v31 = vadd.f32 %v3094_v51, %v3055_v43  ;;  %v3144_v50 = vadd.f32 %v3135_v0, %v3057_v55 }
 0x74f   :  { %v6726_v14 = vpop.eup %6725  ;;  %v3096_v15 = vpop.f32.mrf.mxu0 }
 0x750   :  { %v3137_v17 = vpop.f32.mrf.mxu1  ;;  %v6728_v19 = vpop.eup %6727  ;;  %v6137_v21 = vmul.f32 -1.442695, %v3142_v31  ;;  %v3143_v22 = vadd.f32 %v3096_v15, %v3056_v49 }
 0x751   :  { %v6730_v24 = vpop.eup %6729  ;;  %v3098_v46 = vpop.f32.mrf.mxu0  ;;  %v3001_v5 = vmul.f32 %v6728_v19, %v6726_v14  ;;  %v3145_v35 = vadd.f32 %v3137_v17, %v3058_v4 }
 0x752   :  { %v3139_v28 = vpop.f32.mrf.mxu1  ;;  %v3000_v39 = vmul.f32 %v6730_v24, %v9568_v41  ;;  %6731 = vpow2.f32 %v6137_v21  ;;  %v6138_v44 = vmul.f32 -1.442695, %v3143_v22  ;;  %v3179_v24 = vstv %s6140_s4 }
 0x753   :  { %v3099_v37 = vpop.f32.mrf.mxu0  ;;  %v6139_v41 = vmul.f32 -1.442695, %v3145_v35  ;;  %v3180_v27 = vmul.f32 %v9800_v60, %v3179_v24 }
 0x754   :  { %v3140_v12 = vpop.f32.mrf.mxu1  ;;  %v9846_v8 = vadd.f32 %v3001_v5, %v3000_v39  ;;  %6733 = vpow2.f32 %v6138_v44 }
 0x755   :  { %6735 = vrcp.f32 %v2997_v25  ;;  %v3183_v25 = vstv %s6141_s5 }
 0x756   :  { %6737 = vtanh.f32 %v9846_v8  ;;  %v3184_v32 = vmul.f32 %v9800_v60, %v3183_v25 }
 0x757   :  { %6739 = vpow2.f32 %v6139_v41 }
 0x758   :  { %v3185_v46 = vadd.f32 %v9807_v7, %v3184_v32 }
 0x75a   :  { %v3215_v5 = vrot.slane %v3185_v46, %v11444_v33 }
 0x75f   :  { %v6732_v42 = vpop.eup %6731 }
 0x760   :  { %v3149_v1 = vadd.f32 1.0, %v6732_v42 }
 0x761   :  { %v6734_v43 = vpop.eup %6733 }
 0x762   :  { %v6736_v51 = vpop.eup %6735  ;;  %6741 = vrcp.f32 %v3149_v1  ;;  %v3155_v49 = vadd.f32 1.0, %v6734_v43 }
 0x763   :  { %v6738_v62 = vpop.eup %6737  ;;  %6743 = vtanh.f32 %v3144_v50  ;;  %v3223_v50 = vrot.slane %v3185_v46, %v8433_v52 }
 0x764   :  { %6745 = vrcp.f32 %v3155_v49  ;;  %v3004_v31 = vmul.f32 %v6738_v62, %v6736_v51  ;;  %v6740_v13 = vpop.eup %6739  ;;  %v3219_v62 = vrot.slane %v3185_v46, %v8438_v47 }
 0x765   :  { %v3162_v15 = vadd.f32 1.0, %v6740_v13  ;;  %v3348_v13 = vstv %s6145_s27 }
 0x766   :  { %v3171_v14 = vrot.slane %v3004_v31, 4  ;;  %v3232_v48 = vpack.c.bf16 %v3004_v31, %v3004_v31 }
 0x767   :  { %6747 = vrcp.f32 %v3162_v15 }
 0x768   :  { %3173 = vst [vmem:[#allocation2 + $0x8] sm:$0x30] %v3171_v14  ;;  %3266 = vmatmul.mubr.bf16.vlgmr.msra.gmra.mxu0 %v3232_v48  ;;  %3307 = vmatmul.mubr.bf16.vlgmr.msra.gmra.mxu1 %v3232_v48  ;;  %v3344_v48 = vstv %s3343_s26 }
 0x769   :  { %3399 = vmatpush1.bf16.msra.mxu0 %v9578_v30  ;;  %3440 = vmatpush1.bf16.msra.mxu1 %v9584_v18  ;;  %v3345_v15 = vmul.f32 %v9826_v38, %v3344_v48 }
 0x76a   :  { %3400 = vmatprep.subr.bf16.mxu0 %v9590_v16  ;;  %3441 = vmatprep.subr.bf16.mxu1 %v9596_v45 }
 0x76b   :  { %3430 = vmatprep.mubr.bf16.mxu0 %v11362_v6  ;;  %3471 = vmatprep.mubr.bf16.mxu1 %v11362_v6 }
 0x76d   :  { %3401 = vmatpush1.bf16.msra.mxu0 %v9604_v11  ;;  %3442 = vmatpush1.bf16.msra.mxu1 %v9610_v9  ;;  %v11501_v9 = vld [vmem:[#allocation194_spill] sm:$0xff] }
 0x76e   :  { %3402 = vmatprep.subr.bf16.mxu0 %v9616_v56  ;;  %3443 = vmatprep.subr.bf16.mxu1 %v9622_v20  ;;  %v11502_v56 = vld [vmem:[#allocation191_spill] sm:$0xff] }
 0x76f   :  { %v6742_v30 = vpop.eup %6741  ;;  %v11503_v20 = vld [vmem:[#allocation195_spill] sm:$0xff] }
 0x770   :  { %v6744_v0 = vpop.eup %6743 }
 0x771   :  { %v6746_v18 = vpop.eup %6745  ;;  %3403 = vmatpush1.bf16.msra.mxu0 %v9628_v23  ;;  %3444 = vmatpush1.bf16.msra.mxu1 %v9634_v59  ;;  %v3166_v16 = vmul.f32 %v6744_v0, %v6742_v30  ;;  %v11504_v23 = vld [vmem:[#allocation192_spill] sm:$0xff] }
 0x772   :  { %v3165_v45 = vmul.f32 %v6746_v18, %v9650_v36  ;;  %3404 = vmatprep.subr.bf16.mxu0 %v9641_v40  ;;  %3445 = vmatprep.subr.bf16.mxu1 %v9647_v54  ;;  %v11505_v59 = vld [vmem:[#allocation196_spill] sm:$0xff]  ;;  %v11506_v40 = vld [vmem:[#allocation198_spill] sm:$0xff]  ;;  %v11507_v54 = vld [vmem:[#allocation199_spill] sm:$0xff] }
 0x773   :  { %v11508_v36 = vld [vmem:[#allocation203_spill] sm:$0xff] }
 0x774   :  { %v9868_v11 = vadd.f32 %v3166_v16, %v3165_v45  ;;  %v3349_v16 = vmul.f32 %v9826_v38, %v3348_v13 }
 0x775   :  { %3405 = vmatpush1.bf16.msra.mxu0 %v9655_v58  ;;  %3446 = vmatpush1.bf16.msra.mxu1 %v9661_v53  ;;  %v11509_v58 = vld [vmem:[#allocation204_spill] sm:$0xff]  ;;  %v11510_v53 = vld [vmem:[#allocation205_spill] sm:$0xff] }
 0x776   :  { %3406 = vmatprep.subr.bf16.mxu0 %v9667_v57  ;;  %3447 = vmatprep.subr.bf16.mxu1 %v9673_v2  ;;  %6749 = vtanh.f32 %v9868_v11  ;;  %v6748_v57 = vpop.eup %6747  ;;  %v11511_v2 = vld [vmem:[#allocation171_spill] sm:$0xff] }
 0x779   :  { %3407 = vmatpush1.bf16.msra.mxu0 %v11501_v9  ;;  %3448 = vmatpush1.bf16.msra.mxu1 %v11502_v56 }
 0x77a   :  { %3408 = vmatprep.subr.bf16.mxu0 %v11503_v20  ;;  %3449 = vmatprep.subr.bf16.mxu1 %v11504_v23  ;;  %v3346_v20 = vadd.f32 %v9833_v3, %v3345_v15  ;;  %v3350_v23 = vadd.f32 %v9833_v3, %v3349_v16 }
 0x77d   :  { %3409 = vmatpush1.bf16.msra.mxu0 %v11505_v59  ;;  %3450 = vmatpush1.bf16.msra.mxu1 %v11506_v40  ;;  %v3355_v59 = vrot.slane %v3346_v20, %v11483_v29  ;;  %v3376_v40 = vrot.slane %v3350_v23, %v11483_v29 }
 0x77e   :  { %3410 = vmatprep.subr.bf16.mxu0 %v11507_v54  ;;  %3451 = vmatprep.subr.bf16.mxu1 %v11508_v36  ;;  %v3359_v54 = vrot.slane %v3346_v20, %v11444_v33  ;;  %v3380_v36 = vrot.slane %v3350_v23, %v11444_v33 }
 0x77f   :  { %v3393_v38 = vsel %vm552_vm0, %v3355_v59, %v3376_v40  ;;  %v11515_v59 = vld [vmem:[#allocation40_spill] sm:$0xff] }
 0x781   :  { %3411 = vmatpush1.bf16.msra.mxu0 %v11509_v58  ;;  %3452 = vmatpush1.bf16.msra.mxu1 %v11510_v53 }
 0x782   :  { %3412 = vmatprep.subr.bf16.mxu0 %v11511_v2  ;;  %3453 = vmatprep.subr.bf16.mxu1 %v9746_v63  ;;  %v3181_v63 = vadd.f32 %v9807_v7, %v3180_v27 }
 0x783   :  { %v6750_v17 = vpop.eup %6749 }
 0x784   :  { %v3169_v19 = vmul.f32 %v6750_v17, %v6748_v57  ;;  %v3194_v28 = vrot.slane %v3181_v63, %v11444_v33  ;;  %v3202_v42 = vrot.slane %v3181_v63, %v8433_v52  ;;  %v3198_v49 = vrot.slane %v3181_v63, %v8438_v47 }
 0x785   :  { %3413 = vmatpush1.bf16.msra.mxu0 %v9752_v34  ;;  %3454 = vmatpush1.bf16.msra.mxu1 %v9758_v26  ;;  %v3190_v34 = vrot.slane %v3181_v63, %v11483_v29  ;;  %v3211_v26 = vrot.slane %v3185_v46, %v11483_v29  ;;  %v3394_v57 = vsel %vm552_vm0, %v3359_v54, %v3380_v36 }
 0x786   :  { %v3175_v21 = vrot.slane %v3169_v19, 6  ;;  %v3397_v22 = vpack.c.bf16 %v3169_v19, %v3169_v19  ;;  %v3229_v12 = vsel %vm552_vm0, %v3194_v28, %v3215_v5  ;;  %v3231_v51 = vsel %vm552_vm0, %v3202_v42, %v3223_v50 }
 0x787   :  { %v3228_v39 = vsel %vm552_vm0, %v3190_v34, %v3211_v26  ;;  %v3230_v14 = vsel %vm552_vm0, %v3198_v49, %v3219_v62  ;;  %v3367_v63 = vrot.slane %v3346_v20, %v8433_v52  ;;  %v3388_v46 = vrot.slane %v3350_v23, %v8433_v52 }
 0x788   :  { %3177 = vst [vmem:[#allocation2 + $0x18] sm:$0xc] %v3175_v21  ;;  %3431 = vmatmul.mubr.bf16.vlgmr.msra.gmra.mxu0 %v3397_v22  ;;  %3472 = vmatmul.mubr.bf16.vlgmr.msra.gmra.mxu1 %v3397_v22 }
 0x828   :  { %v3267_v44 = vpop.f32.mrf.mxu0  ;;  %v3308_v37 = vpop.f32.mrf.mxu1 }
 0x829   :  { %v3315_v4 = vadd.f32 %v3267_v44, %v3228_v39  ;;  %v3317_v18 = vadd.f32 %v3308_v37, %v3230_v14 }
 0x82a   :  { %v3269_v60 = vpop.f32.mrf.mxu0  ;;  %v3310_v61 = vpop.f32.mrf.mxu1 }
 0x82b   :  { %v6142_v10 = vmul.f32 -1.442695, %v3315_v4  ;;  %v3316_v35 = vadd.f32 %v3269_v60, %v3229_v12  ;;  %v3318_v31 = vadd.f32 %v3310_v61, %v3231_v51  ;;  %v3396_v4 = vsel %vm552_vm0, %v3367_v63, %v3388_v46 }
 0x82c   :  { %v3271_v7 = vpop.f32.mrf.mxu0  ;;  %v3312_v55 = vpop.f32.mrf.mxu1  ;;  %v3363_v60 = vrot.slane %v3346_v20, %v8438_v47  ;;  %v3384_v61 = vrot.slane %v3350_v23, %v8438_v47  ;;  %v11514_v23 = vld [vmem:[#allocation42_spill] sm:$0xff] }
 0x82d   :  { %6751 = vpow2.f32 %v6142_v10  ;;  %v6143_v41 = vmul.f32 -1.442695, %v3316_v35  ;;  %v6144_v30 = vmul.f32 -1.442695, %v3318_v31  ;;  %v6180_v40 = vcombine.high %v11515_v59, %v11514_v23 }
 0x82e   :  { %v3272_v1 = vpop.f32.mrf.mxu0  ;;  %v3313_v43 = vpop.f32.mrf.mxu1  ;;  %v3395_v35 = vsel %vm552_vm0, %v3363_v60, %v3384_v61  ;;  %v6179_v36 = vcombine.low %v11515_v59, %v11514_v23 }
 0x82f   :  { %6753 = vpow2.f32 %v6143_v41 }
 0x830   :  { %6755 = vpow2.f32 %v6144_v30 }
 0x83a   :  { %v6752_v0 = vpop.eup %6751 }
 0x83b   :  { %v3322_v45 = vadd.f32 1.0, %v6752_v0 }
 0x83c   :  { %v6754_v9 = vpop.eup %6753 }
 0x83d   :  { %6757 = vrcp.f32 %v3322_v45  ;;  %v3328_v56 = vadd.f32 1.0, %v6754_v9  ;;  %v6756_v2 = vpop.eup %6755  ;;  %v11512_v9 = vld [vmem:[#allocation41_spill] sm:$0xff] }
 0x83e   :  { %6759 = vtanh.f32 %v3317_v18  ;;  %v3335_v32 = vadd.f32 1.0, %v6756_v2 }
 0x83f   :  { %6761 = vrcp.f32 %v3328_v56  ;;  %v11513_v56 = vld [vmem:[#allocation39_spill] sm:$0xff] }
 0x840   :  { %v6178_v20 = vcombine.high %v11513_v56, %v11512_v9  ;;  %v6177_v54 = vcombine.low %v11513_v56, %v11512_v9 }
 0x848   :  { %v3432_v58 = vpop.f32.mrf.mxu0  ;;  %v3473_v53 = vpop.f32.mrf.mxu1 }
 0x849   :  { %v3480_v17 = vadd.f32 %v3432_v58, %v3393_v38 }
 0x84a   :  { %v6758_v19 = vpop.eup %6757  ;;  %v3434_v21 = vpop.f32.mrf.mxu0 }
 0x84b   :  { %v3475_v3 = vpop.f32.mrf.mxu1  ;;  %v6760_v22 = vpop.eup %6759  ;;  %v6146_v24 = vmul.f32 -1.442695, %v3480_v17  ;;  %v3481_v25 = vadd.f32 %v3434_v21, %v3394_v57 }
 0x84c   :  { %v6762_v27 = vpop.eup %6761  ;;  %v3436_v34 = vpop.f32.mrf.mxu0  ;;  %v3339_v28 = vmul.f32 %v6760_v22, %v6758_v19  ;;  %v3483_v10 = vadd.f32 %v3475_v3, %v3396_v4 }
 0x84d   :  { %v3477_v26 = vpop.f32.mrf.mxu1  ;;  %v3338_v5 = vmul.f32 %v6762_v27, %v9846_v8  ;;  %6763 = vpow2.f32 %v6146_v24  ;;  %v6147_v39 = vmul.f32 -1.442695, %v3481_v25  ;;  %v3482_v8 = vadd.f32 %v3473_v53, %v3395_v35 }
 0x84e   :  { %v3437_v44 = vpop.f32.mrf.mxu0  ;;  %v6148_v7 = vmul.f32 -1.442695, %v3483_v10 }
 0x84f   :  { %v3478_v37 = vpop.f32.mrf.mxu1  ;;  %v3340_v12 = vadd.f32 %v3339_v28, %v3338_v5  ;;  %6765 = vpow2.f32 %v6147_v39 }
 0x850   :  { %6767 = vrcp.f32 %v3335_v32 }
 0x851   :  { %6769 = vtanh.f32 %v3340_v12 }
 0x852   :  { %6771 = vpow2.f32 %v6148_v7 }
 0x85a   :  { %v6764_v55 = vpop.eup %6763 }
 0x85b   :  { %v3487_v41 = vadd.f32 1.0, %v6764_v55 }
 0x85c   :  { %v6766_v42 = vpop.eup %6765 }
 0x85d   :  { %v6768_v50 = vpop.eup %6767  ;;  %6773 = vrcp.f32 %v3487_v41  ;;  %v3493_v1 = vadd.f32 1.0, %v6766_v42 }
 0x85e   :  { %v6770_v43 = vpop.eup %6769  ;;  %6775 = vtanh.f32 %v3482_v8 }
 0x85f   :  { %v9922_v51 = vmul.f32 %v6770_v43, %v6768_v50  ;;  %6777 = vrcp.f32 %v3493_v1  ;;  %v6772_v62 = vpop.eup %6771 }
 0x860   :  { %v3500_v13 = vadd.f32 1.0, %v6772_v62 }
 0x861   :  { %v3509_v49 = vrot.slane %v9922_v51, 2 }
 0x862   :  { %6779 = vrcp.f32 %v3500_v13 }
 0x863   :  { %3511 = vst [vmem:[#allocation2 + $0x8] sm:$0xc0] %v3509_v49 }
 0x86a   :  { %v6774_v31 = vpop.eup %6773 }
 0x86b   :  { %v6776_v14 = vpop.eup %6775 }
 0x86c   :  { %v6778_v48 = vpop.eup %6777  ;;  %v3504_v30 = vmul.f32 %v6776_v14, %v6774_v31 }
 0x86d   :  { %v3503_v0 = vmul.f32 %v6778_v48, %v9868_v11 }
 0x86f   :  { %v3505_v18 = vadd.f32 %v3504_v30, %v3503_v0  ;;  %v6780_v15 = vpop.eup %6779 }
 0x871   :  { %6781 = vtanh.f32 %v3505_v18 }
 0x87e   :  { %v6782_v16 = vpop.eup %6781 }
 0x87f   :  { %v3507_v45 = vmul.f32 %v6782_v16, %v6780_v15 }
 0x881   :  { %3512 = vst [vmem:[#allocation2 + $0x18] sm:$0x3] %v3507_v45 }
 0x882   :  { %7075 = dma.done.wait [#allocation4], 20480 }
 0x883   :  { %7076 = vsyncadd [#allocation4], 4294946816  ;;  %v11516_v11 = vld [vmem:[#allocation37_spill] sm:$0xff]  ;;  %v11517_v38 = vld [vmem:[#allocation35_spill] sm:$0xff]  ;;  %4025 = vmatprep.subr.bf16.mxu0 %v6178_v20  ;;  %4068 = vmatprep.subr.bf16.mxu1 %v6180_v40  ;;  %vm5704_vm1 = vcmask 1047558   ;;  %vm7080_vm2 = vmmov 0  }
 0x884   :  { %v6174_v58 = vcombine.high %v11517_v38, %v11516_v11  ;;  %v11518_v53 = vld [vmem:[#allocation38_spill] sm:$0xff]  ;;  %v11519_v57 = vld [vmem:[#allocation36_spill] sm:$0xff]  ;;  %4026 = vmatpush1.bf16.msra.mxu0 %v6177_v54  ;;  %4069 = vmatpush1.bf16.msra.mxu1 %v6179_v36  ;;  %v6173_v17 = vcombine.low %v11517_v38, %v11516_v11  ;;  %v11520_v21 = vld [vmem:[#allocation33_spill] sm:$0xff]  ;;  %vm5974_vm4 = vcmask 517120   ;;  %vm5986_vm5 = vcmask 1024  }
 0x885   :  { %v6176_v2 = vcombine.high %v11519_v57, %v11518_v53  ;;  %v6175_v19 = vcombine.low %v11519_v57, %v11518_v53  ;;  %v11521_v3 = vld [vmem:[#allocation31_spill] sm:$0xff]  ;;  %v11522_v24 = vld [vmem:[#allocation34_spill] sm:$0xff]  ;;  %v11523_v25 = vld [vmem:[#allocation32_spill] sm:$0xff] }
 0x886   :  { %4027 = vmatprep.subr.bf16.mxu0 %v6174_v58  ;;  %v6170_v22 = vcombine.high %v11521_v3, %v11520_v21  ;;  %v6172_v27 = vcombine.high %v11523_v25, %v11522_v24  ;;  %v6169_v32 = vcombine.low %v11521_v3, %v11520_v21  ;;  %v6171_v63 = vcombine.low %v11523_v25, %v11522_v24  ;;  %v11524_v46 = vld [vmem:[#allocation29_spill] sm:$0xff]  ;;  %v11525_v34 = vld [vmem:[#allocation27_spill] sm:$0xff]  ;;  %v11526_v28 = vld [vmem:[#allocation30_spill] sm:$0xff] }
 0x887   :  { %4070 = vmatprep.subr.bf16.mxu1 %v6176_v2  ;;  %v6166_v26 = vcombine.high %v11525_v34, %v11524_v46  ;;  %v11527_v5 = vld [vmem:[#allocation28_spill] sm:$0xff]  ;;  %v6165_v44 = vcombine.low %v11525_v34, %v11524_v46  ;;  %v11528_v12 = vld [vmem:[#allocation25_spill] sm:$0xff]  ;;  %v11529_v4 = vld [vmem:[#allocation23_spill] sm:$0xff] }
 0x888   :  { %4028 = vmatpush1.bf16.msra.mxu0 %v6173_v17  ;;  %4071 = vmatpush1.bf16.msra.mxu1 %v6175_v19  ;;  %v6168_v39 = vcombine.high %v11527_v5, %v11526_v28  ;;  %v6167_v37 = vcombine.low %v11527_v5, %v11526_v28  ;;  %v6162_v60 = vcombine.high %v11529_v4, %v11528_v12  ;;  %v11530_v61 = vld [vmem:[#allocation26_spill] sm:$0xff]  ;;  %v11531_v10 = vld [vmem:[#allocation24_spill] sm:$0xff]  ;;  %v11532_v42 = vld [vmem:[#allocation21_spill] sm:$0xff] }
 0x889   :  { %4029 = vmatprep.subr.bf16.mxu0 %v6170_v22  ;;  %4072 = vmatprep.subr.bf16.mxu1 %v6172_v27  ;;  %v6164_v35 = vcombine.high %v11531_v10, %v11530_v61  ;;  %v6161_v7 = vcombine.low %v11529_v4, %v11528_v12  ;;  %v6163_v55 = vcombine.low %v11531_v10, %v11530_v61  ;;  %v3678_v8 = vld [vmem:[#allocation2 + $0x18] sm:$0xff]  ;;  %v3680_v41 = vld [vmem:[#allocation2] sm:$0xff]  ;;  %v11535_v49 = vld [vmem:[#allocation20_spill] sm:$0xff] }
 0x88a   :  { %v11533_v50 = vld [vmem:[#allocation19_spill] sm:$0xff]  ;;  %v11534_v43 = vld [vmem:[#allocation22_spill] sm:$0xff]  ;;  %v3682_v31 = vpack.c.bf16 %v3680_v41, %v3678_v8  ;;  %v11536_v13 = vld [vmem:[#allocation17_spill] sm:$0xff] }
 0x88b   :  { %v6158_v1 = vcombine.high %v11533_v50, %v11532_v42  ;;  %v6160_v62 = vcombine.high %v11535_v49, %v11534_v43  ;;  %v6157_v14 = vcombine.low %v11533_v50, %v11532_v42  ;;  %v6159_v48 = vcombine.low %v11535_v49, %v11534_v43  ;;  %v11537_v30 = vld [vmem:[#allocation15_spill] sm:$0xff]  ;;  %v11538_v18 = vld [vmem:[#allocation18_spill] sm:$0xff]  ;;  %v11539_v15 = vld [vmem:[#allocation16_spill] sm:$0xff] }
 0x88c   :  { %4030 = vmatpush1.bf16.msra.mxu0 %v6169_v32  ;;  %4073 = vmatpush1.bf16.msra.mxu1 %v6171_v63  ;;  %v6154_v0 = vcombine.high %v11537_v30, %v11536_v13  ;;  %v6156_v16 = vcombine.high %v11539_v15, %v11538_v18  ;;  %v6153_v45 = vcombine.low %v11537_v30, %v11536_v13  ;;  %v11540_v56 = vld [vmem:[#allocation13_spill] sm:$0xff]  ;;  %v11541_v20 = vld [vmem:[#allocation11_spill] sm:$0xff]  ;;  %v11542_v59 = vld [vmem:[#allocation14_spill] sm:$0xff] }
 0x88d   :  { %4031 = vmatprep.subr.bf16.mxu0 %v6166_v26  ;;  %4074 = vmatprep.subr.bf16.mxu1 %v6168_v39  ;;  %v6155_v9 = vcombine.low %v11539_v15, %v11538_v18  ;;  %v6150_v23 = vcombine.high %v11541_v20, %v11540_v56  ;;  %v11543_v40 = vld [vmem:[#allocation12_spill] sm:$0xff]  ;;  %v6149_v36 = vcombine.low %v11541_v20, %v11540_v56  ;;  %v11544_v38 = vld [vmem:[#allocation73_spill] sm:$0xff]  ;;  %v11545_v58 = vld [vmem:[#allocation71_spill] sm:$0xff] }
 0x88e   :  { %4057 = vmatprep.mubr.bf16.mxu0 %v3682_v31  ;;  %4100 = vmatprep.mubr.bf16.mxu1 %v3682_v31  ;;  %v6152_v54 = vcombine.high %v11543_v40, %v11542_v59  ;;  %v6151_v11 = vcombine.low %v11543_v40, %v11542_v59  ;;  %v6210_v53 = vcombine.high %v11545_v58, %v11544_v38  ;;  %v11546_v57 = vld [vmem:[#allocation74_spill] sm:$0xff]  ;;  %v11547_v2 = vld [vmem:[#allocation72_spill] sm:$0xff]  ;;  %v11548_v3 = vld [vmem:[#allocation69_spill] sm:$0xff] }
 0x88f   :  { %v6212_v17 = vcombine.high %v11547_v2, %v11546_v57  ;;  %v6209_v19 = vcombine.low %v11545_v58, %v11544_v38  ;;  %v6211_v21 = vcombine.low %v11547_v2, %v11546_v57  ;;  %v11549_v22 = vld [vmem:[#allocation67_spill] sm:$0xff]  ;;  %v11550_v25 = vld [vmem:[#allocation70_spill] sm:$0xff]  ;;  %v11551_v27 = vld [vmem:[#allocation68_spill] sm:$0xff] }
 0x890   :  { %4032 = vmatpush1.bf16.msra.mxu0 %v6165_v44  ;;  %4075 = vmatpush1.bf16.msra.mxu1 %v6167_v37  ;;  %v6206_v24 = vcombine.high %v11549_v22, %v11548_v3  ;;  %v6208_v32 = vcombine.high %v11551_v27, %v11550_v25  ;;  %v6205_v63 = vcombine.low %v11549_v22, %v11548_v3  ;;  %v11552_v34 = vld [vmem:[#allocation65_spill] sm:$0xff]  ;;  %v11553_v26 = vld [vmem:[#allocation63_spill] sm:$0xff]  ;;  %v11554_v5 = vld [vmem:[#allocation66_spill] sm:$0xff] }
 0x891   :  { %4033 = vmatprep.subr.bf16.mxu0 %v6162_v60  ;;  %4076 = vmatprep.subr.bf16.mxu1 %v6164_v35  ;;  %v6207_v46 = vcombine.low %v11551_v27, %v11550_v25  ;;  %v6202_v28 = vcombine.high %v11553_v26, %v11552_v34  ;;  %v11555_v39 = vld [vmem:[#allocation64_spill] sm:$0xff]  ;;  %v6201_v37 = vcombine.low %v11553_v26, %v11552_v34  ;;  %v11556_v4 = vld [vmem:[#allocation61_spill] sm:$0xff]  ;;  %v11557_v60 = vld [vmem:[#allocation59_spill] sm:$0xff] }
 0x892   :  { %v6204_v44 = vcombine.high %v11555_v39, %v11554_v5  ;;  %v6203_v12 = vcombine.low %v11555_v39, %v11554_v5  ;;  %v6198_v61 = vcombine.high %v11557_v60, %v11556_v4  ;;  %v11558_v10 = vld [vmem:[#allocation62_spill] sm:$0xff]  ;;  %v11559_v35 = vld [vmem:[#allocation60_spill] sm:$0xff]  ;;  %v11560_v41 = vld [vmem:[#allocation57_spill] sm:$0xff] }
 0x893   :  { %v6199_v8 = vcombine.low %v11559_v35, %v11558_v10  ;;  %v11561_v42 = vld [vmem:[#allocation55_spill] sm:$0xff]  ;;  %v11563_v43 = vld [vmem:[#allocation56_spill] sm:$0xff]  ;;  %v11566_v30 = vld [vmem:[#allocation54_spill] sm:$0xff] }
 0x894   :  { %4034 = vmatpush1.bf16.msra.mxu0 %v6161_v7  ;;  %4077 = vmatpush1.bf16.msra.mxu1 %v6163_v55  ;;  %v6200_v7 = vcombine.high %v11559_v35, %v11558_v10  ;;  %v6197_v55 = vcombine.low %v11557_v60, %v11556_v4  ;;  %v6194_v50 = vcombine.high %v11561_v42, %v11560_v41  ;;  %v11570_v20 = vld [vmem:[#allocation50_spill] sm:$0xff]  ;;  %v11576_v3 = vld [vmem:[#allocation105_spill] sm:$0xff]  ;;  %v11577_v22 = vld [vmem:[#allocation103_spill] sm:$0xff] }
 0x895   :  { %4035 = vmatprep.subr.bf16.mxu0 %v6158_v1  ;;  %4078 = vmatprep.subr.bf16.mxu1 %v6160_v62  ;;  %v11562_v1 = vld [vmem:[#allocation58_spill] sm:$0xff]  ;;  %v6193_v62 = vcombine.low %v11561_v42, %v11560_v41  ;;  %v11579_v27 = vld [vmem:[#allocation104_spill] sm:$0xff]  ;;  %v11580_v26 = vld [vmem:[#allocation101_spill] sm:$0xff] }
 0x896   :  { %v6196_v49 = vcombine.high %v11563_v43, %v11562_v1  ;;  %v6195_v31 = vcombine.low %v11563_v43, %v11562_v1  ;;  %v11574_v58 = vld [vmem:[#allocation46_spill] sm:$0xff]  ;;  %v11584_v60 = vld [vmem:[#allocation97_spill] sm:$0xff] }
 0x897   :  { %v11578_v25 = vld [vmem:[#allocation106_spill] sm:$0xff]  ;;  %v11588_v42 = vld [vmem:[#allocation93_spill] sm:$0xff] }
 0x898   :  { %4036 = vmatpush1.bf16.msra.mxu0 %v6157_v14  ;;  %4079 = vmatpush1.bf16.msra.mxu1 %v6159_v48  ;;  %v11564_v14 = vld [vmem:[#allocation53_spill] sm:$0xff]  ;;  %v11565_v48 = vld [vmem:[#allocation51_spill] sm:$0xff]  ;;  %v10068_v34 = vcombine.low %v11579_v27, %v11578_v25  ;;  %v11582_v39 = vld [vmem:[#allocation102_spill] sm:$0xff] }
 0x899   :  { %4037 = vmatprep.subr.bf16.mxu0 %v6154_v0  ;;  %4080 = vmatprep.subr.bf16.mxu1 %v6156_v16  ;;  %v6190_v13 = vcombine.high %v11565_v48, %v11564_v14  ;;  %v11567_v0 = vld [vmem:[#allocation52_spill] sm:$0xff]  ;;  %v6189_v15 = vcombine.low %v11565_v48, %v11564_v14  ;;  %v11586_v35 = vld [vmem:[#allocation98_spill] sm:$0xff]  ;;  %v11592_v48 = vld [vmem:[#allocation89_spill] sm:$0xff] }
 0x89a   :  { %v6192_v18 = vcombine.high %v11567_v0, %v11566_v30  ;;  %v6191_v16 = vcombine.low %v11567_v0, %v11566_v30  ;;  %v11590_v43 = vld [vmem:[#allocation94_spill] sm:$0xff] }
 0x89b   :  { %v11594_v0 = vld [vmem:[#allocation90_spill] sm:$0xff] }
 0x89c   :  { %4038 = vmatpush1.bf16.msra.mxu0 %v6153_v45  ;;  %4081 = vmatpush1.bf16.msra.mxu1 %v6155_v9  ;;  %v11568_v45 = vld [vmem:[#allocation49_spill] sm:$0xff]  ;;  %v11569_v9 = vld [vmem:[#allocation47_spill] sm:$0xff] }
 0x89d   :  { %4039 = vmatprep.subr.bf16.mxu0 %v6150_v23  ;;  %4082 = vmatprep.subr.bf16.mxu1 %v6152_v54  ;;  %v6186_v56 = vcombine.high %v11569_v9, %v11568_v45  ;;  %v11571_v23 = vld [vmem:[#allocation48_spill] sm:$0xff]  ;;  %v6185_v40 = vcombine.low %v11569_v9, %v11568_v45  ;;  %v11596_v9 = vld [vmem:[#allocation85_spill] sm:$0xff] }
 0x89e   :  { %v6188_v59 = vcombine.high %v11571_v23, %v11570_v20  ;;  %v6187_v54 = vcombine.low %v11571_v23, %v11570_v20  ;;  %v11598_v23 = vld [vmem:[#allocation86_spill] sm:$0xff] }
 0x8a0   :  { %4040 = vmatpush1.bf16.msra.mxu0 %v6149_v36  ;;  %4083 = vmatpush1.bf16.msra.mxu1 %v6151_v11  ;;  %v11572_v36 = vld [vmem:[#allocation45_spill] sm:$0xff]  ;;  %v11573_v11 = vld [vmem:[#allocation43_spill] sm:$0xff] }
 0x8a1   :  { %4041 = vmatprep.subr.bf16.mxu0 %v6210_v53  ;;  %4084 = vmatprep.subr.bf16.mxu1 %v6212_v17  ;;  %v6182_v38 = vcombine.high %v11573_v11, %v11572_v36  ;;  %v11575_v53 = vld [vmem:[#allocation44_spill] sm:$0xff]  ;;  %v6181_v2 = vcombine.low %v11573_v11, %v11572_v36  ;;  %v11600_v11 = vld [vmem:[#allocation81_spill] sm:$0xff] }
 0x8a2   :  { %v6184_v57 = vcombine.high %v11575_v53, %v11574_v58  ;;  %v6183_v17 = vcombine.low %v11575_v53, %v11574_v58  ;;  %v11602_v53 = vld [vmem:[#allocation82_spill] sm:$0xff] }
 0x8a4   :  { %4042 = vmatpush2.bf16.msra.mxu0 %v6209_v19  ;;  %4085 = vmatpush2.bf16.msra.mxu1 %v6211_v21  ;;  %v3677_v19 = vld [vmem:[#allocation2 + $0x10] sm:$0xff]  ;;  %v3679_v21 = vld [vmem:[#allocation2 + $0x8] sm:$0xff] }
 0x8a5   :  { %4043 = vmatprep.subr.bf16.mxu0 %v6206_v24  ;;  %4086 = vmatprep.subr.bf16.mxu1 %v6208_v32  ;;  %v10056_v24 = vcombine.high %v11577_v22, %v11576_v3  ;;  %v10060_v32 = vcombine.high %v11579_v27, %v11578_v25  ;;  %v11606_v25 = vld [vmem:[#allocation78_spill] sm:$0xff]  ;;  %v11607_v27 = vld [vmem:[#allocation76_spill] sm:$0xff] }
 0x8a8   :  { %4044 = vmatpush2.bf16.msra.mxu0 %v6205_v63  ;;  %4087 = vmatpush2.bf16.msra.mxu1 %v6207_v46  ;;  %v3681_v63 = vpack.c.bf16 %v3679_v21, %v3677_v19  ;;  %v10064_v46 = vcombine.low %v11577_v22, %v11576_v3  ;;  %v11604_v21 = vld [vmem:[#allocation77_spill] sm:$0xff]  ;;  %v11605_v3 = vld [vmem:[#allocation75_spill] sm:$0xff] }
 0x8a9   :  { %4045 = vmatprep.subr.bf16.mxu0 %v6202_v28  ;;  %4088 = vmatprep.subr.bf16.mxu1 %v6204_v44  ;;  %v11581_v28 = vld [vmem:[#allocation99_spill] sm:$0xff]  ;;  %v11583_v44 = vld [vmem:[#allocation100_spill] sm:$0xff]  ;;  %v10196_v22 = vcombine.high %v11605_v3, %v11604_v21 }
 0x8aa   :  { %v10074_v5 = vcombine.high %v11581_v28, %v11580_v26  ;;  %v10088_v4 = vcombine.low %v11583_v44, %v11582_v39 }
 0x8ac   :  { %4046 = vmatpush2.bf16.msra.mxu0 %v6201_v37  ;;  %4089 = vmatpush2.bf16.msra.mxu1 %v6203_v12  ;;  %v10078_v37 = vcombine.high %v11583_v44, %v11582_v39  ;;  %v10084_v12 = vcombine.low %v11581_v28, %v11580_v26  ;;  %v10206_v26 = vcombine.low %v11605_v3, %v11604_v21  ;;  %v3683_v39 = vld [vmem:[%s10882_s8] sm:$0xf] }
 0x8ad   :  { %4047 = vmatprep.subr.bf16.mxu0 %v6198_v61  ;;  %4090 = vmatprep.subr.bf16.mxu1 %v6200_v7  ;;  %v11585_v61 = vld [vmem:[#allocation95_spill] sm:$0xff]  ;;  %v11587_v7 = vld [vmem:[#allocation96_spill] sm:$0xff]  ;;  %v10210_v28 = vcombine.low %v11607_v27, %v11606_v25 }
 0x8ae   :  { %v10094_v10 = vcombine.high %v11585_v61, %v11584_v60  ;;  %v10110_v41 = vcombine.low %v11587_v7, %v11586_v35 }
 0x8b0   :  { %4048 = vmatpush2.bf16.msra.mxu0 %v6197_v55  ;;  %4091 = vmatpush2.bf16.msra.mxu1 %v6199_v8  ;;  %v10098_v55 = vcombine.high %v11587_v7, %v11586_v35  ;;  %v10106_v8 = vcombine.low %v11585_v61, %v11584_v60  ;;  %v3696_v61 = vrot.slane %v3683_v39, %v8438_v47 }
 0x8b1   :  { %4049 = vmatprep.subr.bf16.mxu0 %v6194_v50  ;;  %4092 = vmatprep.subr.bf16.mxu1 %v6196_v49  ;;  %v11589_v50 = vld [vmem:[#allocation91_spill] sm:$0xff]  ;;  %v11591_v49 = vld [vmem:[#allocation92_spill] sm:$0xff] }
 0x8b2   :  { %v10116_v1 = vcombine.high %v11589_v50, %v11588_v42  ;;  %v10130_v14 = vcombine.low %v11591_v49, %v11590_v43 }
 0x8b4   :  { %4050 = vmatpush2.bf16.msra.mxu0 %v6193_v62  ;;  %4093 = vmatpush2.bf16.msra.mxu1 %v6195_v31  ;;  %v10120_v62 = vcombine.high %v11591_v49, %v11590_v43  ;;  %v10126_v31 = vcombine.low %v11589_v50, %v11588_v42  ;;  %v3688_v42 = vrot.slane %v3683_v39, %v11483_v29 }
 0x8b5   :  { %4051 = vmatprep.subr.bf16.mxu0 %v6190_v13  ;;  %4094 = vmatprep.subr.bf16.mxu1 %v6192_v18  ;;  %v11593_v13 = vld [vmem:[#allocation87_spill] sm:$0xff]  ;;  %v11595_v18 = vld [vmem:[#allocation88_spill] sm:$0xff]  ;;  %v3700_v50 = vrot.slane %v3683_v39, %v8433_v52 }
 0x8b6   :  { %v10136_v30 = vcombine.high %v11593_v13, %v11592_v48  ;;  %v10150_v45 = vcombine.low %v11595_v18, %v11594_v0 }
 0x8b8   :  { %4052 = vmatpush2.bf16.msra.mxu0 %v6189_v15  ;;  %4095 = vmatpush2.bf16.msra.mxu1 %v6191_v16  ;;  %v10140_v15 = vcombine.high %v11595_v18, %v11594_v0  ;;  %v10146_v16 = vcombine.low %v11593_v13, %v11592_v48  ;;  %v3692_v48 = vrot.slane %v3683_v39, %v11444_v33 }
 0x8b9   :  { %4053 = vmatprep.subr.bf16.mxu0 %v6186_v56  ;;  %4096 = vmatprep.subr.bf16.mxu1 %v6188_v59  ;;  %v11597_v56 = vld [vmem:[#allocation83_spill] sm:$0xff]  ;;  %v11599_v59 = vld [vmem:[#allocation84_spill] sm:$0xff] }
 0x8ba   :  { %v10156_v20 = vcombine.high %v11597_v56, %v11596_v9  ;;  %v10170_v36 = vcombine.low %v11599_v59, %v11598_v23 }
 0x8bc   :  { %4054 = vmatpush2.bf16.msra.mxu0 %v6185_v40  ;;  %4097 = vmatpush2.bf16.msra.mxu1 %v6187_v54  ;;  %v10160_v40 = vcombine.high %v11599_v59, %v11598_v23  ;;  %v10166_v54 = vcombine.low %v11597_v56, %v11596_v9 }
 0x8bd   :  { %4055 = vmatprep.subr.bf16.mxu0 %v6182_v38  ;;  %4098 = vmatprep.subr.bf16.mxu1 %v6184_v57  ;;  %v11601_v38 = vld [vmem:[#allocation79_spill] sm:$0xff]  ;;  %v11603_v57 = vld [vmem:[#allocation80_spill] sm:$0xff] }
 0x8be   :  { %v10176_v58 = vcombine.high %v11601_v38, %v11600_v11  ;;  %v10190_v19 = vcombine.low %v11603_v57, %v11602_v53 }
 0x8c0   :  { %4056 = vmatpush2.bf16.msra.mxu0 %v6181_v2  ;;  %4099 = vmatpush2.bf16.msra.mxu1 %v6183_v17  ;;  %v10180_v2 = vcombine.high %v11603_v57, %v11602_v53  ;;  %v10186_v17 = vcombine.low %v11601_v38, %v11600_v11 }
 0x8c1   :  { %4271 = vmatprep.subr.bf16.mxu0 %v10056_v24  ;;  %4312 = vmatprep.subr.bf16.mxu1 %v10060_v32 }
 0x8c3   :  { %4058 = vmatmul.mubr.bf16.vlgmr.msra.gmra.mxu0 %v3681_v63  ;;  %4101 = vmatmul.mubr.bf16.vlgmr.msra.gmra.mxu1 %v3681_v63  ;;  %v10200_v63 = vcombine.high %v11607_v27, %v11606_v25 }
 0x8c4   :  { %4272 = vmatpush1.bf16.msra.mxu0 %v10064_v46  ;;  %4313 = vmatpush1.bf16.msra.mxu1 %v10068_v34 }
 0x8c5   :  { %4273 = vmatprep.subr.bf16.mxu0 %v10074_v5  ;;  %4314 = vmatprep.subr.bf16.mxu1 %v10078_v37 }
 0x8c6   :  { %4303 = vmatprep.mubr.bf16.mxu0 %v11362_v6  ;;  %4344 = vmatprep.mubr.bf16.mxu1 %v11362_v6 }
 0x8c8   :  { %4274 = vmatpush1.bf16.msra.mxu0 %v10084_v12  ;;  %4315 = vmatpush1.bf16.msra.mxu1 %v10088_v4 }
 0x8c9   :  { %4275 = vmatprep.subr.bf16.mxu0 %v10094_v10  ;;  %4316 = vmatprep.subr.bf16.mxu1 %v10098_v55 }
 0x8cc   :  { %4276 = vmatpush1.bf16.msra.mxu0 %v10106_v8  ;;  %4317 = vmatpush1.bf16.msra.mxu1 %v10110_v41 }
 0x8cd   :  { %4277 = vmatprep.subr.bf16.mxu0 %v10116_v1  ;;  %4318 = vmatprep.subr.bf16.mxu1 %v10120_v62 }
 0x8d0   :  { %4278 = vmatpush1.bf16.msra.mxu0 %v10126_v31  ;;  %4319 = vmatpush1.bf16.msra.mxu1 %v10130_v14 }
 0x8d1   :  { %4279 = vmatprep.subr.bf16.mxu0 %v10136_v30  ;;  %4320 = vmatprep.subr.bf16.mxu1 %v10140_v15 }
 0x8d4   :  { %4280 = vmatpush1.bf16.msra.mxu0 %v10146_v16  ;;  %4321 = vmatpush1.bf16.msra.mxu1 %v10150_v45 }
 0x8d5   :  { %4281 = vmatprep.subr.bf16.mxu0 %v10156_v20  ;;  %4322 = vmatprep.subr.bf16.mxu1 %v10160_v40 }
 0x8d8   :  { %4282 = vmatpush1.bf16.msra.mxu0 %v10166_v54  ;;  %4323 = vmatpush1.bf16.msra.mxu1 %v10170_v36 }
 0x8d9   :  { %4283 = vmatprep.subr.bf16.mxu0 %v10176_v58  ;;  %4324 = vmatprep.subr.bf16.mxu1 %v10180_v2 }
 0x8dc   :  { %4284 = vmatpush1.bf16.msra.mxu0 %v10186_v17  ;;  %4325 = vmatpush1.bf16.msra.mxu1 %v10190_v19 }
 0x8dd   :  { %4285 = vmatprep.subr.bf16.mxu0 %v10196_v22  ;;  %4326 = vmatprep.subr.bf16.mxu1 %v10200_v63 }
 0x8e0   :  { %4286 = vmatpush1.bf16.msra.mxu0 %v10206_v26  ;;  %4327 = vmatpush1.bf16.msra.mxu1 %v10210_v28 }
 0x8e1   :  { %4382 = vmatprep.subr.bf16.mxu0 %v10056_v24  ;;  %4423 = vmatprep.subr.bf16.mxu1 %v10060_v32 }
 0x8e3   :  { %4304 = vmatmul.mubr.bf16.vlgmr.msra.gmra.mxu0 %v11362_v6  ;;  %4345 = vmatmul.mubr.bf16.vlgmr.msra.gmra.mxu1 %v11362_v6 }
 0x8e4   :  { %4383 = vmatpush1.bf16.msra.mxu0 %v10064_v46  ;;  %4424 = vmatpush1.bf16.msra.mxu1 %v10068_v34 }
 0x8e5   :  { %4384 = vmatprep.subr.bf16.mxu0 %v10074_v5  ;;  %4425 = vmatprep.subr.bf16.mxu1 %v10078_v37 }
 0x8e6   :  { %4414 = vmatprep.mubr.bf16.mxu0 %v11362_v6  ;;  %4455 = vmatprep.mubr.bf16.mxu1 %v11362_v6 }
 0x8e8   :  { %4385 = vmatpush1.bf16.msra.mxu0 %v10084_v12  ;;  %4426 = vmatpush1.bf16.msra.mxu1 %v10088_v4 }
 0x8e9   :  { %4386 = vmatprep.subr.bf16.mxu0 %v10094_v10  ;;  %4427 = vmatprep.subr.bf16.mxu1 %v10098_v55 }
 0x8ec   :  { %4387 = vmatpush1.bf16.msra.mxu0 %v10106_v8  ;;  %4428 = vmatpush1.bf16.msra.mxu1 %v10110_v41 }
 0x8ed   :  { %4388 = vmatprep.subr.bf16.mxu0 %v10116_v1  ;;  %4429 = vmatprep.subr.bf16.mxu1 %v10120_v62 }
 0x8f0   :  { %4389 = vmatpush1.bf16.msra.mxu0 %v10126_v31  ;;  %4430 = vmatpush1.bf16.msra.mxu1 %v10130_v14 }
 0x8f1   :  { %4390 = vmatprep.subr.bf16.mxu0 %v10136_v30  ;;  %4431 = vmatprep.subr.bf16.mxu1 %v10140_v15 }
 0x8f4   :  { %4391 = vmatpush1.bf16.msra.mxu0 %v10146_v16  ;;  %4432 = vmatpush1.bf16.msra.mxu1 %v10150_v45 }
 0x8f5   :  { %4392 = vmatprep.subr.bf16.mxu0 %v10156_v20  ;;  %4433 = vmatprep.subr.bf16.mxu1 %v10160_v40 }
 0x8f8   :  { %4393 = vmatpush1.bf16.msra.mxu0 %v10166_v54  ;;  %4434 = vmatpush1.bf16.msra.mxu1 %v10170_v36 }
 0x8f9   :  { %4394 = vmatprep.subr.bf16.mxu0 %v10176_v58  ;;  %4435 = vmatprep.subr.bf16.mxu1 %v10180_v2 }
 0x8fc   :  { %4395 = vmatpush1.bf16.msra.mxu0 %v10186_v17  ;;  %4436 = vmatpush1.bf16.msra.mxu1 %v10190_v19 }
 0x8fd   :  { %4396 = vmatprep.subr.bf16.mxu0 %v10196_v22  ;;  %4437 = vmatprep.subr.bf16.mxu1 %v10200_v63 }
 0x900   :  { %4397 = vmatpush1.bf16.msra.mxu0 %v10206_v26  ;;  %4438 = vmatpush1.bf16.msra.mxu1 %v10210_v28 }
 0x901   :  { %4511 = vmatprep.subr.bf16.mxu0 %v10056_v24  ;;  %4552 = vmatprep.subr.bf16.mxu1 %v10060_v32 }
 0x983   :  { %v4059_v44 = vpop.f32.mrf.mxu0  ;;  %v4102_v60 = vpop.f32.mrf.mxu1 }
 0x984   :  { %v10269_v59 = vadd.f32 %v4059_v44, %v3688_v42 }
 0x985   :  { %v4061_v35 = vpop.f32.mrf.mxu0  ;;  %v4104_v7 = vpop.f32.mrf.mxu1 }
 0x986   :  { %v10271_v53 = vadd.f32 %v4061_v35, %v3692_v48  ;;  %v10275_v44 = vadd.f32 %v4104_v7, %v3700_v50  ;;  %v10278_v35 = vadd.f32 %v4102_v60, %v3696_v61 }
 0x987   :  { %v4063_v43 = vpop.f32.mrf.mxu0  ;;  %v4106_v49 = vpop.f32.mrf.mxu1 }
 0x988   :  { %v10261_v13 = vadd.f32 %v4063_v43, %v3688_v42  ;;  %v10263_v0 = vadd.f32 %v4106_v49, %v3696_v61 }
 0x989   :  { %v4065_v18 = vpop.f32.mrf.mxu0  ;;  %v4108_v9 = vpop.f32.mrf.mxu1 }
 0x98a   :  { %v10265_v56 = vadd.f32 %v4065_v18, %v3692_v48  ;;  %v10267_v23 = vadd.f32 %v4108_v9, %v3700_v50 }
 0x9a3   :  { %v4305_v11 = vpop.f32.mrf.mxu0  ;;  %v4346_v38 = vpop.f32.mrf.mxu1 }
 0x9a4   :  { %v4353_v57 = vadd.f32 %v4305_v11, %v10269_v59  ;;  %v4355_v33 = vadd.f32 %v4346_v38, %v10278_v35 }
 0x9a5   :  { %v4307_v21 = vpop.f32.mrf.mxu0  ;;  %v4348_v3 = vpop.f32.mrf.mxu1 }
 0x9a6   :  { %v6245_v25 = vmul.f32 -1.442695, %v4353_v57  ;;  %v4354_v27 = vadd.f32 %v4307_v21, %v10271_v53  ;;  %v4356_v42 = vadd.f32 %v4348_v3, %v10275_v44 }
 0x9a7   :  { %v4309_v39 = vpop.f32.mrf.mxu0  ;;  %v4350_v43 = vpop.f32.mrf.mxu1 }
 0x9a8   :  { %6919 = vpow2.f32 %v6245_v25  ;;  %v6246_v49 = vmul.f32 -1.442695, %v4354_v27  ;;  %v6247_v48 = vmul.f32 -1.442695, %v4356_v42 }
 0x9a9   :  { %v4310_v18 = vpop.f32.mrf.mxu0  ;;  %v4351_v9 = vpop.f32.mrf.mxu1 }
 0x9aa   :  { %6921 = vpow2.f32 %v6246_v49 }
 0x9ab   :  { %6923 = vpow2.f32 %v6247_v48 }
 0x9b5   :  { %v6920_v11 = vpop.eup %6919 }
 0x9b6   :  { %v4360_v57 = vadd.f32 1.0, %v6920_v11 }
 0x9b7   :  { %v6922_v47 = vpop.eup %6921 }
 0x9b8   :  { %6925 = vrcp.f32 %v4360_v57  ;;  %v4366_v21 = vadd.f32 1.0, %v6922_v47  ;;  %v6924_v25 = vpop.eup %6923 }
 0x9b9   :  { %6927 = vtanh.f32 %v4355_v33  ;;  %v4373_v50 = vadd.f32 1.0, %v6924_v25 }
 0x9ba   :  { %6929 = vrcp.f32 %v4366_v21 }
 0x9bb   :  { %6931 = vrcp.f32 %v4373_v50 }
 0x9c5   :  { %v6926_v27 = vpop.eup %6925 }
 0x9c6   :  { %v6928_v39 = vpop.eup %6927 }
 0x9c7   :  { %v6930_v7 = vpop.eup %6929  ;;  %v4377_v3 = vmul.f32 %v6928_v39, %v6926_v27 }
 0x9c8   :  { %v4376_v43 = vmul.f32 0.0, %v6930_v7  ;;  %v6932_v61 = vpop.eup %6931 }
 0x9ca   :  { %v10281_v60 = vadd.f32 %v4377_v3, %v4376_v43 }
 0x9cc   :  { %6933 = vtanh.f32 %v10281_v60 }
 0x9d9   :  { %v6934_v38 = vpop.eup %6933 }
 0x9da   :  { %v4380_v49 = vmul.f32 %v6934_v38, %v6932_v61 }
 0x9dc   :  { %v4381_v18 = vpack.c.bf16 %v4380_v49, %v4380_v49 }
 0x9de   :  { %4415 = vmatmul.mubr.bf16.vlgmr.msra.gmra.mxu0 %v4381_v18  ;;  %4456 = vmatmul.mubr.bf16.vlgmr.msra.gmra.mxu1 %v4381_v18 }
 0x9df   :  { %4512 = vmatpush1.bf16.msra.mxu0 %v10064_v46  ;;  %4553 = vmatpush1.bf16.msra.mxu1 %v10068_v34 }
 0x9e0   :  { %4513 = vmatprep.subr.bf16.mxu0 %v10074_v5  ;;  %4554 = vmatprep.subr.bf16.mxu1 %v10078_v37 }
 0x9e1   :  { %4543 = vmatprep.mubr.bf16.mxu0 %v11362_v6  ;;  %4584 = vmatprep.mubr.bf16.mxu1 %v11362_v6 }
 0x9e3   :  { %4514 = vmatpush1.bf16.msra.mxu0 %v10084_v12  ;;  %4555 = vmatpush1.bf16.msra.mxu1 %v10088_v4 }
 0x9e4   :  { %4515 = vmatprep.subr.bf16.mxu0 %v10094_v10  ;;  %4556 = vmatprep.subr.bf16.mxu1 %v10098_v55 }
 0x9e7   :  { %4516 = vmatpush1.bf16.msra.mxu0 %v10106_v8  ;;  %4557 = vmatpush1.bf16.msra.mxu1 %v10110_v41 }
 0x9e8   :  { %4517 = vmatprep.subr.bf16.mxu0 %v10116_v1  ;;  %4558 = vmatprep.subr.bf16.mxu1 %v10120_v62 }
 0x9eb   :  { %4518 = vmatpush1.bf16.msra.mxu0 %v10126_v31  ;;  %4559 = vmatpush1.bf16.msra.mxu1 %v10130_v14 }
 0x9ec   :  { %4519 = vmatprep.subr.bf16.mxu0 %v10136_v30  ;;  %4560 = vmatprep.subr.bf16.mxu1 %v10140_v15 }
 0x9ef   :  { %4520 = vmatpush1.bf16.msra.mxu0 %v10146_v16  ;;  %4561 = vmatpush1.bf16.msra.mxu1 %v10150_v45 }
 0x9f0   :  { %4521 = vmatprep.subr.bf16.mxu0 %v10156_v20  ;;  %4562 = vmatprep.subr.bf16.mxu1 %v10160_v40 }
 0x9f3   :  { %4522 = vmatpush1.bf16.msra.mxu0 %v10166_v54  ;;  %4563 = vmatpush1.bf16.msra.mxu1 %v10170_v36 }
 0x9f4   :  { %4523 = vmatprep.subr.bf16.mxu0 %v10176_v58  ;;  %4564 = vmatprep.subr.bf16.mxu1 %v10180_v2 }
 0x9f7   :  { %4524 = vmatpush1.bf16.msra.mxu0 %v10186_v17  ;;  %4565 = vmatpush1.bf16.msra.mxu1 %v10190_v19 }
 0x9f8   :  { %4525 = vmatprep.subr.bf16.mxu0 %v10196_v22  ;;  %4566 = vmatprep.subr.bf16.mxu1 %v10200_v63 }
 0x9fb   :  { %4526 = vmatpush1.bf16.msra.mxu0 %v10206_v26  ;;  %4567 = vmatpush1.bf16.msra.mxu1 %v10210_v28 }
 0x9fc   :  { %4640 = vmatprep.subr.bf16.mxu0 %v10056_v24  ;;  %4681 = vmatprep.subr.bf16.mxu1 %v10060_v32 }
 0xa9e   :  { %v4416_v47 = vpop.f32.mrf.mxu0  ;;  %v4457_v33 = vpop.f32.mrf.mxu1 }
 0xa9f   :  { %v4468_v9 = vrot.slane %v4416_v47, 6  ;;  %v4470_v38 = vrot.slane %v4457_v33, 6 }
 0xaa0   :  { %v4418_v42 = vpop.f32.mrf.mxu0  ;;  %v4459_v48 = vpop.f32.mrf.mxu1 }
 0xaa1   :  { %v4476_v11 = vadd.f32 %v4468_v9, %v10269_v59  ;;  %v4469_v57 = vrot.slane %v4418_v42, 6  ;;  %v4471_v3 = vrot.slane %v4459_v48, 6  ;;  %v4478_v47 = vadd.f32 %v4470_v38, %v10278_v35 }
 0xaa2   :  { %v4420_v21 = vpop.f32.mrf.mxu0  ;;  %v4461_v25 = vpop.f32.mrf.mxu1 }
 0xaa3   :  { %v6248_v27 = vmul.f32 -1.442695, %v4476_v11  ;;  %v4477_v39 = vadd.f32 %v4469_v57, %v10271_v53  ;;  %v4479_v61 = vadd.f32 %v4471_v3, %v10275_v44 }
 0xaa4   :  { %v4421_v7 = vpop.f32.mrf.mxu0  ;;  %v4462_v50 = vpop.f32.mrf.mxu1 }
 0xaa5   :  { %6935 = vpow2.f32 %v6248_v27  ;;  %v6249_v43 = vmul.f32 -1.442695, %v4477_v39  ;;  %v6250_v49 = vmul.f32 -1.442695, %v4479_v61  ;;  %v4500_v27 = vrot.slane %v10281_v60, 6 }
 0xaa7   :  { %6937 = vpow2.f32 %v6249_v43 }
 0xaa8   :  { %6939 = vpow2.f32 %v6250_v49 }
 0xab2   :  { %v6936_v18 = vpop.eup %6935 }
 0xab3   :  { %v4483_v9 = vadd.f32 1.0, %v6936_v18 }
 0xab4   :  { %v6938_v42 = vpop.eup %6937 }
 0xab5   :  { %6941 = vrcp.f32 %v4483_v9  ;;  %v4489_v11 = vadd.f32 1.0, %v6938_v42  ;;  %v6940_v57 = vpop.eup %6939 }
 0xab6   :  { %6943 = vtanh.f32 %v4478_v47  ;;  %v4496_v39 = vadd.f32 1.0, %v6940_v57 }
 0xab7   :  { %6945 = vrcp.f32 %v4489_v11 }
 0xab8   :  { %6947 = vrcp.f32 %v4496_v39 }
 0xac2   :  { %v6942_v21 = vpop.eup %6941 }
 0xac3   :  { %v6944_v25 = vpop.eup %6943 }
 0xac4   :  { %v6946_v48 = vpop.eup %6945  ;;  %v4503_v7 = vmul.f32 %v6944_v25, %v6942_v21 }
 0xac5   :  { %v4502_v33 = vmul.f32 %v6946_v48, %v4500_v27  ;;  %v6948_v43 = vpop.eup %6947 }
 0xac7   :  { %v10323_v50 = vadd.f32 %v4503_v7, %v4502_v33 }
 0xac9   :  { %6949 = vtanh.f32 %v10323_v50 }
 0xad6   :  { %v6950_v3 = vpop.eup %6949 }
 0xad7   :  { %v4506_v61 = vmul.f32 %v6950_v3, %v6948_v43 }
 0xad9   :  { %v4507_v38 = vpack.c.bf16 %v4506_v61, %v4506_v61 }
 0xadb   :  { %v4509_v49 = vrot.slane %v4507_v38, 1 }
 0xadd   :  { %4544 = vmatmul.mubr.bf16.vlgmr.msra.gmra.mxu0 %v4509_v49  ;;  %4585 = vmatmul.mubr.bf16.vlgmr.msra.gmra.mxu1 %v4509_v49 }
 0xade   :  { %4641 = vmatpush1.bf16.msra.mxu0 %v10064_v46  ;;  %4682 = vmatpush1.bf16.msra.mxu1 %v10068_v34 }
 0xadf   :  { %4642 = vmatprep.subr.bf16.mxu0 %v10074_v5  ;;  %4683 = vmatprep.subr.bf16.mxu1 %v10078_v37 }
 0xae0   :  { %4672 = vmatprep.mubr.bf16.mxu0 %v11362_v6  ;;  %4713 = vmatprep.mubr.bf16.mxu1 %v11362_v6 }
 0xae2   :  { %4643 = vmatpush1.bf16.msra.mxu0 %v10084_v12  ;;  %4684 = vmatpush1.bf16.msra.mxu1 %v10088_v4 }
 0xae3   :  { %4644 = vmatprep.subr.bf16.mxu0 %v10094_v10  ;;  %4685 = vmatprep.subr.bf16.mxu1 %v10098_v55 }
 0xae6   :  { %4645 = vmatpush1.bf16.msra.mxu0 %v10106_v8  ;;  %4686 = vmatpush1.bf16.msra.mxu1 %v10110_v41 }
 0xae7   :  { %4646 = vmatprep.subr.bf16.mxu0 %v10116_v1  ;;  %4687 = vmatprep.subr.bf16.mxu1 %v10120_v62 }
 0xaea   :  { %4647 = vmatpush1.bf16.msra.mxu0 %v10126_v31  ;;  %4688 = vmatpush1.bf16.msra.mxu1 %v10130_v14 }
 0xaeb   :  { %4648 = vmatprep.subr.bf16.mxu0 %v10136_v30  ;;  %4689 = vmatprep.subr.bf16.mxu1 %v10140_v15 }
 0xaee   :  { %4649 = vmatpush1.bf16.msra.mxu0 %v10146_v16  ;;  %4690 = vmatpush1.bf16.msra.mxu1 %v10150_v45 }
 0xaef   :  { %4650 = vmatprep.subr.bf16.mxu0 %v10156_v20  ;;  %4691 = vmatprep.subr.bf16.mxu1 %v10160_v40 }
 0xaf2   :  { %4651 = vmatpush1.bf16.msra.mxu0 %v10166_v54  ;;  %4692 = vmatpush1.bf16.msra.mxu1 %v10170_v36 }
 0xaf3   :  { %4652 = vmatprep.subr.bf16.mxu0 %v10176_v58  ;;  %4693 = vmatprep.subr.bf16.mxu1 %v10180_v2 }
 0xaf6   :  { %4653 = vmatpush1.bf16.msra.mxu0 %v10186_v17  ;;  %4694 = vmatpush1.bf16.msra.mxu1 %v10190_v19 }
 0xaf7   :  { %4654 = vmatprep.subr.bf16.mxu0 %v10196_v22  ;;  %4695 = vmatprep.subr.bf16.mxu1 %v10200_v63 }
 0xafa   :  { %4655 = vmatpush1.bf16.msra.mxu0 %v10206_v26  ;;  %4696 = vmatpush1.bf16.msra.mxu1 %v10210_v28 }
 0xafb   :  { %4769 = vmatprep.subr.bf16.mxu0 %v10056_v24  ;;  %4810 = vmatprep.subr.bf16.mxu1 %v10060_v32 }
 0xb9d   :  { %v4545_v60 = vpop.f32.mrf.mxu0  ;;  %v4586_v18 = vpop.f32.mrf.mxu1 }
 0xb9e   :  { %v4597_v47 = vrot.slane %v4545_v60, 4  ;;  %v4599_v61 = vrot.slane %v4586_v18, 4 }
 0xb9f   :  { %v4547_v9 = vpop.f32.mrf.mxu0  ;;  %v4588_v42 = vpop.f32.mrf.mxu1 }
 0xba0   :  { %v4605_v11 = vadd.f32 %v4597_v47, %v10269_v59  ;;  %v4598_v57 = vrot.slane %v4547_v9, 4  ;;  %v4600_v43 = vrot.slane %v4588_v42, 4  ;;  %v4607_v60 = vadd.f32 %v4599_v61, %v10278_v35 }
 0xba1   :  { %v4549_v21 = vpop.f32.mrf.mxu0  ;;  %v4590_v25 = vpop.f32.mrf.mxu1 }
 0xba2   :  { %v6251_v27 = vmul.f32 -1.442695, %v4605_v11  ;;  %v4606_v48 = vadd.f32 %v4598_v57, %v10271_v53  ;;  %v4608_v3 = vadd.f32 %v4600_v43, %v10275_v44 }
 0xba3   :  { %v4550_v39 = vpop.f32.mrf.mxu0  ;;  %v4591_v7 = vpop.f32.mrf.mxu1 }
 0xba4   :  { %6951 = vpow2.f32 %v6251_v27  ;;  %v6252_v33 = vmul.f32 -1.442695, %v4606_v48  ;;  %v6253_v38 = vmul.f32 -1.442695, %v4608_v3  ;;  %v4629_v27 = vrot.slane %v10323_v50, 6 }
 0xba6   :  { %6953 = vpow2.f32 %v6252_v33 }
 0xba7   :  { %6955 = vpow2.f32 %v6253_v38 }
 0xbb1   :  { %v6952_v49 = vpop.eup %6951 }
 0xbb2   :  { %v4612_v47 = vadd.f32 1.0, %v6952_v49 }
 0xbb3   :  { %v6954_v9 = vpop.eup %6953 }
 0xbb4   :  { %6957 = vrcp.f32 %v4612_v47  ;;  %v4618_v11 = vadd.f32 1.0, %v6954_v9  ;;  %v6956_v57 = vpop.eup %6955 }
 0xbb5   :  { %6959 = vtanh.f32 %v4607_v60  ;;  %v4625_v48 = vadd.f32 1.0, %v6956_v57 }
 0xbb6   :  { %6961 = vrcp.f32 %v4618_v11 }
 0xbb7   :  { %6963 = vrcp.f32 %v4625_v48 }
 0xbc1   :  { %v6958_v21 = vpop.eup %6957 }
 0xbc2   :  { %v6960_v25 = vpop.eup %6959 }
 0xbc3   :  { %v6962_v42 = vpop.eup %6961  ;;  %v4632_v39 = vmul.f32 %v6960_v25, %v6958_v21 }
 0xbc4   :  { %v4631_v18 = vmul.f32 %v6962_v42, %v4629_v27  ;;  %v6964_v33 = vpop.eup %6963 }
 0xbc6   :  { %v10365_v7 = vadd.f32 %v4632_v39, %v4631_v18 }
 0xbc8   :  { %6965 = vtanh.f32 %v10365_v7 }
 0xbd5   :  { %v6966_v43 = vpop.eup %6965 }
 0xbd6   :  { %v4635_v3 = vmul.f32 %v6966_v43, %v6964_v33 }
 0xbd8   :  { %v4636_v61 = vpack.c.bf16 %v4635_v3, %v4635_v3 }
 0xbda   :  { %v4638_v38 = vrot.slane %v4636_v61, 2 }
 0xbdc   :  { %4673 = vmatmul.mubr.bf16.vlgmr.msra.gmra.mxu0 %v4638_v38  ;;  %4714 = vmatmul.mubr.bf16.vlgmr.msra.gmra.mxu1 %v4638_v38 }
 0xbdd   :  { %4770 = vmatpush1.bf16.msra.mxu0 %v10064_v46  ;;  %4811 = vmatpush1.bf16.msra.mxu1 %v10068_v34 }
 0xbde   :  { %4771 = vmatprep.subr.bf16.mxu0 %v10074_v5  ;;  %4812 = vmatprep.subr.bf16.mxu1 %v10078_v37 }
 0xbdf   :  { %4801 = vmatprep.mubr.bf16.mxu0 %v11362_v6  ;;  %4842 = vmatprep.mubr.bf16.mxu1 %v11362_v6 }
 0xbe1   :  { %4772 = vmatpush1.bf16.msra.mxu0 %v10084_v12  ;;  %4813 = vmatpush1.bf16.msra.mxu1 %v10088_v4 }
 0xbe2   :  { %4773 = vmatprep.subr.bf16.mxu0 %v10094_v10  ;;  %4814 = vmatprep.subr.bf16.mxu1 %v10098_v55 }
 0xbe5   :  { %4774 = vmatpush1.bf16.msra.mxu0 %v10106_v8  ;;  %4815 = vmatpush1.bf16.msra.mxu1 %v10110_v41 }
 0xbe6   :  { %4775 = vmatprep.subr.bf16.mxu0 %v10116_v1  ;;  %4816 = vmatprep.subr.bf16.mxu1 %v10120_v62 }
 0xbe9   :  { %4776 = vmatpush1.bf16.msra.mxu0 %v10126_v31  ;;  %4817 = vmatpush1.bf16.msra.mxu1 %v10130_v14 }
 0xbea   :  { %4777 = vmatprep.subr.bf16.mxu0 %v10136_v30  ;;  %4818 = vmatprep.subr.bf16.mxu1 %v10140_v15 }
 0xbed   :  { %4778 = vmatpush1.bf16.msra.mxu0 %v10146_v16  ;;  %4819 = vmatpush1.bf16.msra.mxu1 %v10150_v45 }
 0xbee   :  { %4779 = vmatprep.subr.bf16.mxu0 %v10156_v20  ;;  %4820 = vmatprep.subr.bf16.mxu1 %v10160_v40 }
 0xbf1   :  { %4780 = vmatpush1.bf16.msra.mxu0 %v10166_v54  ;;  %4821 = vmatpush1.bf16.msra.mxu1 %v10170_v36 }
 0xbf2   :  { %4781 = vmatprep.subr.bf16.mxu0 %v10176_v58  ;;  %4822 = vmatprep.subr.bf16.mxu1 %v10180_v2 }
 0xbf5   :  { %4782 = vmatpush1.bf16.msra.mxu0 %v10186_v17  ;;  %4823 = vmatpush1.bf16.msra.mxu1 %v10190_v19 }
 0xbf6   :  { %4783 = vmatprep.subr.bf16.mxu0 %v10196_v22  ;;  %4824 = vmatprep.subr.bf16.mxu1 %v10200_v63 }
 0xbf9   :  { %4784 = vmatpush1.bf16.msra.mxu0 %v10206_v26  ;;  %4825 = vmatpush1.bf16.msra.mxu1 %v10210_v28 }
 0xbfa   :  { %4883 = vmatprep.subr.bf16.mxu0 %v10056_v24  ;;  %4924 = vmatprep.subr.bf16.mxu1 %v10060_v32 }
 0xc9c   :  { %v4674_v50 = vpop.f32.mrf.mxu0  ;;  %v4715_v49 = vpop.f32.mrf.mxu1 }
 0xc9d   :  { %v4726_v60 = vrot.slane %v4674_v50, 2  ;;  %v4728_v3 = vrot.slane %v4715_v49, 2 }
 0xc9e   :  { %v4676_v47 = vpop.f32.mrf.mxu0  ;;  %v4717_v9 = vpop.f32.mrf.mxu1 }
 0xc9f   :  { %v4734_v11 = vadd.f32 %v4726_v60, %v10269_v59  ;;  %v4727_v57 = vrot.slane %v4676_v47, 2  ;;  %v4729_v33 = vrot.slane %v4717_v9, 2  ;;  %v4736_v50 = vadd.f32 %v4728_v3, %v10278_v35 }
 0xca0   :  { %v4678_v21 = vpop.f32.mrf.mxu0  ;;  %v4719_v25 = vpop.f32.mrf.mxu1 }
 0xca1   :  { %v6254_v27 = vmul.f32 -1.442695, %v4734_v11  ;;  %v4735_v42 = vadd.f32 %v4727_v57, %v10271_v53  ;;  %v4737_v43 = vadd.f32 %v4729_v33, %v10275_v44  ;;  %v4758_v21 = vrot.slane %v10365_v7, 6 }
 0xca2   :  { %v4679_v48 = vpop.f32.mrf.mxu0  ;;  %v4720_v39 = vpop.f32.mrf.mxu1 }
 0xca3   :  { %6967 = vpow2.f32 %v6254_v27  ;;  %v6255_v18 = vmul.f32 -1.442695, %v4735_v42  ;;  %v6256_v61 = vmul.f32 -1.442695, %v4737_v43 }
 0xca5   :  { %6969 = vpow2.f32 %v6255_v18 }
 0xca6   :  { %6971 = vpow2.f32 %v6256_v61 }
 0xcb0   :  { %v6968_v38 = vpop.eup %6967 }
 0xcb1   :  { %v4741_v59 = vadd.f32 1.0, %v6968_v38 }
 0xcb2   :  { %v6970_v60 = vpop.eup %6969 }
 0xcb3   :  { %6973 = vrcp.f32 %v4741_v59  ;;  %v4747_v47 = vadd.f32 1.0, %v6970_v60  ;;  %v6972_v53 = vpop.eup %6971 }
 0xcb4   :  { %6975 = vtanh.f32 %v4736_v50  ;;  %v4754_v25 = vadd.f32 1.0, %v6972_v53 }
 0xcb5   :  { %6977 = vrcp.f32 %v4747_v47 }
 0xcb6   :  { %6979 = vrcp.f32 %v4754_v25 }
 0xcc0   :  { %v6974_v11 = vpop.eup %6973 }
 0xcc1   :  { %v6976_v57 = vpop.eup %6975 }
 0xcc2   :  { %v6978_v9 = vpop.eup %6977  ;;  %v4761_v44 = vmul.f32 %v6976_v57, %v6974_v11 }
 0xcc3   :  { %v4760_v49 = vmul.f32 %v6978_v9, %v4758_v21  ;;  %v6980_v35 = vpop.eup %6979 }
 0xcc5   :  { %v10407_v27 = vadd.f32 %v4761_v44, %v4760_v49 }
 0xcc7   :  { %6981 = vtanh.f32 %v10407_v27 }
 0xcd4   :  { %v6982_v42 = vpop.eup %6981 }
 0xcd5   :  { %v4764_v48 = vmul.f32 %v6982_v42, %v6980_v35 }
 0xcd7   :  { %v4765_v39 = vpack.c.bf16 %v4764_v48, %v4764_v48 }
 0xcd9   :  { %v4767_v18 = vrot.slane %v4765_v39, 3 }
 0xcdb   :  { %4802 = vmatmul.mubr.bf16.vlgmr.msra.gmra.mxu0 %v4767_v18  ;;  %4843 = vmatmul.mubr.bf16.vlgmr.msra.gmra.mxu1 %v4767_v18  ;;  %v4875_v18 = vrot.slane %v10407_v27, 6 }
 0xcdc   :  { %4884 = vmatpush1.bf16.msra.mxu0 %v10064_v46  ;;  %4925 = vmatpush1.bf16.msra.mxu1 %v10068_v34 }
 0xcdd   :  { %4885 = vmatprep.subr.bf16.mxu0 %v10074_v5  ;;  %4926 = vmatprep.subr.bf16.mxu1 %v10078_v37 }
 0xcde   :  { %4915 = vmatprep.mubr.bf16.mxu0 %v11362_v6  ;;  %4956 = vmatprep.mubr.bf16.mxu1 %v11362_v6 }
 0xce0   :  { %4886 = vmatpush1.bf16.msra.mxu0 %v10084_v12  ;;  %4927 = vmatpush1.bf16.msra.mxu1 %v10088_v4 }
 0xce1   :  { %4887 = vmatprep.subr.bf16.mxu0 %v10094_v10  ;;  %4928 = vmatprep.subr.bf16.mxu1 %v10098_v55 }
 0xce4   :  { %4888 = vmatpush1.bf16.msra.mxu0 %v10106_v8  ;;  %4929 = vmatpush1.bf16.msra.mxu1 %v10110_v41 }
 0xce5   :  { %4889 = vmatprep.subr.bf16.mxu0 %v10116_v1  ;;  %4930 = vmatprep.subr.bf16.mxu1 %v10120_v62 }
 0xce8   :  { %4890 = vmatpush1.bf16.msra.mxu0 %v10126_v31  ;;  %4931 = vmatpush1.bf16.msra.mxu1 %v10130_v14 }
 0xce9   :  { %4891 = vmatprep.subr.bf16.mxu0 %v10136_v30  ;;  %4932 = vmatprep.subr.bf16.mxu1 %v10140_v15 }
 0xcec   :  { %4892 = vmatpush1.bf16.msra.mxu0 %v10146_v16  ;;  %4933 = vmatpush1.bf16.msra.mxu1 %v10150_v45 }
 0xced   :  { %4893 = vmatprep.subr.bf16.mxu0 %v10156_v20  ;;  %4934 = vmatprep.subr.bf16.mxu1 %v10160_v40 }
 0xcf0   :  { %4894 = vmatpush1.bf16.msra.mxu0 %v10166_v54  ;;  %4935 = vmatpush1.bf16.msra.mxu1 %v10170_v36 }
 0xcf1   :  { %4895 = vmatprep.subr.bf16.mxu0 %v10176_v58  ;;  %4936 = vmatprep.subr.bf16.mxu1 %v10180_v2 }
 0xcf4   :  { %4896 = vmatpush1.bf16.msra.mxu0 %v10186_v17  ;;  %4937 = vmatpush1.bf16.msra.mxu1 %v10190_v19 }
 0xcf5   :  { %4897 = vmatprep.subr.bf16.mxu0 %v10196_v22  ;;  %4938 = vmatprep.subr.bf16.mxu1 %v10200_v63 }
 0xcf8   :  { %4898 = vmatpush1.bf16.msra.mxu0 %v10206_v26  ;;  %4939 = vmatpush1.bf16.msra.mxu1 %v10210_v28 }
 0xcf9   :  { %5012 = vmatprep.subr.bf16.mxu0 %v10056_v24  ;;  %5053 = vmatprep.subr.bf16.mxu1 %v10060_v32 }
 0xd9b   :  { %v4803_v7 = vpop.f32.mrf.mxu0  ;;  %v4844_v33 = vpop.f32.mrf.mxu1 }
 0xd9c   :  { %v4851_v43 = vadd.f32 %v4803_v7, %v10261_v13  ;;  %v4853_v25 = vadd.f32 %v4844_v33, %v10263_v0 }
 0xd9d   :  { %v4805_v3 = vpop.f32.mrf.mxu0  ;;  %v4846_v61 = vpop.f32.mrf.mxu1 }
 0xd9e   :  { %v6257_v38 = vmul.f32 -1.442695, %v4851_v43  ;;  %v4852_v50 = vadd.f32 %v4805_v3, %v10265_v56  ;;  %v4854_v57 = vadd.f32 %v4846_v61, %v10267_v23 }
 0xd9f   :  { %v4807_v59 = vpop.f32.mrf.mxu0  ;;  %v4848_v60 = vpop.f32.mrf.mxu1 }
 0xda0   :  { %6983 = vpow2.f32 %v6257_v38  ;;  %v6258_v47 = vmul.f32 -1.442695, %v4852_v50  ;;  %v6259_v21 = vmul.f32 -1.442695, %v4854_v57 }
 0xda1   :  { %v4808_v53 = vpop.f32.mrf.mxu0  ;;  %v4849_v11 = vpop.f32.mrf.mxu1 }
 0xda2   :  { %6985 = vpow2.f32 %v6258_v47 }
 0xda3   :  { %6987 = vpow2.f32 %v6259_v21 }
 0xdad   :  { %v6984_v9 = vpop.eup %6983 }
 0xdae   :  { %v4858_v44 = vadd.f32 1.0, %v6984_v9 }
 0xdaf   :  { %v6986_v49 = vpop.eup %6985 }
 0xdb0   :  { %6989 = vrcp.f32 %v4858_v44  ;;  %v4864_v35 = vadd.f32 1.0, %v6986_v49  ;;  %v6988_v42 = vpop.eup %6987 }
 0xdb1   :  { %6991 = vtanh.f32 %v4853_v25  ;;  %v4871_v43 = vadd.f32 1.0, %v6988_v42 }
 0xdb2   :  { %6993 = vrcp.f32 %v4864_v35 }
 0xdb3   :  { %6995 = vrcp.f32 %v4871_v43 }
 0xdbd   :  { %v6990_v48 = vpop.eup %6989 }
 0xdbe   :  { %v6992_v39 = vpop.eup %6991 }
 0xdbf   :  { %v6994_v7 = vpop.eup %6993  ;;  %v4878_v3 = vmul.f32 %v6992_v39, %v6990_v48 }
 0xdc0   :  { %v4877_v61 = vmul.f32 %v6994_v7, %v4875_v18  ;;  %v6996_v33 = vpop.eup %6995 }
 0xdc2   :  { %v10449_v38 = vadd.f32 %v4878_v3, %v4877_v61 }
 0xdc4   :  { %6997 = vtanh.f32 %v10449_v38 }
 0xdd1   :  { %v6998_v50 = vpop.eup %6997 }
 0xdd2   :  { %v4881_v59 = vmul.f32 %v6998_v50, %v6996_v33 }
 0xdd4   :  { %v4882_v60 = vpack.c.bf16 %v4881_v59, %v4881_v59 }
 0xdd6   :  { %4916 = vmatmul.mubr.bf16.vlgmr.msra.gmra.mxu0 %v4882_v60  ;;  %4957 = vmatmul.mubr.bf16.vlgmr.msra.gmra.mxu1 %v4882_v60 }
 0xdd7   :  { %5013 = vmatpush1.bf16.msra.mxu0 %v10064_v46  ;;  %5054 = vmatpush1.bf16.msra.mxu1 %v10068_v34 }
 0xdd8   :  { %5014 = vmatprep.subr.bf16.mxu0 %v10074_v5  ;;  %5055 = vmatprep.subr.bf16.mxu1 %v10078_v37 }
 0xdd9   :  { %5044 = vmatprep.mubr.bf16.mxu0 %v11362_v6  ;;  %5085 = vmatprep.mubr.bf16.mxu1 %v11362_v6 }
 0xddb   :  { %5015 = vmatpush1.bf16.msra.mxu0 %v10084_v12  ;;  %5056 = vmatpush1.bf16.msra.mxu1 %v10088_v4 }
 0xddc   :  { %5016 = vmatprep.subr.bf16.mxu0 %v10094_v10  ;;  %5057 = vmatprep.subr.bf16.mxu1 %v10098_v55 }
 0xddf   :  { %5017 = vmatpush1.bf16.msra.mxu0 %v10106_v8  ;;  %5058 = vmatpush1.bf16.msra.mxu1 %v10110_v41 }
 0xde0   :  { %5018 = vmatprep.subr.bf16.mxu0 %v10116_v1  ;;  %5059 = vmatprep.subr.bf16.mxu1 %v10120_v62 }
 0xde3   :  { %5019 = vmatpush1.bf16.msra.mxu0 %v10126_v31  ;;  %5060 = vmatpush1.bf16.msra.mxu1 %v10130_v14 }
 0xde4   :  { %5020 = vmatprep.subr.bf16.mxu0 %v10136_v30  ;;  %5061 = vmatprep.subr.bf16.mxu1 %v10140_v15 }
 0xde7   :  { %5021 = vmatpush1.bf16.msra.mxu0 %v10146_v16  ;;  %5062 = vmatpush1.bf16.msra.mxu1 %v10150_v45 }
 0xde8   :  { %5022 = vmatprep.subr.bf16.mxu0 %v10156_v20  ;;  %5063 = vmatprep.subr.bf16.mxu1 %v10160_v40 }
 0xdeb   :  { %5023 = vmatpush1.bf16.msra.mxu0 %v10166_v54  ;;  %5064 = vmatpush1.bf16.msra.mxu1 %v10170_v36 }
 0xdec   :  { %5024 = vmatprep.subr.bf16.mxu0 %v10176_v58  ;;  %5065 = vmatprep.subr.bf16.mxu1 %v10180_v2 }
 0xdef   :  { %5025 = vmatpush1.bf16.msra.mxu0 %v10186_v17  ;;  %5066 = vmatpush1.bf16.msra.mxu1 %v10190_v19 }
 0xdf0   :  { %5026 = vmatprep.subr.bf16.mxu0 %v10196_v22  ;;  %5067 = vmatprep.subr.bf16.mxu1 %v10200_v63 }
 0xdf3   :  { %5027 = vmatpush1.bf16.msra.mxu0 %v10206_v26  ;;  %5068 = vmatpush1.bf16.msra.mxu1 %v10210_v28 }
 0xdf4   :  { %5141 = vmatprep.subr.bf16.mxu0 %v10056_v24  ;;  %5182 = vmatprep.subr.bf16.mxu1 %v10060_v32 }
 0xe96   :  { %v4917_v27 = vpop.f32.mrf.mxu0  ;;  %v4958_v47 = vpop.f32.mrf.mxu1 }
 0xe97   :  { %v4969_v53 = vrot.slane %v4917_v27, 6  ;;  %v4971_v18 = vrot.slane %v4958_v47, 6 }
 0xe98   :  { %v4919_v11 = vpop.f32.mrf.mxu0  ;;  %v4960_v57 = vpop.f32.mrf.mxu1 }
 0xe99   :  { %v4977_v21 = vadd.f32 %v4969_v53, %v10261_v13  ;;  %v4970_v9 = vrot.slane %v4919_v11, 6  ;;  %v4972_v24 = vrot.slane %v4960_v57, 6  ;;  %v4979_v3 = vadd.f32 %v4971_v18, %v10263_v0 }
 0xe9a   :  { %v4921_v25 = vpop.f32.mrf.mxu0  ;;  %v4962_v44 = vpop.f32.mrf.mxu1  ;;  %v5001_v53 = vrot.slane %v10449_v38, 6 }
 0xe9b   :  { %v6260_v49 = vmul.f32 -1.442695, %v4977_v21  ;;  %v4978_v35 = vadd.f32 %v4970_v9, %v10265_v56  ;;  %v4980_v32 = vadd.f32 %v4972_v24, %v10267_v23 }
 0xe9c   :  { %v4922_v42 = vpop.f32.mrf.mxu0  ;;  %v4963_v48 = vpop.f32.mrf.mxu1 }
 0xe9d   :  { %6999 = vpow2.f32 %v6260_v49  ;;  %v6261_v39 = vmul.f32 -1.442695, %v4978_v35  ;;  %v6262_v7 = vmul.f32 -1.442695, %v4980_v32 }
 0xe9f   :  { %7001 = vpow2.f32 %v6261_v39 }
 0xea0   :  { %7003 = vpow2.f32 %v6262_v7 }
 0xeaa   :  { %v7000_v43 = vpop.eup %6999 }
 0xeab   :  { %v4984_v61 = vadd.f32 1.0, %v7000_v43 }
 0xeac   :  { %v7002_v33 = vpop.eup %7001 }
 0xead   :  { %7005 = vrcp.f32 %v4984_v61  ;;  %v4990_v50 = vadd.f32 1.0, %v7002_v33  ;;  %v7004_v59 = vpop.eup %7003 }
 0xeae   :  { %7007 = vtanh.f32 %v4979_v3  ;;  %v4997_v57 = vadd.f32 1.0, %v7004_v59 }
 0xeaf   :  { %7009 = vrcp.f32 %v4990_v50 }
 0xeb0   :  { %7011 = vrcp.f32 %v4997_v57  ;;  %v11614_v57 = vld [vmem:[#allocation134_spill] sm:$0xff] }
 0xeba   :  { %v7006_v60 = vpop.eup %7005 }
 0xebb   :  { %v7008_v27 = vpop.eup %7007 }
 0xebc   :  { %v7010_v11 = vpop.eup %7009  ;;  %v5004_v21 = vmul.f32 %v7008_v27, %v7006_v60  ;;  %v11612_v27 = vld [vmem:[#allocation133_spill] sm:$0xff] }
 0xebd   :  { %v5003_v47 = vmul.f32 %v7010_v11, %v5001_v53  ;;  %v7012_v25 = vpop.eup %7011  ;;  %v11613_v53 = vld [vmem:[#allocation131_spill] sm:$0xff] }
 0xebe   :  { %v6294_v11 = vcombine.high %v11613_v53, %v11612_v27 }
 0xebf   :  { %v10491_v9 = vadd.f32 %v5004_v21, %v5003_v47  ;;  %v11615_v21 = vld [vmem:[#allocation132_spill] sm:$0xff] }
 0xec0   :  { %v6296_v47 = vcombine.high %v11615_v21, %v11614_v57 }
 0xec1   :  { %7013 = vtanh.f32 %v10491_v9  ;;  %v5130_v48 = vrot.slane %v10491_v9, 6  ;;  %v6293_v9 = vcombine.low %v11613_v53, %v11612_v27  ;;  %v11641_v53 = vld [vmem:[#allocation169_spill] sm:$0xff] }
 0xece   :  { %v7014_v44 = vpop.eup %7013 }
 0xecf   :  { %v5007_v49 = vmul.f32 %v7014_v44, %v7012_v25  ;;  %v6295_v25 = vcombine.low %v11615_v21, %v11614_v57  ;;  %v11616_v44 = vld [vmem:[#allocation129_spill] sm:$0xff]  ;;  %v11643_v21 = vld [vmem:[#allocation170_spill] sm:$0xff] }
 0xed1   :  { %v5008_v35 = vpack.c.bf16 %v5007_v49, %v5007_v49  ;;  %v11617_v49 = vld [vmem:[#allocation127_spill] sm:$0xff] }
 0xed3   :  { %v5010_v42 = vrot.slane %v5008_v35, 1  ;;  %v6290_v35 = vcombine.high %v11617_v49, %v11616_v44 }
 0xed5   :  { %5045 = vmatmul.mubr.bf16.vlgmr.msra.gmra.mxu0 %v5010_v42  ;;  %5086 = vmatmul.mubr.bf16.vlgmr.msra.gmra.mxu1 %v5010_v42  ;;  %v11618_v42 = vld [vmem:[#allocation130_spill] sm:$0xff] }
 0xed6   :  { %5142 = vmatpush1.bf16.msra.mxu0 %v10064_v46  ;;  %5183 = vmatpush1.bf16.msra.mxu1 %v10068_v34  ;;  %v11609_v46 = vld [vmem:[#allocation135_spill] sm:$0xff] }
 0xed7   :  { %5143 = vmatprep.subr.bf16.mxu0 %v10074_v5  ;;  %5184 = vmatprep.subr.bf16.mxu1 %v10078_v37  ;;  %v11610_v5 = vld [vmem:[#allocation138_spill] sm:$0xff]  ;;  %v11611_v37 = vld [vmem:[#allocation136_spill] sm:$0xff] }
 0xed8   :  { %5173 = vmatprep.mubr.bf16.mxu0 %v11362_v6  ;;  %5214 = vmatprep.mubr.bf16.mxu1 %v11362_v6  ;;  %v11608_v6 = vld [vmem:[#allocation137_spill] sm:$0xff]  ;;  %v6299_v59 = vcombine.low %v11611_v37, %v11610_v5 }
 0xed9   :  { %v6298_v34 = vcombine.high %v11609_v46, %v11608_v6  ;;  %v6297_v50 = vcombine.low %v11609_v46, %v11608_v6  ;;  %v11619_v6 = vld [vmem:[#allocation128_spill] sm:$0xff] }
 0xeda   :  { %5144 = vmatpush1.bf16.msra.mxu0 %v10084_v12  ;;  %5185 = vmatpush1.bf16.msra.mxu1 %v10088_v4  ;;  %v6300_v12 = vcombine.high %v11611_v37, %v11610_v5  ;;  %v6292_v46 = vcombine.high %v11619_v6, %v11618_v42  ;;  %v6289_v5 = vcombine.low %v11617_v49, %v11616_v44  ;;  %v11645_v49 = vld [vmem:[#allocation165_spill] sm:$0xff] }
 0xedb   :  { %5145 = vmatprep.subr.bf16.mxu0 %v10094_v10  ;;  %5186 = vmatprep.subr.bf16.mxu1 %v10098_v55  ;;  %v6291_v37 = vcombine.low %v11619_v6, %v11618_v42  ;;  %v11647_v6 = vld [vmem:[#allocation166_spill] sm:$0xff] }
 0xede   :  { %5146 = vmatpush1.bf16.msra.mxu0 %v10106_v8  ;;  %5187 = vmatpush1.bf16.msra.mxu1 %v10110_v41 }
 0xedf   :  { %5147 = vmatprep.subr.bf16.mxu0 %v10116_v1  ;;  %5188 = vmatprep.subr.bf16.mxu1 %v10120_v62 }
 0xee2   :  { %5148 = vmatpush1.bf16.msra.mxu0 %v10126_v31  ;;  %5189 = vmatpush1.bf16.msra.mxu1 %v10130_v14 }
 0xee3   :  { %5149 = vmatprep.subr.bf16.mxu0 %v10136_v30  ;;  %5190 = vmatprep.subr.bf16.mxu1 %v10140_v15 }
 0xee6   :  { %5150 = vmatpush1.bf16.msra.mxu0 %v10146_v16  ;;  %5191 = vmatpush1.bf16.msra.mxu1 %v10150_v45 }
 0xee7   :  { %5151 = vmatprep.subr.bf16.mxu0 %v10156_v20  ;;  %5192 = vmatprep.subr.bf16.mxu1 %v10160_v40 }
 0xeea   :  { %5152 = vmatpush1.bf16.msra.mxu0 %v10166_v54  ;;  %5193 = vmatpush1.bf16.msra.mxu1 %v10170_v36 }
 0xeeb   :  { %5153 = vmatprep.subr.bf16.mxu0 %v10176_v58  ;;  %5194 = vmatprep.subr.bf16.mxu1 %v10180_v2 }
 0xeee   :  { %5154 = vmatpush1.bf16.msra.mxu0 %v10186_v17  ;;  %5195 = vmatpush1.bf16.msra.mxu1 %v10190_v19 }
 0xeef   :  { %5155 = vmatprep.subr.bf16.mxu0 %v10196_v22  ;;  %5196 = vmatprep.subr.bf16.mxu1 %v10200_v63 }
 0xef2   :  { %5156 = vmatpush1.bf16.msra.mxu0 %v10206_v26  ;;  %5197 = vmatpush1.bf16.msra.mxu1 %v10210_v28 }
 0xef3   :  { %5604 = vmatprep.subr.bf16.mxu0 %v6298_v34  ;;  %5644 = vmatprep.subr.bf16.mxu1 %v6300_v12  ;;  %v11620_v34 = vld [vmem:[#allocation197_spill] sm:$0xff] }
 0xef4   :  { %v11621_v12 = vld [vmem:[#allocation125_spill] sm:$0xff] }
 0xf95   :  { %v5046_v4 = vpop.f32.mrf.mxu0  ;;  %v5087_v10 = vpop.f32.mrf.mxu1 }
 0xf96   :  { %v5098_v55 = vrot.slane %v5046_v4, 4  ;;  %v5100_v36 = vrot.slane %v5087_v10, 4  ;;  %v11622_v4 = vld [vmem:[#allocation123_spill] sm:$0xff] }
 0xf97   :  { %v5048_v8 = vpop.f32.mrf.mxu0  ;;  %v5089_v41 = vpop.f32.mrf.mxu1  ;;  %v6286_v10 = vcombine.high %v11622_v4, %v11621_v12 }
 0xf98   :  { %v5106_v1 = vadd.f32 %v5098_v55, %v10261_v13  ;;  %v5099_v62 = vrot.slane %v5048_v8, 4  ;;  %v5101_v40 = vrot.slane %v5089_v41, 4  ;;  %v5108_v17 = vadd.f32 %v5100_v36, %v10263_v0  ;;  %v11623_v55 = vld [vmem:[#allocation126_spill] sm:$0xff]  ;;  %v11624_v8 = vld [vmem:[#allocation124_spill] sm:$0xff]  ;;  %v11630_v36 = vld [vmem:[#allocation115_spill] sm:$0xff] }
 0xf99   :  { %v5050_v31 = vpop.f32.mrf.mxu0  ;;  %v5091_v14 = vpop.f32.mrf.mxu1  ;;  %v6288_v41 = vcombine.high %v11624_v8, %v11623_v55 }
 0xf9a   :  { %v6263_v30 = vmul.f32 -1.442695, %v5106_v1  ;;  %v5107_v15 = vadd.f32 %v5099_v62, %v10265_v56  ;;  %v5109_v54 = vadd.f32 %v5101_v40, %v10267_v23  ;;  %v6285_v1 = vcombine.low %v11622_v4, %v11621_v12  ;;  %v11625_v31 = vld [vmem:[#allocation121_spill] sm:$0xff]  ;;  %v11626_v14 = vld [vmem:[#allocation119_spill] sm:$0xff] }
 0xf9b   :  { %v5051_v16 = vpop.f32.mrf.mxu0  ;;  %v5092_v45 = vpop.f32.mrf.mxu1  ;;  %v6287_v62 = vcombine.low %v11624_v8, %v11623_v55  ;;  %v11649_v12 = vld [vmem:[#allocation161_spill] sm:$0xff]  ;;  %v11650_v4 = vld [vmem:[#allocation159_spill] sm:$0xff]  ;;  %v11651_v55 = vld [vmem:[#allocation162_spill] sm:$0xff] }
 0xf9c   :  { %7015 = vpow2.f32 %v6263_v30  ;;  %v6264_v20 = vmul.f32 -1.442695, %v5107_v15  ;;  %v6265_v58 = vmul.f32 -1.442695, %v5109_v54  ;;  %v6282_v30 = vcombine.high %v11626_v14, %v11625_v31  ;;  %v11627_v15 = vld [vmem:[#allocation122_spill] sm:$0xff]  ;;  %v11628_v16 = vld [vmem:[#allocation120_spill] sm:$0xff] }
 0xf9d   :  { %v6284_v45 = vcombine.high %v11628_v16, %v11627_v15  ;;  %v6283_v40 = vcombine.low %v11628_v16, %v11627_v15  ;;  %v11629_v54 = vld [vmem:[#allocation117_spill] sm:$0xff]  ;;  %v11652_v8 = vld [vmem:[#allocation160_spill] sm:$0xff]  ;;  %v11655_v15 = vld [vmem:[#allocation158_spill] sm:$0xff] }
 0xf9e   :  { %7017 = vpow2.f32 %v6264_v20  ;;  %v6281_v20 = vcombine.low %v11626_v14, %v11625_v31  ;;  %v11653_v31 = vld [vmem:[#allocation157_spill] sm:$0xff]  ;;  %v11654_v14 = vld [vmem:[#allocation155_spill] sm:$0xff]  ;;  %v11656_v16 = vld [vmem:[#allocation156_spill] sm:$0xff] }
 0xf9f   :  { %7019 = vpow2.f32 %v6265_v58  ;;  %v6278_v58 = vcombine.high %v11630_v36, %v11629_v54 }
 0xfa9   :  { %v7016_v2 = vpop.eup %7015 }
 0xfaa   :  { %v5113_v19 = vadd.f32 1.0, %v7016_v2  ;;  %v11631_v2 = vld [vmem:[#allocation118_spill] sm:$0xff] }
 0xfab   :  { %v7018_v22 = vpop.eup %7017 }
 0xfac   :  { %7021 = vrcp.f32 %v5113_v19  ;;  %v5119_v63 = vadd.f32 1.0, %v7018_v22  ;;  %v7020_v26 = vpop.eup %7019  ;;  %v6277_v22 = vcombine.low %v11630_v36, %v11629_v54  ;;  %v11657_v54 = vld [vmem:[#allocation153_spill] sm:$0xff]  ;;  %v11658_v36 = vld [vmem:[#allocation151_spill] sm:$0xff] }
 0xfad   :  { %7023 = vtanh.f32 %v5108_v17  ;;  %v5126_v24 = vadd.f32 1.0, %v7020_v26  ;;  %v11632_v17 = vld [vmem:[#allocation116_spill] sm:$0xff]  ;;  %v11633_v26 = vld [vmem:[#allocation113_spill] sm:$0xff] }
 0xfae   :  { %7025 = vrcp.f32 %v5119_v63  ;;  %v6280_v19 = vcombine.high %v11632_v17, %v11631_v2  ;;  %v6279_v63 = vcombine.low %v11632_v17, %v11631_v2  ;;  %v11659_v2 = vld [vmem:[#allocation154_spill] sm:$0xff]  ;;  %v11660_v17 = vld [vmem:[#allocation152_spill] sm:$0xff] }
 0xfaf   :  { %7027 = vrcp.f32 %v5126_v24 }
 0xfb9   :  { %v7022_v28 = vpop.eup %7021 }
 0xfba   :  { %v7024_v38 = vpop.eup %7023 }
 0xfbb   :  { %v7026_v39 = vpop.eup %7025  ;;  %v5133_v32 = vmul.f32 %v7024_v38, %v7022_v28  ;;  %v11634_v28 = vld [vmem:[#allocation111_spill] sm:$0xff] }
 0xfbc   :  { %v5132_v18 = vmul.f32 %v7026_v39, %v5130_v48  ;;  %v7028_v43 = vpop.eup %7027  ;;  %v6274_v38 = vcombine.high %v11634_v28, %v11633_v26  ;;  %v11635_v48 = vld [vmem:[#allocation114_spill] sm:$0xff]  ;;  %v11636_v39 = vld [vmem:[#allocation112_spill] sm:$0xff] }
 0xfbd   :  { %v6276_v24 = vcombine.high %v11636_v39, %v11635_v48 }
 0xfbe   :  { %v10535_v7 = vadd.f32 %v5133_v32, %v5132_v18  ;;  %v6273_v32 = vcombine.low %v11634_v28, %v11633_v26  ;;  %v6275_v18 = vcombine.low %v11636_v39, %v11635_v48  ;;  %v11661_v26 = vld [vmem:[#allocation149_spill] sm:$0xff]  ;;  %v11662_v28 = vld [vmem:[#allocation147_spill] sm:$0xff]  ;;  %v11663_v48 = vld [vmem:[#allocation150_spill] sm:$0xff] }
 0xfbf   :  { %v11664_v39 = vld [vmem:[#allocation148_spill] sm:$0xff] }
 0xfc0   :  { %7029 = vtanh.f32 %v10535_v7 }
 0xfcd   :  { %v7030_v3 = vpop.eup %7029 }
 0xfce   :  { %v5136_v61 = vmul.f32 %v7030_v3, %v7028_v43  ;;  %v11637_v43 = vld [vmem:[#allocation109_spill] sm:$0xff]  ;;  %v11638_v3 = vld [vmem:[#allocation107_spill] sm:$0xff] }
 0xfd0   :  { %v5137_v33 = vpack.c.bf16 %v5136_v61, %v5136_v61  ;;  %v6270_v61 = vcombine.high %v11638_v3, %v11637_v43 }
 0xfd2   :  { %v5139_v60 = vrot.slane %v5137_v33, 2  ;;  %v11639_v33 = vld [vmem:[#allocation110_spill] sm:$0xff] }
 0xfd4   :  { %5174 = vmatmul.mubr.bf16.vlgmr.msra.gmra.mxu0 %v5139_v60  ;;  %5215 = vmatmul.mubr.bf16.vlgmr.msra.gmra.mxu1 %v5139_v60  ;;  %v6269_v60 = vcombine.low %v11638_v3, %v11637_v43  ;;  %v11665_v43 = vld [vmem:[#allocation145_spill] sm:$0xff]  ;;  %v11666_v3 = vld [vmem:[#allocation143_spill] sm:$0xff] }
 0xfd5   :  { %5605 = vmatpush1.bf16.msra.mxu0 %v6297_v50  ;;  %5645 = vmatpush1.bf16.msra.mxu1 %v6299_v59  ;;  %v11640_v50 = vld [vmem:[#allocation108_spill] sm:$0xff] }
 0xfd6   :  { %5606 = vmatprep.subr.bf16.mxu0 %v6294_v11  ;;  %5646 = vmatprep.subr.bf16.mxu1 %v6296_v47  ;;  %v6272_v59 = vcombine.high %v11640_v50, %v11639_v33  ;;  %v6271_v27 = vcombine.low %v11640_v50, %v11639_v33  ;;  %v11642_v11 = vld [vmem:[#allocation167_spill] sm:$0xff]  ;;  %v11644_v47 = vld [vmem:[#allocation168_spill] sm:$0xff]  ;;  %v11667_v33 = vld [vmem:[#allocation146_spill] sm:$0xff] }
 0xfd7   :  { %5636 = vmatprep.mubr.bf16.mxu0 %v11620_v34  ;;  %5676 = vmatprep.mubr.bf16.mxu1 %v11620_v34  ;;  %v6330_v57 = vcombine.high %v11642_v11, %v11641_v53  ;;  %v6331_v44 = vcombine.low %v11644_v47, %v11643_v21  ;;  %v11668_v50 = vld [vmem:[#allocation144_spill] sm:$0xff] }
 0xfd9   :  { %5607 = vmatpush1.bf16.msra.mxu0 %v6293_v9  ;;  %5647 = vmatpush1.bf16.msra.mxu1 %v6295_v25  ;;  %v6332_v9 = vcombine.high %v11644_v47, %v11643_v21  ;;  %v6329_v25 = vcombine.low %v11642_v11, %v11641_v53  ;;  %v11669_v53 = vld [vmem:[#allocation141_spill] sm:$0xff]  ;;  %v11670_v11 = vld [vmem:[#allocation139_spill] sm:$0xff]  ;;  %v11671_v21 = vld [vmem:[#allocation142_spill] sm:$0xff] }
 0xfda   :  { %5608 = vmatprep.subr.bf16.mxu0 %v6290_v35  ;;  %5648 = vmatprep.subr.bf16.mxu1 %v6292_v46  ;;  %v11646_v35 = vld [vmem:[#allocation163_spill] sm:$0xff]  ;;  %v11648_v46 = vld [vmem:[#allocation164_spill] sm:$0xff] }
 0xfdb   :  { %v6326_v42 = vcombine.high %v11646_v35, %v11645_v49  ;;  %v6328_v34 = vcombine.high %v11648_v46, %v11647_v6  ;;  %v11672_v47 = vld [vmem:[#allocation140_spill] sm:$0xff] }
 0xfdd   :  { %5609 = vmatpush1.bf16.msra.mxu0 %v6289_v5  ;;  %5649 = vmatpush1.bf16.msra.mxu1 %v6291_v37  ;;  %v6325_v5 = vcombine.low %v11646_v35, %v11645_v49  ;;  %v6327_v37 = vcombine.low %v11648_v46, %v11647_v6  ;;  %v5266_v49 = vpack.c.bf16 %v9922_v51, %v9922_v51 }
 0xfde   :  { %5610 = vmatprep.subr.bf16.mxu0 %v6286_v10  ;;  %5650 = vmatprep.subr.bf16.mxu1 %v6288_v41  ;;  %v6322_v10 = vcombine.high %v11650_v4, %v11649_v12  ;;  %v6324_v41 = vcombine.high %v11652_v8, %v11651_v55 }
 0xfe1   :  { %5611 = vmatpush1.bf16.msra.mxu0 %v6285_v1  ;;  %5651 = vmatpush1.bf16.msra.mxu1 %v6287_v62  ;;  %v6321_v1 = vcombine.low %v11650_v4, %v11649_v12  ;;  %v6323_v62 = vcombine.low %v11652_v8, %v11651_v55 }
 0xfe2   :  { %5612 = vmatprep.subr.bf16.mxu0 %v6282_v30  ;;  %5652 = vmatprep.subr.bf16.mxu1 %v6284_v45  ;;  %v6318_v30 = vcombine.high %v11654_v14, %v11653_v31  ;;  %v6320_v45 = vcombine.high %v11656_v16, %v11655_v15 }
 0xfe5   :  { %5613 = vmatpush1.bf16.msra.mxu0 %v6281_v20  ;;  %5653 = vmatpush1.bf16.msra.mxu1 %v6283_v40  ;;  %v6317_v20 = vcombine.low %v11654_v14, %v11653_v31  ;;  %v6319_v40 = vcombine.low %v11656_v16, %v11655_v15 }
 0xfe6   :  { %5614 = vmatprep.subr.bf16.mxu0 %v6278_v58  ;;  %5654 = vmatprep.subr.bf16.mxu1 %v6280_v19  ;;  %v6314_v58 = vcombine.high %v11658_v36, %v11657_v54  ;;  %v6316_v19 = vcombine.high %v11660_v17, %v11659_v2 }
 0xfe9   :  { %5615 = vmatpush1.bf16.msra.mxu0 %v6277_v22  ;;  %5655 = vmatpush1.bf16.msra.mxu1 %v6279_v63  ;;  %v6313_v22 = vcombine.low %v11658_v36, %v11657_v54  ;;  %v6315_v63 = vcombine.low %v11660_v17, %v11659_v2  ;;  %v5259_v54 = vrot.slane %v10535_v7, 6 }
 0xfea   :  { %5616 = vmatprep.subr.bf16.mxu0 %v6274_v38  ;;  %5656 = vmatprep.subr.bf16.mxu1 %v6276_v24  ;;  %v6310_v38 = vcombine.high %v11662_v28, %v11661_v26  ;;  %v6312_v24 = vcombine.high %v11664_v39, %v11663_v48 }
 0xfed   :  { %5617 = vmatpush1.bf16.msra.mxu0 %v6273_v32  ;;  %5657 = vmatpush1.bf16.msra.mxu1 %v6275_v18  ;;  %v6309_v32 = vcombine.low %v11662_v28, %v11661_v26  ;;  %v6311_v18 = vcombine.low %v11664_v39, %v11663_v48 }
 0xfee   :  { %5618 = vmatprep.subr.bf16.mxu0 %v6270_v61  ;;  %5658 = vmatprep.subr.bf16.mxu1 %v6272_v59  ;;  %v6306_v61 = vcombine.high %v11666_v3, %v11665_v43  ;;  %v6308_v59 = vcombine.high %v11668_v50, %v11667_v33 }
 0xff1   :  { %5619 = vmatpush1.bf16.msra.mxu0 %v6269_v60  ;;  %5659 = vmatpush1.bf16.msra.mxu1 %v6271_v27  ;;  %v6305_v60 = vcombine.low %v11666_v3, %v11665_v43  ;;  %v6307_v27 = vcombine.low %v11668_v50, %v11667_v33  ;;  %v11673_v50 = vld [vmem:[#allocation202_spill] sm:$0xff] }
 0xff2   :  { %5620 = vmatprep.subr.bf16.mxu0 %v6330_v57  ;;  %5660 = vmatprep.subr.bf16.mxu1 %v6332_v9  ;;  %v6302_v57 = vcombine.high %v11670_v11, %v11669_v53  ;;  %v6304_v9 = vcombine.high %v11672_v47, %v11671_v21 }
 0xff5   :  { %5621 = vmatpush2.bf16.msra.mxu0 %v6329_v25  ;;  %5661 = vmatpush2.bf16.msra.mxu1 %v6331_v44  ;;  %v6301_v25 = vcombine.low %v11670_v11, %v11669_v53  ;;  %v6303_v44 = vcombine.low %v11672_v47, %v11671_v21 }
 0xff6   :  { %5622 = vmatprep.subr.bf16.mxu0 %v6326_v42  ;;  %5662 = vmatprep.subr.bf16.mxu1 %v6328_v34 }
 0xff9   :  { %5623 = vmatpush2.bf16.msra.mxu0 %v6325_v5  ;;  %5663 = vmatpush2.bf16.msra.mxu1 %v6327_v37 }
 0xffa   :  { %5624 = vmatprep.subr.bf16.mxu0 %v6322_v10  ;;  %5664 = vmatprep.subr.bf16.mxu1 %v6324_v41 }
 0xffd   :  { %5625 = vmatpush2.bf16.msra.mxu0 %v6321_v1  ;;  %5665 = vmatpush2.bf16.msra.mxu1 %v6323_v62 }
 0xffe   :  { %5626 = vmatprep.subr.bf16.mxu0 %v6318_v30  ;;  %5666 = vmatprep.subr.bf16.mxu1 %v6320_v45 }
0x1001   :  { %5627 = vmatpush2.bf16.msra.mxu0 %v6317_v20  ;;  %5667 = vmatpush2.bf16.msra.mxu1 %v6319_v40 }
0x1002   :  { %5628 = vmatprep.subr.bf16.mxu0 %v6314_v58  ;;  %5668 = vmatprep.subr.bf16.mxu1 %v6316_v19 }
0x1005   :  { %5629 = vmatpush2.bf16.msra.mxu0 %v6313_v22  ;;  %5669 = vmatpush2.bf16.msra.mxu1 %v6315_v63  ;;  %v5267_v63 = vld [vmem:[%s10883_s9] sm:$0xf] }
0x1006   :  { %5630 = vmatprep.subr.bf16.mxu0 %v6310_v38  ;;  %5670 = vmatprep.subr.bf16.mxu1 %v6312_v24  ;;  %v5272_v26 = vrot.slane %v5267_v63, %v11483_v29 }
0x1009   :  { %5631 = vmatpush2.bf16.msra.mxu0 %v6309_v32  ;;  %5671 = vmatpush2.bf16.msra.mxu1 %v6311_v18  ;;  %v5280_v18 = vrot.slane %v5267_v63, %v8433_v52 }
0x100a   :  { %5632 = vmatprep.subr.bf16.mxu0 %v6306_v61  ;;  %5672 = vmatprep.subr.bf16.mxu1 %v6308_v59  ;;  %v5276_v59 = vrot.slane %v5267_v63, %v11673_v50  ;;  %v5774_v63 = vld [vmem:[%s10886_s12 + $0xa0] sm:$0xff] }
0x100b   :  { %v5884_v50 = vld [vmem:[%s10888_s14 + $0x60] sm:$0xff] }
0x100d   :  { %5633 = vmatpush2.bf16.msra.mxu0 %v6305_v60  ;;  %5673 = vmatpush2.bf16.msra.mxu1 %v6307_v27 }
0x100e   :  { %5634 = vmatprep.subr.bf16.mxu0 %v6302_v57  ;;  %5674 = vmatprep.subr.bf16.mxu1 %v6304_v9 }
0x1011   :  { %5635 = vmatpush2.bf16.msra.mxu0 %v6301_v25  ;;  %5675 = vmatpush2.bf16.msra.mxu1 %v6303_v44 }
0x1014   :  { %5637 = vmatmul.mubr.bf16.vlgmr.msra.gmra.mxu0 %v5266_v49  ;;  %5677 = vmatmul.mubr.bf16.vlgmr.msra.gmra.mxu1 %v5266_v49 }
0x1094   :  { %v5175_v35 = vpop.f32.mrf.mxu0  ;;  %v5216_v42 = vpop.f32.mrf.mxu1 }
0x1095   :  { %v5227_v6 = vrot.slane %v5175_v35, 2  ;;  %v5229_v31 = vrot.slane %v5216_v42, 2 }
0x1096   :  { %v5177_v46 = vpop.f32.mrf.mxu0  ;;  %v5218_v34 = vpop.f32.mrf.mxu1 }
0x1097   :  { %v5235_v5 = vadd.f32 %v5227_v6, %v10261_v13  ;;  %v5228_v37 = vrot.slane %v5177_v46, 2  ;;  %v5230_v1 = vrot.slane %v5218_v34, 2  ;;  %v5237_v15 = vadd.f32 %v5229_v31, %v10263_v0  ;;  %v5785_v34 = vld [vmem:[%s10886_s12 + $0xf8] sm:$0xff] }
0x1098   :  { %v5179_v12 = vpop.f32.mrf.mxu0  ;;  %v5220_v4 = vpop.f32.mrf.mxu1  ;;  %6340 = vmatprep.subr.mxu0 %v5785_v34 }
0x1099   :  { %v6266_v10 = vmul.f32 -1.442695, %v5235_v5  ;;  %v5236_v55 = vadd.f32 %v5228_v37, %v10265_v56  ;;  %v5238_v62 = vadd.f32 %v5230_v1, %v10267_v23  ;;  %v5769_v5 = vld [vmem:[%s10886_s12 + $0x78] sm:$0xff]  ;;  %v5784_v37 = vld [vmem:[%s10886_s12 + $0xf0] sm:$0xff]  ;;  %v5783_v4 = vld [vmem:[%s10886_s12 + $0xe8] sm:$0xff] }
0x109a   :  { %v5180_v8 = vpop.f32.mrf.mxu0  ;;  %v5221_v41 = vpop.f32.mrf.mxu1  ;;  %v5768_v12 = vld [vmem:[%s10886_s12 + $0x70] sm:$0xff]  ;;  %6341 = vmatpush3.msra.mxu0 %v5769_v5 }
0x109b   :  { %7031 = vpow2.f32 %v6266_v10  ;;  %v6267_v51 = vmul.f32 -1.442695, %v5236_v55  ;;  %v6268_v14 = vmul.f32 -1.442695, %v5238_v62  ;;  %6342 = vmatprep.subr.mxu0 %v5784_v37 }
0x109c   :  { %6343 = vmatpush3.msra.mxu0 %v5768_v12 }
0x109d   :  { %7033 = vpow2.f32 %v6267_v51  ;;  %6344 = vmatprep.subr.mxu0 %v5783_v4 }
0x109e   :  { %7035 = vpow2.f32 %v6268_v14 }
0x10a8   :  { %v7032_v30 = vpop.eup %7031 }
0x10a9   :  { %v5242_v13 = vadd.f32 1.0, %v7032_v30  ;;  %v5767_v30 = vld [vmem:[%s10886_s12 + $0x68] sm:$0xff] }
0x10aa   :  { %v7034_v16 = vpop.eup %7033  ;;  %6345 = vmatpush3.msra.mxu0 %v5767_v30  ;;  %v6335_v30 = vld [vmem:[%s10887_s13] ss:$0 sm:$0xff] }
0x10ab   :  { %7037 = vrcp.f32 %v5242_v13  ;;  %v5248_v45 = vadd.f32 1.0, %v7034_v16  ;;  %v7036_v56 = vpop.eup %7035  ;;  %v5766_v13 = vld [vmem:[%s10886_s12 + $0x60] sm:$0xff]  ;;  %v5781_v16 = vld [vmem:[%s10886_s12 + $0xd8] sm:$0xff] }
0x10ac   :  { %7039 = vtanh.f32 %v5237_v15  ;;  %v5255_v58 = vadd.f32 1.0, %v7036_v56  ;;  %v5782_v15 = vld [vmem:[%s10886_s12 + $0xe0] sm:$0xff]  ;;  %v5780_v56 = vld [vmem:[%s10886_s12 + $0xd0] sm:$0xff] }
0x10ad   :  { %7041 = vrcp.f32 %v5248_v45  ;;  %6346 = vmatprep.subr.mxu0 %v5782_v15  ;;  %v5765_v45 = vld [vmem:[%s10886_s12 + $0x58] sm:$0xff] }
0x10ae   :  { %7043 = vrcp.f32 %v5255_v58  ;;  %6347 = vmatpush3.msra.mxu0 %v5766_v13  ;;  %v5762_v58 = vld [vmem:[%s10886_s12 + $0x40] sm:$0xff] }
0x10af   :  { %6348 = vmatprep.subr.mxu0 %v5781_v16 }
0x10b0   :  { %6349 = vmatpush3.msra.mxu0 %v5765_v45 }
0x10b1   :  { %6350 = vmatprep.subr.mxu0 %v5780_v56 }
0x10b8   :  { %v7038_v20 = vpop.eup %7037 }
0x10b9   :  { %v7040_v40 = vpop.eup %7039 }
0x10ba   :  { %v7042_v36 = vpop.eup %7041  ;;  %v5262_v23 = vmul.f32 %v7040_v40, %v7038_v20  ;;  %v5764_v20 = vld [vmem:[%s10886_s12 + $0x50] sm:$0xff]  ;;  %v5779_v40 = vld [vmem:[%s10886_s12 + $0xc8] sm:$0xff] }
0x10bb   :  { %v5261_v2 = vmul.f32 %v7042_v36, %v5259_v54  ;;  %v7044_v0 = vpop.eup %7043  ;;  %v5763_v54 = vld [vmem:[%s10886_s12 + $0x48] sm:$0xff]  ;;  %6351 = vmatpush3.msra.mxu0 %v5764_v20  ;;  %v5778_v36 = vld [vmem:[%s10886_s12 + $0xc0] sm:$0xff] }
0x10bc   :  { %6352 = vmatprep.subr.mxu0 %v5779_v40  ;;  %v6336_v20 = vld [vmem:[%s10889_s15] ss:$0 sm:$0xff] }
0x10bd   :  { %v5263_v17 = vadd.f32 %v5262_v23, %v5261_v2  ;;  %6353 = vmatpush3.msra.mxu0 %v5763_v54  ;;  %v5777_v23 = vld [vmem:[%s10886_s12 + $0xb8] sm:$0xff] }
0x10be   :  { %6354 = vmatprep.subr.mxu0 %v5778_v36  ;;  %v5761_v2 = vld [vmem:[%s10886_s12 + $0x38] sm:$0xff] }
0x10bf   :  { %7045 = vtanh.f32 %v5263_v17  ;;  %6355 = vmatpush3.msra.mxu0 %v5762_v58  ;;  %v5776_v17 = vld [vmem:[%s10886_s12 + $0xb0] sm:$0xff]  ;;  %v6337_v58 = vld [vmem:[%s10890_s16] ss:$0 sm:$0xff] }
0x10c0   :  { %6356 = vmatprep.subr.mxu0 %v5777_v23 }
0x10c1   :  { %6357 = vmatpush3.msra.mxu0 %v5761_v2 }
0x10c2   :  { %6358 = vmatprep.subr.mxu0 %v5776_v17 }
0x10cc   :  { %v7046_v19 = vpop.eup %7045 }
0x10cd   :  { %v5265_v22 = vmul.f32 %v7046_v19, %v7044_v0  ;;  %v5760_v0 = vld [vmem:[%s10886_s12 + $0x30] sm:$0xff]  ;;  %v5775_v19 = vld [vmem:[%s10886_s12 + $0xa8] sm:$0xff] }
0x10ce   :  { %6359 = vmatpush3.msra.mxu0 %v5760_v0  ;;  %v6338_v0 = vld [vmem:[#allocation5] ss:$0 sm:$0xff] }
0x10cf   :  { %v5705_v42 = vsel %vm5704_vm1, %v5265_v22, 0.0  ;;  %6360 = vmatprep.subr.mxu0 %v5775_v19 }
0x10d4   :  { %v5638_v28 = vpop.f32.mrf.mxu0  ;;  %v5678_v38 = vpop.f32.mrf.mxu1 }
0x10d5   :  { %v5639_v48 = vadd.f32 %v5638_v28, %v5272_v26  ;;  %v5679_v27 = vadd.f32 %v5678_v38, %v5276_v59  ;;  %v5758_v26 = vld [vmem:[%s10886_s12 + $0x20] sm:$0xff]  ;;  %v5773_v28 = vld [vmem:[%s10886_s12 + $0x98] sm:$0xff] }
0x10d6   :  { %v5640_v7 = vpop.f32.mrf.mxu0  ;;  %v5680_v39 = vpop.f32.mrf.mxu1  ;;  %v5757_v38 = vld [vmem:[%s10886_s12 + $0x18] sm:$0xff] }
0x10d7   :  { %v6333_v24 = vmul.f32 -1.442695, %v5639_v48  ;;  %v5681_v33 = vadd.f32 %v5680_v39, %v5280_v18  ;;  %v5772_v48 = vld [vmem:[%s10886_s12 + $0x90] sm:$0xff]  ;;  %v5771_v39 = vld [vmem:[%s10886_s12 + $0x88] sm:$0xff]  ;;  %v5754_v18 = vld [vmem:[%s10886_s12] sm:$0xff] }
0x10d8   :  { %v5641_v32 = vpop.f32.mrf.mxu0  ;;  %v5682_v43 = vpop.f32.mrf.mxu1  ;;  %v5756_v7 = vld [vmem:[%s10886_s12 + $0x10] sm:$0xff]  ;;  %v5883_v59 = vld [vmem:[%s10888_s14 + $0x58] sm:$0xff] }
0x10d9   :  { %7047 = vpow2.f32 %v6333_v24  ;;  %v6334_v60 = vmul.f32 -1.442695, %v5681_v33  ;;  %v5755_v24 = vld [vmem:[%s10886_s12 + $0x8] sm:$0xff]  ;;  %v5770_v32 = vld [vmem:[%s10886_s12 + $0x80] sm:$0xff]  ;;  %v5887_v43 = vld [vmem:[%s10888_s14 + $0x78] sm:$0xff] }
0x10da   :  { %v5642_v3 = vpop.f32.mrf.mxu0  ;;  %v5683_v61 = vpop.f32.mrf.mxu1  ;;  %v5885_v33 = vld [vmem:[%s10888_s14 + $0x68] sm:$0xff] }
0x10db   :  { %7049 = vpow2.f32 %v6334_v60  ;;  %v7079_v3 = vmov 0.0   ;;  %v5886_v61 = vld [vmem:[%s10888_s14 + $0x70] sm:$0xff] }
0x10dc   :  { %7051 = vtanh.f32 %v5679_v27  ;;  %6392 = vmatprep.subr.mxu1 %v7079_v3  ;;  %v5882_v60 = vld [vmem:[%s10888_s14 + $0x50] sm:$0xff]  ;;  %v5881_v27 = vld [vmem:[%s10888_s14 + $0x48] sm:$0xff]  ;;  %6424 = vmatprep.mubr.msk.f32.mxu1 %vm7080_vm2, %v7079_v3 }
0x10dd   :  { %6393 = vmatpush3.msra.mxu1 %v5887_v43 }
0x10de   :  { %6394 = vmatprep.subr.mxu1 %v7079_v3 }
0x10df   :  { %6395 = vmatpush3.msra.mxu1 %v5886_v61 }
0x10e0   :  { %6396 = vmatprep.subr.mxu1 %v7079_v3 }
0x10e1   :  { %6397 = vmatpush3.msra.mxu1 %v5885_v33 }
0x10e2   :  { %6398 = vmatprep.subr.mxu1 %v7079_v3 }
0x10e3   :  { %6399 = vmatpush3.msra.mxu1 %v5884_v50 }
0x10e4   :  { %6400 = vmatprep.subr.mxu1 %v7079_v3 }
0x10e5   :  { %6401 = vmatpush3.msra.mxu1 %v5883_v59 }
0x10e6   :  { %v7048_v53 = vpop.eup %7047  ;;  %6402 = vmatprep.subr.mxu1 %v7079_v3 }
0x10e7   :  { %v5688_v11 = vadd.f32 1.0, %v7048_v53  ;;  %6403 = vmatpush3.msra.mxu1 %v5882_v60  ;;  %v5880_v53 = vld [vmem:[%s10888_s14 + $0x40] sm:$0xff] }
0x10e8   :  { %v7050_v57 = vpop.eup %7049  ;;  %6404 = vmatprep.subr.mxu1 %v7079_v3 }
0x10e9   :  { %7053 = vrcp.f32 %v5688_v11  ;;  %v5695_v21 = vadd.f32 1.0, %v7050_v57  ;;  %v7052_v47 = vpop.eup %7051  ;;  %6405 = vmatpush3.msra.mxu1 %v5881_v27  ;;  %v5879_v11 = vld [vmem:[%s10888_s14 + $0x38] sm:$0xff]  ;;  %v5878_v57 = vld [vmem:[%s10888_s14 + $0x30] sm:$0xff] }
0x10ea   :  { %6406 = vmatprep.subr.mxu1 %v7079_v3 }
0x10eb   :  { %7055 = vrcp.f32 %v5695_v21  ;;  %6407 = vmatpush3.msra.mxu1 %v5880_v53  ;;  %v5877_v21 = vld [vmem:[%s10888_s14 + $0x28] sm:$0xff] }
0x10ec   :  { %6408 = vmatprep.subr.mxu1 %v7079_v3 }
0x10ed   :  { %6409 = vmatpush3.msra.mxu1 %v5879_v11 }
0x10ee   :  { %6410 = vmatprep.subr.mxu1 %v7079_v3 }
0x10ef   :  { %6411 = vmatpush3.msra.mxu1 %v5878_v57 }
0x10f0   :  { %6412 = vmatprep.subr.mxu1 %v7079_v3 }
0x10f1   :  { %6413 = vmatpush3.msra.mxu1 %v5877_v21 }
0x10f2   :  { %6414 = vmatprep.subr.mxu1 %v7079_v3 }
0x10f6   :  { %v7054_v9 = vpop.eup %7053 }
0x10f7   :  { %v5698_v25 = vmul.f32 %v7054_v9, %v7052_v47 }
0x10f8   :  { %v7056_v52 = vpop.eup %7055 }
0x10f9   :  { %7057 = vtanh.f32 %v5698_v25 }
0x1106   :  { %v7058_v44 = vpop.eup %7057 }
0x1107   :  { %v5700_v49 = vmul.f32 %v7058_v44, %v7056_v52  ;;  %v5726_v52 = vld [vmem:[%s10884_s10] sm:$0x3] }
0x1108   :  { %v5740_v44 = vld [vmem:[%s10885_s11] sm:$0x3] }
0x1109   :  { %v5702_v35 = vrot.slane %v5700_v49, 2  ;;  %v5731_v49 = vrot.slane %v5726_v52, %v11483_v29  ;;  %v5745_v34 = vrot.slane %v5740_v44, %v11483_v29  ;;  %v5875_v29 = vld [vmem:[%s10888_s14 + $0x18] sm:$0xff] }
0x110b   :  { %v5706_v6 = vsel %vm5704_vm1, %v5702_v35, 0.0 }
0x110c   :  { %v5707_v46 = vadd.f32 %v5706_v6, %v5705_v42 }
0x110e   :  { %5708 = vadd.xlane.f32.xlu0 %v5707_v46 }
0x1197   :  { %v5709_v10 = vpop.xlane.xlu0 %5708 }
0x1198   :  { %v5711_v55 = vmul.f32 0.00390625, %v5709_v10 }
0x119a   :  { %v10694_v8 = vsub.f32 %v5265_v22, %v5711_v55  ;;  %v10696_v41 = vsub.f32 %v5702_v35, %v5711_v55  ;;  %v5759_v22 = vld [vmem:[%s10886_s12 + $0x28] sm:$0xff]  ;;  %v11674_v35 = vld [vmem:[#allocation201_spill] sm:$0xff] }
0x119b   :  { %6361 = vmatpush3.msra.mxu0 %v5759_v22  ;;  %v5735_v42 = vrot.slane %v5726_v52, %v11674_v35  ;;  %v5749_v5 = vrot.slane %v5740_v44, %v11674_v35 }
0x119c   :  { %v5714_v51 = vmul.f32 %v10694_v8, %v10694_v8  ;;  %v5715_v1 = vmul.f32 %v10696_v41, %v10696_v41  ;;  %6362 = vmatprep.subr.mxu0 %v5774_v63 }
0x119d   :  { %6363 = vmatpush3.msra.mxu0 %v5758_v26 }
0x119e   :  { %v5716_v62 = vsel %vm5704_vm1, %v5714_v51, 0.0  ;;  %v5717_v31 = vsel %vm5704_vm1, %v5715_v1, 0.0  ;;  %6364 = vmatprep.subr.mxu0 %v5773_v28 }
0x119f   :  { %v5718_v14 = vadd.f32 %v5717_v31, %v5716_v62  ;;  %6365 = vmatpush3.msra.mxu0 %v5757_v38  ;;  %v5876_v62 = vld [vmem:[%s10888_s14 + $0x20] sm:$0xff] }
0x11a0   :  { %6366 = vmatprep.subr.mxu0 %v5772_v48  ;;  %6415 = vmatpush3.msra.mxu1 %v5876_v62  ;;  %v5872_v31 = vld [vmem:[%s10888_s14] sm:$0xff] }
0x11a1   :  { %5719 = vadd.xlane.f32.xlu0 %v5718_v14  ;;  %6367 = vmatpush3.msra.mxu0 %v5756_v7 }
0x11a2   :  { %6368 = vmatprep.subr.mxu0 %v5771_v39  ;;  %6416 = vmatprep.subr.mxu1 %v7079_v3 }
0x11a3   :  { %6369 = vmatpush3.msra.mxu0 %v5755_v24  ;;  %6417 = vmatpush3.msra.mxu1 %v5875_v29 }
0x11a4   :  { %6370 = vmatprep.subr.mxu0 %v5770_v32  ;;  %6418 = vmatprep.subr.mxu1 %v7079_v3 }
0x11a5   :  { %6371 = vmatpush3.msra.mxu0 %v5754_v18 }
0x122a   :  { %v5720_v47 = vpop.xlane.xlu0 %5719 }
0x122b   :  { %v5721_v9 = vmul.f32 0.00390625, %v5720_v47 }
0x122d   :  { %v5722_v25 = vadd.f32 1e-05, %v5721_v9 }
0x122f   :  { %7059 = vrsqrt.f32 %v5722_v25 }
0x123c   :  { %v7060_v6 = vpop.eup %7059 }
0x123d   :  { %v5725_v46 = vmul.f32 %v7060_v6, %v10696_v41  ;;  %v5724_v37 = vmul.f32 %v7060_v6, %v10694_v8  ;;  %v5874_v8 = vld [vmem:[%s10888_s14 + $0x10] sm:$0xff]  ;;  %v5873_v41 = vld [vmem:[%s10888_s14 + $0x8] sm:$0xff] }
0x123e   :  { %6419 = vmatpush3.msra.mxu1 %v5874_v8 }
0x123f   :  { %v5739_v12 = vmul.f32 %v5735_v42, %v5725_v46  ;;  %v5738_v4 = vmul.f32 %v5731_v49, %v5724_v37  ;;  %6420 = vmatprep.subr.mxu1 %v7079_v3 }
0x1240   :  { %6421 = vmatpush3.msra.mxu1 %v5873_v41 }
0x1241   :  { %v5753_v10 = vadd.f32 %v5749_v5, %v5739_v12  ;;  %v5752_v55 = vadd.f32 %v5745_v34, %v5738_v4  ;;  %6422 = vmatprep.subr.mxu1 %v7079_v3 }
0x1242   :  { %6423 = vmatpush3.msra.mxu1 %v5872_v31 }
0x1243   :  { %v5796_v51 = vrot.slane %v5753_v10, 6  ;;  %v5795_v1 = vrot.slane %v5752_v55, 6 }
0x1245   :  { %5863 = vmatprep.mubr.f32.mxu0 %v5796_v51 }
0x1246   :  { %5864 = vmatmul.mubr.f32.vlgmr.msra.gmra.mxu0 %v5795_v1 }
0x1306   :  { %v6372_v14 = vpop.f32.mrf.mxu0 }
0x1308   :  { %v6373_v15 = vpop.f32.mrf.mxu0 }
0x1309   :  { %v6374_v13 = vadd.f32 %v6373_v15, %v6372_v14 }
0x130b   :  { %v5866_v16 = vadd.f32 %v6374_v13, %v6335_v30 }
0x130d   :  { %v5870_v45 = vmul.f32 0.01, %v5866_v16  ;;  %vm5869_vm3 = vcmp.ge.f32.partialorder %v5866_v16, 0.0 }
0x130f   :  { %v5871_v56 = vsel %vm5869_vm3, %v5866_v16, %v5870_v45 }
0x1310   :  { %6425 = vmatmul.mubr.f32.vlgmr.msra.gmra.mxu1 %v5871_v56 }
0x13d0   :  { %v5961_v40 = vpop.f32.mrf.mxu1 }
0x13d1   :  { %v5962_v54 = vadd.f32 %v6336_v20, %v5961_v40 }
0x13d2   :  { %v6426_v36 = vpop.f32.mrf.mxu1 }
0x13d3   :  { %v5965_v23 = vmax.f32 %v5962_v54, 0.0 }
0x13d5   :  { %v5973_v2 = vmul.f32 %v6337_v58, %v5965_v23 }
0x13d7   :  { %v5975_v17 = vsel %vm5974_vm4, %v5973_v2, 0.0 }
0x13d8   :  { %5976 = vadd.xlane.f32.xlu1 %v5975_v17 }
0x1461   :  { %v5977_v19 = vpop.xlane.xlu1 %5976 }
0x1462   :  { %v5985_v22 = vadd.f32 %v6338_v0, %v5977_v19 }
0x1464   :  { %5987 = vst.msk [vmem:[%s10892_s18] sm:$0x3] %vm5986_vm5, %v5985_v22 }
0x1465   :  { %5992 = vsyncpa [#allocation7], 1 }
0x1466   :  { %5993 = vsyncmov [#allocation4] }
0x1469   :  { %s5994_s15 = vpop.sfrf %5993 }
0x146a   :  { %p6339_p5 = scmp.ne.s32.totalorder %s5994_s15, 0 }
0x146c   :  { %5998 = shalt.err (%p6339_p5)  }

</bundles_post_ra>
